<compile_context>
chip_gen: v7x
topology: tpu7x:2x2x1
jax: 0.10.0
libtpu: 0.0.40
codegen_flags: <defaults>
</compile_context>

<pallas_src>
import functools
import math

import jax
import jax.numpy as jnp
from jax.experimental import pallas as pl
from jax.experimental.pallas import tpu as pltpu

LN_EPS = 1e-5
_MIB = 1024 * 1024


def _nbytes(shape, dtype):
    return math.prod(shape) * jnp.dtype(dtype).itemsize


def _vmem_limit(block_bytes, scratch_bytes=0):
    # double-buffered blocks + scratch, with headroom; clamp to a safe range.
    est = 3 * block_bytes + scratch_bytes
    return int(min(48 * _MIB, max(24 * _MIB, est)))


# ----------------------------------------------------------------------------
# Kernel 1: graph-guided embedding mixing + embedding sum + LayerNorm
# ----------------------------------------------------------------------------
def _embed_mix_ln_kernel(nodes_ref, token_ref, attn_ref, wemb_ref, pemb_ref,
                         tte_ref, g_ref, b_ref, out_ref):
    eb = wemb_ref[0]                                   # (L, D) bf16 word embeddings
    e = eb.astype(jnp.float32)
    nod = nodes_ref[0].astype(jnp.float32)             # (1, L) lane-dense node mask
    tok = token_ref[0].astype(jnp.float32)             # (1, L) lane-dense token mask
    am = attn_ref[0].astype(jnp.float32)               # (L, L) attention mask
    L = am.shape[0]

    # Row-normalised token&attn mixing matrix (nodes factor folded in below).
    tm = tok * am
    r = tm / (jnp.sum(tm, axis=-1, keepdims=True) + 1e-10)
    avg = jnp.dot(r.astype(jnp.bfloat16), eb, preferred_element_type=jnp.float32)

    # diag(nodes) built lane-dense (no (L,1) mask DMA / lane->sublane transpose);
    # mixed = e + diag(n) @ (avg - e)  ==  e*(1-n) + avg*n   row-wise.
    row = jax.lax.broadcasted_iota(jnp.int32, (L, L), 0)
    col = jax.lax.broadcasted_iota(jnp.int32, (L, L), 1)
    dn = jnp.where(row == col, nod, 0.0)
    mixed = e + jnp.dot(dn.astype(jnp.bfloat16), (avg - e).astype(jnp.bfloat16),
                        preferred_element_type=jnp.float32)

    emb = mixed + pemb_ref[0].astype(jnp.float32) + tte_ref[...].astype(jnp.float32)
    # one-pass LN statistics
    mu = jnp.mean(emb, axis=-1, keepdims=True)
    var = jnp.mean(emb * emb, axis=-1, keepdims=True) - mu * mu
    normed = (emb - mu) * jax.lax.rsqrt(var + LN_EPS)
    out_ref[0] = normed * g_ref[...] + b_ref[...]


def embed_mix_ln(nodes_i8, token_i8, attn_i8, wemb, pemb, tte, g, b):
    B, L, D = wemb.shape
    blk_bytes = (2 * _nbytes((1, 1, L), jnp.int8) + _nbytes((1, L, L), jnp.int8)
                 + 2 * _nbytes((1, L, D), jnp.bfloat16) + _nbytes((1, D), jnp.bfloat16)
                 + 2 * _nbytes((1, D), jnp.float32) + _nbytes((1, L, D), jnp.float32))
    return pl.pallas_call(
        _embed_mix_ln_kernel,
        out_shape=jax.ShapeDtypeStruct((B, L, D), jnp.float32),
        grid=(B,),
        in_specs=[
            pl.BlockSpec((1, 1, L), lambda i: (i, 0, 0)),
            pl.BlockSpec((1, 1, L), lambda i: (i, 0, 0)),
            pl.BlockSpec((1, L, L), lambda i: (i, 0, 0)),
            pl.BlockSpec((1, L, D), lambda i: (i, 0, 0)),
            pl.BlockSpec((1, L, D), lambda i: (i, 0, 0)),
            pl.BlockSpec((1, D), lambda i: (0, 0)),
            pl.BlockSpec((1, D), lambda i: (0, 0)),
            pl.BlockSpec((1, D), lambda i: (0, 0)),
        ],
        out_specs=pl.BlockSpec((1, L, D), lambda i: (i, 0, 0)),
        compiler_params=pltpu.CompilerParams(
            dimension_semantics=("parallel",),
            vmem_limit_bytes=_vmem_limit(blk_bytes)),
    )(nodes_i8, token_i8, attn_i8, wemb, pemb, tte, g, b)


# ----------------------------------------------------------------------------
# Kernel 2: attention block (MHA + residual + LN1)
# ----------------------------------------------------------------------------
def _attn_kernel(h_ref, mask_ref, wq_ref, bq_ref, wk_ref, bk_ref, wv_ref, bv_ref,
                 wo_ref, bo_ref, g_ref, b_ref, out_ref, ctx_ref,
                 *, num_heads, head_dim):
    h = h_ref[0]                                       # (L, D) f32
    hb = h.astype(jnp.bfloat16)
    q = jnp.dot(hb, wq_ref[...], preferred_element_type=jnp.float32) + bq_ref[...]
    k = jnp.dot(hb, wk_ref[...], preferred_element_type=jnp.float32) + bk_ref[...]
    v = jnp.dot(hb, wv_ref[...], preferred_element_type=jnp.float32) + bv_ref[...]

    # Additive bias formed in-kernel from the int8 mask.
    bias = (1.0 - mask_ref[0].astype(jnp.float32)) * -10000.0
    scale = 1.0 / math.sqrt(head_dim)

    for hidx in range(num_heads):
        lo = hidx * head_dim
        qh = q[:, lo:lo + head_dim].astype(jnp.bfloat16)
        kh = k[:, lo:lo + head_dim].astype(jnp.bfloat16)
        vh = v[:, lo:lo + head_dim].astype(jnp.bfloat16)
        s = jax.lax.dot_general(qh, kh, (((1,), (1,)), ((), ())),
                                preferred_element_type=jnp.float32)
        s = s * scale + bias
        s = s - jnp.max(s, axis=-1, keepdims=True)
        p = jnp.exp(s)
        p = p * pl.reciprocal(jnp.sum(p, axis=-1, keepdims=True), approx=True)
        # per-head context goes straight into the VMEM scratch (no concatenate)
        ctx_ref[:, lo:lo + head_dim] = jnp.dot(p.astype(jnp.bfloat16), vh,
                                               preferred_element_type=jnp.float32)

    attn = jnp.dot(ctx_ref[...].astype(jnp.bfloat16), wo_ref[...],
                   preferred_element_type=jnp.float32) + bo_ref[...]
    y = h + attn
    mu = jnp.mean(y, axis=-1, keepdims=True)
    var = jnp.mean(y * y, axis=-1, keepdims=True) - mu * mu
    out_ref[0] = ((y - mu) * jax.lax.rsqrt(var + LN_EPS)) * g_ref[...] + b_ref[...]


def attention_block(h, mask_i8, p, num_heads):
    B, L, D = h.shape
    head_dim = D // num_heads
    kern = functools.partial(_attn_kernel, num_heads=num_heads, head_dim=head_dim)

    def rep2(shape):
        return pl.BlockSpec(shape, lambda i: (0, 0))

    blk_bytes = (2 * _nbytes((1, L, D), jnp.float32) + _nbytes((1, L, L), jnp.int8)
                 + 4 * _nbytes((D, D), jnp.bfloat16) + 6 * _nbytes((1, D), jnp.float32))
    return pl.pallas_call(
        kern,
        out_shape=jax.ShapeDtypeStruct((B, L, D), jnp.float32),
        grid=(B,),
        in_specs=[
            pl.BlockSpec((1, L, D), lambda i: (i, 0, 0)),
            pl.BlockSpec((1, L, L), lambda i: (i, 0, 0)),
            rep2((D, D)), rep2((1, D)),      # wq, bq
            rep2((D, D)), rep2((1, D)),      # wk, bk
            rep2((D, D)), rep2((1, D)),      # wv, bv
            rep2((D, D)), rep2((1, D)),      # wo, bo
            rep2((1, D)), rep2((1, D)),      # ln1 gamma, beta
        ],
        out_specs=pl.BlockSpec((1, L, D), lambda i: (i, 0, 0)),
        scratch_shapes=[pltpu.VMEM((L, D), jnp.float32)],
        compiler_params=pltpu.CompilerParams(
            dimension_semantics=("parallel",),
            vmem_limit_bytes=_vmem_limit(blk_bytes, _nbytes((L, D), jnp.float32))),
    )(h, mask_i8, p["wq"], p["bq"], p["wk"], p["bk"], p["wv"], p["bv"],
      p["wo"], p["bo"], p["ln1g"], p["ln1b"])


# ----------------------------------------------------------------------------
# Kernel 3: FFN block (gelu MLP tiled over I) + residual + LN2
# ----------------------------------------------------------------------------
def _ffn_kernel(h_ref, wi_ref, bi_ref, wo2_ref, bo2_ref, g_ref, b_ref,
                out_ref, acc_ref):
    c = pl.program_id(1)

    @pl.when(c == 0)
    def _():
        acc_ref[...] = jnp.zeros_like(acc_ref)

    h = h_ref[0]                                       # (L, D) f32 (resident across chunks)
    t = jnp.dot(h.astype(jnp.bfloat16), wi_ref[...],
                preferred_element_type=jnp.float32) + bi_ref[...]
    # TODO(synk): RoBERTa uses exact erf-GELU; tanh-approx GELU used here (EUP-friendly).
    t = jax.nn.gelu(t, approximate=True)
    acc_ref[...] += jnp.dot(t.astype(jnp.bfloat16), wo2_ref[...],
                            preferred_element_type=jnp.float32)

    @pl.when(c == pl.num_programs(1) - 1)
    def _():
        y = h + acc_ref[...] + bo2_ref[...]
        mu = jnp.mean(y, axis=-1, keepdims=True)
        var = jnp.mean(y * y, axis=-1, keepdims=True) - mu * mu
        out_ref[0] = ((y - mu) * jax.lax.rsqrt(var + LN_EPS)) * g_ref[...] + b_ref[...]


def ffn_block(h, p, i_tile=512):
    B, L, D = h.shape
    I = p["wi"].shape[1]
    it = min(i_tile, I)
    assert I % it == 0, "intermediate dim must be divisible by the FFN tile"
    nc = I // it

    blk_bytes = (2 * _nbytes((1, L, D), jnp.float32) + _nbytes((D, it), jnp.bfloat16)
                 + _nbytes((it, D), jnp.bfloat16) + _nbytes((1, it), jnp.float32)
                 + 3 * _nbytes((1, D), jnp.float32))
    return pl.pallas_call(
        _ffn_kernel,
        out_shape=jax.ShapeDtypeStruct((B, L, D), jnp.float32),
        grid=(B, nc),
        in_specs=[
            pl.BlockSpec((1, L, D), lambda b, c: (b, 0, 0)),
            pl.BlockSpec((D, it), lambda b, c: (0, c)),
            pl.BlockSpec((1, it), lambda b, c: (0, c)),
            pl.BlockSpec((it, D), lambda b, c: (c, 0)),
            pl.BlockSpec((1, D), lambda b, c: (0, 0)),
            pl.BlockSpec((1, D), lambda b, c: (0, 0)),
            pl.BlockSpec((1, D), lambda b, c: (0, 0)),
        ],
        out_specs=pl.BlockSpec((1, L, D), lambda b, c: (b, 0, 0)),
        scratch_shapes=[pltpu.VMEM((L, D), jnp.float32)],
        compiler_params=pltpu.CompilerParams(
            dimension_semantics=("parallel", "arbitrary"),
            vmem_limit_bytes=_vmem_limit(blk_bytes, _nbytes((L, D), jnp.float32))),
    )(h, p["wi"], p["bi"], p["wo2"], p["bo2"], p["ln2g"], p["ln2b"])


# ----------------------------------------------------------------------------
# Parameter construction (deterministic, synthetic); matmul weights in bf16.
# ----------------------------------------------------------------------------
def init_params(key, vocab, max_pos, D, I, n_layers):
    def nrm(k, shape, scale=0.02, dtype=jnp.bfloat16):
        return (scale * jax.random.normal(k, shape)).astype(dtype)

    keys = iter(jax.random.split(key, 8 + 8 * n_layers))
    params = {
        "word_embeddings": nrm(next(keys), (vocab, D)),
        "position_embeddings": nrm(next(keys), (max_pos, D)),
        "token_type_emb0": nrm(next(keys), (1, D)),
        "emb_ln_g": jnp.ones((1, D), jnp.float32),
        "emb_ln_b": jnp.zeros((1, D), jnp.float32),
        "layers": [],
    }
    for _ in range(n_layers):
        params["layers"].append({
            "wq": nrm(next(keys), (D, D)), "bq": jnp.zeros((1, D), jnp.float32),
            "wk": nrm(next(keys), (D, D)), "bk": jnp.zeros((1, D), jnp.float32),
            "wv": nrm(next(keys), (D, D)), "bv": jnp.zeros((1, D), jnp.float32),
            "wo": nrm(next(keys), (D, D)), "bo": jnp.zeros((1, D), jnp.float32),
            "ln1g": jnp.ones((1, D), jnp.float32), "ln1b": jnp.zeros((1, D), jnp.float32),
            "wi": nrm(next(keys), (D, I)), "bi": jnp.zeros((1, I), jnp.float32),
            "wo2": nrm(next(keys), (I, D)), "bo2": jnp.zeros((1, D), jnp.float32),
            "ln2g": jnp.ones((1, D), jnp.float32), "ln2b": jnp.zeros((1, D), jnp.float32),
        })
    params["cls"] = {
        "wd": nrm(next(keys), (2 * D, D), dtype=jnp.float32),
        "bd": jnp.zeros((1, D), jnp.float32),
        "wp": nrm(next(keys), (D, 2), dtype=jnp.float32),
        "bp": jnp.zeros((1, 2), jnp.float32),
    }
    return params


# ----------------------------------------------------------------------------
# Full forward (Model_for_sim.forward with labels=None -> returns (prob, outputs))
# ----------------------------------------------------------------------------
def model_for_sim_forward(params, inputs_ids_1, position_idx_1, attn_mask_1,
                          inputs_ids_2, position_idx_2, attn_mask_2,
                          *, num_heads):
    bs, l = inputs_ids_1.shape
    inputs_ids = jnp.stack([inputs_ids_1, inputs_ids_2], axis=1).reshape(bs * 2, l)
    position_idx = jnp.stack([position_idx_1, position_idx_2], axis=1).reshape(bs * 2, l)
    attn_mask = jnp.stack([attn_mask_1, attn_mask_2], axis=1).reshape(bs * 2, l, l)

    # int8 masks (re-used every layer): 4x less HBM traffic than an f32 bias stream.
    attn_i8 = attn_mask.astype(jnp.int8)
    nodes_i8 = (position_idx == 0).astype(jnp.int8)[:, None, :]   # (B, 1, L) lane-dense
    token_i8 = (position_idx >= 2).astype(jnp.int8)[:, None, :]   # (B, 1, L) lane-dense

    # embedding gathers (glue, plain JAX)
    # TODO(synk): real HF RoBERTa offsets position ids by padding_idx; synthetic table
    # here is indexed directly.
    word_emb = jnp.take(params["word_embeddings"], inputs_ids, axis=0)       # (B,L,D) bf16
    pos_emb = jnp.take(params["position_embeddings"], position_idx, axis=0)  # (B,L,D) bf16

    h = embed_mix_ln(nodes_i8, token_i8, attn_i8, word_emb, pos_emb,
                     params["token_type_emb0"], params["emb_ln_g"], params["emb_ln_b"])

    for lp in params["layers"]:
        h = ffn_block(attention_block(h, attn_i8, lp, num_heads), lp)

    # classification head: features[:, 0, :] -> reshape(bs, 2*D); tiny (bs, 2) matmul,
    # left to XLA (no MXU / Pallas benefit).
    x = h[:, 0, :].reshape(bs, -1)
    cls = params["cls"]
    logits = jnp.dot(jnp.tanh(jnp.dot(x, cls["wd"]) + cls["bd"]), cls["wp"]) + cls["bp"]
    prob = jax.nn.softmax(logits, axis=-1)    # F.softmax over dim=1
    return prob, h


# ----------------------------------------------------------------------------
if __name__ == "__main__":
    bs, l = 2, 128
    D, num_heads, I_FF, n_layers = 64, 4, 128, 2
    vocab, max_pos = 128, 160

    key = jax.random.PRNGKey(0)
    kp, k1, k2, k3, k4 = jax.random.split(key, 5)
    params = init_params(kp, vocab, max_pos, D, I_FF, n_layers)

    inputs_ids_1 = jax.random.randint(k1, (bs, l), 0, vocab, dtype=jnp.int32)
    inputs_ids_2 = jax.random.randint(k2, (bs, l), 0, vocab, dtype=jnp.int32)

    # GraphCodeBERT convention: position 0 = DFG node, 1 = padding, >=2 = code token.
    def make_positions(n_tok, n_node):
        return jnp.concatenate([
            jnp.arange(2, 2 + n_tok, dtype=jnp.int32),
            jnp.zeros((n_node,), jnp.int32),
            jnp.ones((l - n_tok - n_node,), jnp.int32)])

    position_idx_1 = jnp.stack([make_positions(64, 32), make_positions(48, 24)])
    position_idx_2 = jnp.stack([make_positions(56, 40), make_positions(32, 16)])
    attn_mask_1 = jax.random.bernoulli(k3, 0.8, (bs, l, l))
    attn_mask_2 = jax.random.bernoulli(k4, 0.8, (bs, l, l))

    fwd = jax.jit(functools.partial(model_for_sim_forward, num_heads=num_heads))
    prob, outputs = fwd(params, inputs_ids_1, position_idx_1, attn_mask_1,
                        inputs_ids_2, position_idx_2, attn_mask_2)
    jax.block_until_ready((prob, outputs))

    assert prob.shape == (bs, 2)
    assert outputs.shape == (bs * 2, l, D)
    assert bool(jnp.all(jnp.isfinite(prob)))
    print("KERNEL_OK")
</pallas_src>

<mosaic_0001>
module attributes {stable_mosaic.version = 11 : i64} {
  func.func @_ffn_kernel(%arg0: i32, %arg1: i32, %arg2: memref<1x128x64xf32, #tpu.memory_space<vmem>>, %arg3: memref<64x128xbf16, #tpu.memory_space<vmem>>, %arg4: memref<1x128xf32, #tpu.memory_space<vmem>>, %arg5: memref<128x64xbf16, #tpu.memory_space<vmem>>, %arg6: memref<1x64xf32, #tpu.memory_space<vmem>>, %arg7: memref<1x64xf32, #tpu.memory_space<vmem>>, %arg8: memref<1x64xf32, #tpu.memory_space<vmem>>, %arg9: memref<1x128x64xf32, #tpu.memory_space<vmem>>, %arg10: memref<128x64xf32, #tpu.memory_space<vmem>>) attributes {dimension_semantics = [#tpu.dimension_semantics<parallel>, #tpu.dimension_semantics<arbitrary>], iteration_bounds = array<i64: 4, 1>, scalar_prefetch = 0 : i64, scratch_operands = 1 : i64, tpu.core_type = #tpu.core_type<tc>, window_params = [{transform_indices = @transform_0, window_bounds = array<i64: 1, 128, 64>}, {transform_indices = @transform_1, window_bounds = array<i64: 64, 128>}, {transform_indices = @transform_2, window_bounds = array<i64: 1, 128>}, {transform_indices = @transform_3, window_bounds = array<i64: 128, 64>}, {pipeline_mode = #tpu.pipeline_mode<synchronous>, transform_indices = @transform_4, window_bounds = array<i64: 1, 64>}, {pipeline_mode = #tpu.pipeline_mode<synchronous>, transform_indices = @transform_5, window_bounds = array<i64: 1, 64>}, {pipeline_mode = #tpu.pipeline_mode<synchronous>, transform_indices = @transform_6, window_bounds = array<i64: 1, 64>}, {transform_indices = @transform_7, window_bounds = array<i64: 1, 128, 64>}]} {
    %c0_i32 = arith.constant 0 : i32
    %0 = arith.cmpi eq, %arg1, %c0_i32 : i32
    %1 = arith.extui %0 : i1 to i32
    %c0_i32_0 = arith.constant 0 : i32
    %2 = arith.cmpi ne, %1, %c0_i32_0 : i32
    scf.if %2 {
      %cst_20 = arith.constant 0.000000e+00 : f32
      %33 = vector.broadcast %cst_20 : f32 to vector<128x64xf32>
      %c0_21 = arith.constant 0 : index
      %c0_22 = arith.constant 0 : index
      %34 = vector.load %arg10[%c0_21, %c0_22] : memref<128x64xf32, #tpu.memory_space<vmem>>, vector<128x64xf32>
      tpu.vector_store %arg10[%c0_21, %c0_22], %33 {strides = array<i32>} : memref<128x64xf32, #tpu.memory_space<vmem>>, vector<128x64xf32>,
    } else {
    }
    %c0 = arith.constant 0 : index
    %c0_1 = arith.constant 0 : index
    %c0_2 = arith.constant 0 : index
    %3 = vector.load %arg2[%c0, %c0_1, %c0_2] : memref<1x128x64xf32, #tpu.memory_space<vmem>>, vector<1x128x64xf32>
    %4 = vector.shape_cast %3 : vector<1x128x64xf32> to vector<128x64xf32>
    %5 = arith.truncf %4 : vector<128x64xf32> to vector<128x64xbf16>
    %c0_3 = arith.constant 0 : index
    %c0_4 = arith.constant 0 : index
    %6 = vector.load %arg3[%c0_3, %c0_4] : memref<64x128xbf16, #tpu.memory_space<vmem>>, vector<64x128xbf16>
    %cst = arith.constant dense<0.000000e+00> : vector<128x128xf32>
    %7 = tpu.matmul %5, %6, %cst {dimension_numbers = #tpu.dot_dimension_numbers<[1], [0], [0], [1], [0, 0, 1, 1], [], []>} : vector<128x64xbf16>, vector<64x128xbf16>, vector<128x128xf32> -> vector<128x128xf32>
    %c0_5 = arith.constant 0 : index
    %c0_6 = arith.constant 0 : index
    %8 = vector.load %arg4[%c0_5, %c0_6] : memref<1x128xf32, #tpu.memory_space<vmem>>, vector<1x128xf32>
    %9 = vector.broadcast %8 : vector<1x128xf32> to vector<128x128xf32>
    %10 = arith.addf %7, %9 : vector<128x128xf32>
    %11 = arith.mulf %10, %10 : vector<128x128xf32>
    %12 = arith.mulf %10, %11 : vector<128x128xf32>
    %cst_7 = arith.constant 4.471500e-02 : f32
    %13 = vector.broadcast %cst_7 : f32 to vector<128x128xf32>
    %14 = arith.mulf %13, %12 : vector<128x128xf32>
    %15 = arith.addf %10, %14 : vector<128x128xf32>
    %cst_8 = arith.constant 0.797884583 : f32
    %16 = vector.broadcast %cst_8 : f32 to vector<128x128xf32>
    %17 = arith.mulf %16, %15 : vector<128x128xf32>
    %18 = math.tanh %17 : vector<128x128xf32>
    %cst_9 = arith.constant 1.000000e+00 : f32
    %19 = vector.broadcast %cst_9 : f32 to vector<128x128xf32>
    %20 = arith.addf %19, %18 : vector<128x128xf32>
    %cst_10 = arith.constant 5.000000e-01 : f32
    %21 = vector.broadcast %cst_10 : f32 to vector<128x128xf32>
    %22 = arith.mulf %21, %20 : vector<128x128xf32>
    %23 = arith.mulf %10, %22 : vector<128x128xf32>
    %c0_11 = arith.constant 0 : index
    %c0_12 = arith.constant 0 : index
    %24 = vector.load %arg10[%c0_11, %c0_12] : memref<128x64xf32, #tpu.memory_space<vmem>>, vector<128x64xf32>
    %25 = arith.truncf %23 : vector<128x128xf32> to vector<128x128xbf16>
    %c0_13 = arith.constant 0 : index
    %c0_14 = arith.constant 0 : index
    %26 = vector.load %arg5[%c0_13, %c0_14] : memref<128x64xbf16, #tpu.memory_space<vmem>>, vector<128x64xbf16>
    %cst_15 = arith.constant dense<0.000000e+00> : vector<128x64xf32>
    %27 = tpu.matmul %25, %26, %cst_15 {dimension_numbers = #tpu.dot_dimension_numbers<[1], [0], [0], [1], [0, 0, 1, 1], [], []>} : vector<128x128xbf16>, vector<128x64xbf16>, vector<128x64xf32> -> vector<128x64xf32>
    %28 = arith.addf %24, %27 : vector<128x64xf32>
    %c0_16 = arith.constant 0 : index
    %c0_17 = arith.constant 0 : index
    %29 = vector.load %arg10[%c0_16, %c0_17] : memref<128x64xf32, #tpu.memory_space<vmem>>, vector<128x64xf32>
    tpu.vector_store %arg10[%c0_16, %c0_17], %28 {strides = array<i32>} : memref<128x64xf32, #tpu.memory_space<vmem>>, vector<128x64xf32>,
    %c0_i32_18 = arith.constant 0 : i32
    %30 = arith.cmpi eq, %arg1, %c0_i32_18 : i32
    %31 = arith.extui %30 : i1 to i32
    %c0_i32_19 = arith.constant 0 : i32
    %32 = arith.cmpi ne, %31, %c0_i32_19 : i32
    scf.if %32 {
      %c0_20 = arith.constant 0 : index
      %c0_21 = arith.constant 0 : index
      %33 = vector.load %arg10[%c0_20, %c0_21] : memref<128x64xf32, #tpu.memory_space<vmem>>, vector<128x64xf32>
      %34 = arith.addf %4, %33 : vector<128x64xf32>
      %c0_22 = arith.constant 0 : index
      %c0_23 = arith.constant 0 : index
      %35 = vector.load %arg6[%c0_22, %c0_23] : memref<1x64xf32, #tpu.memory_space<vmem>>, vector<1x64xf32>
      %36 = vector.broadcast %35 : vector<1x64xf32> to vector<128x64xf32>
      %37 = arith.addf %34, %36 : vector<128x64xf32>
      %cst_24 = arith.constant dense<0.000000e+00> : vector<128xf32>
      %38 = vector.multi_reduction <add>, %37, %cst_24 [1] : vector<128x64xf32> to vector<128xf32>
      %39 = vector.shape_cast %38 : vector<128xf32> to vector<128x1xf32>
      %cst_25 = arith.constant 6.400000e+01 : f32
      %40 = vector.broadcast %cst_25 : f32 to vector<128x1xf32>
      %41 = arith.divf %39, %40 : vector<128x1xf32>
      %42 = arith.mulf %37, %37 : vector<128x64xf32>
      %cst_26 = arith.constant dense<0.000000e+00> : vector<128xf32>
      %43 = vector.multi_reduction <add>, %42, %cst_26 [1] : vector<128x64xf32> to vector<128xf32>
      %44 = vector.shape_cast %43 : vector<128xf32> to vector<128x1xf32>
      %cst_27 = arith.constant 6.400000e+01 : f32
      %45 = vector.broadcast %cst_27 : f32 to vector<128x1xf32>
      %46 = arith.divf %44, %45 : vector<128x1xf32>
      %47 = arith.mulf %41, %41 : vector<128x1xf32>
      %48 = arith.subf %46, %47 : vector<128x1xf32>
      %49 = vector.broadcast %41 : vector<128x1xf32> to vector<128x64xf32>
      %50 = arith.subf %37, %49 : vector<128x64xf32>
      %cst_28 = arith.constant 9.99999974E-6 : f32
      %51 = vector.broadcast %cst_28 : f32 to vector<128x1xf32>
      %52 = arith.addf %48, %51 : vector<128x1xf32>
      %53 = math.rsqrt %52 : vector<128x1xf32>
      %54 = vector.broadcast %53 : vector<128x1xf32> to vector<128x64xf32>
      %55 = arith.mulf %50, %54 : vector<128x64xf32>
      %c0_29 = arith.constant 0 : index
      %c0_30 = arith.constant 0 : index
      %56 = vector.load %arg7[%c0_29, %c0_30] : memref<1x64xf32, #tpu.memory_space<vmem>>, vector<1x64xf32>
      %57 = vector.broadcast %56 : vector<1x64xf32> to vector<128x64xf32>
      %58 = arith.mulf %55, %57 : vector<128x64xf32>
      %c0_31 = arith.constant 0 : index
      %c0_32 = arith.constant 0 : index
      %59 = vector.load %arg8[%c0_31, %c0_32] : memref<1x64xf32, #tpu.memory_space<vmem>>, vector<1x64xf32>
      %60 = vector.broadcast %59 : vector<1x64xf32> to vector<128x64xf32>
      %61 = arith.addf %58, %60 : vector<128x64xf32>
      %c0_33 = arith.constant 0 : index
      %c0_34 = arith.constant 0 : index
      %c0_35 = arith.constant 0 : index
      %62 = vector.load %arg9[%c0_33, %c0_34, %c0_35] : memref<1x128x64xf32, #tpu.memory_space<vmem>>, vector<1x128x64xf32>
      %63 = vector.shape_cast %62 : vector<1x128x64xf32> to vector<128x64xf32>
      %64 = vector.shape_cast %61 : vector<128x64xf32> to vector<1x128x64xf32>
      tpu.vector_store %arg9[%c0_33, %c0_34, %c0_35], %64 {strides = array<i32>} : memref<1x128x64xf32, #tpu.memory_space<vmem>>, vector<1x128x64xf32>,
    } else {
    }
    return
  }
  func.func @transform_0(%arg0: i32, %arg1: i32) -> (i32, i32, i32) {
    %c0_i32 = arith.constant 0 : i32
    %c0_i32_0 = arith.constant 0 : i32
    %c0_i32_1 = arith.constant 0 : i32
    return %arg0, %c0_i32, %c0_i32_0 : i32, i32, i32
  }
  func.func @transform_1(%arg0: i32, %arg1: i32) -> (i32, i32) {
    %c0_i32 = arith.constant 0 : i32
    %c0_i32_0 = arith.constant 0 : i32
    return %c0_i32, %arg1 : i32, i32
  }
  func.func @transform_2(%arg0: i32, %arg1: i32) -> (i32, i32) {
    %c0_i32 = arith.constant 0 : i32
    %c0_i32_0 = arith.constant 0 : i32
    return %c0_i32, %arg1 : i32, i32
  }
  func.func @transform_3(%arg0: i32, %arg1: i32) -> (i32, i32) {
    %c0_i32 = arith.constant 0 : i32
    %c0_i32_0 = arith.constant 0 : i32
    return %arg1, %c0_i32 : i32, i32
  }
  func.func @transform_4(%arg0: i32, %arg1: i32) -> (i32, i32) {
    %c0_i32 = arith.constant 0 : i32
    %c0_i32_0 = arith.constant 0 : i32
    %c0_i32_1 = arith.constant 0 : i32
    return %c0_i32, %c0_i32_0 : i32, i32
  }
  func.func @transform_5(%arg0: i32, %arg1: i32) -> (i32, i32) {
    %c0_i32 = arith.constant 0 : i32
    %c0_i32_0 = arith.constant 0 : i32
    %c0_i32_1 = arith.constant 0 : i32
    return %c0_i32, %c0_i32_0 : i32, i32
  }
  func.func @transform_6(%arg0: i32, %arg1: i32) -> (i32, i32) {
    %c0_i32 = arith.constant 0 : i32
    %c0_i32_0 = arith.constant 0 : i32
    %c0_i32_1 = arith.constant 0 : i32
    return %c0_i32, %c0_i32_0 : i32, i32
  }
  func.func @transform_7(%arg0: i32, %arg1: i32) -> (i32, i32, i32) {
    %c0_i32 = arith.constant 0 : i32
    %c0_i32_0 = arith.constant 0 : i32
    %c0_i32_1 = arith.constant 0 : i32
    return %arg0, %c0_i32, %c0_i32_0 : i32, i32, i32
  }
}

module attributes {stable_mosaic.version = 11 : i64} {
  func.func @_embed_mix_ln_kernel(%arg0: i32, %arg1: memref<1x1x128xi8, #tpu.memory_space<vmem>>, %arg2: memref<1x1x128xi8, #tpu.memory_space<vmem>>, %arg3: memref<1x128x128xi8, #tpu.memory_space<vmem>>, %arg4: memref<1x128x64xbf16, #tpu.memory_space<vmem>>, %arg5: memref<1x128x64xbf16, #tpu.memory_space<vmem>>, %arg6: memref<1x64xbf16, #tpu.memory_space<vmem>>, %arg7: memref<1x64xf32, #tpu.memory_space<vmem>>, %arg8: memref<1x64xf32, #tpu.memory_space<vmem>>, %arg9: memref<1x128x64xf32, #tpu.memory_space<vmem>>) attributes {dimension_semantics = [#tpu.dimension_semantics<parallel>], iteration_bounds = array<i64: 4>, scalar_prefetch = 0 : i64, scratch_operands = 0 : i64, tpu.core_type = #tpu.core_type<tc>, window_params = [{transform_indices = @transform_0, window_bounds = array<i64: 1, 1, 128>}, {transform_indices = @transform_1, window_bounds = array<i64: 1, 1, 128>}, {transform_indices = @transform_2, window_bounds = array<i64: 1, 128, 128>}, {transform_indices = @transform_3, window_bounds = array<i64: 1, 128, 64>}, {transform_indices = @transform_4, window_bounds = array<i64: 1, 128, 64>}, {pipeline_mode = #tpu.pipeline_mode<synchronous>, transform_indices = @transform_5, window_bounds = array<i64: 1, 64>}, {pipeline_mode = #tpu.pipeline_mode<synchronous>, transform_indices = @transform_6, window_bounds = array<i64: 1, 64>}, {pipeline_mode = #tpu.pipeline_mode<synchronous>, transform_indices = @transform_7, window_bounds = array<i64: 1, 64>}, {transform_indices = @transform_8, window_bounds = array<i64: 1, 128, 64>}]} {
    %c0 = arith.constant 0 : index
    %c0_0 = arith.constant 0 : index
    %c0_1 = arith.constant 0 : index
    %0 = vector.load %arg4[%c0, %c0_0, %c0_1] : memref<1x128x64xbf16, #tpu.memory_space<vmem>>, vector<1x128x64xbf16>
    %1 = vector.shape_cast %0 : vector<1x128x64xbf16> to vector<128x64xbf16>
    %2 = arith.extf %1 : vector<128x64xbf16> to vector<128x64xf32>
    %c0_2 = arith.constant 0 : index
    %c0_3 = arith.constant 0 : index
    %c0_4 = arith.constant 0 : index
    %3 = vector.load %arg1[%c0_2, %c0_3, %c0_4] : memref<1x1x128xi8, #tpu.memory_space<vmem>>, vector<1x1x128xi8>
    %4 = vector.shape_cast %3 : vector<1x1x128xi8> to vector<1x128xi8>
    %5 = arith.sitofp %4 : vector<1x128xi8> to vector<1x128xf32>
    %c0_5 = arith.constant 0 : index
    %c0_6 = arith.constant 0 : index
    %c0_7 = arith.constant 0 : index
    %6 = vector.load %arg2[%c0_5, %c0_6, %c0_7] : memref<1x1x128xi8, #tpu.memory_space<vmem>>, vector<1x1x128xi8>
    %7 = vector.shape_cast %6 : vector<1x1x128xi8> to vector<1x128xi8>
    %8 = arith.sitofp %7 : vector<1x128xi8> to vector<1x128xf32>
    %c0_8 = arith.constant 0 : index
    %c0_9 = arith.constant 0 : index
    %c0_10 = arith.constant 0 : index
    %9 = vector.load %arg3[%c0_8, %c0_9, %c0_10] : memref<1x128x128xi8, #tpu.memory_space<vmem>>, vector<1x128x128xi8>
    %10 = vector.shape_cast %9 : vector<1x128x128xi8> to vector<128x128xi8>
    %11 = arith.sitofp %10 : vector<128x128xi8> to vector<128x128xf32>
    %12 = vector.broadcast %8 : vector<1x128xf32> to vector<128x128xf32>
    %13 = arith.mulf %12, %11 : vector<128x128xf32>
    %cst = arith.constant dense<0.000000e+00> : vector<128xf32>
    %14 = vector.multi_reduction <add>, %13, %cst [1] : vector<128x128xf32> to vector<128xf32>
    %15 = vector.shape_cast %14 : vector<128xf32> to vector<128x1xf32>
    %cst_11 = arith.constant 1.000000e-10 : f32
    %16 = vector.broadcast %cst_11 : f32 to vector<128x1xf32>
    %17 = arith.addf %15, %16 : vector<128x1xf32>
    %18 = vector.broadcast %17 : vector<128x1xf32> to vector<128x128xf32>
    %19 = arith.divf %13, %18 : vector<128x128xf32>
    %20 = arith.truncf %19 : vector<128x128xf32> to vector<128x128xbf16>
    %cst_12 = arith.constant dense<0.000000e+00> : vector<128x64xf32>
    %21 = tpu.matmul %20, %1, %cst_12 {dimension_numbers = #tpu.dot_dimension_numbers<[1], [0], [0], [1], [0, 0, 1, 1], [], []>} : vector<128x128xbf16>, vector<128x64xbf16>, vector<128x64xf32> -> vector<128x64xf32>
    %22 = tpu.iota {dimensions = array<i32: 0>} : vector<128x128xi32>
    %23 = tpu.iota {dimensions = array<i32: 1>} : vector<128x128xi32>
    %24 = arith.cmpi eq, %22, %23 : vector<128x128xi32>
    %cst_13 = arith.constant 0.000000e+00 : f32
    %25 = vector.shape_cast %5 : vector<1x128xf32> to vector<1x128xf32>
    %26 = vector.broadcast %25 : vector<1x128xf32> to vector<128x128xf32>
    %27 = vector.broadcast %cst_13 : f32 to vector<128x128xf32>
    %28 = arith.select %24, %26, %27 : vector<128x128xi1>, vector<128x128xf32>
    %29 = arith.truncf %28 : vector<128x128xf32> to vector<128x128xbf16>
    %30 = arith.subf %21, %2 : vector<128x64xf32>
    %31 = arith.truncf %30 : vector<128x64xf32> to vector<128x64xbf16>
    %cst_14 = arith.constant dense<0.000000e+00> : vector<128x64xf32>
    %32 = tpu.matmul %29, %31, %cst_14 {dimension_numbers = #tpu.dot_dimension_numbers<[1], [0], [0], [1], [0, 0, 1, 1], [], []>} : vector<128x128xbf16>, vector<128x64xbf16>, vector<128x64xf32> -> vector<128x64xf32>
    %33 = arith.addf %2, %32 : vector<128x64xf32>
    %c0_15 = arith.constant 0 : index
    %c0_16 = arith.constant 0 : index
    %c0_17 = arith.constant 0 : index
    %34 = vector.load %arg5[%c0_15, %c0_16, %c0_17] : memref<1x128x64xbf16, #tpu.memory_space<vmem>>, vector<1x128x64xbf16>
    %35 = vector.shape_cast %34 : vector<1x128x64xbf16> to vector<128x64xbf16>
    %36 = arith.extf %35 : vector<128x64xbf16> to vector<128x64xf32>
    %37 = arith.addf %33, %36 : vector<128x64xf32>
    %c0_18 = arith.constant 0 : index
    %c0_19 = arith.constant 0 : index
    %38 = vector.load %arg6[%c0_18, %c0_19] : memref<1x64xbf16, #tpu.memory_space<vmem>>, vector<1x64xbf16>
    %39 = arith.extf %38 : vector<1x64xbf16> to vector<1x64xf32>
    %40 = vector.broadcast %39 : vector<1x64xf32> to vector<128x64xf32>
    %41 = arith.addf %37, %40 : vector<128x64xf32>
    %cst_20 = arith.constant dense<0.000000e+00> : vector<128xf32>
    %42 = vector.multi_reduction <add>, %41, %cst_20 [1] : vector<128x64xf32> to vector<128xf32>
    %43 = vector.shape_cast %42 : vector<128xf32> to vector<128x1xf32>
    %cst_21 = arith.constant 6.400000e+01 : f32
    %44 = vector.broadcast %cst_21 : f32 to vector<128x1xf32>
    %45 = arith.divf %43, %44 : vector<128x1xf32>
    %46 = arith.mulf %41, %41 : vector<128x64xf32>
    %cst_22 = arith.constant dense<0.000000e+00> : vector<128xf32>
    %47 = vector.multi_reduction <add>, %46, %cst_22 [1] : vector<128x64xf32> to vector<128xf32>
    %48 = vector.shape_cast %47 : vector<128xf32> to vector<128x1xf32>
    %cst_23 = arith.constant 6.400000e+01 : f32
    %49 = vector.broadcast %cst_23 : f32 to vector<128x1xf32>
    %50 = arith.divf %48, %49 : vector<128x1xf32>
    %51 = arith.mulf %45, %45 : vector<128x1xf32>
    %52 = arith.subf %50, %51 : vector<128x1xf32>
    %53 = vector.broadcast %45 : vector<128x1xf32> to vector<128x64xf32>
    %54 = arith.subf %41, %53 : vector<128x64xf32>
    %cst_24 = arith.constant 9.99999974E-6 : f32
    %55 = vector.broadcast %cst_24 : f32 to vector<128x1xf32>
    %56 = arith.addf %52, %55 : vector<128x1xf32>
    %57 = math.rsqrt %56 : vector<128x1xf32>
    %58 = vector.broadcast %57 : vector<128x1xf32> to vector<128x64xf32>
    %59 = arith.mulf %54, %58 : vector<128x64xf32>
    %c0_25 = arith.constant 0 : index
    %c0_26 = arith.constant 0 : index
    %60 = vector.load %arg7[%c0_25, %c0_26] : memref<1x64xf32, #tpu.memory_space<vmem>>, vector<1x64xf32>
    %61 = vector.broadcast %60 : vector<1x64xf32> to vector<128x64xf32>
    %62 = arith.mulf %59, %61 : vector<128x64xf32>
    %c0_27 = arith.constant 0 : index
    %c0_28 = arith.constant 0 : index
    %63 = vector.load %arg8[%c0_27, %c0_28] : memref<1x64xf32, #tpu.memory_space<vmem>>, vector<1x64xf32>
    %64 = vector.broadcast %63 : vector<1x64xf32> to vector<128x64xf32>
    %65 = arith.addf %62, %64 : vector<128x64xf32>
    %c0_29 = arith.constant 0 : index
    %c0_30 = arith.constant 0 : index
    %c0_31 = arith.constant 0 : index
    %66 = vector.load %arg9[%c0_29, %c0_30, %c0_31] : memref<1x128x64xf32, #tpu.memory_space<vmem>>, vector<1x128x64xf32>
    %67 = vector.shape_cast %66 : vector<1x128x64xf32> to vector<128x64xf32>
    %68 = vector.shape_cast %65 : vector<128x64xf32> to vector<1x128x64xf32>
    tpu.vector_store %arg9[%c0_29, %c0_30, %c0_31], %68 {strides = array<i32>} : memref<1x128x64xf32, #tpu.memory_space<vmem>>, vector<1x128x64xf32>,
    return
  }
  func.func @transform_0(%arg0: i32) -> (i32, i32, i32) {
    %c0_i32 = arith.constant 0 : i32
    %c0_i32_0 = arith.constant 0 : i32
    %c0_i32_1 = arith.constant 0 : i32
    return %arg0, %c0_i32, %c0_i32_0 : i32, i32, i32
  }
  func.func @transform_1(%arg0: i32) -> (i32, i32, i32) {
    %c0_i32 = arith.constant 0 : i32
    %c0_i32_0 = arith.constant 0 : i32
    %c0_i32_1 = arith.constant 0 : i32
    return %arg0, %c0_i32, %c0_i32_0 : i32, i32, i32
  }
  func.func @transform_2(%arg0: i32) -> (i32, i32, i32) {
    %c0_i32 = arith.constant 0 : i32
    %c0_i32_0 = arith.constant 0 : i32
    %c0_i32_1 = arith.constant 0 : i32
    return %arg0, %c0_i32, %c0_i32_0 : i32, i32, i32
  }
  func.func @transform_3(%arg0: i32) -> (i32, i32, i32) {
    %c0_i32 = arith.constant 0 : i32
    %c0_i32_0 = arith.constant 0 : i32
    %c0_i32_1 = arith.constant 0 : i32
    return %arg0, %c0_i32, %c0_i32_0 : i32, i32, i32
  }
  func.func @transform_4(%arg0: i32) -> (i32, i32, i32) {
    %c0_i32 = arith.constant 0 : i32
    %c0_i32_0 = arith.constant 0 : i32
    %c0_i32_1 = arith.constant 0 : i32
    return %arg0, %c0_i32, %c0_i32_0 : i32, i32, i32
  }
  func.func @transform_5(%arg0: i32) -> (i32, i32) {
    %c0_i32 = arith.constant 0 : i32
    %c0_i32_0 = arith.constant 0 : i32
    %c0_i32_1 = arith.constant 0 : i32
    return %c0_i32, %c0_i32_0 : i32, i32
  }
  func.func @transform_6(%arg0: i32) -> (i32, i32) {
    %c0_i32 = arith.constant 0 : i32
    %c0_i32_0 = arith.constant 0 : i32
    %c0_i32_1 = arith.constant 0 : i32
    return %c0_i32, %c0_i32_0 : i32, i32
  }
  func.func @transform_7(%arg0: i32) -> (i32, i32) {
    %c0_i32 = arith.constant 0 : i32
    %c0_i32_0 = arith.constant 0 : i32
    %c0_i32_1 = arith.constant 0 : i32
    return %c0_i32, %c0_i32_0 : i32, i32
  }
  func.func @transform_8(%arg0: i32) -> (i32, i32, i32) {
    %c0_i32 = arith.constant 0 : i32
    %c0_i32_0 = arith.constant 0 : i32
    %c0_i32_1 = arith.constant 0 : i32
    return %arg0, %c0_i32, %c0_i32_0 : i32, i32, i32
  }
}

module attributes {stable_mosaic.version = 11 : i64} {
  func.func @_attn_kernel(%arg0: i32, %arg1: memref<1x128x64xf32, #tpu.memory_space<vmem>>, %arg2: memref<1x128x128xi8, #tpu.memory_space<vmem>>, %arg3: memref<64x64xbf16, #tpu.memory_space<vmem>>, %arg4: memref<1x64xf32, #tpu.memory_space<vmem>>, %arg5: memref<64x64xbf16, #tpu.memory_space<vmem>>, %arg6: memref<1x64xf32, #tpu.memory_space<vmem>>, %arg7: memref<64x64xbf16, #tpu.memory_space<vmem>>, %arg8: memref<1x64xf32, #tpu.memory_space<vmem>>, %arg9: memref<64x64xbf16, #tpu.memory_space<vmem>>, %arg10: memref<1x64xf32, #tpu.memory_space<vmem>>, %arg11: memref<1x64xf32, #tpu.memory_space<vmem>>, %arg12: memref<1x64xf32, #tpu.memory_space<vmem>>, %arg13: memref<1x128x64xf32, #tpu.memory_space<vmem>>, %arg14: memref<128x64xf32, #tpu.memory_space<vmem>>) attributes {dimension_semantics = [#tpu.dimension_semantics<parallel>], iteration_bounds = array<i64: 4>, scalar_prefetch = 0 : i64, scratch_operands = 1 : i64, tpu.core_type = #tpu.core_type<tc>, window_params = [{transform_indices = @transform_0, window_bounds = array<i64: 1, 128, 64>}, {transform_indices = @transform_1, window_bounds = array<i64: 1, 128, 128>}, {pipeline_mode = #tpu.pipeline_mode<synchronous>, transform_indices = @transform_2, window_bounds = array<i64: 64, 64>}, {pipeline_mode = #tpu.pipeline_mode<synchronous>, transform_indices = @transform_3, window_bounds = array<i64: 1, 64>}, {pipeline_mode = #tpu.pipeline_mode<synchronous>, transform_indices = @transform_4, window_bounds = array<i64: 64, 64>}, {pipeline_mode = #tpu.pipeline_mode<synchronous>, transform_indices = @transform_5, window_bounds = array<i64: 1, 64>}, {pipeline_mode = #tpu.pipeline_mode<synchronous>, transform_indices = @transform_6, window_bounds = array<i64: 64, 64>}, {pipeline_mode = #tpu.pipeline_mode<synchronous>, transform_indices = @transform_7, window_bounds = array<i64: 1, 64>}, {pipeline_mode = #tpu.pipeline_mode<synchronous>, transform_indices = @transform_8, window_bounds = array<i64: 64, 64>}, {pipeline_mode = #tpu.pipeline_mode<synchronous>, transform_indices = @transform_9, window_bounds = array<i64: 1, 64>}, {pipeline_mode = #tpu.pipeline_mode<synchronous>, transform_indices = @transform_10, window_bounds = array<i64: 1, 64>}, {pipeline_mode = #tpu.pipeline_mode<synchronous>, transform_indices = @transform_11, window_bounds = array<i64: 1, 64>}, {transform_indices = @transform_12, window_bounds = array<i64: 1, 128, 64>}]} {
    %c0 = arith.constant 0 : index
    %c0_0 = arith.constant 0 : index
    %c0_1 = arith.constant 0 : index
    %0 = vector.load %arg1[%c0, %c0_0, %c0_1] : memref<1x128x64xf32, #tpu.memory_space<vmem>>, vector<1x128x64xf32>
    %1 = vector.shape_cast %0 : vector<1x128x64xf32> to vector<128x64xf32>
    %2 = arith.truncf %1 : vector<128x64xf32> to vector<128x64xbf16>
    %c0_2 = arith.constant 0 : index
    %c0_3 = arith.constant 0 : index
    %3 = vector.load %arg3[%c0_2, %c0_3] : memref<64x64xbf16, #tpu.memory_space<vmem>>, vector<64x64xbf16>
    %cst = arith.constant dense<0.000000e+00> : vector<128x64xf32>
    %4 = tpu.matmul %2, %3, %cst {dimension_numbers = #tpu.dot_dimension_numbers<[1], [0], [0], [1], [0, 0, 1, 1], [], []>} : vector<128x64xbf16>, vector<64x64xbf16>, vector<128x64xf32> -> vector<128x64xf32>
    %c0_4 = arith.constant 0 : index
    %c0_5 = arith.constant 0 : index
    %5 = vector.load %arg4[%c0_4, %c0_5] : memref<1x64xf32, #tpu.memory_space<vmem>>, vector<1x64xf32>
    %6 = vector.broadcast %5 : vector<1x64xf32> to vector<128x64xf32>
    %7 = arith.addf %4, %6 : vector<128x64xf32>
    %c0_6 = arith.constant 0 : index
    %c0_7 = arith.constant 0 : index
    %8 = vector.load %arg5[%c0_6, %c0_7] : memref<64x64xbf16, #tpu.memory_space<vmem>>, vector<64x64xbf16>
    %cst_8 = arith.constant dense<0.000000e+00> : vector<128x64xf32>
    %9 = tpu.matmul %2, %8, %cst_8 {dimension_numbers = #tpu.dot_dimension_numbers<[1], [0], [0], [1], [0, 0, 1, 1], [], []>} : vector<128x64xbf16>, vector<64x64xbf16>, vector<128x64xf32> -> vector<128x64xf32>
    %c0_9 = arith.constant 0 : index
    %c0_10 = arith.constant 0 : index
    %10 = vector.load %arg6[%c0_9, %c0_10] : memref<1x64xf32, #tpu.memory_space<vmem>>, vector<1x64xf32>
    %11 = vector.broadcast %10 : vector<1x64xf32> to vector<128x64xf32>
    %12 = arith.addf %9, %11 : vector<128x64xf32>
    %c0_11 = arith.constant 0 : index
    %c0_12 = arith.constant 0 : index
    %13 = vector.load %arg7[%c0_11, %c0_12] : memref<64x64xbf16, #tpu.memory_space<vmem>>, vector<64x64xbf16>
    %cst_13 = arith.constant dense<0.000000e+00> : vector<128x64xf32>
    %14 = tpu.matmul %2, %13, %cst_13 {dimension_numbers = #tpu.dot_dimension_numbers<[1], [0], [0], [1], [0, 0, 1, 1], [], []>} : vector<128x64xbf16>, vector<64x64xbf16>, vector<128x64xf32> -> vector<128x64xf32>
    %c0_14 = arith.constant 0 : index
    %c0_15 = arith.constant 0 : index
    %15 = vector.load %arg8[%c0_14, %c0_15] : memref<1x64xf32, #tpu.memory_space<vmem>>, vector<1x64xf32>
    %16 = vector.broadcast %15 : vector<1x64xf32> to vector<128x64xf32>
    %17 = arith.addf %14, %16 : vector<128x64xf32>
    %c0_16 = arith.constant 0 : index
    %c0_17 = arith.constant 0 : index
    %c0_18 = arith.constant 0 : index
    %18 = vector.load %arg2[%c0_16, %c0_17, %c0_18] : memref<1x128x128xi8, #tpu.memory_space<vmem>>, vector<1x128x128xi8>
    %19 = vector.shape_cast %18 : vector<1x128x128xi8> to vector<128x128xi8>
    %20 = arith.sitofp %19 : vector<128x128xi8> to vector<128x128xf32>
    %cst_19 = arith.constant 1.000000e+00 : f32
    %21 = vector.broadcast %cst_19 : f32 to vector<128x128xf32>
    %22 = arith.subf %21, %20 : vector<128x128xf32>
    %cst_20 = arith.constant -1.000000e+04 : f32
    %23 = vector.broadcast %cst_20 : f32 to vector<128x128xf32>
    %24 = arith.mulf %22, %23 : vector<128x128xf32>
    %25 = vector.extract_strided_slice %7 {offsets = [0, 0], sizes = [128, 16], strides = [1, 1]} : vector<128x64xf32> to vector<128x16xf32>
    %26 = arith.truncf %25 : vector<128x16xf32> to vector<128x16xbf16>
    %27 = vector.extract_strided_slice %12 {offsets = [0, 0], sizes = [128, 16], strides = [1, 1]} : vector<128x64xf32> to vector<128x16xf32>
    %28 = arith.truncf %27 : vector<128x16xf32> to vector<128x16xbf16>
    %29 = vector.extract_strided_slice %17 {offsets = [0, 0], sizes = [128, 16], strides = [1, 1]} : vector<128x64xf32> to vector<128x16xf32>
    %30 = arith.truncf %29 : vector<128x16xf32> to vector<128x16xbf16>
    %cst_21 = arith.constant dense<0.000000e+00> : vector<128x128xf32>
    %31 = tpu.matmul %26, %28, %cst_21 {dimension_numbers = #tpu.dot_dimension_numbers<[1], [1], [0], [0], [0, 0, 1, 0], [], []>} : vector<128x16xbf16>, vector<128x16xbf16>, vector<128x128xf32> -> vector<128x128xf32>
    %cst_22 = arith.constant 2.500000e-01 : f32
    %32 = vector.broadcast %cst_22 : f32 to vector<128x128xf32>
    %33 = arith.mulf %31, %32 : vector<128x128xf32>
    %34 = arith.addf %33, %24 : vector<128x128xf32>
    %cst_23 = arith.constant dense<0xFF800000> : vector<128xf32>
    %35 = vector.multi_reduction <maximumf>, %34, %cst_23 [1] : vector<128x128xf32> to vector<128xf32>
    %36 = vector.shape_cast %35 : vector<128xf32> to vector<128x1xf32>
    %37 = vector.broadcast %36 : vector<128x1xf32> to vector<128x128xf32>
    %38 = arith.subf %34, %37 : vector<128x128xf32>
    %39 = math.exp %38 : vector<128x128xf32>
    %cst_24 = arith.constant dense<0.000000e+00> : vector<128xf32>
    %40 = vector.multi_reduction <add>, %39, %cst_24 [1] : vector<128x128xf32> to vector<128xf32>
    %41 = vector.shape_cast %40 : vector<128xf32> to vector<128x1xf32>
    %42 = tpu.reciprocal %41 {approx = true} : vector<128x1xf32> -> vector<128x1xf32>
    %43 = vector.broadcast %42 : vector<128x1xf32> to vector<128x128xf32>
    %44 = arith.mulf %39, %43 : vector<128x128xf32>
    %45 = arith.truncf %44 : vector<128x128xf32> to vector<128x128xbf16>
    %cst_25 = arith.constant dense<0.000000e+00> : vector<128x16xf32>
    %46 = tpu.matmul %45, %30, %cst_25 {dimension_numbers = #tpu.dot_dimension_numbers<[1], [0], [0], [1], [0, 0, 1, 1], [], []>} : vector<128x128xbf16>, vector<128x16xbf16>, vector<128x16xf32> -> vector<128x16xf32>
    %c0_26 = arith.constant 0 : index
    %c0_27 = arith.constant 0 : index
    %47 = vector.load %arg14[%c0_26, %c0_27] : memref<128x64xf32, #tpu.memory_space<vmem>>, vector<128x16xf32>
    tpu.vector_store %arg14[%c0_26, %c0_27], %46 {strides = array<i32>} : memref<128x64xf32, #tpu.memory_space<vmem>>, vector<128x16xf32>,
    %48 = vector.extract_strided_slice %7 {offsets = [0, 16], sizes = [128, 16], strides = [1, 1]} : vector<128x64xf32> to vector<128x16xf32>
    %49 = arith.truncf %48 : vector<128x16xf32> to vector<128x16xbf16>
    %50 = vector.extract_strided_slice %12 {offsets = [0, 16], sizes = [128, 16], strides = [1, 1]} : vector<128x64xf32> to vector<128x16xf32>
    %51 = arith.truncf %50 : vector<128x16xf32> to vector<128x16xbf16>
    %52 = vector.extract_strided_slice %17 {offsets = [0, 16], sizes = [128, 16], strides = [1, 1]} : vector<128x64xf32> to vector<128x16xf32>
    %53 = arith.truncf %52 : vector<128x16xf32> to vector<128x16xbf16>
    %cst_28 = arith.constant dense<0.000000e+00> : vector<128x128xf32>
    %54 = tpu.matmul %49, %51, %cst_28 {dimension_numbers = #tpu.dot_dimension_numbers<[1], [1], [0], [0], [0, 0, 1, 0], [], []>} : vector<128x16xbf16>, vector<128x16xbf16>, vector<128x128xf32> -> vector<128x128xf32>
    %cst_29 = arith.constant 2.500000e-01 : f32
    %55 = vector.broadcast %cst_29 : f32 to vector<128x128xf32>
    %56 = arith.mulf %54, %55 : vector<128x128xf32>
    %57 = arith.addf %56, %24 : vector<128x128xf32>
    %cst_30 = arith.constant dense<0xFF800000> : vector<128xf32>
    %58 = vector.multi_reduction <maximumf>, %57, %cst_30 [1] : vector<128x128xf32> to vector<128xf32>
    %59 = vector.shape_cast %58 : vector<128xf32> to vector<128x1xf32>
    %60 = vector.broadcast %59 : vector<128x1xf32> to vector<128x128xf32>
    %61 = arith.subf %57, %60 : vector<128x128xf32>
    %62 = math.exp %61 : vector<128x128xf32>
    %cst_31 = arith.constant dense<0.000000e+00> : vector<128xf32>
    %63 = vector.multi_reduction <add>, %62, %cst_31 [1] : vector<128x128xf32> to vector<128xf32>
    %64 = vector.shape_cast %63 : vector<128xf32> to vector<128x1xf32>
    %65 = tpu.reciprocal %64 {approx = true} : vector<128x1xf32> -> vector<128x1xf32>
    %66 = vector.broadcast %65 : vector<128x1xf32> to vector<128x128xf32>
    %67 = arith.mulf %62, %66 : vector<128x128xf32>
    %68 = arith.truncf %67 : vector<128x128xf32> to vector<128x128xbf16>
    %cst_32 = arith.constant dense<0.000000e+00> : vector<128x16xf32>
    %69 = tpu.matmul %68, %53, %cst_32 {dimension_numbers = #tpu.dot_dimension_numbers<[1], [0], [0], [1], [0, 0, 1, 1], [], []>} : vector<128x128xbf16>, vector<128x16xbf16>, vector<128x16xf32> -> vector<128x16xf32>
    %c0_33 = arith.constant 0 : index
    %c16 = arith.constant 16 : index
    %70 = vector.load %arg14[%c0_33, %c16] : memref<128x64xf32, #tpu.memory_space<vmem>>, vector<128x16xf32>
    tpu.vector_store %arg14[%c0_33, %c16], %69 {strides = array<i32>} : memref<128x64xf32, #tpu.memory_space<vmem>>, vector<128x16xf32>,
    %71 = vector.extract_strided_slice %7 {offsets = [0, 32], sizes = [128, 16], strides = [1, 1]} : vector<128x64xf32> to vector<128x16xf32>
    %72 = arith.truncf %71 : vector<128x16xf32> to vector<128x16xbf16>
    %73 = vector.extract_strided_slice %12 {offsets = [0, 32], sizes = [128, 16], strides = [1, 1]} : vector<128x64xf32> to vector<128x16xf32>
    %74 = arith.truncf %73 : vector<128x16xf32> to vector<128x16xbf16>
    %75 = vector.extract_strided_slice %17 {offsets = [0, 32], sizes = [128, 16], strides = [1, 1]} : vector<128x64xf32> to vector<128x16xf32>
    %76 = arith.truncf %75 : vector<128x16xf32> to vector<128x16xbf16>
    %cst_34 = arith.constant dense<0.000000e+00> : vector<128x128xf32>
    %77 = tpu.matmul %72, %74, %cst_34 {dimension_numbers = #tpu.dot_dimension_numbers<[1], [1], [0], [0], [0, 0, 1, 0], [], []>} : vector<128x16xbf16>, vector<128x16xbf16>, vector<128x128xf32> -> vector<128x128xf32>
    %cst_35 = arith.constant 2.500000e-01 : f32
    %78 = vector.broadcast %cst_35 : f32 to vector<128x128xf32>
    %79 = arith.mulf %77, %78 : vector<128x128xf32>
    %80 = arith.addf %79, %24 : vector<128x128xf32>
    %cst_36 = arith.constant dense<0xFF800000> : vector<128xf32>
    %81 = vector.multi_reduction <maximumf>, %80, %cst_36 [1] : vector<128x128xf32> to vector<128xf32>
    %82 = vector.shape_cast %81 : vector<128xf32> to vector<128x1xf32>
    %83 = vector.broadcast %82 : vector<128x1xf32> to vector<128x128xf32>
    %84 = arith.subf %80, %83 : vector<128x128xf32>
    %85 = math.exp %84 : vector<128x128xf32>
    %cst_37 = arith.constant dense<0.000000e+00> : vector<128xf32>
    %86 = vector.multi_reduction <add>, %85, %cst_37 [1] : vector<128x128xf32> to vector<128xf32>
    %87 = vector.shape_cast %86 : vector<128xf32> to vector<128x1xf32>
    %88 = tpu.reciprocal %87 {approx = true} : vector<128x1xf32> -> vector<128x1xf32>
    %89 = vector.broadcast %88 : vector<128x1xf32> to vector<128x128xf32>
    %90 = arith.mulf %85, %89 : vector<128x128xf32>
    %91 = arith.truncf %90 : vector<128x128xf32> to vector<128x128xbf16>
    %cst_38 = arith.constant dense<0.000000e+00> : vector<128x16xf32>
    %92 = tpu.matmul %91, %76, %cst_38 {dimension_numbers = #tpu.dot_dimension_numbers<[1], [0], [0], [1], [0, 0, 1, 1], [], []>} : vector<128x128xbf16>, vector<128x16xbf16>, vector<128x16xf32> -> vector<128x16xf32>
    %c0_39 = arith.constant 0 : index
    %c32 = arith.constant 32 : index
    %93 = vector.load %arg14[%c0_39, %c32] : memref<128x64xf32, #tpu.memory_space<vmem>>, vector<128x16xf32>
    tpu.vector_store %arg14[%c0_39, %c32], %92 {strides = array<i32>} : memref<128x64xf32, #tpu.memory_space<vmem>>, vector<128x16xf32>,
    %94 = vector.extract_strided_slice %7 {offsets = [0, 48], sizes = [128, 16], strides = [1, 1]} : vector<128x64xf32> to vector<128x16xf32>
    %95 = arith.truncf %94 : vector<128x16xf32> to vector<128x16xbf16>
    %96 = vector.extract_strided_slice %12 {offsets = [0, 48], sizes = [128, 16], strides = [1, 1]} : vector<128x64xf32> to vector<128x16xf32>
    %97 = arith.truncf %96 : vector<128x16xf32> to vector<128x16xbf16>
    %98 = vector.extract_strided_slice %17 {offsets = [0, 48], sizes = [128, 16], strides = [1, 1]} : vector<128x64xf32> to vector<128x16xf32>
    %99 = arith.truncf %98 : vector<128x16xf32> to vector<128x16xbf16>
    %cst_40 = arith.constant dense<0.000000e+00> : vector<128x128xf32>
    %100 = tpu.matmul %95, %97, %cst_40 {dimension_numbers = #tpu.dot_dimension_numbers<[1], [1], [0], [0], [0, 0, 1, 0], [], []>} : vector<128x16xbf16>, vector<128x16xbf16>, vector<128x128xf32> -> vector<128x128xf32>
    %cst_41 = arith.constant 2.500000e-01 : f32
    %101 = vector.broadcast %cst_41 : f32 to vector<128x128xf32>
    %102 = arith.mulf %100, %101 : vector<128x128xf32>
    %103 = arith.addf %102, %24 : vector<128x128xf32>
    %cst_42 = arith.constant dense<0xFF800000> : vector<128xf32>
    %104 = vector.multi_reduction <maximumf>, %103, %cst_42 [1] : vector<128x128xf32> to vector<128xf32>
    %105 = vector.shape_cast %104 : vector<128xf32> to vector<128x1xf32>
    %106 = vector.broadcast %105 : vector<128x1xf32> to vector<128x128xf32>
    %107 = arith.subf %103, %106 : vector<128x128xf32>
    %108 = math.exp %107 : vector<128x128xf32>
    %cst_43 = arith.constant dense<0.000000e+00> : vector<128xf32>
    %109 = vector.multi_reduction <add>, %108, %cst_43 [1] : vector<128x128xf32> to vector<128xf32>
    %110 = vector.shape_cast %109 : vector<128xf32> to vector<128x1xf32>
    %111 = tpu.reciprocal %110 {approx = true} : vector<128x1xf32> -> vector<128x1xf32>
    %112 = vector.broadcast %111 : vector<128x1xf32> to vector<128x128xf32>
    %113 = arith.mulf %108, %112 : vector<128x128xf32>
    %114 = arith.truncf %113 : vector<128x128xf32> to vector<128x128xbf16>
    %cst_44 = arith.constant dense<0.000000e+00> : vector<128x16xf32>
    %115 = tpu.matmul %114, %99, %cst_44 {dimension_numbers = #tpu.dot_dimension_numbers<[1], [0], [0], [1], [0, 0, 1, 1], [], []>} : vector<128x128xbf16>, vector<128x16xbf16>, vector<128x16xf32> -> vector<128x16xf32>
    %c0_45 = arith.constant 0 : index
    %c48 = arith.constant 48 : index
    %116 = vector.load %arg14[%c0_45, %c48] : memref<128x64xf32, #tpu.memory_space<vmem>>, vector<128x16xf32>
    tpu.vector_store %arg14[%c0_45, %c48], %115 {strides = array<i32>} : memref<128x64xf32, #tpu.memory_space<vmem>>, vector<128x16xf32>,
    %c0_46 = arith.constant 0 : index
    %c0_47 = arith.constant 0 : index
    %117 = vector.load %arg14[%c0_46, %c0_47] : memref<128x64xf32, #tpu.memory_space<vmem>>, vector<128x64xf32>
    %118 = arith.truncf %117 : vector<128x64xf32> to vector<128x64xbf16>
    %c0_48 = arith.constant 0 : index
    %c0_49 = arith.constant 0 : index
    %119 = vector.load %arg9[%c0_48, %c0_49] : memref<64x64xbf16, #tpu.memory_space<vmem>>, vector<64x64xbf16>
    %cst_50 = arith.constant dense<0.000000e+00> : vector<128x64xf32>
    %120 = tpu.matmul %118, %119, %cst_50 {dimension_numbers = #tpu.dot_dimension_numbers<[1], [0], [0], [1], [0, 0, 1, 1], [], []>} : vector<128x64xbf16>, vector<64x64xbf16>, vector<128x64xf32> -> vector<128x64xf32>
    %c0_51 = arith.constant 0 : index
    %c0_52 = arith.constant 0 : index
    %121 = vector.load %arg10[%c0_51, %c0_52] : memref<1x64xf32, #tpu.memory_space<vmem>>, vector<1x64xf32>
    %122 = vector.broadcast %121 : vector<1x64xf32> to vector<128x64xf32>
    %123 = arith.addf %120, %122 : vector<128x64xf32>
    %124 = arith.addf %1, %123 : vector<128x64xf32>
    %cst_53 = arith.constant dense<0.000000e+00> : vector<128xf32>
    %125 = vector.multi_reduction <add>, %124, %cst_53 [1] : vector<128x64xf32> to vector<128xf32>
    %126 = vector.shape_cast %125 : vector<128xf32> to vector<128x1xf32>
    %cst_54 = arith.constant 6.400000e+01 : f32
    %127 = vector.broadcast %cst_54 : f32 to vector<128x1xf32>
    %128 = arith.divf %126, %127 : vector<128x1xf32>
    %129 = arith.mulf %124, %124 : vector<128x64xf32>
    %cst_55 = arith.constant dense<0.000000e+00> : vector<128xf32>
    %130 = vector.multi_reduction <add>, %129, %cst_55 [1] : vector<128x64xf32> to vector<128xf32>
    %131 = vector.shape_cast %130 : vector<128xf32> to vector<128x1xf32>
    %cst_56 = arith.constant 6.400000e+01 : f32
    %132 = vector.broadcast %cst_56 : f32 to vector<128x1xf32>
    %133 = arith.divf %131, %132 : vector<128x1xf32>
    %134 = arith.mulf %128, %128 : vector<128x1xf32>
    %135 = arith.subf %133, %134 : vector<128x1xf32>
    %136 = vector.broadcast %128 : vector<128x1xf32> to vector<128x64xf32>
    %137 = arith.subf %124, %136 : vector<128x64xf32>
    %cst_57 = arith.constant 9.99999974E-6 : f32
    %138 = vector.broadcast %cst_57 : f32 to vector<128x1xf32>
    %139 = arith.addf %135, %138 : vector<128x1xf32>
    %140 = math.rsqrt %139 : vector<128x1xf32>
    %141 = vector.broadcast %140 : vector<128x1xf32> to vector<128x64xf32>
    %142 = arith.mulf %137, %141 : vector<128x64xf32>
    %c0_58 = arith.constant 0 : index
    %c0_59 = arith.constant 0 : index
    %143 = vector.load %arg11[%c0_58, %c0_59] : memref<1x64xf32, #tpu.memory_space<vmem>>, vector<1x64xf32>
    %144 = vector.broadcast %143 : vector<1x64xf32> to vector<128x64xf32>
    %145 = arith.mulf %142, %144 : vector<128x64xf32>
    %c0_60 = arith.constant 0 : index
    %c0_61 = arith.constant 0 : index
    %146 = vector.load %arg12[%c0_60, %c0_61] : memref<1x64xf32, #tpu.memory_space<vmem>>, vector<1x64xf32>
    %147 = vector.broadcast %146 : vector<1x64xf32> to vector<128x64xf32>
    %148 = arith.addf %145, %147 : vector<128x64xf32>
    %c0_62 = arith.constant 0 : index
    %c0_63 = arith.constant 0 : index
    %c0_64 = arith.constant 0 : index
    %149 = vector.load %arg13[%c0_62, %c0_63, %c0_64] : memref<1x128x64xf32, #tpu.memory_space<vmem>>, vector<1x128x64xf32>
    %150 = vector.shape_cast %149 : vector<1x128x64xf32> to vector<128x64xf32>
    %151 = vector.shape_cast %148 : vector<128x64xf32> to vector<1x128x64xf32>
    tpu.vector_store %arg13[%c0_62, %c0_63, %c0_64], %151 {strides = array<i32>} : memref<1x128x64xf32, #tpu.memory_space<vmem>>, vector<1x128x64xf32>,
    return
  }
  func.func @transform_0(%arg0: i32) -> (i32, i32, i32) {
    %c0_i32 = arith.constant 0 : i32
    %c0_i32_0 = arith.constant 0 : i32
    %c0_i32_1 = arith.constant 0 : i32
    return %arg0, %c0_i32, %c0_i32_0 : i32, i32, i32
  }
  func.func @transform_1(%arg0: i32) -> (i32, i32, i32) {
    %c0_i32 = arith.constant 0 : i32
    %c0_i32_0 = arith.constant 0 : i32
    %c0_i32_1 = arith.constant 0 : i32
    return %arg0, %c0_i32, %c0_i32_0 : i32, i32, i32
  }
  func.func @transform_2(%arg0: i32) -> (i32, i32) {
    %c0_i32 = arith.constant 0 : i32
    %c0_i32_0 = arith.constant 0 : i32
    %c0_i32_1 = arith.constant 0 : i32
    return %c0_i32, %c0_i32_0 : i32, i32
  }
  func.func @transform_3(%arg0: i32) -> (i32, i32) {
    %c0_i32 = arith.constant 0 : i32
    %c0_i32_0 = arith.constant 0 : i32
    %c0_i32_1 = arith.constant 0 : i32
    return %c0_i32, %c0_i32_0 : i32, i32
  }
  func.func @transform_4(%arg0: i32) -> (i32, i32) {
    %c0_i32 = arith.constant 0 : i32
    %c0_i32_0 = arith.constant 0 : i32
    %c0_i32_1 = arith.constant 0 : i32
    return %c0_i32, %c0_i32_0 : i32, i32
  }
  func.func @transform_5(%arg0: i32) -> (i32, i32) {
    %c0_i32 = arith.constant 0 : i32
    %c0_i32_0 = arith.constant 0 : i32
    %c0_i32_1 = arith.constant 0 : i32
    return %c0_i32, %c0_i32_0 : i32, i32
  }
  func.func @transform_6(%arg0: i32) -> (i32, i32) {
    %c0_i32 = arith.constant 0 : i32
    %c0_i32_0 = arith.constant 0 : i32
    %c0_i32_1 = arith.constant 0 : i32
    return %c0_i32, %c0_i32_0 : i32, i32
  }
  func.func @transform_7(%arg0: i32) -> (i32, i32) {
    %c0_i32 = arith.constant 0 : i32
    %c0_i32_0 = arith.constant 0 : i32
    %c0_i32_1 = arith.constant 0 : i32
    return %c0_i32, %c0_i32_0 : i32, i32
  }
  func.func @transform_8(%arg0: i32) -> (i32, i32) {
    %c0_i32 = arith.constant 0 : i32
    %c0_i32_0 = arith.constant 0 : i32
    %c0_i32_1 = arith.constant 0 : i32
    return %c0_i32, %c0_i32_0 : i32, i32
  }
  func.func @transform_9(%arg0: i32) -> (i32, i32) {
    %c0_i32 = arith.constant 0 : i32
    %c0_i32_0 = arith.constant 0 : i32
    %c0_i32_1 = arith.constant 0 : i32
    return %c0_i32, %c0_i32_0 : i32, i32
  }
  func.func @transform_10(%arg0: i32) -> (i32, i32) {
    %c0_i32 = arith.constant 0 : i32
    %c0_i32_0 = arith.constant 0 : i32
    %c0_i32_1 = arith.constant 0 : i32
    return %c0_i32, %c0_i32_0 : i32, i32
  }
  func.func @transform_11(%arg0: i32) -> (i32, i32) {
    %c0_i32 = arith.constant 0 : i32
    %c0_i32_0 = arith.constant 0 : i32
    %c0_i32_1 = arith.constant 0 : i32
    return %c0_i32, %c0_i32_0 : i32, i32
  }
  func.func @transform_12(%arg0: i32) -> (i32, i32, i32) {
    %c0_i32 = arith.constant 0 : i32
    %c0_i32_0 = arith.constant 0 : i32
    %c0_i32_1 = arith.constant 0 : i32
    return %arg0, %c0_i32, %c0_i32_0 : i32, i32, i32
  }
}

</mosaic_0001>

<bundles_post_ra>
// kernel: squeeze.1
= control target key start
LH: loop header
LB: loop body
LE: loop exit
PB: predicated region body
PF: predicated region fallthrough
CT: control target
= control target key end

     0   :  { %s18_s8 = smov 3  ;;  %vm20_vm0 = vcmask 523264   ;;  %s39_s9 = smov 64   ;;  %vm27_vm1 = vcmask 1048064   ;;  %v40_v6 = vmov 0.0   ;;  %s57_s0 = inlined_call_operand.vmem [shape: bf16[4,64], index: 0, kind: input, shape index: {}]   ;;  %s58_s1 = inlined_call_operand.vmem [shape: bf16[2,128], index: 1, kind: output, shape index: {}]  }
   0x1   :  { %v14_v0 = vld [vmem:[%s57_s0] sm:$0x3]  ;;  %s23_s0 = smov 3 }
   0x2   :  { %v15_v1 = vunpack.c.l.bf16 %v14_v0 }
   0x4   :  { %17 = vst [vmem:[#allocation1] sm:$0xf] %v15_v1 }
   0xb   :  { %v24_v2 = vld [vmem:[#allocation1 + $0x1] ss:$2 sm:%s23_s0]   ;;  %v19_v3 = vld [vmem:[#allocation1] ss:$2 sm:%s18_s8]  }
   0xc   :  { %25 = vrot.lane.b32.xlu0 %v24_v2, %s39_s9  ;;  %21 = vst.msk [vmem:[#allocation0] sm:$0x3] %vm20_vm0, %v19_v3  }
  0x7e   :  { %v26_v4 = vpop.permute.xlu0 %25  }
  0x7f   :  { %28 = vst.msk [vmem:[#allocation0] sm:$0x3] %vm27_vm1, %v26_v4  }
  0x86   :  { %v33_v5 = vld [vmem:[#allocation0] sm:$0x3] }
  0x87   :  { %v34_v7 = vpack.c.bf16 %v40_v6, %v33_v5 }
  0x89   :  { %36 = vst [vmem:[%s58_s1] sm:$0x1] %v34_v7 }

// kernel: model_for_sim_forward.7
= control target key start
LH: loop header
LB: loop body
LE: loop exit
PB: predicated region body
PF: predicated region fallthrough
CT: control target
= control target key end

     0   :  { %s1685_s24 = smov 0   ;;  %s1687_s25 = smov 0   ;;  %s2291_s0 = inlined_call_operand.vmem [shape: f32[4,128,64], index: 0, kind: input, shape index: {}]   ;;  %s2292_s1 = inlined_call_operand.vmem [shape: bf16[64,128], index: 1, kind: input, shape index: {}]   ;;  %s2293_s2 = inlined_call_operand.vmem [shape: f32[1,128], index: 2, kind: input, shape index: {}]   ;;  %s2294_s3 = inlined_call_operand.vmem [shape: bf16[128,64], index: 3, kind: input, shape index: {}]   ;;  %s2295_s4 = inlined_call_operand.vmem [shape: f32[1,64], index: 4, kind: input, shape index: {}]   ;;  %s2296_s5 = inlined_call_operand.vmem [shape: f32[1,64], index: 5, kind: input, shape index: {}]   ;;  %s2297_s6 = inlined_call_operand.vmem [shape: f32[1,64], index: 6, kind: input, shape index: {}]   ;;  %s2298_s7 = inlined_call_operand.vmem [shape: f32[4,128,64], index: 7, kind: output, shape index: {}]  }
   0x1   :  { %s1689_s26 = smov 0  }
   0x2 LB: > { %s29_s27 = sadd.s32 1, %s1638_s25  ;;  %p1386_p0 = scmp.ge.s32.totalorder %s1642_s26, 1  ;;  %s1642_s26 = sphi %s1689_s26, %s17_s26   ;;  %s1638_s25 = sphi %s1687_s25, %s2300_s25   ;;  %s1634_s24 = sphi %s1685_s24, %s2299_s24  }
   0x3   : > { %p31_p1 = scmp.ge.s32.totalorder %s29_s27, 4  ;;  %p277_p2 = scmp.lt.s32.totalorder %s1642_s26, 5 }
   0x5   : > { %s2302_s27 = smov (%p31_p1, %s29_s27), 0  ;;  %p278_p3 = pnand %p1386_p0, %p277_p2 }
   0x6   : > { %v1544_v0 = vld [vmem:[%s2292_s1] sm:$0xff] (!%p278_p3)   ;;  %p321_p4 = scmp.lt.s32.totalorder (!%p278_p3), %s1634_s24, 3  ;;  %v1545_v1 = vld [vmem:[%s2292_s1 + $0x8] sm:$0xff] (!%p278_p3)   ;;  %v1546_v2 = vld [vmem:[%s2292_s1 + $0x10] sm:$0xff] (!%p278_p3)   ;;  %vm349_vm0 = vcmask (!%p278_p3), 523264   ;;  %v1644_v36 = vmov (!%p278_p3), 0.0  }
   0x7   : > { %281 = sbr.rel (%p278_p3) target bundleno = 729 (0x2d9), region = 48  ;;  %1447 = vmatprep.subr.bf16.mxu0 (!%p278_p3), %v1544_v0  ;;  %v1547_v6 = vld [vmem:[%s2292_s1 + $0x18] sm:$0xff] (!%p278_p3)   ;;  %v1548_v28 = vld [vmem:[%s2294_s3] sm:$0xff] (!%p278_p3)   ;;  %v1549_v29 = vld [vmem:[%s2294_s3 + $0x8] sm:$0xff] (!%p278_p3)   ;;  %352 = vst.msk [vmem:[#allocation2 + $0x10] sm:$0xff] (!%p278_p3), %vm349_vm0, %v1644_v36 }
   0x8   : > { %1448 = vmatpush3.bf16.msra.mxu0 (!%p278_p3), %v1544_v0  ;;  %1503 = vmatprep.subr.bf16.mxu1 (!%p278_p3), %v1548_v28  ;;  %v1550_v30 = vld [vmem:[%s2294_s3 + $0x10] sm:$0xff] (!%p278_p3)   ;;  %v1551_v31 = vld [vmem:[%s2294_s3 + $0x18] sm:$0xff] (!%p278_p3)   ;;  %v1552_v32 = vld [vmem:[%s2294_s3 + $0x20] sm:$0xff] (!%p278_p3)   ;;  %350 = vst.msk [vmem:[#allocation2] sm:$0xff] (!%p278_p3), %vm349_vm0, %v1644_v36 }
   0x9   : > { %1449 = vmatprep.subr.bf16.mxu0 (!%p278_p3), %v1545_v1  ;;  %1511 = vmatpush3.bf16.msra.mxu1 (!%p278_p3), %v1548_v28  ;;  %v1553_v33 = vld [vmem:[%s2294_s3 + $0x28] sm:$0xff] (!%p278_p3)   ;;  %v1554_v34 = vld [vmem:[%s2294_s3 + $0x30] sm:$0xff] (!%p278_p3)   ;;  %v1555_v35 = vld [vmem:[%s2294_s3 + $0x38] sm:$0xff] (!%p278_p3)   ;;  %351 = vst.msk [vmem:[#allocation2 + $0x8] sm:$0xff] (!%p278_p3), %vm349_vm0, %v1644_v36 }
   0xa   : > { %1504 = vmatprep.subr.bf16.mxu1 (!%p278_p3), %v1549_v29  ;;  %353 = vst.msk [vmem:[#allocation2 + $0x18] sm:$0xff] (!%p278_p3), %vm349_vm0, %v1644_v36  ;;  %354 = vst.msk [vmem:[#allocation2 + $0x20] sm:$0xff] (!%p278_p3), %vm349_vm0, %v1644_v36  ;;  %v1840_v37 = vld [vmem:[%s2293_s2] ss:$0 sm:$0xff] (!%p278_p3) }
   0xb   : > { %355 = vst.msk [vmem:[#allocation2 + $0x28] sm:$0xff] (!%p278_p3), %vm349_vm0, %v1644_v36  ;;  %356 = vst.msk [vmem:[#allocation2 + $0x30] sm:$0xff] (!%p278_p3), %vm349_vm0, %v1644_v36 }
   0xc   : > { %1450 = vmatpush3.bf16.msra.mxu0 (!%p278_p3), %v1545_v1  ;;  %357 = vst.msk [vmem:[#allocation2 + $0x38] sm:$0xff] (!%p278_p3), %vm349_vm0, %v1644_v36  ;;  %358 = vst.msk [vmem:[#allocation2 + $0x40] sm:$0xff] (!%p278_p3), %vm349_vm0, %v1644_v36 }
   0xd   : > { %1451 = vmatprep.subr.bf16.mxu0 (!%p278_p3), %v1546_v2  ;;  %1512 = vmatpush3.bf16.msra.mxu1 (!%p278_p3), %v1549_v29  ;;  %359 = vst.msk [vmem:[#allocation2 + $0x48] sm:$0xff] (!%p278_p3), %vm349_vm0, %v1644_v36  ;;  %360 = vst.msk [vmem:[#allocation2 + $0x50] sm:$0xff] (!%p278_p3), %vm349_vm0, %v1644_v36 }
   0xe   : > { %s2304_s24 = smov (!%p321_p4, %s1634_s24), 3  ;;  %1505 = vmatprep.subr.bf16.mxu1 %v1550_v30  ;;  %361 = vst.msk [vmem:[#allocation2 + $0x58] sm:$0xff] %vm349_vm0, %v1644_v36  ;;  %362 = vst.msk [vmem:[#allocation2 + $0x60] sm:$0xff] %vm349_vm0, %v1644_v36 }
   0xf   : > { %s1417_s11 = sshll.u32 %s2304_s24, 7  ;;  %363 = vst.msk [vmem:[#allocation2 + $0x68] sm:$0xff] %vm349_vm0, %v1644_v36  ;;  %364 = vst.msk [vmem:[#allocation2 + $0x70] sm:$0xff] %vm349_vm0, %v1644_v36 }
  0x10   : > { %s1720_s14 = scalar_lea.vmem %s2291_s0, %s1417_s11  ;;  %1452 = vmatpush3.bf16.msra.mxu0 %v1546_v2  ;;  %365 = vst.msk [vmem:[#allocation2 + $0x78] sm:$0xff] %vm349_vm0, %v1644_v36  ;;  %s2167_s29 = scalar_lea.vmem %s2298_s7, %s1417_s11 }
  0x11   : > { %v1723_v3 = vld [vmem:[%s1720_s14] sm:$0xff]  ;;  %v1726_v4 = vld [vmem:[%s1720_s14 + $0x8] sm:$0xff]  ;;  %v1735_v7 = vld [vmem:[%s1720_s14 + $0x10] sm:$0xff]  ;;  %1453 = vmatprep.subr.bf16.mxu0 %v1547_v6  ;;  %1513 = vmatpush3.bf16.msra.mxu1 %v1550_v30 }
  0x12   : > { %v382_v5 = vpack.c.bf16 %v1726_v4, %v1723_v3  ;;  %v1738_v8 = vld [vmem:[%s1720_s14 + $0x18] sm:$0xff]  ;;  %v1741_v9 = vld [vmem:[%s1720_s14 + $0x20] sm:$0xff]  ;;  %v1744_v10 = vld [vmem:[%s1720_s14 + $0x28] sm:$0xff]  ;;  %1506 = vmatprep.subr.bf16.mxu1 %v1551_v31 }
  0x13   : > { %v383_v11 = vpack.c.bf16 %v1738_v8, %v1735_v7  ;;  %v384_v12 = vpack.c.bf16 %v1744_v10, %v1741_v9  ;;  %v1753_v13 = vld [vmem:[%s1720_s14 + $0x30] sm:$0xff]  ;;  %v1756_v14 = vld [vmem:[%s1720_s14 + $0x38] sm:$0xff]  ;;  %v1759_v15 = vld [vmem:[%s1720_s14 + $0x40] sm:$0xff] }
  0x14   : > { %1455 = vmatprep.mubr.msk.bf16.mxu0 %vm349_vm0, %v382_v5  ;;  %1454 = vmatpush3.bf16.msra.mxu0 %v1547_v6  ;;  %v1762_v16 = vld [vmem:[%s1720_s14 + $0x48] sm:$0xff]  ;;  %v385_v17 = vpack.c.bf16 %v1756_v14, %v1753_v13  ;;  %v1771_v19 = vld [vmem:[%s1720_s14 + $0x50] sm:$0xff]  ;;  %v1774_v20 = vld [vmem:[%s1720_s14 + $0x58] sm:$0xff] }
  0x15   : > { %v386_v18 = vpack.c.bf16 %v1762_v16, %v1759_v15  ;;  %v1777_v21 = vld [vmem:[%s1720_s14 + $0x60] sm:$0xff]  ;;  %v1780_v22 = vld [vmem:[%s1720_s14 + $0x68] sm:$0xff]  ;;  %v387_v23 = vpack.c.bf16 %v1774_v20, %v1771_v19  ;;  %v1789_v25 = vld [vmem:[%s1720_s14 + $0x70] sm:$0xff]  ;;  %1471 = vmatprep.subr.bf16.mxu0 %v1548_v28  ;;  %1514 = vmatpush3.bf16.msra.mxu1 %v1551_v31 }
  0x16   : > { %v388_v24 = vpack.c.bf16 %v1780_v22, %v1777_v21  ;;  %v1792_v26 = vld [vmem:[%s1720_s14 + $0x78] sm:$0xff]  ;;  %1507 = vmatprep.subr.bf16.mxu1 %v1552_v32 }
  0x17   : > { %1456 = vmatmul.mubr.msk.bf16.vlgmr.msra.gmra.mrb[0].mxu0 %vm349_vm0, %v383_v11  ;;  %v389_v27 = vpack.c.bf16 %v1792_v26, %v1789_v25 }
  0x18   : > { %1459 = vmatprep.mubr.msk.bf16.mxu0 %vm349_vm0, %v384_v12  ;;  %1472 = vmatpush3.bf16.msra.mxu0 %v1548_v28 }
  0x19   : > { %1473 = vmatprep.subr.bf16.mxu0 %v1549_v29  ;;  %1515 = vmatpush3.bf16.msra.mxu1 %v1552_v32 }
  0x1a   : > { %1508 = vmatprep.subr.bf16.mxu1 %v1553_v33 }
  0x1c   : > { %1474 = vmatpush3.bf16.msra.mxu0 %v1549_v29 }
  0x1d   : > { %1475 = vmatprep.subr.bf16.mxu0 %v1550_v30  ;;  %1516 = vmatpush3.bf16.msra.mxu1 %v1553_v33 }
  0x1e   : > { %1509 = vmatprep.subr.bf16.mxu1 %v1554_v34 }
  0x1f   : > { %1460 = vmatmul.mubr.msk.bf16.gmra.mrb[4].mxu0 %vm349_vm0, %v385_v17 }
  0x20   : > { %1463 = vmatprep.mubr.msk.bf16.mxu0 %vm349_vm0, %v386_v18  ;;  %1476 = vmatpush3.bf16.msra.mxu0 %v1550_v30 }
  0x21   : > { %1477 = vmatprep.subr.bf16.mxu0 %v1551_v31  ;;  %1517 = vmatpush3.bf16.msra.mxu1 %v1554_v34 }
  0x22   : > { %1510 = vmatprep.subr.bf16.mxu1 %v1555_v35 }
  0x24   : > { %1478 = vmatpush3.bf16.msra.mxu0 %v1551_v31 }
  0x25   : > { %1479 = vmatprep.subr.bf16.mxu0 %v1552_v32  ;;  %1518 = vmatpush3.bf16.msra.mxu1 %v1555_v35 }
  0x27   : > { %1464 = vmatmul.mubr.msk.bf16.gmra.mrb[8].mxu0 %vm349_vm0, %v387_v23 }
  0x28   : > { %1467 = vmatprep.mubr.msk.bf16.mxu0 %vm349_vm0, %v388_v24  ;;  %1480 = vmatpush3.bf16.msra.mxu0 %v1552_v32 }
  0x29   : > { %1481 = vmatprep.subr.bf16.mxu0 %v1553_v33 }
  0x2c   : > { %1482 = vmatpush3.bf16.msra.mxu0 %v1553_v33 }
  0x2d   : > { %1483 = vmatprep.subr.bf16.mxu0 %v1554_v34 }
  0x2f   : > { %1468 = vmatmul.mubr.msk.bf16.gmra.mrb[12].mxu0 %vm349_vm0, %v389_v27 }
  0x30   : > { %1484 = vmatpush3.bf16.msra.mxu0 %v1554_v34 }
  0x31   : > { %1485 = vmatprep.subr.bf16.mxu0 %v1555_v35 }
  0x34   : > { %1486 = vmatpush3.bf16.msra.mxu0 %v1555_v35 }
  0xea   : > { %v1457_v38 = vpop.f32.mrb[0].mxu0 }
  0xeb   : > { %v1843_v39 = vadd.f32 %v1457_v38, %v1840_v37  ;;  %v488_v40 = vpop.f32.mrb[1].mxu0 }
  0xec   : > { %v1846_v41 = vadd.f32 %v1840_v37, %v488_v40  ;;  %v1458_v42 = vpop.f32.mrb[2].mxu0 }
  0xed   : > { %v553_v43 = vmul.f32 %v1843_v39, %v1843_v39  ;;  %v1851_v44 = vadd.f32 %v1458_v42, %v1840_v37  ;;  %v491_v45 = vpop.f32.mrb[3].mxu0 }
  0xee   : > { %v551_v46 = vmul.f32 %v1846_v41, %v1846_v41  ;;  %v1856_v47 = vadd.f32 %v1840_v37, %v491_v45 }
  0xef   : > { %v569_v48 = vmul.f32 %v553_v43, %v1843_v39  ;;  %v554_v49 = vmul.f32 %v1851_v44, %v1851_v44 }
  0xf0   : > { %v567_v50 = vmul.f32 %v551_v46, %v1846_v41  ;;  %v552_v51 = vmul.f32 %v1856_v47, %v1856_v47 }
  0xf1   : > { %v585_v52 = vmul.f32 0.044715, %v569_v48  ;;  %v570_v53 = vmul.f32 %v554_v49, %v1851_v44 }
  0xf2   : > { %v583_v54 = vmul.f32 0.044715, %v567_v50  ;;  %v568_v55 = vmul.f32 %v552_v51, %v1856_v47  ;;  %v1461_v56 = vpop.f32.mrb[4].mxu0 }
  0xf3   : > { %v601_v57 = vadd.f32 %v585_v52, %v1843_v39  ;;  %v586_v58 = vmul.f32 0.044715, %v570_v53  ;;  %v1868_v59 = vadd.f32 %v1461_v56, %v1840_v37  ;;  %v504_v60 = vpop.f32.mrb[5].mxu0 }
  0xf4   : > { %v599_v61 = vadd.f32 %v583_v54, %v1846_v41  ;;  %v584_v62 = vmul.f32 0.044715, %v568_v55  ;;  %v1872_v63 = vadd.f32 %v1840_v37, %v504_v60  ;;  %v1462_v0 = vpop.f32.mrb[6].mxu0 }
  0xf5   : > { %v617_v1 = vmul.f32 0.7978846, %v601_v57  ;;  %v602_v2 = vadd.f32 %v586_v58, %v1851_v44  ;;  %v557_v5 = vmul.f32 %v1868_v59, %v1868_v59  ;;  %v1878_v6 = vadd.f32 %v1462_v0, %v1840_v37  ;;  %v507_v11 = vpop.f32.mrb[7].mxu0 }
  0xf6   : > { %v615_v12 = vmul.f32 0.7978846, %v599_v61  ;;  %v600_v17 = vadd.f32 %v584_v62, %v1856_v47  ;;  %v555_v18 = vmul.f32 %v1872_v63, %v1872_v63  ;;  %v1884_v23 = vadd.f32 %v1840_v37, %v507_v11 }
  0xf7   : > { %1556 = vtanh.f32 %v617_v1  ;;  %v618_v24 = vmul.f32 0.7978846, %v602_v2  ;;  %v573_v27 = vmul.f32 %v557_v5, %v1868_v59  ;;  %v558_v28 = vmul.f32 %v1878_v6, %v1878_v6 }
  0xf8   : > { %1558 = vtanh.f32 %v615_v12  ;;  %v616_v29 = vmul.f32 0.7978846, %v600_v17  ;;  %v571_v30 = vmul.f32 %v555_v18, %v1872_v63  ;;  %v556_v31 = vmul.f32 %v1884_v23, %v1884_v23 }
  0xf9   : > { %1560 = vtanh.f32 %v618_v24  ;;  %v589_v32 = vmul.f32 0.044715, %v573_v27  ;;  %v574_v33 = vmul.f32 %v558_v28, %v1878_v6 }
  0xfa   : > { %v587_v34 = vmul.f32 0.044715, %v571_v30  ;;  %v572_v35 = vmul.f32 %v556_v31, %v1884_v23  ;;  %v1465_v36 = vpop.f32.mrb[8].mxu0  ;;  %1562 = vtanh.f32 %v616_v29 }
  0xfb   : > { %v605_v38 = vadd.f32 %v589_v32, %v1868_v59  ;;  %v590_v40 = vmul.f32 0.044715, %v574_v33  ;;  %v1896_v42 = vadd.f32 %v1465_v36, %v1840_v37  ;;  %v520_v43 = vpop.f32.mrb[9].mxu0 }
  0xfc   : > { %v588_v45 = vmul.f32 0.044715, %v572_v35  ;;  %v1899_v46 = vadd.f32 %v1840_v37, %v520_v43  ;;  %v1466_v48 = vpop.f32.mrb[10].mxu0  ;;  %v603_v49 = vadd.f32 %v587_v34, %v1872_v63 }
  0xfd   : > { %v621_v50 = vmul.f32 0.7978846, %v605_v38  ;;  %v606_v51 = vadd.f32 %v590_v40, %v1878_v6  ;;  %v561_v52 = vmul.f32 %v1896_v42, %v1896_v42  ;;  %v1906_v53 = vadd.f32 %v1466_v48, %v1840_v37  ;;  %v523_v54 = vpop.f32.mrb[11].mxu0 }
  0xfe   : > { %v559_v55 = vmul.f32 %v1899_v46, %v1899_v46  ;;  %v1911_v56 = vadd.f32 %v1840_v37, %v523_v54  ;;  %v604_v57 = vadd.f32 %v588_v45, %v1884_v23  ;;  %v619_v58 = vmul.f32 0.7978846, %v603_v49 }
  0xff   : > { %1564 = vtanh.f32 %v621_v50  ;;  %v622_v60 = vmul.f32 0.7978846, %v606_v51  ;;  %v577_v61 = vmul.f32 %v561_v52, %v1896_v42  ;;  %v562_v62 = vmul.f32 %v1906_v53, %v1906_v53 }
 0x100   : > { %v575_v0 = vmul.f32 %v559_v55, %v1899_v46  ;;  %v560_v1 = vmul.f32 %v1911_v56, %v1911_v56  ;;  %v620_v2 = vmul.f32 0.7978846, %v604_v57  ;;  %1566 = vtanh.f32 %v619_v58 }
 0x101   : > { %v1557_v5 = vpop.eup %1556  ;;  %1568 = vtanh.f32 %v622_v60  ;;  %v593_v11 = vmul.f32 0.044715, %v577_v61  ;;  %v578_v12 = vmul.f32 %v562_v62, %v1906_v53 }
 0x102   : > { %v1559_v17 = vpop.eup %1558  ;;  %v649_v18 = vadd.f32 1.0, %v1557_v5  ;;  %v591_v24 = vmul.f32 0.044715, %v575_v0  ;;  %v576_v27 = vmul.f32 %v560_v1, %v1911_v56  ;;  %v1469_v28 = vpop.f32.mrb[12].mxu0  ;;  %1570 = vtanh.f32 %v620_v2 }
 0x103   : > { %v1561_v29 = vpop.eup %1560  ;;  %v609_v30 = vadd.f32 %v593_v11, %v1896_v42  ;;  %v594_v31 = vmul.f32 0.044715, %v578_v12  ;;  %v1924_v32 = vadd.f32 %v1469_v28, %v1840_v37  ;;  %v536_v33 = vpop.f32.mrb[13].mxu0  ;;  %v647_v34 = vadd.f32 1.0, %v1559_v17 }
 0x104   : > { %v665_v35 = vmul.f32 0.5, %v649_v18  ;;  %v650_v36 = vadd.f32 1.0, %v1561_v29  ;;  %v607_v38 = vadd.f32 %v591_v24, %v1899_v46  ;;  %v592_v40 = vmul.f32 0.044715, %v576_v27  ;;  %v1470_v43 = vpop.f32.mrb[14].mxu0  ;;  %v1563_v52 = vpop.eup %1562 }
 0x105   : > { %v625_v45 = vmul.f32 0.7978846, %v609_v30  ;;  %v610_v48 = vadd.f32 %v594_v31, %v1906_v53  ;;  %v565_v49 = vmul.f32 %v1924_v32, %v1924_v32  ;;  %v1931_v50 = vadd.f32 %v1840_v37, %v536_v33  ;;  %v539_v51 = vpop.f32.mrb[15].mxu0 }
 0x106   : > { %v681_v54 = vmul.f32 %v665_v35, %v1843_v39  ;;  %v666_v55 = vmul.f32 0.5, %v650_v36  ;;  %v623_v57 = vmul.f32 0.7978846, %v607_v38  ;;  %v608_v58 = vadd.f32 %v592_v40, %v1911_v56 }
 0x107   : > { %1572 = vtanh.f32 %v625_v45  ;;  %v626_v60 = vmul.f32 0.7978846, %v610_v48  ;;  %v581_v61 = vmul.f32 %v565_v49, %v1924_v32  ;;  %v563_v62 = vmul.f32 %v1931_v50, %v1931_v50 }
 0x108   : > { %v682_v0 = vmul.f32 %v666_v55, %v1851_v44  ;;  %1574 = vtanh.f32 %v623_v57  ;;  %v624_v1 = vmul.f32 0.7978846, %v608_v58  ;;  %v1940_v2 = vadd.f32 %v1470_v43, %v1840_v37 }
 0x109   : > { %v1565_v5 = vpop.eup %1564  ;;  %1576 = vtanh.f32 %v626_v60  ;;  %v597_v39 = vmul.f32 0.044715, %v581_v61  ;;  %v579_v11 = vmul.f32 %v563_v62, %v1931_v50  ;;  %v1944_v12 = vadd.f32 %v1840_v37, %v539_v51 }
 0x10a   : > { %v1567_v17 = vpop.eup %1566  ;;  %v712_v18 = vpack.c.bf16 %v682_v0, %v681_v54  ;;  %1578 = vtanh.f32 %v624_v1  ;;  %v566_v24 = vmul.f32 %v1940_v2, %v1940_v2  ;;  %v648_v44 = vadd.f32 1.0, %v1563_v52 }
 0x10b   : > { %v1569_v27 = vpop.eup %1568  ;;  %v613_v28 = vadd.f32 %v597_v39, %v1924_v32  ;;  %v595_v29 = vmul.f32 0.044715, %v579_v11  ;;  %v564_v30 = vmul.f32 %v1944_v12, %v1944_v12  ;;  %v663_v31 = vmul.f32 0.5, %v647_v34 }
 0x10c   : > { %v1571_v33 = vpop.eup %1570  ;;  %v582_v35 = vmul.f32 %v566_v24, %v1940_v2  ;;  %v664_v37 = vmul.f32 0.5, %v648_v44  ;;  %v651_v36 = vadd.f32 1.0, %v1567_v17  ;;  %v653_v38 = vadd.f32 1.0, %v1565_v5 }
 0x10d   : > { %v629_v40 = vmul.f32 0.7978846, %v613_v28  ;;  %v611_v43 = vadd.f32 %v595_v29, %v1931_v50  ;;  %v580_v45 = vmul.f32 %v564_v30, %v1944_v12  ;;  %v679_v48 = vmul.f32 %v663_v31, %v1846_v41 }
 0x10e   : > { %v598_v49 = vmul.f32 0.044715, %v582_v35  ;;  %v680_v51 = vmul.f32 %v664_v37, %v1856_v47  ;;  %v652_v52 = vadd.f32 1.0, %v1571_v33  ;;  %v667_v54 = vmul.f32 0.5, %v651_v36 }
 0x10f   : > { %1580 = vtanh.f32 %v629_v40  ;;  %v627_v34 = vmul.f32 0.7978846, %v611_v43  ;;  %v596_v55 = vmul.f32 0.044715, %v580_v45  ;;  %v654_v57 = vadd.f32 1.0, %v1569_v27 }
 0x110   : > { %v614_v58 = vadd.f32 %v598_v49, %v1940_v2  ;;  %v711_v60 = vpack.c.bf16 %v680_v51, %v679_v48  ;;  %v668_v61 = vmul.f32 0.5, %v652_v52  ;;  %v669_v1 = vmul.f32 0.5, %v653_v38 }
 0x111   : > { %v1573_v62 = vpop.eup %1572  ;;  %1582 = vtanh.f32 %v627_v34  ;;  %v612_v0 = vadd.f32 %v596_v55, %v1944_v12  ;;  %v670_v5 = vmul.f32 0.5, %v654_v57  ;;  %v683_v47 = vmul.f32 %v667_v54, %v1872_v63 }
 0x112   : > { %v1575_v41 = vpop.eup %1574  ;;  %v630_v39 = vmul.f32 0.7978846, %v614_v58  ;;  %1487 = vmatprep.mubr.bf16.mxu0 %v711_v60  ;;  %v684_v11 = vmul.f32 %v668_v61, %v1884_v23  ;;  %v657_v17 = vadd.f32 1.0, %v1573_v62  ;;  %v685_v27 = vmul.f32 %v669_v1, %v1868_v59 }
 0x113   : > { %v1577_v24 = vpop.eup %1576  ;;  %v628_v44 = vmul.f32 0.7978846, %v612_v0  ;;  %1488 = vmatmul.mubr.bf16.vlgmr.msra.gmra.mrb[16].mxu0 %v712_v18  ;;  %v686_v28 = vmul.f32 %v670_v5, %v1878_v6  ;;  %v655_v29 = vadd.f32 1.0, %v1575_v41  ;;  %v697_v5 = vld [vmem:[#allocation2 + $0x10] sm:$0xff]  ;;  %v695_v41 = vld [vmem:[#allocation2] sm:$0xff] }
 0x114   : > { %v1579_v30 = vpop.eup %1578  ;;  %1584 = vtanh.f32 %v630_v39  ;;  %v713_v31 = vpack.c.bf16 %v684_v11, %v683_v47  ;;  %v658_v33 = vadd.f32 1.0, %v1577_v24  ;;  %v673_v35 = vmul.f32 0.5, %v657_v17  ;;  %v698_v47 = vld [vmem:[#allocation2 + $0x18] sm:$0xff]  ;;  %v696_v24 = vld [vmem:[#allocation2 + $0x8] sm:$0xff] }
 0x115   : > { %1586 = vtanh.f32 %v628_v44  ;;  %v714_v37 = vpack.c.bf16 %v686_v28, %v685_v27  ;;  %v656_v36 = vadd.f32 1.0, %v1579_v30  ;;  %v671_v63 = vmul.f32 0.5, %v655_v29  ;;  %v699_v28 = vld [vmem:[#allocation2 + $0x20] sm:$0xff]  ;;  %v702_v30 = vld [vmem:[#allocation2 + $0x38] sm:$0xff] }
 0x116   : > { %1491 = vmatprep.mubr.bf16.mxu1 %v713_v31  ;;  %v674_v23 = vmul.f32 0.5, %v658_v33  ;;  %v689_v18 = vmul.f32 %v673_v35, %v1896_v42  ;;  %v700_v35 = vld [vmem:[#allocation2 + $0x28] sm:$0xff] }
 0x117   : > { %1492 = vmatmul.mubr.bf16.vlgmr.msra.gmra.mrb[0].mxu1 %v714_v37  ;;  %v672_v38 = vmul.f32 0.5, %v656_v36  ;;  %v687_v6 = vmul.f32 %v671_v63, %v1899_v46 }
 0x118   : > { %v690_v59 = vmul.f32 %v674_v23, %v1906_v53 }
 0x119   : > { %v1581_v40 = vpop.eup %1580  ;;  %v688_v43 = vmul.f32 %v672_v38, %v1911_v56 }
 0x11a   : > { %v716_v45 = vpack.c.bf16 %v690_v59, %v689_v18  ;;  %v661_v51 = vadd.f32 1.0, %v1581_v40  ;;  %v705_v18 = vld [vmem:[#allocation2 + $0x50] sm:$0xff]  ;;  %v1981_v40 = vld [vmem:[%s2295_s4] ss:$0 sm:$0xff] }
 0x11b   : > { %v1583_v48 = vpop.eup %1582  ;;  %v715_v49 = vpack.c.bf16 %v688_v43, %v687_v6  ;;  %v703_v43 = vld [vmem:[#allocation2 + $0x40] sm:$0xff] }
 0x11c   : > { %v659_v52 = vadd.f32 1.0, %v1583_v48  ;;  %v677_v57 = vmul.f32 0.5, %v661_v51  ;;  %v706_v51 = vld [vmem:[#allocation2 + $0x58] sm:$0xff] }
 0x11d   : > { %1495 = vmatprep.mubr.bf16.mxu1 %v715_v49 }
 0x11e   : > { %v1585_v54 = vpop.eup %1584  ;;  %v675_v42 = vmul.f32 0.5, %v659_v52  ;;  %v693_v61 = vmul.f32 %v677_v57, %v1924_v32  ;;  %v701_v32 = vld [vmem:[#allocation2 + $0x30] sm:$0xff]  ;;  %v704_v57 = vld [vmem:[#allocation2 + $0x48] sm:$0xff] }
 0x11f   : > { %v1587_v34 = vpop.eup %1586  ;;  %1496 = vmatmul.mubr.bf16.gmra.mrb[4].mxu1 %v716_v45  ;;  %v662_v55 = vadd.f32 1.0, %v1585_v54 }
 0x120   : > { %v660_v58 = vadd.f32 1.0, %v1587_v34  ;;  %v691_v56 = vmul.f32 %v675_v42, %v1931_v50 }
 0x121   : > { %v678_v60 = vmul.f32 0.5, %v662_v55 }
 0x122   : > { %v676_v53 = vmul.f32 0.5, %v660_v58 }
 0x123   : > { %v694_v46 = vmul.f32 %v678_v60, %v1940_v2 }
 0x124   : > { %v692_v62 = vmul.f32 %v676_v53, %v1944_v12 }
 0x125   : > { %v718_v0 = vpack.c.bf16 %v694_v46, %v693_v61 }
 0x126   : > { %v717_v1 = vpack.c.bf16 %v692_v62, %v691_v56 }
 0x128   : > { %1499 = vmatprep.mubr.bf16.mxu1 %v717_v1 }
 0x129   : > { %1500 = vmatmul.mubr.bf16.gmra.mrb[8].mxu1 %v718_v0 }
 0x1e6   : > { %v1489_v39 = vpop.f32.mrb[16].mxu0 }
 0x1e7   : > { %v882_v11 = vadd.f32 %v1489_v39, %v697_v5  ;;  %v817_v17 = vpop.f32.mrb[17].mxu0 }
 0x1e8   : > { %v880_v44 = vadd.f32 %v817_v17, %v695_v41  ;;  %v1490_v27 = vpop.f32.mrb[18].mxu0  ;;  %v707_v17 = vld [vmem:[#allocation2 + $0x60] sm:$0xff] }
 0x1e9   : > { %898 = vst.msk [vmem:[#allocation2 + $0x10] sm:$0xff] %vm349_vm0, %v882_v11  ;;  %v883_v2 = vadd.f32 %v1490_v27, %v698_v47  ;;  %v820_v50 = vpop.f32.mrb[19].mxu0  ;;  %v709_v47 = vld [vmem:[#allocation2 + $0x70] sm:$0xff]  ;;  %v710_v27 = vld [vmem:[#allocation2 + $0x78] sm:$0xff] }
 0x1ea   : > { %896 = vst.msk [vmem:[#allocation2] sm:$0xff] %vm349_vm0, %v880_v44  ;;  %v881_v12 = vadd.f32 %v820_v50, %v696_v24  ;;  %v1493_v29 = vpop.f32.mrb[0].mxu1 }
 0x1eb   : > { %899 = vst.msk [vmem:[#allocation2 + $0x18] sm:$0xff] %vm349_vm0, %v883_v2  ;;  %v886_v31 = vadd.f32 %v1493_v29, %v701_v32  ;;  %v833_v33 = vpop.f32.mrb[1].mxu1 }
 0x1ec   : > { %897 = vst.msk [vmem:[#allocation2 + $0x8] sm:$0xff] %vm349_vm0, %v881_v12  ;;  %v884_v37 = vadd.f32 %v833_v33, %v699_v28  ;;  %v1494_v36 = vpop.f32.mrb[2].mxu1  ;;  %v708_v28 = vld [vmem:[#allocation2 + $0x68] sm:$0xff] }
 0x1ed   : > { %902 = vst.msk [vmem:[#allocation2 + $0x30] sm:$0xff] %vm349_vm0, %v886_v31  ;;  %v887_v63 = vadd.f32 %v1494_v36, %v702_v30  ;;  %v836_v23 = vpop.f32.mrb[3].mxu1 }
 0x1ee   : > { %900 = vst.msk [vmem:[#allocation2 + $0x20] sm:$0xff] %vm349_vm0, %v884_v37  ;;  %v885_v38 = vadd.f32 %v836_v23, %v700_v35 }
 0x1ef   : > { %903 = vst.msk [vmem:[#allocation2 + $0x38] sm:$0xff] %vm349_vm0, %v887_v63 }
 0x1f0   : > { %901 = vst.msk [vmem:[#allocation2 + $0x28] sm:$0xff] %vm349_vm0, %v885_v38  ;;  %v917_v59 = vld [vmem:[#allocation2 + $0x10] sm:$0xff] }
 0x1f1   : > { %v933_v6 = vadd.f32 %v917_v59, %v1735_v7  ;;  %v915_v45 = vld [vmem:[#allocation2] sm:$0xff] }
 0x1f2   : > { %v1497_v48 = vpop.f32.mrb[4].mxu1  ;;  %v931_v49 = vadd.f32 %v915_v45, %v1723_v3  ;;  %v918_v52 = vld [vmem:[#allocation2 + $0x18] sm:$0xff] }
 0x1f3   : > { %v890_v54 = vadd.f32 %v1497_v48, %v705_v18  ;;  %v1986_v34 = vadd.f32 %v1981_v40, %v933_v6  ;;  %v849_v55 = vpop.f32.mrb[5].mxu1  ;;  %v934_v58 = vadd.f32 %v918_v52, %v1738_v8  ;;  %v916_v42 = vld [vmem:[#allocation2 + $0x8] sm:$0xff] }
 0x1f4   : > { %v888_v60 = vadd.f32 %v849_v55, %v703_v43  ;;  %v1990_v53 = vadd.f32 %v1981_v40, %v931_v49  ;;  %v1498_v7 = vpop.f32.mrb[6].mxu1  ;;  %v932_v62 = vadd.f32 %v916_v42, %v1726_v4  ;;  %v921_v24 = vld [vmem:[#allocation2 + $0x30] sm:$0xff] }
 0x1f5   : > { %906 = vst.msk [vmem:[#allocation2 + $0x50] sm:$0xff] %vm349_vm0, %v890_v54  ;;  %v976_v3 = vsel %vm349_vm0, %v1986_v34, 0.0  ;;  %v891_v61 = vadd.f32 %v1498_v7, %v706_v51  ;;  %v852_v46 = vpop.f32.mrb[7].mxu1  ;;  %v1996_v56 = vadd.f32 %v1981_v40, %v934_v58  ;;  %v1037_v1 = vmul.f32 %v1986_v34, %v1986_v34  ;;  %v919_v38 = vld [vmem:[#allocation2 + $0x20] sm:$0xff] }
 0x1f6   : > { %977 = vadd.xlane.f32.xlu1 %v976_v3  ;;  %904 = vst.msk [vmem:[#allocation2 + $0x40] sm:$0xff] %vm349_vm0, %v888_v60  ;;  %v970_v8 = vsel %vm349_vm0, %v1990_v53, 0.0  ;;  %v889_v0 = vadd.f32 %v852_v46, %v704_v57  ;;  %v2011_v41 = vadd.f32 %v1981_v40, %v932_v62  ;;  %v922_v11 = vld [vmem:[#allocation2 + $0x38] sm:$0xff]  ;;  %v1035_v35 = vmul.f32 %v1990_v53, %v1990_v53 }
 0x1f7   : > { %971 = vadd.xlane.f32.xlu0 %v970_v8  ;;  %907 = vst.msk [vmem:[#allocation2 + $0x58] sm:$0xff] %vm349_vm0, %v891_v61  ;;  %v979_v5 = vsel %vm349_vm0, %v1996_v56, 0.0  ;;  %v1038_v4 = vmul.f32 %v1996_v56, %v1996_v56  ;;  %v1057_v39 = vsel %vm349_vm0, %v1037_v1, 0.0  ;;  %v938_v29 = vadd.f32 %v922_v11, %v1756_v14  ;;  %v920_v36 = vld [vmem:[#allocation2 + $0x28] sm:$0xff] }
 0x1f8   : > { %905 = vst.msk [vmem:[#allocation2 + $0x48] sm:$0xff] %vm349_vm0, %v889_v0  ;;  %v1036_v12 = vmul.f32 %v2011_v41, %v2011_v41  ;;  %v973_v31 = vsel %vm349_vm0, %v2011_v41, 0.0  ;;  %v937_v37 = vadd.f32 %v921_v24, %v1753_v13  ;;  %v936_v6 = vadd.f32 %v920_v36, %v1744_v10 }
 0x1f9   : > { %v1060_v2 = vsel %vm349_vm0, %v1038_v4, 0.0  ;;  %v2028_v59 = vadd.f32 %v1981_v40, %v938_v29  ;;  %v1051_v13 = vsel %vm349_vm0, %v1035_v35, 0.0  ;;  %v935_v45 = vadd.f32 %v919_v38, %v1741_v9 }
 0x1fa   : > { %980 = vadd.xlane.f32.xlu1 %v979_v5  ;;  %v1054_v18 = vsel %vm349_vm0, %v1036_v12, 0.0  ;;  %v2034_v43 = vadd.f32 %v1981_v40, %v937_v37  ;;  %v2040_v49 = vadd.f32 %v1981_v40, %v936_v6 }
 0x1fb   : > { %1058 = vadd.xlane.f32.xlu0 %v1057_v39  ;;  %v991_v48 = vsel %vm349_vm0, %v2028_v59, 0.0  ;;  %v2045_v51 = vadd.f32 %v1981_v40, %v935_v45  ;;  %v1042_v9 = vmul.f32 %v2028_v59, %v2028_v59 }
 0x1fc   : > { %v1501_v44 = vpop.f32.mrb[8].mxu1  ;;  %v988_v10 = vsel %vm349_vm0, %v2034_v43, 0.0  ;;  %v985_v52 = vsel %vm349_vm0, %v2040_v49, 0.0  ;;  %v1041_v55 = vmul.f32 %v2034_v43, %v2034_v43  ;;  %v925_v58 = vld [vmem:[#allocation2 + $0x50] sm:$0xff]  ;;  %v1040_v60 = vmul.f32 %v2040_v49, %v2040_v49 }
 0x1fd   : > { %v894_v32 = vadd.f32 %v1501_v44, %v709_v47  ;;  %v865_v50 = vpop.f32.mrb[9].mxu1  ;;  %v982_v54 = vsel %vm349_vm0, %v2045_v51, 0.0  ;;  %v1072_v42 = vsel %vm349_vm0, %v1042_v9, 0.0  ;;  %v1039_v61 = vmul.f32 %v2045_v51, %v2045_v51  ;;  %v923_v8 = vld [vmem:[#allocation2 + $0x40] sm:$0xff] }
 0x1fe   : > { %1061 = vadd.xlane.f32.xlu1 %v1060_v2  ;;  %v892_v30 = vadd.f32 %v865_v50, %v707_v17  ;;  %v1502_v33 = vpop.f32.mrb[10].mxu1  ;;  %v926_v57 = vld [vmem:[#allocation2 + $0x58] sm:$0xff]  ;;  %v1069_v3 = vsel %vm349_vm0, %v1041_v55, 0.0  ;;  %v941_v46 = vadd.f32 %v925_v58, %v1771_v19  ;;  %v1066_v0 = vsel %vm349_vm0, %v1040_v60, 0.0 }
 0x1ff   : > { %910 = vst.msk [vmem:[#allocation2 + $0x70] sm:$0xff] %vm349_vm0, %v894_v32  ;;  %974 = vadd.xlane.f32.xlu0 %v973_v31  ;;  %v895_v63 = vadd.f32 %v1502_v33, %v710_v27  ;;  %v868_v23 = vpop.f32.mrb[11].mxu1  ;;  %v942_v7 = vadd.f32 %v926_v57, %v1774_v20  ;;  %v924_v62 = vld [vmem:[#allocation2 + $0x48] sm:$0xff]  ;;  %v1063_v20 = vsel %vm349_vm0, %v1039_v61, 0.0  ;;  %v939_v39 = vadd.f32 %v923_v8, %v1759_v15 }
 0x200   : > { %908 = vst.msk [vmem:[#allocation2 + $0x60] sm:$0xff] %vm349_vm0, %v892_v30  ;;  %v893_v14 = vadd.f32 %v868_v23, %v708_v28  ;;  %v940_v5 = vadd.f32 %v924_v62, %v1762_v16  ;;  %v2070_v4 = vadd.f32 %v1981_v40, %v941_v46 }
 0x201   : > { %911 = vst.msk [vmem:[#allocation2 + $0x78] sm:$0xff] %vm349_vm0, %v895_v63  ;;  %v2065_v1 = vadd.f32 %v1981_v40, %v942_v7  ;;  %v2081_v16 = vadd.f32 %v1981_v40, %v939_v39 }
 0x202   : > { %909 = vst.msk [vmem:[#allocation2 + $0x68] sm:$0xff] %vm349_vm0, %v893_v14  ;;  %1055 = vadd.xlane.f32.xlu1 %v1054_v18  ;;  %v2076_v47 = vadd.f32 %v1981_v40, %v940_v5  ;;  %v1000_v11 = vsel %vm349_vm0, %v2070_v4, 0.0  ;;  %v1045_v44 = vmul.f32 %v2070_v4, %v2070_v4 }
 0x203   : > { %1052 = vadd.xlane.f32.xlu0 %v1051_v13  ;;  %v1003_v19 = vsel %vm349_vm0, %v2065_v1, 0.0  ;;  %v1046_v15 = vmul.f32 %v2065_v1, %v2065_v1  ;;  %v994_v24 = vsel %vm349_vm0, %v2081_v16, 0.0  ;;  %v1043_v29 = vmul.f32 %v2081_v16, %v2081_v16 }
 0x204   : > { %v997_v17 = vsel %vm349_vm0, %v2076_v47, 0.0  ;;  %v1044_v50 = vmul.f32 %v2076_v47, %v2076_v47  ;;  %v1081_v12 = vsel %vm349_vm0, %v1045_v44, 0.0 }
 0x205   : > { %v1084_v2 = vsel %vm349_vm0, %v1046_v15, 0.0 }
 0x206   : > { %992 = vadd.xlane.f32.xlu1 %v991_v48  ;;  %v929_v32 = vld [vmem:[#allocation2 + $0x70] sm:$0xff]  ;;  %v1078_v35 = vsel %vm349_vm0, %v1044_v50, 0.0 }
 0x207   : > { %989 = vadd.xlane.f32.xlu0 %v988_v10  ;;  %v945_v30 = vadd.f32 %v929_v32, %v1789_v25  ;;  %v927_v33 = vld [vmem:[#allocation2 + $0x60] sm:$0xff] }
 0x208   : > { %v930_v27 = vld [vmem:[#allocation2 + $0x78] sm:$0xff]  ;;  %v943_v23 = vadd.f32 %v927_v33, %v1777_v21 }
 0x209   : > { %v946_v28 = vadd.f32 %v930_v27, %v1792_v26  ;;  %v928_v31 = vld [vmem:[#allocation2 + $0x68] sm:$0xff]  ;;  %v1075_v26 = vsel %vm349_vm0, %v1043_v29, 0.0  ;;  %v2106_v63 = vadd.f32 %v1981_v40, %v945_v30 }
 0x20a   : > { %986 = vadd.xlane.f32.xlu1 %v985_v52  ;;  %v944_v36 = vadd.f32 %v928_v31, %v1780_v22  ;;  %v2117_v22 = vadd.f32 %v1981_v40, %v943_v23  ;;  %v2145_v23 = vld [vmem:[%s2296_s5] ss:$0 sm:$0xff] }
 0x20b   : > { %983 = vadd.xlane.f32.xlu0 %v982_v54  ;;  %v2101_v37 = vadd.f32 %v1981_v40, %v946_v28  ;;  %v1012_v14 = vsel %vm349_vm0, %v2106_v63, 0.0  ;;  %v1049_v10 = vmul.f32 %v2106_v63, %v2106_v63 }
 0x20c   : > { %v2112_v38 = vadd.f32 %v1981_v40, %v944_v36  ;;  %v1006_v6 = vsel %vm349_vm0, %v2117_v22, 0.0  ;;  %v1047_v13 = vmul.f32 %v2117_v22, %v2117_v22 }
 0x20d   : > { %v1015_v25 = vsel %vm349_vm0, %v2101_v37, 0.0  ;;  %v1050_v40 = vmul.f32 %v2101_v37, %v2101_v37  ;;  %v1093_v9 = vsel %vm349_vm0, %v1049_v10, 0.0 }
 0x20e   : > { %1073 = vadd.xlane.f32.xlu1 %v1072_v42  ;;  %v1009_v18 = vsel %vm349_vm0, %v2112_v38, 0.0  ;;  %v1048_v21 = vmul.f32 %v2112_v38, %v2112_v38  ;;  %v1087_v48 = vsel %vm349_vm0, %v1047_v13, 0.0 }
 0x20f   : > { %1070 = vadd.xlane.f32.xlu0 %v1069_v3  ;;  %v1096_v52 = vsel %vm349_vm0, %v1050_v40, 0.0 }
 0x210   : > { %v1090_v45 = vsel %vm349_vm0, %v1048_v21, 0.0  ;;  %v2153_v21 = vld [vmem:[%s2297_s6] ss:$0 sm:$0xff] }
 0x212   : > { %1067 = vadd.xlane.f32.xlu1 %v1066_v0 }
 0x213   : > { %1064 = vadd.xlane.f32.xlu0 %v1063_v20 }
 0x216   : > { %1004 = vadd.xlane.f32.xlu1 %v1003_v19 }
 0x217   : > { %1001 = vadd.xlane.f32.xlu0 %v1000_v11 }
 0x21a   : > { %998 = vadd.xlane.f32.xlu1 %v997_v17 }
 0x21b   : > { %995 = vadd.xlane.f32.xlu0 %v994_v24 }
 0x21e   : > { %1085 = vadd.xlane.f32.xlu1 %v1084_v2 }
 0x21f   : > { %1082 = vadd.xlane.f32.xlu0 %v1081_v12 }
 0x222   : > { %1079 = vadd.xlane.f32.xlu1 %v1078_v35 }
 0x223   : > { %1076 = vadd.xlane.f32.xlu0 %v1075_v26 }
 0x226   : > { %1016 = vadd.xlane.f32.xlu1 %v1015_v25 }
 0x227   : > { %1013 = vadd.xlane.f32.xlu0 %v1012_v14 }
 0x22a   : > { %1010 = vadd.xlane.f32.xlu1 %v1009_v18 }
 0x22b   : > { %1007 = vadd.xlane.f32.xlu0 %v1006_v6 }
 0x22e   : > { %1091 = vadd.xlane.f32.xlu1 %v1090_v45 }
 0x22f   : > { %1088 = vadd.xlane.f32.xlu0 %v1087_v48 }
 0x232   : > { %1097 = vadd.xlane.f32.xlu1 %v1096_v52 }
 0x233   : > { %1094 = vadd.xlane.f32.xlu0 %v1093_v9 }
 0x283   : > { %v978_v54 = vpop.xlane.xlu1 %977 }
 0x284   : > { %v972_v55 = vpop.xlane.xlu0 %971  ;;  %v1021_v57 = vmul.f32 0.015625, %v978_v54 }
 0x285   : > { %v2135_v5 = vmul.f32 0.015625, %v972_v55 }
 0x286   : > { %v1117_v7 = vmul.f32 %v1021_v57, %v1021_v57  ;;  %v1149_v35 = vsub.f32 %v1986_v34, %v1021_v57 }
 0x287   : > { %v981_v58 = vpop.xlane.xlu1 %980  ;;  %v1115_v27 = vmul.f32 %v2135_v5, %v2135_v5 }
 0x288   : > { %v1022_v42 = vmul.f32 0.015625, %v981_v58  ;;  %v1059_v60 = vpop.xlane.xlu0 %1058  ;;  %v1147_v58 = vsub.f32 %v1990_v53, %v2135_v5 }
 0x289   : > { %v1101_v3 = vmul.f32 0.015625, %v1059_v60 }
 0x28a   : > { %v1118_v62 = vmul.f32 %v1022_v42, %v1022_v42  ;;  %v1150_v18 = vsub.f32 %v1996_v56, %v1022_v42 }
 0x28b   : > { %v1133_v61 = vsub.f32 %v1101_v3, %v1117_v7  ;;  %v1062_v46 = vpop.xlane.xlu1 %1061 }
 0x28c   : > { %v1102_v8 = vmul.f32 0.015625, %v1062_v46  ;;  %v975_v0 = vpop.xlane.xlu0 %974 }
 0x28d   : > { %v1165_v20 = vadd.f32 1e-05, %v1133_v61  ;;  %v1020_v39 = vmul.f32 0.015625, %v975_v0 }
 0x28e   : > { %v1134_v19 = vsub.f32 %v1102_v8, %v1118_v62 }
 0x28f   : > { %1588 = vrsqrt.f32 %v1165_v20  ;;  %v1116_v11 = vmul.f32 %v1020_v39, %v1020_v39  ;;  %v1056_v17 = vpop.xlane.xlu1 %1055  ;;  %v1148_v60 = vsub.f32 %v2011_v41, %v1020_v39 }
 0x290   : > { %v1166_v15 = vadd.f32 1e-05, %v1134_v19  ;;  %v1100_v24 = vmul.f32 0.015625, %v1056_v17  ;;  %v1053_v44 = vpop.xlane.xlu0 %1052 }
 0x291   : > { %v1099_v32 = vmul.f32 0.015625, %v1053_v44 }
 0x292   : > { %1590 = vrsqrt.f32 %v1166_v15  ;;  %v1132_v2 = vsub.f32 %v1100_v24, %v1116_v11 }
 0x293   : > { %v1131_v50 = vsub.f32 %v1099_v32, %v1115_v27  ;;  %v993_v28 = vpop.xlane.xlu1 %992 }
 0x294   : > { %v1164_v12 = vadd.f32 1e-05, %v1132_v2  ;;  %v990_v29 = vpop.xlane.xlu0 %989  ;;  %v2139_v31 = vmul.f32 0.015625, %v993_v28 }
 0x295   : > { %v1163_v30 = vadd.f32 1e-05, %v1131_v50  ;;  %v2147_v25 = vmul.f32 0.015625, %v990_v29 }
 0x296   : > { %1592 = vrsqrt.f32 %v1164_v12  ;;  %v1122_v34 = vmul.f32 %v2139_v31, %v2139_v31 }
 0x297   : > { %1594 = vrsqrt.f32 %v1163_v30  ;;  %v987_v33 = vpop.xlane.xlu1 %986  ;;  %v1121_v9 = vmul.f32 %v2147_v25, %v2147_v25 }
 0x298   : > { %v984_v36 = vpop.xlane.xlu0 %983  ;;  %v2158_v40 = vmul.f32 0.015625, %v987_v33 }
 0x299   : > { %v1589_v26 = vpop.eup %1588  ;;  %v2160_v48 = vmul.f32 0.015625, %v984_v36  ;;  %v1154_v36 = vsub.f32 %v2028_v59, %v2139_v31 }
 0x29a   : > { %v1197_v14 = vmul.f32 %v1589_v26, %v1149_v35  ;;  %v1120_v46 = vmul.f32 %v2158_v40, %v2158_v40  ;;  %v1152_v31 = vsub.f32 %v2040_v49, %v2158_v40 }
 0x29b   : > { %v1074_v6 = vpop.xlane.xlu1 %1073  ;;  %v1119_v62 = vmul.f32 %v2160_v48, %v2160_v48 }
 0x29c   : > { %v1591_v13 = vpop.eup %1590  ;;  %v1220_v45 = vmul.f32 %v2145_v23, %v1197_v14  ;;  %v1106_v10 = vmul.f32 0.015625, %v1074_v6  ;;  %v1071_v52 = vpop.xlane.xlu0 %1070 }
 0x29d   : > { %v1198_v56 = vmul.f32 %v1591_v13, %v1150_v18  ;;  %v1105_v54 = vmul.f32 0.015625, %v1071_v52 }
 0x29e   : > { %v1243_v55 = vadd.f32 %v2153_v21, %v1220_v45  ;;  %v1138_v57 = vsub.f32 %v1106_v10, %v1122_v34  ;;  %v1153_v34 = vsub.f32 %v2034_v43, %v2147_v25  ;;  %v1151_v43 = vsub.f32 %v2045_v51, %v2160_v48 }
 0x29f   : > { %v1221_v42 = vmul.f32 %v2145_v23, %v1198_v56  ;;  %v1137_v7 = vsub.f32 %v1105_v54, %v1121_v9  ;;  %v1068_v3 = vpop.xlane.xlu1 %1067 }
 0x2a0   : > { %v1593_v61 = vpop.eup %1592  ;;  %1259 = vst.msk [vmem:[%s2167_s29 + $0x10] sm:$0xff] %vm349_vm0, %v1243_v55  ;;  %v1170_v8 = vadd.f32 1e-05, %v1138_v57  ;;  %v1104_v0 = vmul.f32 0.015625, %v1068_v3  ;;  %v1065_v20 = vpop.xlane.xlu0 %1064 }
 0x2a1   : > { %v1595_v53 = vpop.eup %1594  ;;  %v1244_v5 = vadd.f32 %v2153_v21, %v1221_v42  ;;  %v1196_v19 = vmul.f32 %v1593_v61, %v1148_v60  ;;  %v1169_v41 = vadd.f32 1e-05, %v1137_v7  ;;  %v1103_v39 = vmul.f32 0.015625, %v1065_v20 }
 0x2a2   : > { %v1195_v11 = vmul.f32 %v1595_v53, %v1147_v58  ;;  %1596 = vrsqrt.f32 %v1170_v8  ;;  %v1136_v17 = vsub.f32 %v1104_v0, %v1120_v46 }
 0x2a3   : > { %1260 = vst.msk [vmem:[%s2167_s29 + $0x18] sm:$0xff] %vm349_vm0, %v1244_v5  ;;  %v1219_v15 = vmul.f32 %v2145_v23, %v1196_v19  ;;  %1598 = vrsqrt.f32 %v1169_v41  ;;  %v1135_v24 = vsub.f32 %v1103_v39, %v1119_v62  ;;  %v1005_v44 = vpop.xlane.xlu1 %1004 }
 0x2a4   : > { %v1218_v27 = vmul.f32 %v2145_v23, %v1195_v11  ;;  %v1168_v32 = vadd.f32 1e-05, %v1136_v17  ;;  %v1002_v2 = vpop.xlane.xlu0 %1001  ;;  %v2193_v30 = vmul.f32 0.015625, %v1005_v44 }
 0x2a5   : > { %v1242_v50 = vadd.f32 %v2153_v21, %v1219_v15  ;;  %v1167_v28 = vadd.f32 1e-05, %v1135_v24  ;;  %v2195_v35 = vmul.f32 0.015625, %v1002_v2 }
 0x2a6   : > { %v1241_v12 = vadd.f32 %v2153_v21, %v1218_v27  ;;  %1600 = vrsqrt.f32 %v1168_v32  ;;  %v1126_v6 = vmul.f32 %v2193_v30, %v2193_v30 }
 0x2a7   : > { %1258 = vst.msk [vmem:[%s2167_s29 + $0x8] sm:$0xff] %vm349_vm0, %v1242_v50  ;;  %1602 = vrsqrt.f32 %v1167_v28  ;;  %v999_v29 = vpop.xlane.xlu1 %998  ;;  %v1125_v9 = vmul.f32 %v2195_v35, %v2195_v35  ;;  %v1158_v28 = vsub.f32 %v2065_v1, %v2193_v30 }
 0x2a8   : > { %1257 = vst.msk [vmem:[%s2167_s29] sm:$0xff] %vm349_vm0, %v1241_v12  ;;  %v996_v33 = vpop.xlane.xlu0 %995  ;;  %v2199_v26 = vmul.f32 0.015625, %v999_v29 }
 0x2a9   : > { %v2205_v13 = vmul.f32 0.015625, %v996_v33 }
 0x2aa   : > { %v1124_v57 = vmul.f32 %v2199_v26, %v2199_v26 }
 0x2ab   : > { %v1086_v14 = vpop.xlane.xlu1 %1085  ;;  %v1123_v3 = vmul.f32 %v2205_v13, %v2205_v13  ;;  %v1155_v30 = vsub.f32 %v2081_v16, %v2205_v13 }
 0x2ac   : > { %v1597_v18 = vpop.eup %1596  ;;  %v1110_v45 = vmul.f32 0.015625, %v1086_v14  ;;  %v1083_v10 = vpop.xlane.xlu0 %1082 }
 0x2ad   : > { %v1599_v52 = vpop.eup %1598  ;;  %v1202_v56 = vmul.f32 %v1597_v18, %v1154_v36  ;;  %v1109_v59 = vmul.f32 0.015625, %v1083_v10  ;;  %v1157_v36 = vsub.f32 %v2070_v4, %v2195_v35 }
 0x2ae   : > { %v1201_v54 = vmul.f32 %v1599_v52, %v1153_v34  ;;  %v1142_v55 = vsub.f32 %v1110_v45, %v1126_v6 }
 0x2af   : > { %v1225_v25 = vmul.f32 %v2145_v23, %v1202_v56  ;;  %v1141_v58 = vsub.f32 %v1109_v59, %v1125_v9  ;;  %v1080_v42 = vpop.xlane.xlu1 %1079  ;;  %v1156_v9 = vsub.f32 %v2076_v47, %v2199_v26 }
 0x2b0   : > { %v1601_v60 = vpop.eup %1600  ;;  %v1224_v7 = vmul.f32 %v2145_v23, %v1201_v54  ;;  %v1174_v49 = vadd.f32 1e-05, %v1142_v55  ;;  %v1108_v40 = vmul.f32 0.015625, %v1080_v42  ;;  %v1077_v61 = vpop.xlane.xlu0 %1076 }
 0x2b1   : > { %v1603_v46 = vpop.eup %1602  ;;  %v1248_v51 = vadd.f32 %v2153_v21, %v1225_v25  ;;  %v1200_v48 = vmul.f32 %v1601_v60, %v1152_v31  ;;  %v1173_v62 = vadd.f32 1e-05, %v1141_v58  ;;  %v1107_v8 = vmul.f32 0.015625, %v1077_v61 }
 0x2b2   : > { %v1247_v0 = vadd.f32 %v2153_v21, %v1224_v7  ;;  %v1199_v20 = vmul.f32 %v1603_v46, %v1151_v43  ;;  %1604 = vrsqrt.f32 %v1174_v49  ;;  %v1140_v53 = vsub.f32 %v1108_v40, %v1124_v57 }
 0x2b3   : > { %1264 = vst.msk [vmem:[%s2167_s29 + $0x38] sm:$0xff] %vm349_vm0, %v1248_v51  ;;  %v1223_v5 = vmul.f32 %v2145_v23, %v1200_v48  ;;  %1606 = vrsqrt.f32 %v1173_v62  ;;  %v1139_v19 = vsub.f32 %v1107_v8, %v1123_v3  ;;  %v1017_v41 = vpop.xlane.xlu1 %1016 }
 0x2b4   : > { %1263 = vst.msk [vmem:[%s2167_s29 + $0x30] sm:$0xff] %vm349_vm0, %v1247_v0  ;;  %v1222_v39 = vmul.f32 %v2145_v23, %v1199_v20  ;;  %v1172_v11 = vadd.f32 1e-05, %v1140_v53  ;;  %v1014_v17 = vpop.xlane.xlu0 %1013  ;;  %v2235_v12 = vmul.f32 0.015625, %v1017_v41 }
 0x2b5   : > { %v1246_v15 = vadd.f32 %v2153_v21, %v1223_v5  ;;  %v1171_v24 = vadd.f32 1e-05, %v1139_v19  ;;  %v1033_v14 = vmul.f32 0.015625, %v1014_v17 }
 0x2b6   : > { %v1245_v44 = vadd.f32 %v2153_v21, %v1222_v39  ;;  %1608 = vrsqrt.f32 %v1172_v11  ;;  %v1130_v4 = vmul.f32 %v2235_v12, %v2235_v12  ;;  %v1162_v39 = vsub.f32 %v2101_v37, %v2235_v12 }
 0x2b7   : > { %1262 = vst.msk [vmem:[%s2167_s29 + $0x28] sm:$0xff] %vm349_vm0, %v1246_v15  ;;  %1610 = vrsqrt.f32 %v1171_v24  ;;  %v1011_v27 = vpop.xlane.xlu1 %1010  ;;  %v1129_v25 = vmul.f32 %v1033_v14, %v1033_v14  ;;  %v1161_v15 = vsub.f32 %v2106_v63, %v1033_v14 }
 0x2b8   : > { %1261 = vst.msk [vmem:[%s2167_s29 + $0x20] sm:$0xff] %vm349_vm0, %v1245_v44  ;;  %v1032_v32 = vmul.f32 0.015625, %v1011_v27  ;;  %v1008_v2 = vpop.xlane.xlu0 %1007 }
 0x2b9   : > { %v1031_v50 = vmul.f32 0.015625, %v1008_v2 }
 0x2ba   : > { %v1128_v18 = vmul.f32 %v1032_v32, %v1032_v32  ;;  %v1160_v0 = vsub.f32 %v2112_v38, %v1032_v32 }
 0x2bb   : > { %v1092_v29 = vpop.xlane.xlu1 %1091  ;;  %v1127_v52 = vmul.f32 %v1031_v50, %v1031_v50  ;;  %v1159_v53 = vsub.f32 %v2117_v22, %v1031_v50 }
 0x2bc   : > { %v1605_v33 = vpop.eup %1604  ;;  %v1112_v34 = vmul.f32 0.015625, %v1092_v29  ;;  %v1089_v6 = vpop.xlane.xlu0 %1088 }
 0x2bd   : > { %v1607_v45 = vpop.eup %1606  ;;  %v1206_v10 = vmul.f32 %v1605_v33, %v1158_v28  ;;  %v1111_v56 = vmul.f32 0.015625, %v1089_v6 }
 0x2be   : > { %v1205_v59 = vmul.f32 %v1607_v45, %v1157_v36  ;;  %v1144_v1 = vsub.f32 %v1112_v34, %v1128_v18 }
 0x2bf   : > { %v1229_v31 = vmul.f32 %v2145_v23, %v1206_v10  ;;  %v1143_v35 = vsub.f32 %v1111_v56, %v1127_v52  ;;  %v1098_v54 = vpop.xlane.xlu1 %1097 }
 0x2c0   : > { %v1609_v55 = vpop.eup %1608  ;;  %v1228_v43 = vmul.f32 %v2145_v23, %v1205_v59  ;;  %v1176_v57 = vadd.f32 1e-05, %v1144_v1  ;;  %v1114_v47 = vmul.f32 0.015625, %v1098_v54  ;;  %v1095_v26 = vpop.xlane.xlu0 %1094 }
 0x2c1   : > { %v1611_v58 = vpop.eup %1610  ;;  %v1252_v42 = vadd.f32 %v2153_v21, %v1229_v31  ;;  %v1204_v16 = vmul.f32 %v1609_v55, %v1156_v9  ;;  %v1175_v13 = vadd.f32 1e-05, %v1143_v35  ;;  %v1113_v60 = vmul.f32 0.015625, %v1095_v26 }
 0x2c2   : > { %v1251_v7 = vadd.f32 %v2153_v21, %v1228_v43  ;;  %v1203_v3 = vmul.f32 %v1611_v58, %v1155_v30  ;;  %1612 = vrsqrt.f32 %v1176_v57  ;;  %v1146_v49 = vsub.f32 %v1114_v47, %v1130_v4 }
 0x2c3   : > { %1268 = vst.msk [vmem:[%s2167_s29 + $0x58] sm:$0xff] %vm349_vm0, %v1252_v42  ;;  %v1227_v40 = vmul.f32 %v2145_v23, %v1204_v16  ;;  %1614 = vrsqrt.f32 %v1175_v13  ;;  %v1145_v61 = vsub.f32 %v1113_v60, %v1129_v25 }
 0x2c4   : > { %1267 = vst.msk [vmem:[%s2167_s29 + $0x50] sm:$0xff] %vm349_vm0, %v1251_v7  ;;  %v1226_v46 = vmul.f32 %v2145_v23, %v1203_v3  ;;  %v1178_v51 = vadd.f32 1e-05, %v1146_v49 }
 0x2c5   : > { %v1250_v48 = vadd.f32 %v2153_v21, %v1227_v40  ;;  %v1177_v62 = vadd.f32 1e-05, %v1145_v61 }
 0x2c6   : > { %v1249_v8 = vadd.f32 %v2153_v21, %v1226_v46  ;;  %1616 = vrsqrt.f32 %v1178_v51 }
 0x2c7   : > { %1266 = vst.msk [vmem:[%s2167_s29 + $0x48] sm:$0xff] %vm349_vm0, %v1250_v48  ;;  %1618 = vrsqrt.f32 %v1177_v62 }
 0x2c8   : > { %1265 = vst.msk [vmem:[%s2167_s29 + $0x40] sm:$0xff] %vm349_vm0, %v1249_v8 }
 0x2cc   : > { %v1613_v20 = vpop.eup %1612 }
 0x2cd   : > { %v1615_v5 = vpop.eup %1614  ;;  %v1208_v19 = vmul.f32 %v1613_v20, %v1160_v0 }
 0x2ce   : > { %v1207_v41 = vmul.f32 %v1615_v5, %v1159_v53 }
 0x2cf   : > { %v1231_v11 = vmul.f32 %v2145_v23, %v1208_v19 }
 0x2d0   : > { %v1617_v17 = vpop.eup %1616  ;;  %v1230_v38 = vmul.f32 %v2145_v23, %v1207_v41 }
 0x2d1   : > { %v1619_v24 = vpop.eup %1618  ;;  %v1254_v44 = vadd.f32 %v2153_v21, %v1231_v11  ;;  %v1210_v22 = vmul.f32 %v1617_v17, %v1162_v39 }
 0x2d2   : > { %v1253_v27 = vadd.f32 %v2153_v21, %v1230_v38  ;;  %v1209_v32 = vmul.f32 %v1619_v24, %v1161_v15 }
 0x2d3   : > { %1270 = vst.msk [vmem:[%s2167_s29 + $0x68] sm:$0xff] %vm349_vm0, %v1254_v44  ;;  %v1233_v37 = vmul.f32 %v2145_v23, %v1210_v22 }
 0x2d4   : > { %1269 = vst.msk [vmem:[%s2167_s29 + $0x60] sm:$0xff] %vm349_vm0, %v1253_v27  ;;  %v1232_v2 = vmul.f32 %v2145_v23, %v1209_v32 }
 0x2d5   : > { %v1256_v50 = vadd.f32 %v2153_v21, %v1233_v37 }
 0x2d6   : > { %v1255_v63 = vadd.f32 %v2153_v21, %v1232_v2 }
 0x2d7   : > { %1272 = vst.msk [vmem:[%s2167_s29 + $0x78] sm:$0xff] %vm349_vm0, %v1256_v50 }
 0x2d8   : > { %1271 = vst.msk [vmem:[%s2167_s29 + $0x70] sm:$0xff] %vm349_vm0, %v1255_v63 }
 0x2d9 PF: > { %s17_s26 = sadd.s32 1, %s1642_s26   ;;  %s2299_s24 = smov %s1638_s25 }
 0x2da   : > { %p14_p5 = scmp.ge.s32.totalorder %s17_s26, 6   ;;  %s2300_s25 = smov %s2302_s27 }
 0x2dc   :  { %16 = sbr.rel (!%p14_p5) target bundleno = 2 (0x2), region = 95 }

// kernel: model_for_sim_forward.5
= control target key start
LH: loop header
LB: loop body
LE: loop exit
PB: predicated region body
PF: predicated region fallthrough
CT: control target
= control target key end

     0   :  { %s1702_s27 = smov 0   ;;  %s2286_s0 = inlined_call_operand.vmem [shape: s8[4,1,128], index: 0, kind: input, shape index: {}]   ;;  %s2287_s1 = inlined_call_operand.vmem [shape: s8[4,1,128], index: 1, kind: input, shape index: {}]   ;;  %s2288_s2 = inlined_call_operand.vmem [shape: s8[4,128,128], index: 2, kind: input, shape index: {}]   ;;  %s2289_s3 = inlined_call_operand.vmem [shape: bf16[4,128,64], index: 3, kind: input, shape index: {}]   ;;  %s2290_s4 = inlined_call_operand.vmem [shape: bf16[4,128,64], index: 4, kind: input, shape index: {}]   ;;  %s2291_s5 = inlined_call_operand.vmem [shape: bf16[1,64], index: 5, kind: input, shape index: {}]   ;;  %s2292_s6 = inlined_call_operand.vmem [shape: f32[1,64], index: 6, kind: input, shape index: {}]   ;;  %s2293_s7 = inlined_call_operand.vmem [shape: f32[1,64], index: 7, kind: input, shape index: {}]   ;;  %s2294_s8 = inlined_call_operand.vmem [shape: f32[4,128,64], index: 8, kind: output, shape index: {}]  }
   0x1 LB: > { %s1373_s28 = sadd.s32 4294967295, %s1655_s27   ;;  %p1377_p0 = scmp.ge.s32.totalorder %s1655_s27, 1  ;;  %s1655_s27 = sphi %s1702_s27, %s18_s27  }
   0x2   : > { %p298_p1 = scmp.lt.s32.totalorder %s1655_s27, 5 }
   0x4   : > { %p299_p2 = pnand %p1377_p0, %p298_p1 }
   0x5   : > { %p348_p3 = scmp.lt.s32.totalorder (!%p299_p2), %s1373_s28, 3  ;;  %v449_v0 = vlaneseq (!%p299_p2) }
   0x6   : > { %302 = sbr.rel (%p299_p2) target bundleno = 887 (0x377), region = 52 }
   0x7   : > { %v1713_v1 = vshrl.u32 (!%p299_p2), %v449_v0, 7 }
   0x9   : > { %v1727_v5 = vsub.s32 (!%p299_p2), 0, %v1713_v1 }
   0xd   : > { %s2296_s28 = smov (!%p348_p3, %s1373_s28), 3 }
   0xe   : > { %s353_s9 = scalar_lea.vmem %s2287_s1, %s2296_s28  ;;  %s1422_s10 = sshll.u32 %s2296_s28, 5 }
   0xf   : > { %s1723_s13 = scalar_lea.vmem %s2288_s2, %s1422_s10  ;;  %v410_v2 = vld [vmem:[%s353_s9] sm:$0x1]  ;;  %s1423_s14 = sshll.u32 %s2296_s28, 6 }
  0x10   : > { %v411_v3 = vunpack.c.0.s8 %v410_v2  ;;  %v413_v4 = vld [vmem:[%s1723_s13] sm:$0xff]  ;;  %v414_v6 = vld [vmem:[%s1723_s13 + $0x8] sm:$0xff]  ;;  %s1739_s17 = scalar_lea.vmem %s2289_s3, %s1423_s14  ;;  %v415_v27 = vld [vmem:[%s1723_s13 + $0x10] sm:$0xff]  ;;  %s350_s20 = scalar_lea.vmem %s2286_s0, %s2296_s28 }
  0x11   : > { %v419_v7 = vunpack.c.2.s8 %v413_v4  ;;  %v417_v8 = vunpack.c.0.s8 %v413_v4  ;;  %v420_v9 = vunpack.c.3.s8 %v413_v4  ;;  %v418_v10 = vunpack.c.1.s8 %v413_v4  ;;  %v1757_v28 = vld [vmem:[%s1739_s17] sm:$0xff]   ;;  %v1760_v29 = vld [vmem:[%s1739_s17 + $0x8] sm:$0xff]   ;;  %v1772_v36 = vld [vmem:[%s1739_s17 + $0x10] sm:$0xff]   ;;  %s1966_s23 = scalar_lea.vmem %s2290_s4, %s1423_s14  ;;  %s1425_s30 = sshll.u32 %s2296_s28, 7 }
  0x12   : > { %v412_v11 = vcvt.s32.f32 %v411_v3  ;;  %v422_v14 = vunpack.c.1.s8 %v414_v6  ;;  %v421_v18 = vunpack.c.0.s8 %v414_v6  ;;  %v424_v22 = vunpack.c.3.s8 %v414_v6  ;;  %1497 = vmatprep.subr.bf16.mxu0 %v1757_v28  ;;  %v416_v43 = vld [vmem:[%s1723_s13 + $0x18] sm:$0xff]  ;;  %v1809_v57 = vld [vmem:[%s1739_s17 + $0x20] sm:$0xff]   ;;  %v1822_v62 = vld [vmem:[%s1739_s17 + $0x28] sm:$0xff]   ;;  %s2178_s12 = scalar_lea.vmem %s2294_s8, %s1425_s30 }
  0x13   : > { %v435_v12 = vcvt.s32.f32 %v419_v7  ;;  %v433_v13 = vcvt.s32.f32 %v417_v8  ;;  %v436_v16 = vcvt.s32.f32 %v420_v9  ;;  %v434_v17 = vcvt.s32.f32 %v418_v10  ;;  %1498 = vmatpush3.bf16.msra.mxu0 %v1757_v28  ;;  %v1796_v50 = vld [vmem:[%s1739_s17 + $0x18] sm:$0xff]   ;;  %v1835_v3 = vld [vmem:[%s1739_s17 + $0x30] sm:$0xff]  }
  0x14   : > { %v1732_v15 = vrot.slane %v412_v11, %v1727_v5  ;;  %v438_v21 = vcvt.s32.f32 %v422_v14  ;;  %v437_v25 = vcvt.s32.f32 %v421_v18  ;;  %v423_v26 = vunpack.c.2.s8 %v414_v6  ;;  %1499 = vmatprep.subr.bf16.mxu0 %v1760_v29  ;;  %v1842_v4 = vld [vmem:[%s1739_s17 + $0x38] sm:$0xff]  }
  0x15   : > { %v440_v30 = vcvt.s32.f32 %v424_v22  ;;  %v426_v31 = vunpack.c.1.s8 %v415_v27  ;;  %v425_v32 = vunpack.c.0.s8 %v415_v27  ;;  %v428_v38 = vunpack.c.3.s8 %v415_v27 }
  0x16   : > { %v1742_v19 = vmul.f32 %v1732_v15, %v435_v12  ;;  %v1745_v20 = vmul.f32 %v1732_v15, %v433_v13  ;;  %v1750_v23 = vmul.f32 %v1732_v15, %v436_v16  ;;  %v1753_v24 = vmul.f32 %v1732_v15, %v434_v17 }
  0x17   : > { %v1765_v33 = vmul.f32 %v1732_v15, %v438_v21  ;;  %v1768_v34 = vmul.f32 %v1732_v15, %v437_v25  ;;  %v439_v35 = vcvt.s32.f32 %v423_v26  ;;  %v1775_v37 = vmul.f32 %v1732_v15, %v440_v30  ;;  %1500 = vmatpush3.bf16.msra.mxu0 %v1760_v29 }
  0x18   : > { %473 = vadd.xlane.f32.xlu1 %v1742_v19  ;;  %469 = vadd.xlane.f32.xlu0 %v1745_v20  ;;  %v442_v40 = vcvt.s32.f32 %v426_v31  ;;  %v441_v41 = vcvt.s32.f32 %v425_v32  ;;  %v427_v42 = vunpack.c.2.s8 %v415_v27  ;;  %v444_v44 = vcvt.s32.f32 %v428_v38 }
  0x19   : > { %v1781_v39 = vmul.f32 %v1732_v15, %v439_v35  ;;  %v430_v45 = vunpack.c.1.s8 %v416_v43  ;;  %v429_v49 = vunpack.c.0.s8 %v416_v43  ;;  %1501 = vmatprep.subr.bf16.mxu0 %v1772_v36  ;;  %v432_v52 = vunpack.c.3.s8 %v416_v43 }
  0x1a   : > { %v1789_v46 = vmul.f32 %v1732_v15, %v442_v40  ;;  %v1792_v47 = vmul.f32 %v1732_v15, %v441_v41  ;;  %v443_v48 = vcvt.s32.f32 %v427_v42  ;;  %v1799_v51 = vmul.f32 %v1732_v15, %v444_v44 }
  0x1b   : > { %1502 = vmatpush3.bf16.msra.mxu0 %v1772_v36  ;;  %v446_v54 = vcvt.s32.f32 %v430_v45  ;;  %v445_v55 = vcvt.s32.f32 %v429_v49  ;;  %v431_v56 = vunpack.c.2.s8 %v416_v43  ;;  %v448_v60 = vcvt.s32.f32 %v432_v52 }
  0x1c   : > { %475 = vadd.xlane.f32.xlu1 %v1750_v23  ;;  %471 = vadd.xlane.f32.xlu0 %v1753_v24  ;;  %v1805_v53 = vmul.f32 %v1732_v15, %v443_v48 }
  0x1d   : > { %1503 = vmatprep.subr.bf16.mxu0 %v1796_v50  ;;  %v1815_v58 = vmul.f32 %v1732_v15, %v446_v54  ;;  %v1818_v59 = vmul.f32 %v1732_v15, %v445_v55  ;;  %v447_v61 = vcvt.s32.f32 %v431_v56  ;;  %v1828_v63 = vmul.f32 %v1732_v15, %v448_v60 }
  0x1f   : > { %1504 = vmatpush3.bf16.msra.mxu0 %v1796_v50  ;;  %v1831_v2 = vmul.f32 %v1732_v15, %v447_v61 }
  0x20   : > { %479 = vadd.xlane.f32.xlu1 %v1765_v33  ;;  %477 = vadd.xlane.f32.xlu0 %v1768_v34 }
  0x21   : > { %1505 = vmatprep.subr.bf16.mxu0 %v1809_v57 }
  0x23   : > { %1506 = vmatpush3.bf16.msra.mxu0 %v1809_v57 }
  0x24   : > { %483 = vadd.xlane.f32.xlu1 %v1775_v37  ;;  %481 = vadd.xlane.f32.xlu0 %v1781_v39 }
  0x25   : > { %1507 = vmatprep.subr.bf16.mxu0 %v1822_v62 }
  0x27   : > { %1508 = vmatpush3.bf16.msra.mxu0 %v1822_v62 }
  0x28   : > { %487 = vadd.xlane.f32.xlu1 %v1789_v46  ;;  %485 = vadd.xlane.f32.xlu0 %v1792_v47 }
  0x29   : > { %1509 = vmatprep.subr.bf16.mxu0 %v1835_v3 }
  0x2b   : > { %1510 = vmatpush3.bf16.msra.mxu0 %v1835_v3 }
  0x2c   : > { %491 = vadd.xlane.f32.xlu1 %v1799_v51  ;;  %489 = vadd.xlane.f32.xlu0 %v1805_v53 }
  0x2d   : > { %1511 = vmatprep.subr.bf16.mxu0 %v1842_v4 }
  0x2f   : > { %1512 = vmatpush3.bf16.msra.mxu0 %v1842_v4 }
  0x30   : > { %495 = vadd.xlane.f32.xlu1 %v1815_v58  ;;  %493 = vadd.xlane.f32.xlu0 %v1818_v59 }
  0x34   : > { %499 = vadd.xlane.f32.xlu1 %v1828_v63  ;;  %497 = vadd.xlane.f32.xlu0 %v1831_v2 }
  0xa5   : > { %v474_v6 = vpop.xlane.xlu1 %473  ;;  %v470_v7 = vpop.xlane.xlu0 %469 }
  0xa6   : > { %v503_v8 = vadd.f32 1e-10, %v474_v6  ;;  %v501_v9 = vadd.f32 1e-10, %v470_v7 }
  0xa8   : > { %1585 = vrcp.f32 %v503_v8 }
  0xa9   : > { %v476_v10 = vpop.xlane.xlu1 %475  ;;  %v472_v11 = vpop.xlane.xlu0 %471  ;;  %1587 = vrcp.f32 %v501_v9 }
  0xaa   : > { %v504_v12 = vadd.f32 1e-10, %v476_v10  ;;  %v502_v13 = vadd.f32 1e-10, %v472_v11 }
  0xac   : > { %1589 = vrcp.f32 %v504_v12 }
  0xad   : > { %1591 = vrcp.f32 %v502_v13  ;;  %v480_v14 = vpop.xlane.xlu1 %479  ;;  %v478_v15 = vpop.xlane.xlu0 %477 }
  0xae   : > { %v506_v16 = vadd.f32 1e-10, %v480_v14  ;;  %v505_v17 = vadd.f32 1e-10, %v478_v15 }
  0xb0   : > { %1593 = vrcp.f32 %v506_v16 }
  0xb1   : > { %1595 = vrcp.f32 %v505_v17  ;;  %v484_v18 = vpop.xlane.xlu1 %483  ;;  %v482_v21 = vpop.xlane.xlu0 %481 }
  0xb2   : > { %v508_v22 = vadd.f32 1e-10, %v484_v18  ;;  %v507_v25 = vadd.f32 1e-10, %v482_v21  ;;  %v1586_v26 = vpop.eup %1585 }
  0xb3   : > { %v1588_v27 = vpop.eup %1587  ;;  %v522_v41 = vmul.f32 %v1586_v26, %v1742_v19 }
  0xb4   : > { %1597 = vrcp.f32 %v508_v22  ;;  %v518_v43 = vmul.f32 %v1588_v27, %v1745_v20 }
  0xb5   : > { %1599 = vrcp.f32 %v507_v25  ;;  %v488_v30 = vpop.xlane.xlu1 %487  ;;  %v486_v31 = vpop.xlane.xlu0 %485 }
  0xb6   : > { %v1590_v32 = vpop.eup %1589  ;;  %v510_v35 = vadd.f32 1e-10, %v488_v30  ;;  %v509_v38 = vadd.f32 1e-10, %v486_v31 }
  0xb7   : > { %v1592_v40 = vpop.eup %1591  ;;  %v524_v42 = vmul.f32 %v1590_v32, %v1750_v23 }
  0xb8   : > { %1601 = vrcp.f32 %v510_v35  ;;  %v520_v44 = vmul.f32 %v1592_v40, %v1753_v24 }
  0xb9   : > { %1603 = vrcp.f32 %v509_v38  ;;  %v492_v45 = vpop.xlane.xlu1 %491  ;;  %v490_v48 = vpop.xlane.xlu0 %489  ;;  %v550_v49 = vpack.c.bf16 %v524_v42, %v522_v41  ;;  %v1869_v42 = vand.u32 127, %v449_v0  ;;  %v391_v0 = vunpack.c.l.bf16 %v1757_v28 }
  0xba   : > { %v1594_v52 = vpop.eup %1593  ;;  %v512_v54 = vadd.f32 1e-10, %v492_v45  ;;  %v511_v55 = vadd.f32 1e-10, %v490_v48  ;;  %v549_v56 = vpack.c.bf16 %v520_v44, %v518_v43  ;;  %v394_v44 = vunpack.c.h.bf16 %v1760_v29 }
  0xbb   : > { %v1596_v60 = vpop.eup %1595  ;;  %v528_v61 = vmul.f32 %v1594_v52, %v1765_v33  ;;  %vm721_vm0 = vcmp.eq.s32.totalorder %v1713_v1, %v1869_v42  ;;  %v392_v48 = vunpack.c.h.bf16 %v1757_v28 }
  0xbc   : > { %1605 = vrcp.f32 %v512_v54  ;;  %1513 = vmatprep.mubr.bf16.mxu0 %v549_v56  ;;  %v526_v19 = vmul.f32 %v1596_v60, %v1768_v34 }
  0xbd   : > { %1607 = vrcp.f32 %v511_v55  ;;  %1514 = vmatmul.mubr.bf16.vlgmr.msra.gmra.mrb[0].mxu0 %v550_v49  ;;  %v496_v20 = vpop.xlane.xlu1 %495  ;;  %v494_v23 = vpop.xlane.xlu0 %493 }
  0xbe   : > { %v1598_v24 = vpop.eup %1597  ;;  %v514_v6 = vadd.f32 1e-10, %v496_v20  ;;  %v513_v7 = vadd.f32 1e-10, %v494_v23  ;;  %v551_v8 = vpack.c.bf16 %v528_v61, %v526_v19  ;;  %v397_v23 = vunpack.c.l.bf16 %v1796_v50 }
  0xbf   : > { %v1600_v9 = vpop.eup %1599  ;;  %v532_v10 = vmul.f32 %v1598_v24, %v1775_v37  ;;  %v398_v24 = vunpack.c.h.bf16 %v1796_v50 }
  0xc0   : > { %1609 = vrcp.f32 %v514_v6  ;;  %1517 = vmatprep.mubr.bf16.mxu0 %v551_v8  ;;  %v530_v11 = vmul.f32 %v1600_v9, %v1781_v39  ;;  %v396_v8 = vunpack.c.h.bf16 %v1772_v36 }
  0xc1   : > { %1611 = vrcp.f32 %v513_v7  ;;  %v500_v33 = vpop.xlane.xlu1 %499  ;;  %v498_v12 = vpop.xlane.xlu0 %497  ;;  %v395_v7 = vunpack.c.l.bf16 %v1772_v36 }
  0xc2   : > { %v1602_v13 = vpop.eup %1601  ;;  %v516_v34 = vadd.f32 1e-10, %v500_v33  ;;  %v515_v14 = vadd.f32 1e-10, %v498_v12  ;;  %v552_v15 = vpack.c.bf16 %v532_v10, %v530_v11 }
  0xc3   : > { %v1604_v16 = vpop.eup %1603  ;;  %v536_v17 = vmul.f32 %v1602_v13, %v1789_v46 }
  0xc4   : > { %1613 = vrcp.f32 %v516_v34  ;;  %v534_v18 = vmul.f32 %v1604_v16, %v1792_v47  ;;  %v401_v16 = vunpack.c.l.bf16 %v1822_v62 }
  0xc5   : > { %1615 = vrcp.f32 %v515_v14  ;;  %1518 = vmatmul.mubr.bf16.gmra.mrb[4].mxu0 %v552_v15 }
  0xc6   : > { %v1606_v37 = vpop.eup %1605  ;;  %v553_v21 = vpack.c.bf16 %v536_v17, %v534_v18  ;;  %v402_v17 = vunpack.c.h.bf16 %v1822_v62 }
  0xc7   : > { %v1608_v22 = vpop.eup %1607  ;;  %v540_v39 = vmul.f32 %v1606_v37, %v1799_v51  ;;  %v399_v37 = vunpack.c.l.bf16 %v1809_v57 }
  0xc8   : > { %1521 = vmatprep.mubr.bf16.mxu0 %v553_v21  ;;  %v538_v25 = vmul.f32 %v1608_v22, %v1805_v53  ;;  %v407_v53 = vld [vmem:[%s350_s20] sm:$0x1]  ;;  %v400_v21 = vunpack.c.h.bf16 %v1809_v57  ;;  %v1464_v57 = vld [vmem:[%s1966_s23 + $0x38] sm:$0xff]  }
  0xc9   : > { %v408_v41 = vunpack.c.0.s8 %v407_v53 }
  0xca   : > { %v1610_v26 = vpop.eup %1609  ;;  %v554_v27 = vpack.c.bf16 %v540_v39, %v538_v25 }
  0xcb   : > { %v1612_v30 = vpop.eup %1611  ;;  %v544_v31 = vmul.f32 %v1610_v26, %v1815_v58  ;;  %v409_v58 = vcvt.s32.f32 %v408_v41 }
  0xcc   : > { %v542_v46 = vmul.f32 %v1612_v30, %v1818_v59  ;;  %v704_v59 = vadd.s32 8, %v1713_v1 }
  0xcd   : > { %1522 = vmatmul.mubr.bf16.gmra.mrb[8].mxu0 %v554_v27  ;;  %v740_v43 = vrot.slane %v409_v58, %v1727_v5 }
  0xce   : > { %v1614_v47 = vpop.eup %1613  ;;  %v555_v32 = vpack.c.bf16 %v544_v31, %v542_v46  ;;  %vm722_vm1 = vcmp.eq.s32.totalorder %v704_v59, %v1869_v42 }
  0xcf   : > { %v1616_v35 = vpop.eup %1615  ;;  %v548_v38 = vmul.f32 %v1614_v47, %v1828_v63  ;;  %v1875_v63 = vpack.c.bf16 %v740_v43, %v740_v43  ;;  %vm1394_vm2 = vmpackc.low %vm722_vm1, %vm721_vm0 }
  0xd0   : > { %1525 = vmatprep.mubr.bf16.mxu0 %v555_v32  ;;  %v546_v51 = vmul.f32 %v1616_v35, %v1831_v2  ;;  %v393_v2 = vunpack.c.l.bf16 %v1760_v29  ;;  %v405_v32 = vunpack.c.l.bf16 %v1842_v4  ;;  %v406_v35 = vunpack.c.h.bf16 %v1842_v4 }
  0xd1   : > { %1545 = vmatprep.mubr.msk.bf16.mxu1 %vm1394_vm2, %v1875_v63 }
  0xd2   : > { %v556_v40 = vpack.c.bf16 %v548_v38, %v546_v51  ;;  %v403_v51 = vunpack.c.l.bf16 %v1835_v3 }
  0xd5   : > { %1526 = vmatmul.mubr.bf16.gmra.mrb[12].mxu0 %v556_v40  ;;  %v404_v40 = vunpack.c.h.bf16 %v1835_v3 }
 0x190   : > { %v1515_v45 = vpop.f32.mrb[0].mxu0 }
 0x191   : > { %v639_v49 = vpop.f32.mrb[1].mxu0  ;;  %v767_v54 = vsub.f32 %v1515_v45, %v393_v2 }
 0x192   : > { %v1516_v52 = vpop.f32.mrb[2].mxu0  ;;  %v765_v60 = vsub.f32 %v639_v49, %v391_v0 }
 0x193   : > { %v768_v55 = vsub.f32 %v1516_v52, %v394_v44  ;;  %v642_v56 = vpop.f32.mrb[3].mxu0 }
 0x194   : > { %v766_v61 = vsub.f32 %v642_v56, %v392_v48  ;;  %v706_v56 = vadd.s32 24, %v1713_v1 }
 0x195   : > { %v782_v19 = vpack.c.bf16 %v768_v55, %v767_v54  ;;  %v705_v55 = vadd.s32 16, %v1713_v1 }
 0x196   : > { %v781_v20 = vpack.c.bf16 %v766_v61, %v765_v60  ;;  %v707_v60 = vadd.s32 32, %v1713_v1  ;;  %v708_v61 = vadd.s32 40, %v1713_v1  ;;  %vm724_vm4 = vcmp.eq.s32.totalorder %v706_v56, %v1869_v42 }
 0x197   : > { %vm723_vm3 = vcmp.eq.s32.totalorder %v705_v55, %v1869_v42 }
 0x198   : > { %v1519_v6 = vpop.f32.mrb[4].mxu0  ;;  %1529 = vmatprep.subr.bf16.mxu1 %v781_v20  ;;  %vm725_vm5 = vcmp.eq.s32.totalorder %v707_v60, %v1869_v42  ;;  %vm726_vm6 = vcmp.eq.s32.totalorder %v708_v61, %v1869_v42  ;;  %vm1397_vm7 = vmpackc.low %vm724_vm4, %vm723_vm3 }
 0x199   : > { %v655_v9 = vpop.f32.mrb[5].mxu0  ;;  %1530 = vmatpush3.bf16.msra.mxu1 %v781_v20  ;;  %v771_v11 = vsub.f32 %v1519_v6, %v397_v23  ;;  %vm1400_vm8 = vmpackc.low %vm726_vm6, %vm725_vm5  ;;  %v710_v20 = vadd.s32 56, %v1713_v1  ;;  %v711_v6 = vadd.s32 64, %v1713_v1 }
 0x19a   : > { %v1520_v10 = vpop.f32.mrb[6].mxu0  ;;  %1531 = vmatprep.subr.bf16.mxu1 %v782_v19  ;;  %v769_v13 = vsub.f32 %v655_v9, %v395_v7  ;;  %v712_v9 = vadd.s32 72, %v1713_v1 }
 0x19b   : > { %v772_v33 = vsub.f32 %v1520_v10, %v398_v24  ;;  %v658_v12 = vpop.f32.mrb[7].mxu0  ;;  %vm728_vm10 = vcmp.eq.s32.totalorder %v710_v20, %v1869_v42  ;;  %vm729_vm11 = vcmp.eq.s32.totalorder %v711_v6, %v1869_v42  ;;  %v713_v10 = vadd.s32 80, %v1713_v1 }
 0x19c   : > { %v770_v34 = vsub.f32 %v658_v12, %v396_v8  ;;  %vm730_vm12 = vcmp.eq.s32.totalorder %v712_v9, %v1869_v42  ;;  %v716_v12 = vadd.s32 104, %v1713_v1 }
 0x19d   : > { %v784_v14 = vpack.c.bf16 %v772_v33, %v771_v11  ;;  %1532 = vmatpush3.bf16.msra.mxu1 %v782_v19  ;;  %v709_v19 = vadd.s32 48, %v1713_v1  ;;  %vm1406_vm14 = vmpackc.low %vm730_vm12, %vm729_vm11  ;;  %v714_v11 = vadd.s32 88, %v1713_v1  ;;  %v715_v33 = vadd.s32 96, %v1713_v1 }
 0x19e   : > { %v783_v15 = vpack.c.bf16 %v770_v34, %v769_v13  ;;  %vm731_vm15 = vcmp.eq.s32.totalorder %v713_v10, %v1869_v42  ;;  %vm734_vm2 = vcmp.eq.s32.totalorder %v716_v12, %v1869_v42  ;;  %v717_v13 = vadd.s32 112, %v1713_v1 }
 0x19f   : > { %vm727_vm9 = vcmp.eq.s32.totalorder %v709_v19, %v1869_v42  ;;  %vm732_vm0 = vcmp.eq.s32.totalorder %v714_v11, %v1869_v42  ;;  %vm733_vm1 = vcmp.eq.s32.totalorder %v715_v33, %v1869_v42  ;;  %v718_v34 = vadd.s32 120, %v1713_v1  ;;  %v950_v1 = vld [vmem:[%s2291_s5] sm:$0x1]  ;;  %v1459_v19 = vld [vmem:[%s1966_s23 + $0x10] sm:$0xff]  }
 0x1a0   : > { %v1523_v18 = vpop.f32.mrb[8].mxu0  ;;  %1533 = vmatprep.subr.bf16.mxu1 %v783_v15  ;;  %vm1403_vm13 = vmpackc.low %vm728_vm10, %vm727_vm9  ;;  %vm735_vm5 = vcmp.eq.s32.totalorder %v717_v13, %v1869_v42  ;;  %v1436_v33 = vunpack.c.l.bf16 %v1459_v19 }
 0x1a1   : > { %v671_v22 = vpop.f32.mrb[9].mxu0  ;;  %1534 = vmatpush3.bf16.msra.mxu1 %v783_v15  ;;  %v775_v25 = vsub.f32 %v1523_v18, %v401_v16  ;;  %vm1409_vm3 = vmpackc.low %vm732_vm0, %vm731_vm15  ;;  %vm736_vm6 = vcmp.eq.s32.totalorder %v718_v34, %v1869_v42  ;;  %v951_v15 = vunpack.c.l.bf16 %v950_v1  ;;  %v1427_v18 = vld [vmem:[%s1966_s23] sm:$0xff]   ;;  %v1437_v34 = vunpack.c.h.bf16 %v1459_v19 }
 0x1a2   : > { %v1524_v39 = vpop.f32.mrb[10].mxu0  ;;  %1535 = vmatprep.subr.bf16.mxu1 %v784_v14  ;;  %v773_v30 = vsub.f32 %v671_v22, %v399_v37  ;;  %vm1412_vm4 = vmpackc.low %vm734_vm2, %vm733_vm1 }
 0x1a3   : > { %v776_v26 = vsub.f32 %v1524_v39, %v402_v17  ;;  %v674_v27 = vpop.f32.mrb[11].mxu0  ;;  %v1428_v39 = vunpack.c.l.bf16 %v1427_v18 }
 0x1a4   : > { %v774_v31 = vsub.f32 %v674_v27, %v400_v21 }
 0x1a5   : > { %v786_v46 = vpack.c.bf16 %v776_v26, %v775_v25  ;;  %1536 = vmatpush3.bf16.msra.mxu1 %v784_v14  ;;  %v1458_v14 = vld [vmem:[%s1966_s23 + $0x8] sm:$0xff]  }
 0x1a6   : > { %v785_v47 = vpack.c.bf16 %v774_v31, %v773_v30  ;;  %v1432_v22 = vunpack.c.l.bf16 %v1458_v14  ;;  %v1433_v27 = vunpack.c.h.bf16 %v1458_v14 }
 0x1a8   : > { %v1527_v38 = vpop.f32.mrb[12].mxu0  ;;  %1537 = vmatprep.subr.bf16.mxu1 %v785_v47 }
 0x1a9   : > { %v687_v53 = vpop.f32.mrb[13].mxu0  ;;  %1538 = vmatpush3.bf16.msra.mxu1 %v785_v47  ;;  %v779_v58 = vsub.f32 %v1527_v38, %v405_v32 }
 0x1aa   : > { %v1528_v41 = vpop.f32.mrb[14].mxu0  ;;  %1539 = vmatprep.subr.bf16.mxu1 %v786_v46  ;;  %v777_v45 = vsub.f32 %v687_v53, %v403_v51 }
 0x1ab   : > { %v780_v59 = vsub.f32 %v1528_v41, %v406_v35  ;;  %v690_v43 = vpop.f32.mrb[15].mxu0 }
 0x1ac   : > { %v778_v49 = vsub.f32 %v690_v43, %v404_v40  ;;  %v1460_v43 = vld [vmem:[%s1966_s23 + $0x18] sm:$0xff]  }
 0x1ad   : > { %v788_v52 = vpack.c.bf16 %v780_v59, %v779_v58  ;;  %1540 = vmatpush3.bf16.msra.mxu1 %v786_v46  ;;  %v1429_v46 = vunpack.c.h.bf16 %v1427_v18  ;;  %v1441_v20 = vunpack.c.h.bf16 %v1460_v43 }
 0x1ae   : > { %v787_v54 = vpack.c.bf16 %v778_v49, %v777_v45 }
 0x1b0   : > { %1541 = vmatprep.subr.bf16.mxu1 %v787_v54 }
 0x1b1   : > { %1542 = vmatpush3.bf16.msra.mxu1 %v787_v54 }
 0x1b2   : > { %1543 = vmatprep.subr.bf16.mxu1 %v788_v52 }
 0x1b5   : > { %1544 = vmatpush3.bf16.msra.mxu1 %v788_v52  ;;  %v1440_v52 = vunpack.c.l.bf16 %v1460_v43 }
 0x1b8   : > { %1546 = vmatmul.mubr.msk.bf16.vlgmr.msra.gmra.mrb[0].mxu1 %vm1397_vm7, %v1875_v63  ;;  %vm1415_vm7 = vmpackc.low %vm736_vm6, %vm735_vm5 }
 0x1b9   : > { %1549 = vmatprep.mubr.msk.bf16.mxu1 %vm1400_vm8, %v1875_v63  ;;  %vm972_vm8 = vcmask 523264  }
 0x1c0   : > { %1550 = vmatmul.mubr.msk.bf16.gmra.mrb[4].mxu1 %vm1403_vm13, %v1875_v63 }
 0x1c1   : > { %1553 = vmatprep.mubr.msk.bf16.mxu1 %vm1406_vm14, %v1875_v63 }
 0x1c8   : > { %1554 = vmatmul.mubr.msk.bf16.gmra.mrb[8].mxu1 %vm1409_vm3, %v1875_v63 }
 0x1c9   : > { %1557 = vmatprep.mubr.msk.bf16.mxu1 %vm1412_vm4, %v1875_v63 }
 0x1d0   : > { %1558 = vmatmul.mubr.msk.bf16.gmra.mrb[12].mxu1 %vm1415_vm7, %v1875_v63  ;;  %v1974_v63 = vrot.slane %v951_v15, %v1727_v5 }
 0x28b   : > { %v1547_v42 = vpop.f32.mrb[0].mxu1 }
 0x28c   : > { %v888_v25 = vadd.f32 %v1547_v42, %v393_v2  ;;  %v823_v26 = vpop.f32.mrb[1].mxu1 }
 0x28d   : > { %v886_v30 = vadd.f32 %v823_v26, %v391_v0  ;;  %v1548_v31 = vpop.f32.mrb[2].mxu1 }
 0x28e   : > { %v936_v47 = vadd.f32 %v1432_v22, %v888_v25  ;;  %v889_v38 = vadd.f32 %v1548_v31, %v394_v44  ;;  %v826_v53 = vpop.f32.mrb[3].mxu1 }
 0x28f   : > { %v934_v41 = vadd.f32 %v1428_v39, %v886_v30  ;;  %v887_v5 = vadd.f32 %v826_v53, %v392_v48 }
 0x290   : > { %v1985_v58 = vadd.f32 %v1974_v63, %v936_v47  ;;  %v937_v2 = vadd.f32 %v1433_v27, %v889_v38 }
 0x291   : > { %v935_v59 = vadd.f32 %v1429_v46, %v887_v5  ;;  %v1989_v0 = vadd.f32 %v1974_v63, %v934_v41 }
 0x292   : > { %v1992_v45 = vadd.f32 %v1974_v63, %v937_v2  ;;  %v979_v29 = vsel %vm972_vm8, %v1985_v58, 0.0  ;;  %v1040_v60 = vmul.f32 %v1985_v58, %v1985_v58 }
 0x293   : > { %980 = vadd.xlane.f32.xlu0 %v979_v29  ;;  %v1551_v28 = vpop.f32.mrb[4].mxu1  ;;  %v1997_v44 = vadd.f32 %v1974_v63, %v935_v59  ;;  %v973_v56 = vsel %vm972_vm8, %v1989_v0, 0.0  ;;  %v1038_v13 = vmul.f32 %v1989_v0, %v1989_v0 }
 0x294   : > { %v982_v48 = vsel %vm972_vm8, %v1992_v45, 0.0  ;;  %v892_v49 = vadd.f32 %v1551_v28, %v397_v23  ;;  %v839_v54 = vpop.f32.mrb[5].mxu1  ;;  %v1041_v10 = vmul.f32 %v1992_v45, %v1992_v45  ;;  %v1060_v12 = vsel %vm972_vm8, %v1040_v60, 0.0  ;;  %v1461_v28 = vld [vmem:[%s1966_s23 + $0x20] sm:$0xff]  }
 0x295   : > { %983 = vadd.xlane.f32.xlu1 %v982_v48  ;;  %v1552_v55 = vpop.f32.mrb[6].mxu1  ;;  %v976_v9 = vsel %vm972_vm8, %v1997_v44, 0.0  ;;  %v890_v11 = vadd.f32 %v839_v54, %v395_v7  ;;  %v1039_v1 = vmul.f32 %v1997_v44, %v1997_v44  ;;  %v1054_v39 = vsel %vm972_vm8, %v1038_v13, 0.0 }
 0x296   : > { %v842_v61 = vpop.f32.mrb[7].mxu1  ;;  %v940_v6 = vadd.f32 %v1440_v52, %v892_v49  ;;  %v893_v23 = vadd.f32 %v1552_v55, %v398_v24  ;;  %v1063_v15 = vsel %vm972_vm8, %v1041_v10, 0.0  ;;  %v1445_v19 = vunpack.c.h.bf16 %v1461_v28 }
 0x297   : > { %974 = vadd.xlane.f32.xlu0 %v973_v56  ;;  %v891_v7 = vadd.f32 %v842_v61, %v396_v8  ;;  %v938_v42 = vadd.f32 %v1436_v33, %v890_v11  ;;  %v1057_v30 = vsel %vm972_vm8, %v1039_v1, 0.0  ;;  %v1462_v8 = vld [vmem:[%s1966_s23 + $0x28] sm:$0xff]   ;;  %v1444_v56 = vunpack.c.l.bf16 %v1461_v28 }
 0x298   : > { %v2022_v24 = vadd.f32 %v1974_v63, %v940_v6  ;;  %v941_v14 = vadd.f32 %v1441_v20, %v893_v23  ;;  %v1448_v41 = vunpack.c.l.bf16 %v1462_v8  ;;  %v1449_v48 = vunpack.c.h.bf16 %v1462_v8 }
 0x299   : > { %977 = vadd.xlane.f32.xlu1 %v976_v9  ;;  %v939_v27 = vadd.f32 %v1437_v34, %v891_v7  ;;  %v2036_v31 = vadd.f32 %v1974_v63, %v938_v42 }
 0x29a   : > { %v2029_v26 = vadd.f32 %v1974_v63, %v941_v14  ;;  %v991_v36 = vsel %vm972_vm8, %v2022_v24, 0.0  ;;  %v1044_v43 = vmul.f32 %v2022_v24, %v2022_v24 }
 0x29b   : > { %1061 = vadd.xlane.f32.xlu0 %v1060_v12  ;;  %v1555_v50 = vpop.f32.mrb[8].mxu1  ;;  %v2039_v47 = vadd.f32 %v1974_v63, %v939_v27  ;;  %v985_v59 = vsel %vm972_vm8, %v2036_v31, 0.0  ;;  %v1042_v61 = vmul.f32 %v2036_v31, %v2036_v31 }
 0x29c   : > { %v855_v18 = vpop.f32.mrb[9].mxu1  ;;  %v994_v38 = vsel %vm972_vm8, %v2029_v26, 0.0  ;;  %v896_v53 = vadd.f32 %v1555_v50, %v401_v16  ;;  %v1045_v54 = vmul.f32 %v2029_v26, %v2029_v26  ;;  %v1072_v60 = vsel %vm972_vm8, %v1044_v43, 0.0 }
 0x29d   : > { %1064 = vadd.xlane.f32.xlu1 %v1063_v15  ;;  %v1556_v22 = vpop.f32.mrb[10].mxu1  ;;  %v988_v52 = vsel %vm972_vm8, %v2039_v47, 0.0  ;;  %v894_v55 = vadd.f32 %v855_v18, %v399_v37  ;;  %v1043_v62 = vmul.f32 %v2039_v47, %v2039_v47  ;;  %v1066_v23 = vsel %vm972_vm8, %v1042_v61, 0.0  ;;  %v1463_v15 = vld [vmem:[%s1966_s23 + $0x30] sm:$0xff]  }
 0x29e   : > { %v858_v25 = vpop.f32.mrb[11].mxu1  ;;  %v944_v49 = vadd.f32 %v1448_v41, %v896_v53  ;;  %v897_v16 = vadd.f32 %v1556_v22, %v402_v17  ;;  %v1075_v37 = vsel %vm972_vm8, %v1045_v54, 0.0  ;;  %v1456_v50 = vunpack.c.l.bf16 %v1464_v57 }
 0x29f   : > { %1055 = vadd.xlane.f32.xlu0 %v1054_v39  ;;  %v895_v6 = vadd.f32 %v858_v25, %v400_v21  ;;  %v942_v9 = vadd.f32 %v1444_v56, %v894_v55  ;;  %v1069_v33 = vsel %vm972_vm8, %v1043_v62, 0.0  ;;  %v1457_v18 = vunpack.c.h.bf16 %v1464_v57 }
 0x2a0   : > { %v2064_v17 = vadd.f32 %v1974_v63, %v944_v49  ;;  %v945_v20 = vadd.f32 %v1449_v48, %v897_v16  ;;  %v1452_v27 = vunpack.c.l.bf16 %v1463_v15  ;;  %v1453_v8 = vunpack.c.h.bf16 %v1463_v15 }
 0x2a1   : > { %1058 = vadd.xlane.f32.xlu1 %v1057_v30  ;;  %v943_v11 = vadd.f32 %v1445_v19, %v895_v6  ;;  %v2078_v21 = vadd.f32 %v1974_v63, %v942_v9 }
 0x2a2   : > { %v2071_v10 = vadd.f32 %v1974_v63, %v945_v20  ;;  %v1003_v12 = vsel %vm972_vm8, %v2064_v17, 0.0  ;;  %v1048_v7 = vmul.f32 %v2064_v17, %v2064_v17 }
 0x2a3   : > { %992 = vadd.xlane.f32.xlu0 %v991_v36  ;;  %v1559_v46 = vpop.f32.mrb[12].mxu1  ;;  %v2081_v13 = vadd.f32 %v1974_v63, %v943_v11  ;;  %v997_v14 = vsel %vm972_vm8, %v2078_v21, 0.0  ;;  %v1046_v36 = vmul.f32 %v2078_v21, %v2078_v21 }
 0x2a4   : > { %v871_v5 = vpop.f32.mrb[13].mxu1  ;;  %v1006_v34 = vsel %vm972_vm8, %v2071_v10, 0.0  ;;  %v900_v1 = vadd.f32 %v1559_v46, %v405_v32  ;;  %v1049_v32 = vmul.f32 %v2071_v10, %v2071_v10  ;;  %v1084_v30 = vsel %vm972_vm8, %v1048_v7, 0.0 }
 0x2a5   : > { %995 = vadd.xlane.f32.xlu1 %v994_v38  ;;  %v1560_v2 = vpop.f32.mrb[14].mxu1  ;;  %v1000_v42 = vsel %vm972_vm8, %v2081_v13, 0.0  ;;  %v898_v25 = vadd.f32 %v871_v5, %v403_v51  ;;  %v1047_v46 = vmul.f32 %v2081_v13, %v2081_v13  ;;  %v1078_v41 = vsel %vm972_vm8, %v1046_v36, 0.0 }
 0x2a6   : > { %v874_v29 = vpop.f32.mrb[15].mxu1  ;;  %v948_v22 = vadd.f32 %v1456_v50, %v900_v1  ;;  %v901_v39 = vadd.f32 %v1560_v2, %v406_v35  ;;  %v1087_v51 = vsel %vm972_vm8, %v1049_v32, 0.0 }
 0x2a7   : > { %986 = vadd.xlane.f32.xlu0 %v985_v59  ;;  %v899_v38 = vadd.f32 %v874_v29, %v404_v40  ;;  %v946_v53 = vadd.f32 %v1452_v27, %v898_v25  ;;  %v1081_v59 = vsel %vm972_vm8, %v1047_v46, 0.0 }
 0x2a8   : > { %v2106_v4 = vadd.f32 %v1974_v63, %v948_v22  ;;  %v949_v35 = vadd.f32 %v1457_v18, %v901_v39 }
 0x2a9   : > { %989 = vadd.xlane.f32.xlu1 %v988_v52  ;;  %v947_v2 = vadd.f32 %v1453_v8, %v899_v38  ;;  %v2119_v3 = vadd.f32 %v1974_v63, %v946_v53 }
 0x2aa   : > { %v2113_v5 = vadd.f32 %v1974_v63, %v949_v35  ;;  %v1015_v43 = vsel %vm972_vm8, %v2106_v4, 0.0  ;;  %v1052_v16 = vmul.f32 %v2106_v4, %v2106_v4 }
 0x2ab   : > { %1073 = vadd.xlane.f32.xlu0 %v1072_v60  ;;  %v2122_v40 = vadd.f32 %v1974_v63, %v947_v2  ;;  %v1009_v28 = vsel %vm972_vm8, %v2119_v3, 0.0  ;;  %v1050_v48 = vmul.f32 %v2119_v3, %v2119_v3 }
 0x2ac   : > { %v1018_v29 = vsel %vm972_vm8, %v2113_v5, 0.0  ;;  %v1053_v55 = vmul.f32 %v2113_v5, %v2113_v5  ;;  %v1096_v56 = vsel %vm972_vm8, %v1052_v16, 0.0 }
 0x2ad   : > { %1076 = vadd.xlane.f32.xlu1 %v1075_v37  ;;  %v1012_v49 = vsel %vm972_vm8, %v2122_v40, 0.0  ;;  %v1051_v52 = vmul.f32 %v2122_v40, %v2122_v40  ;;  %v1090_v63 = vsel %vm972_vm8, %v1050_v48, 0.0 }
 0x2ae   : > { %v1099_v60 = vsel %vm972_vm8, %v1053_v55, 0.0  ;;  %v2167_v55 = vld [vmem:[%s2293_s7] ss:$0 sm:$0xff] }
 0x2af   : > { %1067 = vadd.xlane.f32.xlu0 %v1066_v23  ;;  %v1093_v54 = vsel %vm972_vm8, %v1051_v52, 0.0 }
 0x2b1   : > { %1070 = vadd.xlane.f32.xlu1 %v1069_v33 }
 0x2b3   : > { %1004 = vadd.xlane.f32.xlu0 %v1003_v12 }
 0x2b5   : > { %1007 = vadd.xlane.f32.xlu1 %v1006_v34 }
 0x2b7   : > { %998 = vadd.xlane.f32.xlu0 %v997_v14 }
 0x2b9   : > { %1001 = vadd.xlane.f32.xlu1 %v1000_v42 }
 0x2bb   : > { %1085 = vadd.xlane.f32.xlu0 %v1084_v30 }
 0x2bd   : > { %1088 = vadd.xlane.f32.xlu1 %v1087_v51 }
 0x2bf   : > { %1079 = vadd.xlane.f32.xlu0 %v1078_v41 }
 0x2c1   : > { %1082 = vadd.xlane.f32.xlu1 %v1081_v59 }
 0x2c3   : > { %1016 = vadd.xlane.f32.xlu0 %v1015_v43 }
 0x2c5   : > { %1019 = vadd.xlane.f32.xlu1 %v1018_v29  ;;  %v2154_v29 = vld [vmem:[%s2292_s6] ss:$0 sm:$0xff] }
 0x2c7   : > { %1010 = vadd.xlane.f32.xlu0 %v1009_v28 }
 0x2c9   : > { %1013 = vadd.xlane.f32.xlu1 %v1012_v49 }
 0x2cb   : > { %1091 = vadd.xlane.f32.xlu0 %v1090_v63 }
 0x2cd   : > { %1094 = vadd.xlane.f32.xlu1 %v1093_v54 }
 0x2cf   : > { %1097 = vadd.xlane.f32.xlu0 %v1096_v56 }
 0x2d1   : > { %1100 = vadd.xlane.f32.xlu1 %v1099_v60 }
 0x320   : > { %v981_v61 = vpop.xlane.xlu0 %980 }
 0x321   : > { %v1024_v20 = vmul.f32 0.015625, %v981_v61 }
 0x322   : > { %v984_v19 = vpop.xlane.xlu1 %983 }
 0x323   : > { %v1025_v37 = vmul.f32 0.015625, %v984_v19  ;;  %v1120_v23 = vmul.f32 %v1024_v20, %v1024_v20  ;;  %v1152_v2 = vsub.f32 %v1985_v58, %v1024_v20 }
 0x324   : > { %v975_v62 = vpop.xlane.xlu0 %974 }
 0x325   : > { %v1022_v11 = vmul.f32 0.015625, %v975_v62  ;;  %v1121_v34 = vmul.f32 %v1025_v37, %v1025_v37  ;;  %v1153_v52 = vsub.f32 %v1992_v45, %v1025_v37 }
 0x326   : > { %v978_v6 = vpop.xlane.xlu1 %977 }
 0x327   : > { %v2142_v12 = vmul.f32 0.015625, %v978_v6  ;;  %v1118_v7 = vmul.f32 %v1022_v11, %v1022_v11  ;;  %v1150_v19 = vsub.f32 %v1989_v0, %v1022_v11 }
 0x328   : > { %v1062_v9 = vpop.xlane.xlu0 %1061 }
 0x329   : > { %v1104_v33 = vmul.f32 0.015625, %v1062_v9  ;;  %v1119_v42 = vmul.f32 %v2142_v12, %v2142_v12  ;;  %v1151_v45 = vsub.f32 %v1997_v44, %v2142_v12 }
 0x32a   : > { %v1065_v57 = vpop.xlane.xlu1 %1064 }
 0x32b   : > { %v1136_v1 = vsub.f32 %v1104_v33, %v1120_v23  ;;  %v1105_v50 = vmul.f32 0.015625, %v1065_v57 }
 0x32c   : > { %v1056_v14 = vpop.xlane.xlu0 %1055 }
 0x32d   : > { %v1168_v15 = vadd.f32 1e-05, %v1136_v1  ;;  %v1137_v18 = vsub.f32 %v1105_v50, %v1121_v34  ;;  %v1102_v22 = vmul.f32 0.015625, %v1056_v14 }
 0x32e   : > { %v1059_v39 = vpop.xlane.xlu1 %1058 }
 0x32f   : > { %1617 = vrsqrt.f32 %v1168_v15  ;;  %v1169_v32 = vadd.f32 1e-05, %v1137_v18  ;;  %v1134_v25 = vsub.f32 %v1102_v22, %v1118_v7  ;;  %v1103_v27 = vmul.f32 0.015625, %v1059_v39 }
 0x330   : > { %v993_v30 = vpop.xlane.xlu0 %992 }
 0x331   : > { %1619 = vrsqrt.f32 %v1169_v32  ;;  %v1166_v36 = vadd.f32 1e-05, %v1134_v25  ;;  %v1135_v8 = vsub.f32 %v1103_v27, %v1119_v42  ;;  %v2146_v51 = vmul.f32 0.015625, %v993_v30 }
 0x332   : > { %v996_v46 = vpop.xlane.xlu1 %995 }
 0x333   : > { %1621 = vrsqrt.f32 %v1166_v36  ;;  %v1167_v35 = vadd.f32 1e-05, %v1135_v8  ;;  %v2148_v41 = vmul.f32 0.015625, %v996_v46  ;;  %v1124_v28 = vmul.f32 %v2146_v51, %v2146_v51 }
 0x334   : > { %v987_v38 = vpop.xlane.xlu0 %986 }
 0x335   : > { %1623 = vrsqrt.f32 %v1167_v35  ;;  %v2158_v48 = vmul.f32 0.015625, %v987_v38  ;;  %v1125_v56 = vmul.f32 %v2148_v41, %v2148_v41 }
 0x336   : > { %v990_v53 = vpop.xlane.xlu1 %989 }
 0x337   : > { %v2162_v16 = vmul.f32 0.015625, %v990_v53  ;;  %v1122_v9 = vmul.f32 %v2158_v48, %v2158_v48 }
 0x338   : > { %v1074_v59 = vpop.xlane.xlu0 %1073 }
 0x339   : > { %v1618_v43 = vpop.eup %1617  ;;  %v1108_v49 = vmul.f32 0.015625, %v1074_v59  ;;  %v1123_v57 = vmul.f32 %v2162_v16, %v2162_v16 }
 0x33a   : > { %v1200_v63 = vmul.f32 %v1618_v43, %v1152_v2  ;;  %v1077_v58 = vpop.xlane.xlu1 %1076  ;;  %v1156_v2 = vsub.f32 %v2022_v24, %v2146_v51 }
 0x33b   : > { %v1620_v54 = vpop.eup %1619  ;;  %v1140_v60 = vsub.f32 %v1108_v49, %v1124_v28  ;;  %v1109_v61 = vmul.f32 0.015625, %v1077_v58 }
 0x33c   : > { %v1223_v62 = vmul.f32 %v2154_v29, %v1200_v63  ;;  %v1201_v20 = vmul.f32 %v1620_v54, %v1153_v52  ;;  %v1068_v6 = vpop.xlane.xlu0 %1067  ;;  %v1157_v63 = vsub.f32 %v2029_v26, %v2148_v41 }
 0x33d   : > { %v1622_v37 = vpop.eup %1621  ;;  %v1172_v23 = vadd.f32 1e-05, %v1140_v60  ;;  %v1141_v33 = vsub.f32 %v1109_v61, %v1125_v56  ;;  %v1106_v0 = vmul.f32 0.015625, %v1068_v6 }
 0x33e   : > { %v1246_v11 = vadd.f32 %v2167_v55, %v1223_v62  ;;  %v1224_v44 = vmul.f32 %v2154_v29, %v1201_v20  ;;  %v1198_v12 = vmul.f32 %v1622_v37, %v1150_v19  ;;  %v1071_v34 = vpop.xlane.xlu1 %1070  ;;  %v1154_v19 = vsub.f32 %v2036_v31, %v2158_v48 }
 0x33f   : > { %v1624_v1 = vpop.eup %1623  ;;  %1625 = vrsqrt.f32 %v1172_v23  ;;  %v1173_v50 = vadd.f32 1e-05, %v1141_v33  ;;  %v1138_v14 = vsub.f32 %v1106_v0, %v1122_v9  ;;  %v1107_v7 = vmul.f32 0.015625, %v1071_v34 }
 0x340   : > { %1262 = vst.msk [vmem:[%s2178_s12 + $0x10] sm:$0xff] %vm972_vm8, %v1246_v11  ;;  %v1247_v15 = vadd.f32 %v2167_v55, %v1224_v44  ;;  %v1221_v18 = vmul.f32 %v2154_v29, %v1198_v12  ;;  %v1199_v22 = vmul.f32 %v1624_v1, %v1151_v45  ;;  %v1005_v42 = vpop.xlane.xlu0 %1004  ;;  %v1155_v45 = vsub.f32 %v2039_v47, %v2162_v16 }
 0x341   : > { %1627 = vrsqrt.f32 %v1173_v50  ;;  %v1170_v39 = vadd.f32 1e-05, %v1138_v14  ;;  %v1139_v32 = vsub.f32 %v1107_v7, %v1123_v57  ;;  %v2197_v35 = vmul.f32 0.015625, %v1005_v42 }
 0x342   : > { %1263 = vst.msk [vmem:[%s2178_s12 + $0x18] sm:$0xff] %vm972_vm8, %v1247_v15  ;;  %v1244_v25 = vadd.f32 %v2167_v55, %v1221_v18  ;;  %v1222_v27 = vmul.f32 %v2154_v29, %v1199_v22  ;;  %v1008_v30 = vpop.xlane.xlu1 %1007 }
 0x343   : > { %1629 = vrsqrt.f32 %v1170_v39  ;;  %v1171_v36 = vadd.f32 1e-05, %v1139_v32  ;;  %v2201_v53 = vmul.f32 0.015625, %v1008_v30  ;;  %v1128_v28 = vmul.f32 %v2197_v35, %v2197_v35 }
 0x344   : > { %1260 = vst.msk [vmem:[%s2178_s12] sm:$0xff] %vm972_vm8, %v1244_v25  ;;  %v1245_v8 = vadd.f32 %v2167_v55, %v1222_v27  ;;  %v999_v46 = vpop.xlane.xlu0 %998 }
 0x345   : > { %1631 = vrsqrt.f32 %v1171_v36  ;;  %v2207_v49 = vmul.f32 0.015625, %v999_v46  ;;  %v1129_v61 = vmul.f32 %v2201_v53, %v2201_v53  ;;  %v1160_v36 = vsub.f32 %v2064_v17, %v2197_v35 }
 0x346   : > { %1261 = vst.msk [vmem:[%s2178_s12 + $0x8] sm:$0xff] %vm972_vm8, %v1245_v8  ;;  %v1002_v38 = vpop.xlane.xlu1 %1001 }
 0x347   : > { %v2211_v54 = vmul.f32 0.015625, %v1002_v38  ;;  %v1126_v6 = vmul.f32 %v2207_v49, %v2207_v49 }
 0x348   : > { %v1086_v59 = vpop.xlane.xlu0 %1085 }
 0x349   : > { %v1626_v43 = vpop.eup %1625  ;;  %v1112_v52 = vmul.f32 0.015625, %v1086_v59  ;;  %v1127_v47 = vmul.f32 %v2211_v54, %v2211_v54  ;;  %v1159_v17 = vsub.f32 %v2081_v13, %v2211_v54 }
 0x34a   : > { %v1204_v58 = vmul.f32 %v1626_v43, %v1156_v2  ;;  %v1089_v56 = vpop.xlane.xlu1 %1088  ;;  %v1161_v43 = vsub.f32 %v2071_v10, %v2201_v53 }
 0x34b   : > { %v1628_v60 = vpop.eup %1627  ;;  %v1144_v24 = vsub.f32 %v1112_v52, %v1128_v28  ;;  %v1113_v51 = vmul.f32 0.015625, %v1089_v56 }
 0x34c   : > { %v1227_v62 = vmul.f32 %v2154_v29, %v1204_v58  ;;  %v1205_v20 = vmul.f32 %v1628_v60, %v1157_v63  ;;  %v1080_v26 = vpop.xlane.xlu0 %1079 }
 0x34d   : > { %v1630_v41 = vpop.eup %1629  ;;  %v1176_v37 = vadd.f32 1e-05, %v1144_v24  ;;  %v1145_v9 = vsub.f32 %v1113_v51, %v1129_v61  ;;  %v1110_v23 = vmul.f32 0.015625, %v1080_v26  ;;  %v1158_v24 = vsub.f32 %v2078_v21, %v2207_v49 }
 0x34e   : > { %v1250_v33 = vadd.f32 %v2167_v55, %v1227_v62  ;;  %v1228_v0 = vmul.f32 %v2154_v29, %v1205_v20  ;;  %v1202_v31 = vmul.f32 %v1630_v41, %v1154_v19  ;;  %v1083_v48 = vpop.xlane.xlu1 %1082 }
 0x34f   : > { %v1632_v16 = vpop.eup %1631  ;;  %1633 = vrsqrt.f32 %v1176_v37  ;;  %v1177_v11 = vadd.f32 1e-05, %v1145_v9  ;;  %v1142_v44 = vsub.f32 %v1110_v23, %v1126_v6  ;;  %v1111_v12 = vmul.f32 0.015625, %v1083_v48 }
 0x350   : > { %1266 = vst.msk [vmem:[%s2178_s12 + $0x30] sm:$0xff] %vm972_vm8, %v1250_v33  ;;  %v1251_v57 = vadd.f32 %v2167_v55, %v1228_v0  ;;  %v1225_v34 = vmul.f32 %v2154_v29, %v1202_v31  ;;  %v1203_v1 = vmul.f32 %v1632_v16, %v1155_v45  ;;  %v1017_v50 = vpop.xlane.xlu0 %1016 }
 0x351   : > { %1635 = vrsqrt.f32 %v1177_v11  ;;  %v1174_v14 = vadd.f32 1e-05, %v1142_v44  ;;  %v1143_v7 = vsub.f32 %v1111_v12, %v1127_v47  ;;  %v1036_v38 = vmul.f32 0.015625, %v1017_v50 }
 0x352   : > { %1267 = vst.msk [vmem:[%s2178_s12 + $0x38] sm:$0xff] %vm972_vm8, %v1251_v57  ;;  %v1248_v15 = vadd.f32 %v2167_v55, %v1225_v34  ;;  %v1226_v18 = vmul.f32 %v2154_v29, %v1203_v1  ;;  %v1020_v22 = vpop.xlane.xlu1 %1019 }
 0x353   : > { %1637 = vrsqrt.f32 %v1174_v14  ;;  %v1175_v42 = vadd.f32 1e-05, %v1143_v7  ;;  %v1037_v52 = vmul.f32 0.015625, %v1020_v22  ;;  %v1132_v10 = vmul.f32 %v1036_v38, %v1036_v38 }
 0x354   : > { %1264 = vst.msk [vmem:[%s2178_s12 + $0x20] sm:$0xff] %vm972_vm8, %v1248_v15  ;;  %v1249_v39 = vadd.f32 %v2167_v55, %v1226_v18  ;;  %v1011_v32 = vpop.xlane.xlu0 %1010  ;;  %v1164_v14 = vsub.f32 %v2106_v4, %v1036_v38 }
 0x355   : > { %1639 = vrsqrt.f32 %v1175_v42  ;;  %v1034_v25 = vmul.f32 0.015625, %v1011_v32  ;;  %v1133_v21 = vmul.f32 %v1037_v52, %v1037_v52  ;;  %v1165_v22 = vsub.f32 %v2113_v5, %v1037_v52 }
 0x356   : > { %1265 = vst.msk [vmem:[%s2178_s12 + $0x28] sm:$0xff] %vm972_vm8, %v1249_v39  ;;  %v1014_v27 = vpop.xlane.xlu1 %1013 }
 0x357   : > { %v1035_v30 = vmul.f32 0.015625, %v1014_v27  ;;  %v1130_v2 = vmul.f32 %v1034_v25, %v1034_v25  ;;  %v1162_v12 = vsub.f32 %v2119_v3, %v1034_v25 }
 0x358   : > { %v1092_v8 = vpop.xlane.xlu0 %1091 }
 0x359   : > { %v1634_v46 = vpop.eup %1633  ;;  %v1114_v59 = vmul.f32 0.015625, %v1092_v8  ;;  %v1131_v56 = vmul.f32 %v1035_v30, %v1035_v30  ;;  %v1163_v34 = vsub.f32 %v2122_v40, %v1035_v30 }
 0x35a   : > { %v1208_v28 = vmul.f32 %v1634_v46, %v1160_v36  ;;  %v1095_v63 = vpop.xlane.xlu1 %1094 }
 0x35b   : > { %v1636_v58 = vpop.eup %1635  ;;  %v1146_v60 = vsub.f32 %v1114_v59, %v1130_v2  ;;  %v1115_v61 = vmul.f32 0.015625, %v1095_v63 }
 0x35c   : > { %v1231_v35 = vmul.f32 %v2154_v29, %v1208_v28  ;;  %v1209_v51 = vmul.f32 %v1636_v58, %v1161_v43  ;;  %v1098_v19 = vpop.xlane.xlu0 %1097 }
 0x35d   : > { %v1638_v45 = vpop.eup %1637  ;;  %v1178_v53 = vadd.f32 1e-05, %v1146_v60  ;;  %v1147_v62 = vsub.f32 %v1115_v61, %v1131_v56  ;;  %v1116_v20 = vmul.f32 0.015625, %v1098_v19 }
 0x35e   : > { %v1254_v26 = vadd.f32 %v2167_v55, %v1231_v35  ;;  %v1232_v41 = vmul.f32 %v2154_v29, %v1209_v51  ;;  %v1206_v6 = vmul.f32 %v1638_v45, %v1158_v24  ;;  %v1101_v49 = vpop.xlane.xlu1 %1100 }
 0x35f   : > { %v1640_v37 = vpop.eup %1639  ;;  %1641 = vrsqrt.f32 %v1178_v53  ;;  %v1179_v13 = vadd.f32 1e-05, %v1147_v62  ;;  %v1148_v54 = vsub.f32 %v1116_v20, %v1132_v10  ;;  %v1117_v9 = vmul.f32 0.015625, %v1101_v49 }
 0x360   : > { %1270 = vst.msk [vmem:[%s2178_s12 + $0x50] sm:$0xff] %vm972_vm8, %v1254_v26  ;;  %v1255_v23 = vadd.f32 %v2167_v55, %v1232_v41  ;;  %v1229_v33 = vmul.f32 %v2154_v29, %v1206_v6  ;;  %v1207_v0 = vmul.f32 %v1640_v37, %v1159_v17 }
 0x361   : > { %1643 = vrsqrt.f32 %v1179_v13  ;;  %v1180_v31 = vadd.f32 1e-05, %v1148_v54  ;;  %v1149_v47 = vsub.f32 %v1117_v9, %v1133_v21 }
 0x362   : > { %1271 = vst.msk [vmem:[%s2178_s12 + $0x58] sm:$0xff] %vm972_vm8, %v1255_v23  ;;  %v1252_v48 = vadd.f32 %v2167_v55, %v1229_v33  ;;  %v1230_v16 = vmul.f32 %v2154_v29, %v1207_v0 }
 0x363   : > { %1645 = vrsqrt.f32 %v1180_v31  ;;  %v1181_v11 = vadd.f32 1e-05, %v1149_v47 }
 0x364   : > { %1268 = vst.msk [vmem:[%s2178_s12 + $0x40] sm:$0xff] %vm972_vm8, %v1252_v48  ;;  %v1253_v44 = vadd.f32 %v2167_v55, %v1230_v16 }
 0x365   : > { %1647 = vrsqrt.f32 %v1181_v11 }
 0x366   : > { %1269 = vst.msk [vmem:[%s2178_s12 + $0x48] sm:$0xff] %vm972_vm8, %v1253_v44 }
 0x369   : > { %v1642_v57 = vpop.eup %1641 }
 0x36a   : > { %v1210_v1 = vmul.f32 %v1642_v57, %v1162_v12 }
 0x36b   : > { %v1644_v50 = vpop.eup %1643 }
 0x36c   : > { %v1233_v7 = vmul.f32 %v2154_v29, %v1210_v1  ;;  %v1211_v15 = vmul.f32 %v1644_v50, %v1163_v34 }
 0x36d   : > { %v1646_v18 = vpop.eup %1645 }
 0x36e   : > { %v1256_v42 = vadd.f32 %v2167_v55, %v1233_v7  ;;  %v1234_v3 = vmul.f32 %v2154_v29, %v1211_v15  ;;  %v1212_v39 = vmul.f32 %v1646_v18, %v1164_v14 }
 0x36f   : > { %v1648_v32 = vpop.eup %1647 }
 0x370   : > { %1272 = vst.msk [vmem:[%s2178_s12 + $0x60] sm:$0xff] %vm972_vm8, %v1256_v42  ;;  %v1257_v40 = vadd.f32 %v2167_v55, %v1234_v3  ;;  %v1235_v4 = vmul.f32 %v2154_v29, %v1212_v39  ;;  %v1213_v25 = vmul.f32 %v1648_v32, %v1165_v22 }
 0x372   : > { %1273 = vst.msk [vmem:[%s2178_s12 + $0x68] sm:$0xff] %vm972_vm8, %v1257_v40  ;;  %v1258_v27 = vadd.f32 %v2167_v55, %v1235_v4  ;;  %v1236_v30 = vmul.f32 %v2154_v29, %v1213_v25 }
 0x374   : > { %1274 = vst.msk [vmem:[%s2178_s12 + $0x70] sm:$0xff] %vm972_vm8, %v1258_v27  ;;  %v1259_v5 = vadd.f32 %v2167_v55, %v1236_v30 }
 0x376   : > { %1275 = vst.msk [vmem:[%s2178_s12 + $0x78] sm:$0xff] %vm972_vm8, %v1259_v5 }
 0x377 PF: > { %s18_s27 = sadd.s32 1, %s1655_s27  }
 0x378   : > { %p15_p4 = scmp.ge.s32.totalorder %s18_s27, 6  }
 0x37a   :  { %17 = sbr.rel (!%p15_p4) target bundleno = 1 (0x1), region = 94 }

// kernel: model_for_sim_forward.6
= control target key start
LH: loop header
LB: loop body
LE: loop exit
PB: predicated region body
PF: predicated region fallthrough
CT: control target
= control target key end

     0   :  { %s4785_s21 = smov 0   ;;  %s6421_s0 = inlined_call_operand.vmem [shape: f32[4,128,64], index: 0, kind: input, shape index: {}]   ;;  %s6422_s1 = inlined_call_operand.vmem [shape: s8[4,128,128], index: 1, kind: input, shape index: {}]   ;;  %s6423_s2 = inlined_call_operand.vmem [shape: bf16[64,64], index: 2, kind: input, shape index: {}]   ;;  %s6424_s3 = inlined_call_operand.vmem [shape: f32[1,64], index: 3, kind: input, shape index: {}]   ;;  %s6425_s4 = inlined_call_operand.vmem [shape: bf16[64,64], index: 4, kind: input, shape index: {}]   ;;  %s6426_s5 = inlined_call_operand.vmem [shape: f32[1,64], index: 5, kind: input, shape index: {}]   ;;  %s6427_s6 = inlined_call_operand.vmem [shape: bf16[64,64], index: 6, kind: input, shape index: {}]   ;;  %s6428_s7 = inlined_call_operand.vmem [shape: f32[1,64], index: 7, kind: input, shape index: {}]   ;;  %s6429_s8 = inlined_call_operand.vmem [shape: bf16[64,64], index: 8, kind: input, shape index: {}]   ;;  %s6430_s9 = inlined_call_operand.vmem [shape: f32[1,64], index: 9, kind: input, shape index: {}]   ;;  %s6431_s10 = inlined_call_operand.vmem [shape: f32[1,64], index: 10, kind: input, shape index: {}]   ;;  %s6432_s11 = inlined_call_operand.vmem [shape: f32[1,64], index: 11, kind: input, shape index: {}]   ;;  %s6433_s12 = inlined_call_operand.vmem [shape: f32[4,128,64], index: 12, kind: output, shape index: {}]  }
   0x1 LB: > { %s3710_s22 = sadd.s32 4294967295, %s4712_s21   ;;  %p3714_p0 = scmp.ge.s32.totalorder %s4712_s21, 1  ;;  %s4712_s21 = sphi %s4785_s21, %s22_s21  }
   0x2   : > { %p372_p1 = scmp.lt.s32.totalorder %s4712_s21, 5 }
   0x4   : > { %p373_p2 = pnand %p3714_p0, %p372_p1 }
   0x6   : > { %376 = sbr.rel (%p373_p2) target bundleno = 3549 (0xddd), region = 68 }
   0xd   : > { %v4386_v0 = vld [vmem:[%s6425_s4] sm:$0xff]   ;;  %p419_p3 = scmp.lt.s32.totalorder %s3710_s22, 3  ;;  %v4387_v1 = vld [vmem:[%s6425_s4 + $0x8] sm:$0xff]   ;;  %v4388_v2 = vld [vmem:[%s6425_s4 + $0x10] sm:$0xff]   ;;  %vm498_vm0 = vcmask 523264   ;;  %vm984_vm1 = vcmask 130048  }
   0xe   : > { %4012 = vmatprep.subr.bf16.mxu1 %v4386_v0  ;;  %v4390_v3 = vld [vmem:[%s6423_s2] sm:$0xff]   ;;  %v4391_v4 = vld [vmem:[%s6423_s2 + $0x8] sm:$0xff]   ;;  %v4389_v8 = vld [vmem:[%s6425_s4 + $0x18] sm:$0xff]   ;;  %s4714_s25 = smov 112   ;;  %s4715_s15 = smov 96   ;;  %vm1997_vm2 = vcmask 261248  }
   0xf   : > { %s6545_s22 = smov (!%p419_p3, %s3710_s22), 3  ;;  %4013 = vmatpush3.bf16.msra.mxu1 %v4386_v0  ;;  %3988 = vmatprep.subr.bf16.mxu0 %v4390_v3  ;;  %v4392_v12 = vld [vmem:[%s6423_s2 + $0x10] sm:$0xff]   ;;  %v4393_v14 = vld [vmem:[%s6423_s2 + $0x18] sm:$0xff]   ;;  %v4394_v17 = vld [vmem:[%s6427_s6] sm:$0xff]   ;;  %s4716_s17 = smov 80   ;;  %vm2560_vm3 = vcmask 392448  }
  0x10   : > { %4014 = vmatprep.subr.bf16.mxu1 %v4387_v1  ;;  %s3809_s29 = sshll.u32 %s6545_s22, 7  ;;  %3989 = vmatpush3.bf16.msra.mxu0 %v4390_v3  ;;  %v4395_v22 = vld [vmem:[%s6427_s6 + $0x8] sm:$0xff]   ;;  %v4396_v25 = vld [vmem:[%s6427_s6 + $0x10] sm:$0xff]   ;;  %v4397_v30 = vld [vmem:[%s6427_s6 + $0x18] sm:$0xff]   ;;  %s3810_s28 = sshll.u32 %s6545_s22, 5  ;;  %vm3123_vm4 = vcmask 523648  }
  0x11   : > { %s4813_s16 = scalar_lea.vmem %s6421_s0, %s3809_s29  ;;  %3990 = vmatprep.subr.bf16.mxu0 %v4391_v4  ;;  %v4887_v37 = vld [vmem:[%s6426_s5] ss:$0 sm:$0xff]  ;;  %s5053_s14 = scalar_lea.vmem %s6422_s1, %s3810_s28 }
  0x12   : > { %v435_v5 = vld [vmem:[%s4813_s16] sm:$0xff]  ;;  %v436_v6 = vld [vmem:[%s4813_s16 + $0x8] sm:$0xff]  ;;  %v437_v9 = vld [vmem:[%s4813_s16 + $0x10] sm:$0xff]  ;;  %s4717_s18 = smov 16   ;;  %s4718_s19 = smov 32  }
  0x13   : > { %4015 = vmatpush3.bf16.msra.mxu1 %v4387_v1  ;;  %v4820_v7 = vpack.c.bf16 %v436_v6, %v435_v5  ;;  %v438_v10 = vld [vmem:[%s4813_s16 + $0x18] sm:$0xff]  ;;  %v439_v11 = vld [vmem:[%s4813_s16 + $0x20] sm:$0xff]  ;;  %v440_v13 = vld [vmem:[%s4813_s16 + $0x28] sm:$0xff]  ;;  %s4719_s13 = smov 48   ;;  %s6333_s24 = scalar_lea.vmem %s6433_s12, %s3809_s29 }
  0x14   : > { %4016 = vmatprep.subr.bf16.mxu1 %v4388_v2  ;;  %3991 = vmatpush3.bf16.msra.mxu0 %v4391_v4  ;;  %v452_v15 = vpack.c.bf16 %v438_v10, %v437_v9  ;;  %v453_v16 = vpack.c.bf16 %v440_v13, %v439_v11  ;;  %v441_v18 = vld [vmem:[%s4813_s16 + $0x30] sm:$0xff]  ;;  %v442_v19 = vld [vmem:[%s4813_s16 + $0x38] sm:$0xff]  ;;  %v443_v20 = vld [vmem:[%s4813_s16 + $0x40] sm:$0xff] }
  0x15   : > { %4020 = vmatprep.mubr.msk.bf16.mxu1 %vm498_vm0, %v4820_v7  ;;  %3996 = vmatprep.mubr.msk.bf16.mxu0 %vm498_vm0, %v4820_v7  ;;  %v444_v21 = vld [vmem:[%s4813_s16 + $0x48] sm:$0xff]  ;;  %v454_v23 = vpack.c.bf16 %v442_v19, %v441_v18  ;;  %v445_v26 = vld [vmem:[%s4813_s16 + $0x50] sm:$0xff]  ;;  %v446_v27 = vld [vmem:[%s4813_s16 + $0x58] sm:$0xff] }
  0x16   : > { %3992 = vmatprep.subr.bf16.mxu0 %v4392_v12  ;;  %v455_v24 = vpack.c.bf16 %v444_v21, %v443_v20  ;;  %v447_v28 = vld [vmem:[%s4813_s16 + $0x60] sm:$0xff]  ;;  %v448_v29 = vld [vmem:[%s4813_s16 + $0x68] sm:$0xff]  ;;  %v456_v31 = vpack.c.bf16 %v446_v27, %v445_v26  ;;  %v449_v33 = vld [vmem:[%s4813_s16 + $0x70] sm:$0xff] }
  0x17   : > { %4017 = vmatpush3.bf16.msra.mxu1 %v4388_v2  ;;  %v457_v32 = vpack.c.bf16 %v448_v29, %v447_v28  ;;  %v450_v34 = vld [vmem:[%s4813_s16 + $0x78] sm:$0xff]  ;;  %v4892_v40 = vld [vmem:[%s6424_s3] ss:$0 sm:$0xff] }
  0x18   : > { %4018 = vmatprep.subr.bf16.mxu1 %v4389_v8  ;;  %3993 = vmatpush3.bf16.msra.mxu0 %v4392_v12  ;;  %v458_v35 = vpack.c.bf16 %v450_v34, %v449_v33 }
  0x19   : > { %3994 = vmatprep.subr.bf16.mxu0 %v4393_v14 }
  0x1b   : > { %4019 = vmatpush3.bf16.msra.mxu1 %v4389_v8 }
  0x1c   : > { %3995 = vmatpush3.bf16.msra.mxu0 %v4393_v14 }
  0x1d   : > { %4036 = vmatprep.subr.bf16.mxu0 %v4394_v17 }
  0x1e   : > { %4021 = vmatmul.mubr.msk.bf16.vlgmr.msra.gmra.mrb[0].mxu1 %vm498_vm0, %v452_v15 }
  0x1f   : > { %4024 = vmatprep.mubr.msk.bf16.mxu1 %vm498_vm0, %v453_v16  ;;  %3997 = vmatmul.mubr.msk.bf16.vlgmr.msra.gmra.mrb[0].mxu0 %vm498_vm0, %v452_v15 }
  0x20   : > { %4000 = vmatprep.mubr.msk.bf16.mxu0 %vm498_vm0, %v453_v16  ;;  %4037 = vmatpush3.bf16.msra.mxu0 %v4394_v17 }
  0x21   : > { %4038 = vmatprep.subr.bf16.mxu0 %v4395_v22 }
  0x24   : > { %4039 = vmatpush3.bf16.msra.mxu0 %v4395_v22 }
  0x25   : > { %4040 = vmatprep.subr.bf16.mxu0 %v4396_v25 }
  0x26   : > { %4025 = vmatmul.mubr.msk.bf16.gmra.mrb[4].mxu1 %vm498_vm0, %v454_v23 }
  0x27   : > { %4028 = vmatprep.mubr.msk.bf16.mxu1 %vm498_vm0, %v455_v24  ;;  %4001 = vmatmul.mubr.msk.bf16.gmra.mrb[4].mxu0 %vm498_vm0, %v454_v23 }
  0x28   : > { %4004 = vmatprep.mubr.msk.bf16.mxu0 %vm498_vm0, %v455_v24  ;;  %4041 = vmatpush3.bf16.msra.mxu0 %v4396_v25 }
  0x29   : > { %4042 = vmatprep.subr.bf16.mxu0 %v4397_v30 }
  0x2c   : > { %4043 = vmatpush3.bf16.msra.mxu0 %v4397_v30 }
  0x2e   : > { %4029 = vmatmul.mubr.msk.bf16.gmra.mrb[8].mxu1 %vm498_vm0, %v456_v31 }
  0x2f   : > { %4032 = vmatprep.mubr.msk.bf16.mxu1 %vm498_vm0, %v457_v32  ;;  %4005 = vmatmul.mubr.msk.bf16.gmra.mrb[8].mxu0 %vm498_vm0, %v456_v31 }
  0x30   : > { %4008 = vmatprep.mubr.msk.bf16.mxu0 %vm498_vm0, %v457_v32 }
  0x36   : > { %4033 = vmatmul.mubr.msk.bf16.gmra.mrb[12].mxu1 %vm498_vm0, %v458_v35 }
  0x37   : > { %4009 = vmatmul.mubr.msk.bf16.gmra.mrb[12].mxu0 %vm498_vm0, %v458_v35 }
  0x38   : > { %4044 = vmatprep.mubr.msk.bf16.mxu0 %vm498_vm0, %v4820_v7 }
  0x3f   : > { %4045 = vmatmul.mubr.msk.bf16.vlgmr.msra.gmra.mrb[16].mxu0 %vm498_vm0, %v452_v15 }
  0x40   : > { %4048 = vmatprep.mubr.msk.bf16.mxu0 %vm498_vm0, %v453_v16 }
  0x47   : > { %4049 = vmatmul.mubr.msk.bf16.gmra.mrb[20].mxu0 %vm498_vm0, %v454_v23 }
  0x48   : > { %4052 = vmatprep.mubr.msk.bf16.mxu0 %vm498_vm0, %v455_v24 }
  0x4f   : > { %4053 = vmatmul.mubr.msk.bf16.gmra.mrb[24].mxu0 %vm498_vm0, %v456_v31 }
  0x50   : > { %4056 = vmatprep.mubr.msk.bf16.mxu0 %vm498_vm0, %v457_v32 }
  0x57   : > { %4057 = vmatmul.mubr.msk.bf16.gmra.mrb[28].mxu0 %vm498_vm0, %v458_v35 }
  0xf1   : > { %v4022_v36 = vpop.f32.mrb[0].mxu1 }
  0xf2   : > { %v693_v38 = vpop.f32.mrb[1].mxu1  ;;  %v702_v41 = vadd.f32 %v4022_v36, %v4887_v37  ;;  %v3998_v46 = vpop.f32.mrb[0].mxu0 }
  0xf3   : > { %v4023_v39 = vpop.f32.mrb[2].mxu1  ;;  %v694_v44 = vadd.f32 %v4887_v37, %v693_v38  ;;  %v566_v48 = vadd.f32 %v3998_v46, %v4892_v40  ;;  %v557_v49 = vpop.f32.mrb[1].mxu0 }
  0xf4   : > { %v705_v42 = vadd.f32 %v4023_v39, %v4887_v37  ;;  %v696_v43 = vpop.f32.mrb[3].mxu1  ;;  %v558_v51 = vadd.f32 %v4892_v40, %v557_v49  ;;  %v3999_v52 = vpop.f32.mrb[2].mxu0 }
  0xf5   : > { %v697_v45 = vadd.f32 %v4887_v37, %v696_v43  ;;  %v569_v53 = vadd.f32 %v3999_v52, %v4892_v40  ;;  %v560_v54 = vpop.f32.mrb[3].mxu0 }
  0xf6   : > { %v4898_v47 = vpack.c.bf16 %v705_v42, %v702_v41  ;;  %v561_v57 = vadd.f32 %v4892_v40, %v560_v54 }
  0xf7   : > { %v4901_v50 = vpack.c.bf16 %v697_v45, %v694_v44  ;;  %v4915_v60 = vpack.c.bf16 %v569_v53, %v566_v48 }
  0xf8   : > { %1461 = vrot.lane.b32.xlu1 %v4898_v47, %s4714_s25  ;;  %v4920_v63 = vpack.c.bf16 %v561_v57, %v558_v51  ;;  %v1013_v12 = vsel %vm984_vm1, %v4898_v47, 0 }
  0xf9   : > { %1459 = vrot.lane.b32.xlu0 %v4901_v50, %s4714_s25  ;;  %4340 = vmatprep.subr.msk.bf16.mxu1 %vm984_vm1, %v4901_v50  ;;  %v1010_v55 = vsel %vm984_vm1, %v4901_v50, 0  ;;  %v4026_v56 = vpop.f32.mrb[4].mxu1 }
  0xfa   : > { %4061 = vmatpush3.bf16.xpose.msra.mxu1 %v1010_v55  ;;  %v718_v58 = vadd.f32 %v4026_v56, %v4887_v37  ;;  %v709_v59 = vpop.f32.mrb[5].mxu1  ;;  %4076 = vmatprep.mubr.msk.bf16.mxu1 %vm984_vm1, %v4920_v63  ;;  %v4002_v3 = vpop.f32.mrb[4].mxu0 }
  0xfb   : > { %4341 = vmatprep.subr.msk.bf16.mxu1 %vm984_vm1, %v4898_v47  ;;  %v710_v61 = vadd.f32 %v4887_v37, %v709_v59  ;;  %v4027_v62 = vpop.f32.mrb[6].mxu1  ;;  %v582_v5 = vadd.f32 %v4002_v3, %v4892_v40  ;;  %v573_v6 = vpop.f32.mrb[5].mxu0 }
  0xfc   : > { %v721_v0 = vadd.f32 %v4027_v62, %v4887_v37  ;;  %v712_v1 = vpop.f32.mrb[7].mxu1  ;;  %v574_v8 = vadd.f32 %v4892_v40, %v573_v6  ;;  %v4003_v9 = vpop.f32.mrb[6].mxu0  ;;  %v3747_v62 = vld [vmem:[%s6428_s7] ss:$0 sm:$0xff] }
  0xfd   : > { %v713_v2 = vadd.f32 %v4887_v37, %v712_v1  ;;  %v585_v10 = vadd.f32 %v4003_v9, %v4892_v40  ;;  %v576_v11 = vpop.f32.mrb[7].mxu0 }
  0xfe   : > { %v4926_v4 = vpack.c.bf16 %v721_v0, %v718_v58  ;;  %v577_v14 = vadd.f32 %v4892_v40, %v576_v11 }
  0xff   : > { %v4929_v7 = vpack.c.bf16 %v713_v2, %v710_v61  ;;  %v4937_v17 = vpack.c.bf16 %v585_v10, %v582_v5 }
 0x100   : > { %6464 = vst [vmem:[#allocation3_spill] sm:$0xff] %v4926_v4  ;;  %v4942_v20 = vpack.c.bf16 %v577_v14, %v574_v8  ;;  %v1019_v58 = vsel %vm984_vm1, %v4926_v4, 0 }
 0x101   : > { %6465 = vst [vmem:[#allocation4_spill] sm:$0xff] %v4929_v7  ;;  %v4030_v13 = vpop.f32.mrb[8].mxu1  ;;  %v1016_v33 = vsel %vm984_vm1, %v4929_v7, 0 }
 0x102   : > { %4063 = vmatpush3.bf16.xpose.msra.mxu1 %v1013_v12  ;;  %v734_v15 = vadd.f32 %v4030_v13, %v4887_v37  ;;  %v725_v16 = vpop.f32.mrb[9].mxu1  ;;  %v4006_v24 = vpop.f32.mrb[8].mxu0 }
 0x103   : > { %4342 = vmatprep.subr.msk.bf16.mxu1 %vm984_vm1, %v4929_v7  ;;  %v726_v18 = vadd.f32 %v4887_v37, %v725_v16  ;;  %v4031_v19 = vpop.f32.mrb[10].mxu1  ;;  %v598_v26 = vadd.f32 %v4006_v24, %v4892_v40  ;;  %v589_v27 = vpop.f32.mrb[9].mxu0 }
 0x104   : > { %v737_v21 = vadd.f32 %v4031_v19, %v4887_v37  ;;  %v728_v22 = vpop.f32.mrb[11].mxu1  ;;  %v590_v29 = vadd.f32 %v4892_v40, %v589_v27  ;;  %v4007_v30 = vpop.f32.mrb[10].mxu0 }
 0x105   : > { %v729_v23 = vadd.f32 %v4887_v37, %v728_v22  ;;  %v601_v31 = vadd.f32 %v4007_v30, %v4892_v40  ;;  %v592_v32 = vpop.f32.mrb[11].mxu0 }
 0x106   : > { %v4946_v25 = vpack.c.bf16 %v737_v21, %v734_v15  ;;  %v593_v35 = vadd.f32 %v4892_v40, %v592_v32 }
 0x107   : > { %v4949_v28 = vpack.c.bf16 %v729_v23, %v726_v18  ;;  %v4957_v39 = vpack.c.bf16 %v601_v31, %v598_v26 }
 0x108   : > { %6466 = vst [vmem:[#allocation5_spill] sm:$0xff] %v4946_v25  ;;  %v4962_v43 = vpack.c.bf16 %v593_v35, %v590_v29  ;;  %v1025_v21 = vsel %vm984_vm1, %v4946_v25, 0 }
 0x109   : > { %6467 = vst [vmem:[#allocation6_spill] sm:$0xff] %v4949_v28  ;;  %v4034_v34 = vpop.f32.mrb[12].mxu1 }
 0x10a   : > { %4065 = vmatpush3.bf16.xpose.msra.mxu1 %v1016_v33  ;;  %v750_v36 = vadd.f32 %v4034_v34, %v4887_v37  ;;  %v741_v38 = vpop.f32.mrb[13].mxu1  ;;  %v4010_v48 = vpop.f32.mrb[12].mxu0 }
 0x10b   : > { %4343 = vmatprep.subr.msk.bf16.mxu1 %vm984_vm1, %v4926_v4  ;;  %v742_v41 = vadd.f32 %v4887_v37, %v741_v38  ;;  %v4035_v42 = vpop.f32.mrb[14].mxu1  ;;  %v614_v51 = vadd.f32 %v4010_v48, %v4892_v40  ;;  %v605_v52 = vpop.f32.mrb[13].mxu0 }
 0x10c   : > { %v753_v44 = vadd.f32 %v4035_v42, %v4887_v37  ;;  %v744_v45 = vpop.f32.mrb[15].mxu1  ;;  %v606_v54 = vadd.f32 %v4892_v40, %v605_v52  ;;  %v4011_v55 = vpop.f32.mrb[14].mxu0 }
 0x10d   : > { %v745_v46 = vadd.f32 %v4887_v37, %v744_v45  ;;  %v617_v56 = vadd.f32 %v4011_v55, %v4892_v40  ;;  %v608_v57 = vpop.f32.mrb[15].mxu0 }
 0x10e   : > { %v4966_v49 = vpack.c.bf16 %v753_v44, %v750_v36  ;;  %v609_v59 = vadd.f32 %v4892_v40, %v608_v57  ;;  %v1022_v40 = vsel %vm984_vm1, %v4949_v28, 0 }
 0x10f   : > { %v4969_v53 = vpack.c.bf16 %v745_v46, %v742_v41  ;;  %v4976_v37 = vpack.c.bf16 %v617_v56, %v614_v51 }
 0x110   : > { %v4980_v61 = vpack.c.bf16 %v609_v59, %v606_v54  ;;  %v1031_v52 = vsel %vm984_vm1, %v4966_v49, 0 }
 0x111   : > { %v1028_v34 = vsel %vm984_vm1, %v4969_v53, 0 }
 0x112   : > { %4067 = vmatpush3.bf16.xpose.msra.mxu1 %v1019_v58  ;;  %v4046_v0 = vpop.f32.mrb[16].mxu0  ;;  %v892_v58 = vld [vmem:[%s5053_s14] sm:$0xff] }
 0x113   : > { %4344 = vmatprep.subr.msk.bf16.mxu1 %vm984_vm1, %v4949_v28  ;;  %v838_v1 = vadd.f32 %v4046_v0, %v3747_v62  ;;  %v829_v2 = vpop.f32.mrb[17].mxu0  ;;  %v898_v59 = vunpack.c.2.s8 %v892_v58 }
 0x114   : > { %v830_v3 = vadd.f32 %v3747_v62, %v829_v2  ;;  %v4047_v5 = vpop.f32.mrb[18].mxu0 }
 0x115   : > { %v841_v6 = vadd.f32 %v4047_v5, %v3747_v62  ;;  %v832_v8 = vpop.f32.mrb[19].mxu0  ;;  %v914_v0 = vcvt.s32.f32 %v898_v59  ;;  %v893_v5 = vld [vmem:[%s5053_s14 + $0x8] sm:$0xff] }
 0x116   : > { %v833_v9 = vadd.f32 %v3747_v62, %v832_v8 }
 0x117   : > { %v4987_v10 = vpack.c.bf16 %v841_v6, %v838_v1  ;;  %v899_v1 = vunpack.c.3.s8 %v892_v58  ;;  %v930_v6 = vsub.f32 1.0, %v914_v0 }
 0x118   : > { %v4991_v11 = vpack.c.bf16 %v833_v9, %v830_v3  ;;  %v897_v3 = vunpack.c.1.s8 %v892_v58 }
 0x119   : > { %v915_v8 = vcvt.s32.f32 %v899_v1 }
 0x11a   : > { %4069 = vmatpush3.bf16.xpose.msra.mxu1 %v1022_v40  ;;  %v4050_v12 = vpop.f32.mrb[20].mxu0  ;;  %4092 = vmatprep.subr.bf16.mxu0 %v4991_v11  ;;  %v902_v40 = vunpack.c.2.s8 %v893_v5 }
 0x11b   : > { %4345 = vmatprep.subr.msk.bf16.mxu1 %vm984_vm1, %v4946_v25  ;;  %v854_v13 = vadd.f32 %v4050_v12, %v3747_v62  ;;  %v845_v14 = vpop.f32.mrb[21].mxu0  ;;  %4093 = vmatpush3.bf16.msra.mxu0 %v4991_v11  ;;  %v913_v12 = vcvt.s32.f32 %v897_v3 }
 0x11c   : > { %v846_v15 = vadd.f32 %v3747_v62, %v845_v14  ;;  %v4051_v16 = vpop.f32.mrb[22].mxu0  ;;  %4094 = vmatprep.subr.bf16.mxu0 %v4987_v10  ;;  %v900_v14 = vunpack.c.0.s8 %v893_v5 }
 0x11d   : > { %v857_v18 = vadd.f32 %v4051_v16, %v3747_v62  ;;  %v848_v19 = vpop.f32.mrb[23].mxu0  ;;  %v5057_v16 = vmul.f32 -10000.0, %v930_v6 }
 0x11e   : > { %v849_v22 = vadd.f32 %v3747_v62, %v848_v19  ;;  %v918_v19 = vcvt.s32.f32 %v902_v40 }
 0x11f   : > { %v4998_v23 = vpack.c.bf16 %v857_v18, %v854_v13  ;;  %4095 = vmatpush3.bf16.msra.mxu0 %v4987_v10  ;;  %v903_v13 = vunpack.c.3.s8 %v893_v5  ;;  %v931_v18 = vsub.f32 1.0, %v915_v8 }
 0x120   : > { %v5003_v24 = vpack.c.bf16 %v849_v22, %v846_v15  ;;  %v901_v15 = vunpack.c.1.s8 %v893_v5 }
 0x121   : > { %6468 = vst [vmem:[#allocation7_spill] sm:$0xff] %v4998_v23 }
 0x122   : > { %4071 = vmatpush3.bf16.xpose.msra.mxu1 %v1025_v21  ;;  %v4054_v26 = vpop.f32.mrb[24].mxu0  ;;  %4096 = vmatprep.subr.bf16.mxu0 %v5003_v24  ;;  %v894_v21 = vld [vmem:[%s5053_s14 + $0x10] sm:$0xff] }
 0x123   : > { %4346 = vmatprep.subr.msk.bf16.mxu1 %vm984_vm1, %v4969_v53  ;;  %v870_v27 = vadd.f32 %v4054_v26, %v3747_v62  ;;  %v861_v29 = vpop.f32.mrb[25].mxu0  ;;  %4097 = vmatpush3.bf16.msra.mxu0 %v5003_v24  ;;  %v905_v6 = vunpack.c.1.s8 %v894_v21 }
 0x124   : > { %v862_v30 = vadd.f32 %v3747_v62, %v861_v29  ;;  %v4055_v31 = vpop.f32.mrb[26].mxu0  ;;  %4098 = vmatprep.subr.bf16.mxu0 %v4998_v23 }
 0x125   : > { %v873_v32 = vadd.f32 %v4055_v31, %v3747_v62  ;;  %v864_v33 = vpop.f32.mrb[27].mxu0  ;;  %v919_v31 = vcvt.s32.f32 %v903_v13 }
 0x126   : > { %v865_v35 = vadd.f32 %v3747_v62, %v864_v33 }
 0x127   : > { %v5010_v36 = vpack.c.bf16 %v873_v32, %v870_v27  ;;  %4099 = vmatpush3.bf16.msra.mxu0 %v4998_v23  ;;  %v929_v27 = vsub.f32 1.0, %v913_v12  ;;  %v916_v32 = vcvt.s32.f32 %v900_v14 }
 0x128   : > { %v5015_v38 = vpack.c.bf16 %v865_v35, %v862_v30  ;;  %v917_v35 = vcvt.s32.f32 %v901_v15 }
 0x129   : > { %6469 = vst [vmem:[#allocation8_spill] sm:$0xff] %v5010_v36  ;;  %v932_v59 = vsub.f32 1.0, %v916_v32 }
 0x12a   : > { %4073 = vmatpush3.bf16.xpose.msra.mxu1 %v1028_v34  ;;  %v4058_v41 = vpop.f32.mrb[28].mxu0  ;;  %4100 = vmatprep.subr.bf16.mxu0 %v5015_v38  ;;  %v933_v0 = vsub.f32 1.0, %v917_v35 }
 0x12b   : > { %4347 = vmatprep.subr.msk.bf16.mxu1 %vm984_vm1, %v4966_v49  ;;  %v886_v42 = vadd.f32 %v4058_v41, %v3747_v62  ;;  %v877_v44 = vpop.f32.mrb[29].mxu0  ;;  %4101 = vmatpush3.bf16.msra.mxu0 %v5015_v38  ;;  %v906_v41 = vunpack.c.2.s8 %v894_v21  ;;  %v5088_v15 = vmul.f32 -10000.0, %v932_v59 }
 0x12c   : > { %v878_v45 = vadd.f32 %v3747_v62, %v877_v44  ;;  %v4059_v46 = vpop.f32.mrb[30].mxu0  ;;  %4102 = vmatprep.subr.bf16.mxu0 %v5010_v36 }
 0x12d   : > { %v889_v48 = vadd.f32 %v4059_v46, %v3747_v62  ;;  %v880_v51 = vpop.f32.mrb[31].mxu0  ;;  %v5065_v46 = vmul.f32 -10000.0, %v931_v18  ;;  %v922_v1 = vcvt.s32.f32 %v906_v41  ;;  %6472 = vst [vmem:[#allocation11_spill] sm:$0xff] %v5088_v15 }
 0x12e   : > { %v881_v54 = vadd.f32 %v3747_v62, %v880_v51  ;;  %v896_v62 = vunpack.c.0.s8 %v892_v58  ;;  %v935_v58 = vsub.f32 1.0, %v919_v31 }
 0x12f   : > { %v5022_v55 = vpack.c.bf16 %v889_v48, %v886_v42  ;;  %4103 = vmatpush3.bf16.msra.mxu0 %v5010_v36  ;;  %v934_v48 = vsub.f32 1.0, %v918_v19 }
 0x130   : > { %v5025_v56 = vpack.c.bf16 %v881_v54, %v878_v45  ;;  %v912_v2 = vcvt.s32.f32 %v896_v62  ;;  %v5070_v54 = vmul.f32 -10000.0, %v929_v27  ;;  %v907_v62 = vunpack.c.3.s8 %v894_v21 }
 0x131   : > { %6470 = vst [vmem:[#allocation9_spill] sm:$0xff] %v5022_v55  ;;  %v5077_v5 = vmul.f32 -10000.0, %v934_v48  ;;  %v5086_v14 = vmul.f32 -10000.0, %v935_v58  ;;  %v938_v27 = vsub.f32 1.0, %v922_v1 }
 0x132   : > { %4075 = vmatpush3.bf16.xpose.msra.mxu1 %v1031_v52  ;;  %6471 = vst [vmem:[#allocation10_spill] sm:$0xff] %v5025_v56  ;;  %4104 = vmatprep.subr.bf16.mxu0 %v5025_v56  ;;  %v928_v9 = vsub.f32 1.0, %v912_v2  ;;  %v904_v2 = vunpack.c.0.s8 %v894_v21  ;;  %v923_v18 = vcvt.s32.f32 %v907_v62  ;;  %v5091_v21 = vmul.f32 -10000.0, %v933_v0 }
 0x133   : > { %4105 = vmatpush3.bf16.msra.mxu0 %v5025_v56  ;;  %v5109_v59 = vmul.f32 -10000.0, %v938_v27 }
 0x134   : > { %4106 = vmatprep.subr.bf16.mxu0 %v5022_v55  ;;  %v5060_v26 = vmul.f32 -10000.0, %v928_v9  ;;  %v5083_v9 = vld [vmem:[%s5053_s14 + $0x18] sm:$0xff] }
 0x135   : > { %6473 = vst [vmem:[#allocation12_spill] sm:$0xff] %v5109_v59 }
 0x137   : > { %4107 = vmatpush3.bf16.msra.mxu0 %v5022_v55 }
 0x139   : > { %4077 = vmatmul.mubr.msk.bf16.vlgmr.msra.gmra.mrb[16].mxu1 %vm984_vm1, %v4915_v60 }
 0x13a   : > { %4080 = vmatprep.mubr.msk.bf16.mxu1 %vm984_vm1, %v4942_v20 }
 0x141   : > { %4081 = vmatmul.mubr.msk.bf16.gmra.mrb[20].mxu1 %vm984_vm1, %v4937_v17 }
 0x142   : > { %4084 = vmatprep.mubr.msk.bf16.mxu1 %vm984_vm1, %v4962_v43 }
 0x149   : > { %4085 = vmatmul.mubr.msk.bf16.gmra.mrb[24].mxu1 %vm984_vm1, %v4957_v39 }
 0x14a   : > { %4088 = vmatprep.mubr.msk.bf16.mxu1 %vm984_vm1, %v4980_v61 }
 0x151   : > { %4089 = vmatmul.mubr.msk.bf16.gmra.mrb[28].mxu1 %vm984_vm1, %v4976_v37 }
 0x16b   : > { %v5045_v57 = vpop.permute.xlu0 %1459 }
 0x16c   : > { %4348 = vmatprep.subr.msk.bf16.mxu0 %vm984_vm1, %v5045_v57 }
 0x20c   : > { %v4078_v22 = vpop.f32.mrb[16].mxu1 }
 0x20d   : > { %v1132_v29 = vmul.f32 0.25, %v4078_v22  ;;  %v1067_v30 = vpop.f32.mrb[17].mxu1 }
 0x20e   : > { %v1130_v33 = vmul.f32 0.25, %v1067_v30  ;;  %v4079_v34 = vpop.f32.mrb[18].mxu1 }
 0x20f   : > { %v1133_v42 = vmul.f32 0.25, %v4079_v34  ;;  %v1070_v44 = vpop.f32.mrb[19].mxu1  ;;  %v5063_v45 = vadd.f32 %v1132_v29, %v5057_v16  ;;  %v920_v29 = vcvt.s32.f32 %v904_v2  ;;  %v910_v34 = vunpack.c.2.s8 %v5083_v9 }
 0x210   : > { %v1131_v51 = vmul.f32 0.25, %v1070_v44  ;;  %v5068_v52 = vadd.f32 %v1130_v33, %v5060_v26  ;;  %v921_v33 = vcvt.s32.f32 %v905_v6 }
 0x211   : > { %1166 = vmax.xlane.f32.xlu1 %v5063_v45  ;;  %v5075_v3 = vadd.f32 %v1133_v42, %v5065_v46  ;;  %v939_v42 = vsub.f32 1.0, %v923_v18  ;;  %v936_v48 = vsub.f32 1.0, %v920_v29  ;;  %v926_v0 = vcvt.s32.f32 %v910_v34 }
 0x212   : > { %1162 = vmax.xlane.f32.xlu0 %v5068_v52  ;;  %v5080_v40 = vadd.f32 %v1131_v51, %v5070_v54  ;;  %v908_v51 = vunpack.c.0.s8 %v5083_v9  ;;  %v937_v62 = vsub.f32 1.0, %v921_v33 }
 0x213   : > { %v5114_v18 = vmul.f32 -10000.0, %v936_v48 }
 0x214   : > { %v4082_v8 = vpop.f32.mrb[20].mxu1 }
 0x215   : > { %v1136_v12 = vmul.f32 0.25, %v4082_v8  ;;  %1168 = vmax.xlane.f32.xlu1 %v5075_v3  ;;  %v1083_v13 = vpop.f32.mrb[21].mxu1  ;;  %v5111_v8 = vmul.f32 -10000.0, %v939_v42  ;;  %6475 = vst [vmem:[#allocation14_spill] sm:$0xff] %v5114_v18 }
 0x216   : > { %v1134_v19 = vmul.f32 0.25, %v1083_v13  ;;  %1164 = vmax.xlane.f32.xlu0 %v5080_v40  ;;  %v4083_v22 = vpop.f32.mrb[22].mxu1 }
 0x217   : > { %v1137_v30 = vmul.f32 0.25, %v4083_v22  ;;  %v5094_v31 = vadd.f32 %v1136_v12, %v5077_v5  ;;  %v1086_v32 = vpop.f32.mrb[23].mxu1  ;;  %6474 = vst [vmem:[#allocation13_spill] sm:$0xff] %v5111_v8 }
 0x218   : > { %v1135_v35 = vmul.f32 0.25, %v1086_v32  ;;  %v5102_v44 = vadd.f32 %v1134_v19, %v5088_v15  ;;  %v924_v19 = vcvt.s32.f32 %v908_v51  ;;  %v942_v32 = vsub.f32 1.0, %v926_v0 }
 0x219   : > { %v5098_v41 = vadd.f32 %v1137_v30, %v5086_v14  ;;  %v5120_v30 = vmul.f32 -10000.0, %v937_v62 }
 0x21a   : > { %1174 = vmax.xlane.f32.xlu0 %v5094_v31  ;;  %v5107_v58 = vadd.f32 %v1135_v35, %v5091_v21  ;;  %v940_v42 = vsub.f32 1.0, %v924_v19  ;;  %v5133_v51 = vmul.f32 -10000.0, %v942_v32 }
 0x21b   : > { %1176 = vmax.xlane.f32.xlu1 %v5098_v41  ;;  %6476 = vst [vmem:[#allocation15_spill] sm:$0xff] %v5120_v30 }
 0x21c   : > { %v4086_v1 = vpop.f32.mrb[24].mxu1  ;;  %6477 = vst [vmem:[#allocation16_spill] sm:$0xff] %v5133_v51 }
 0x21d   : > { %v1140_v2 = vmul.f32 0.25, %v4086_v1  ;;  %v1099_v6 = vpop.f32.mrb[25].mxu1 }
 0x21e   : > { %v1138_v12 = vmul.f32 0.25, %v1099_v6  ;;  %1170 = vmax.xlane.f32.xlu0 %v5102_v44  ;;  %v4087_v13 = vpop.f32.mrb[26].mxu1  ;;  %v5136_v6 = vmul.f32 -10000.0, %v940_v42 }
 0x21f   : > { %v1141_v22 = vmul.f32 0.25, %v4087_v13  ;;  %1172 = vmax.xlane.f32.xlu1 %v5107_v58  ;;  %v5118_v27 = vadd.f32 %v1140_v2, %v5109_v59  ;;  %v1102_v29 = vpop.f32.mrb[27].mxu1 }
 0x220   : > { %v1139_v33 = vmul.f32 0.25, %v1102_v29  ;;  %v5127_v35 = vadd.f32 %v1138_v12, %v5114_v18  ;;  %6478 = vst [vmem:[#allocation17_spill] sm:$0xff] %v5136_v6  ;;  %v911_v29 = vunpack.c.3.s8 %v5083_v9 }
 0x221   : > { %v5123_v34 = vadd.f32 %v1141_v22, %v5111_v8 }
 0x222   : > { %1182 = vmax.xlane.f32.xlu0 %v5118_v27  ;;  %v5131_v48 = vadd.f32 %v1139_v33, %v5120_v30  ;;  %v927_v32 = vcvt.s32.f32 %v911_v29  ;;  %v909_v33 = vunpack.c.1.s8 %v5083_v9  ;;  %v5165_v9 = vpop.permute.xlu1 %1461 }
 0x223   : > { %1184 = vmax.xlane.f32.xlu1 %v5123_v34 }
 0x224   : > { %v4090_v62 = vpop.f32.mrb[28].mxu1  ;;  %v943_v42 = vsub.f32 1.0, %v927_v32 }
 0x225   : > { %v1144_v1 = vmul.f32 0.25, %v4090_v62  ;;  %v1115_v0 = vpop.f32.mrb[29].mxu1  ;;  %v925_v62 = vcvt.s32.f32 %v909_v33 }
 0x226   : > { %1178 = vmax.xlane.f32.xlu0 %v5127_v35  ;;  %v1142_v2 = vmul.f32 0.25, %v1115_v0  ;;  %v4091_v13 = vpop.f32.mrb[30].mxu1  ;;  %v5153_v0 = vmul.f32 -10000.0, %v943_v42 }
 0x227   : > { %1180 = vmax.xlane.f32.xlu1 %v5131_v48  ;;  %v5140_v12 = vadd.f32 %v1144_v1, %v5133_v51  ;;  %v1118_v19 = vpop.f32.mrb[31].mxu1  ;;  %v1145_v1 = vmul.f32 0.25, %v4091_v13 }
 0x228   : > { %v5144_v22 = vadd.f32 %v1142_v2, %v5136_v6  ;;  %6479 = vst [vmem:[#allocation18_spill] sm:$0xff] %v5153_v0  ;;  %v941_v2 = vsub.f32 1.0, %v925_v62  ;;  %v1143_v6 = vmul.f32 0.25, %v1118_v19 }
 0x229   : > { %v5156_v51 = vadd.f32 %v1145_v1, %v5153_v0 }
 0x22a   : > { %1190 = vmax.xlane.f32.xlu0 %v5140_v12  ;;  %v5158_v18 = vmul.f32 -10000.0, %v941_v2 }
 0x22c   : > { %6480 = vst [vmem:[#allocation19_spill] sm:$0xff] %v5158_v18 }
 0x22e   : > { %1186 = vmax.xlane.f32.xlu0 %v5144_v22 }
 0x238   : > { %1465 = vrot.lane.b32.xlu1 %v4926_v4, %s4714_s25 }
 0x244   : > { %1463 = vrot.lane.b32.xlu0 %v4929_v7, %s4714_s25  ;;  %v5162_v7 = vadd.f32 %v1143_v6, %v5158_v18 }
 0x25c   : > { %1192 = vmax.xlane.f32.xlu1 %v5156_v51 }
 0x260   : > { %1188 = vmax.xlane.f32.xlu1 %v5162_v7 }
 0x29e   : > { %v1167_v29 = vpop.xlane.xlu1 %1166 }
 0x29f   : > { %v1196_v13 = vsub.f32 %v5063_v45, %v1167_v29  ;;  %v1163_v32 = vpop.xlane.xlu0 %1162 }
 0x2a0   : > { %v1194_v19 = vsub.f32 %v5068_v52, %v1163_v32 }
 0x2a1   : > { %v1214_v33 = vmul.f32 1.442695, %v1196_v13 }
 0x2a2   : > { %v1210_v42 = vmul.f32 1.442695, %v1194_v19  ;;  %v1169_v62 = vpop.xlane.xlu1 %1168 }
 0x2a3   : > { %4402 = vpow2.f32 %v1214_v33  ;;  %v1197_v1 = vsub.f32 %v5075_v3, %v1169_v62  ;;  %v1165_v2 = vpop.xlane.xlu0 %1164 }
 0x2a4   : > { %v1195_v6 = vsub.f32 %v5080_v40, %v1165_v2  ;;  %4404 = vpow2.f32 %v1210_v42 }
 0x2a5   : > { %v1216_v18 = vmul.f32 1.442695, %v1197_v1 }
 0x2a6   : > { %v1212_v0 = vmul.f32 1.442695, %v1195_v6 }
 0x2a7   : > { %4406 = vpow2.f32 %v1216_v18  ;;  %v1175_v40 = vpop.xlane.xlu0 %1174 }
 0x2a8   : > { %4408 = vpow2.f32 %v1212_v0  ;;  %v1177_v29 = vpop.xlane.xlu1 %1176  ;;  %v1200_v19 = vsub.f32 %v5094_v31, %v1175_v40 }
 0x2a9   : > { %v1201_v6 = vsub.f32 %v5098_v41, %v1177_v29 }
 0x2aa   : > { %v1222_v62 = vmul.f32 1.442695, %v1200_v19 }
 0x2ab   : > { %v1171_v18 = vpop.xlane.xlu0 %1170  ;;  %v1224_v8 = vmul.f32 1.442695, %v1201_v6 }
 0x2ac   : > { %v1173_v32 = vpop.xlane.xlu1 %1172  ;;  %v1198_v33 = vsub.f32 %v5102_v44, %v1171_v18  ;;  %4410 = vpow2.f32 %v1222_v62 }
 0x2ad   : > { %v5171_v4 = vpop.eup %4402  ;;  %v1199_v1 = vsub.f32 %v5107_v58, %v1173_v32 }
 0x2ae   : > { %1246 = vadd.xlane.f32.xlu0 %v5171_v4  ;;  %v5174_v45 = vpop.eup %4404  ;;  %v1218_v30 = vmul.f32 1.442695, %v1198_v33 }
 0x2af   : > { %v1183_v0 = vpop.xlane.xlu0 %1182 }
 0x2b0   : > { %v1185_v2 = vpop.xlane.xlu1 %1184  ;;  %4412 = vpow2.f32 %v1218_v30  ;;  %v1204_v15 = vsub.f32 %v5118_v27, %v1183_v0 }
 0x2b1   : > { %v5176_v52 = vpop.eup %4406  ;;  %v1205_v27 = vsub.f32 %v5123_v34, %v1185_v2 }
 0x2b2   : > { %1242 = vadd.xlane.f32.xlu0 %v5174_v45  ;;  %1248 = vadd.xlane.f32.xlu1 %v5176_v52  ;;  %v5180_v3 = vpop.eup %4408  ;;  %v1230_v58 = vmul.f32 1.442695, %v1204_v15 }
 0x2b3   : > { %v1179_v13 = vpop.xlane.xlu0 %1178 }
 0x2b4   : > { %v1181_v31 = vpop.xlane.xlu1 %1180  ;;  %v1202_v18 = vsub.f32 %v5127_v35, %v1179_v13 }
 0x2b5   : > { %v1203_v35 = vsub.f32 %v5131_v48, %v1181_v31 }
 0x2b6   : > { %1244 = vadd.xlane.f32.xlu1 %v5180_v3  ;;  %v5197_v32 = vpop.eup %4410  ;;  %v1226_v30 = vmul.f32 1.442695, %v1202_v18 }
 0x2b7   : > { %v1191_v42 = vpop.xlane.xlu0 %1190 }
 0x2b8   : > { %v5195_v29 = vpop.permute.xlu1 %1465 }
 0x2bb   : > { %v1187_v59 = vpop.xlane.xlu0 %1186 }
 0x2bc   : > { %v1206_v40 = vsub.f32 %v5144_v22, %v1187_v59 }
 0x2be   : > { %v1234_v41 = vmul.f32 1.442695, %v1206_v40 }
 0x2bf   : > { %v1464_v6 = vpop.permute.xlu0 %1463 }
 0x2c7   : > { %1469 = vrot.lane.b32.xlu1 %v4946_v25, %s4714_s25  ;;  %v1220_v25 = vmul.f32 1.442695, %v1199_v1 }
 0x2c8   : > { %1467 = vrot.lane.b32.xlu0 %v4949_v28, %s4714_s25  ;;  %v1208_v28 = vsub.f32 %v5140_v12, %v1191_v42 }
 0x2c9   : > { %4414 = vpow2.f32 %v1220_v25  ;;  %v5201_v25 = vpop.eup %4412 }
 0x2ca   : > { %v1238_v44 = vmul.f32 1.442695, %v1208_v28  ;;  %4416 = vpow2.f32 %v1224_v8  ;;  %v1232_v8 = vmul.f32 1.442695, %v1205_v27 }
 0x2cc   : > { %4418 = vpow2.f32 %v1238_v44 }
 0x2cd   : > { %4420 = vpow2.f32 %v1230_v58 }
 0x2ce   : > { %4422 = vpow2.f32 %v1234_v41 }
 0x2cf   : > { %4424 = vpow2.f32 %v1226_v30 }
 0x2d3   : > { %v5203_v59 = vpop.eup %4414 }
 0x2d4   : > { %v5209_v22 = vpop.eup %4416 }
 0x2d6   : > { %v5211_v0 = vpop.eup %4418 }
 0x2d7   : > { %v5216_v19 = vpop.eup %4420 }
 0x2d8   : > { %v5218_v33 = vpop.eup %4422 }
 0x2d9   : > { %v5222_v42 = vpop.eup %4424 }
 0x2e7   : > { %1254 = vadd.xlane.f32.xlu0 %v5197_v32 }
 0x2e9   : > { %v1193_v28 = vpop.xlane.xlu1 %1192 }
 0x2ea   : > { %v1209_v15 = vsub.f32 %v5156_v51, %v1193_v28  ;;  %v1228_v51 = vmul.f32 1.442695, %v1203_v35 }
 0x2eb   : > { %1252 = vadd.xlane.f32.xlu0 %v5203_v59  ;;  %1250 = vadd.xlane.f32.xlu1 %v5201_v25 }
 0x2ec   : > { %v1240_v12 = vmul.f32 1.442695, %v1209_v15 }
 0x2ed   : > { %v1189_v34 = vpop.xlane.xlu1 %1188 }
 0x2ee   : > { %4426 = vpow2.f32 %v1240_v12  ;;  %v1207_v13 = vsub.f32 %v5162_v7, %v1189_v34 }
 0x2ef   : > { %1270 = vadd.xlane.f32.xlu0 %v5211_v0  ;;  %1256 = vadd.xlane.f32.xlu1 %v5209_v22  ;;  %4428 = vpow2.f32 %v1232_v8 }
 0x2f0   : > { %4430 = vpow2.f32 %v1228_v51  ;;  %v1236_v48 = vmul.f32 1.442695, %v1207_v13  ;;  %v1500_v51 = vsel %vm984_vm1, %v5045_v57, 0 }
 0x2f2   : > { %4432 = vpow2.f32 %v1236_v48 }
 0x2f3   : > { %1266 = vadd.xlane.f32.xlu0 %v5218_v33  ;;  %1262 = vadd.xlane.f32.xlu1 %v5216_v19 }
 0x2f7   : > { %1258 = vadd.xlane.f32.xlu1 %v5222_v42 }
 0x2f8   : > { %v5225_v62 = vpop.eup %4426 }
 0x2f9   : > { %1272 = vadd.xlane.f32.xlu0 %v5225_v62  ;;  %v5228_v7 = vpop.eup %4428 }
 0x2fa   : > { %v5231_v1 = vpop.eup %4430 }
 0x2fb   : > { %1264 = vadd.xlane.f32.xlu1 %v5228_v7 }
 0x2fc   : > { %v5234_v2 = vpop.eup %4432 }
 0x2ff   : > { %1260 = vadd.xlane.f32.xlu1 %v5231_v1 }
 0x303   : > { %1268 = vadd.xlane.f32.xlu1 %v5234_v2 }
 0x30f   : > { %1471 = vrot.lane.b32.xlu0 %v4969_v53, %s4714_s25 }
 0x313   : > { %1435 = vrot.lane.b32.xlu0 %v4920_v63, %s4714_s25 }
 0x314   : > { %1473 = vrot.lane.b32.xlu1 %v4966_v49, %s4714_s25 }
 0x317   : > { %1439 = vrot.lane.b32.xlu0 %v4942_v20, %s4714_s25 }
 0x318   : > { %1437 = vrot.lane.b32.xlu1 %v4915_v60, %s4714_s25 }
 0x31b   : > { %1443 = vrot.lane.b32.xlu0 %v4962_v43, %s4714_s25 }
 0x31c   : > { %1441 = vrot.lane.b32.xlu1 %v4937_v17, %s4714_s25 }
 0x31f   : > { %1447 = vrot.lane.b32.xlu0 %v4980_v61, %s4714_s25 }
 0x320   : > { %1445 = vrot.lane.b32.xlu1 %v4957_v39, %s4714_s25 }
 0x323   : > { %1812 = vrot.lane.b32.xlu0 %v4991_v11, %s4714_s25 }
 0x324   : > { %1449 = vrot.lane.b32.xlu1 %v4976_v37, %s4714_s25 }
 0x327   : > { %1816 = vrot.lane.b32.xlu0 %v5003_v24, %s4714_s25 }
 0x328   : > { %1814 = vrot.lane.b32.xlu1 %v4987_v10, %s4714_s25 }
 0x32b   : > { %1820 = vrot.lane.b32.xlu0 %v5015_v38, %s4714_s25 }
 0x32c   : > { %1818 = vrot.lane.b32.xlu1 %v4998_v23, %s4714_s25 }
 0x32f   : > { %1824 = vrot.lane.b32.xlu0 %v5025_v56, %s4714_s25 }
 0x330   : > { %1822 = vrot.lane.b32.xlu1 %v5010_v36, %s4714_s25 }
 0x333   : > { %2030 = vrot.lane.b32.xlu0 %v4901_v50, %s4715_s15 }
 0x334   : > { %1826 = vrot.lane.b32.xlu1 %v5022_v55, %s4714_s25 }
 0x338   : > { %2032 = vrot.lane.b32.xlu1 %v4898_v47, %s4715_s15 }
 0x33b   : > { %v1247_v31 = vpop.xlane.xlu0 %1246 }
 0x33f   : > { %v1243_v44 = vpop.xlane.xlu0 %1242  ;;  %v1249_v40 = vpop.xlane.xlu1 %1248 }
 0x340   : > { %4434 = vrcp.f32 %v1249_v40 }
 0x341   : > { %4436 = vrcp.f32 %v1243_v44 }
 0x342   : > { %4438 = vrcp.f32 %v1247_v31 }
 0x343   : > { %v1245_v58 = vpop.xlane.xlu1 %1244  ;;  %v1468_v57 = vpop.permute.xlu0 %1467 }
 0x344   : > { %4440 = vrcp.f32 %v1245_v58 }
 0x34a   : > { %v4435_v18 = vpop.eup %4434 }
 0x34b   : > { %v4437_v41 = vpop.eup %4436  ;;  %v1293_v28 = vmul.f32 %v4435_v18, %v5176_v52  ;;  %v1503_v52 = vsel %vm984_vm1, %v5165_v9, 0 }
 0x34c   : > { %v4439_v27 = vpop.eup %4438  ;;  %v1290_v15 = vmul.f32 %v4437_v41, %v5174_v45  ;;  %v1506_v45 = vsel %vm984_vm1, %v1464_v6, 0 }
 0x34d   : > { %v1292_v35 = vmul.f32 %v4439_v27, %v5171_v4  ;;  %v1509_v4 = vsel %vm984_vm1, %v5195_v29, 0 }
 0x34e   : > { %v4441_v30 = vpop.eup %4440 }
 0x34f   : > { %v1291_v8 = vmul.f32 %v4441_v30, %v5180_v3  ;;  %v1307_v34 = vpack.c.bf16 %v1293_v28, %v1292_v35  ;;  %v1470_v3 = vpop.permute.xlu1 %1469 }
 0x350   : > { %v1515_v44 = vsel %vm984_vm1, %v1470_v3, 0 }
 0x351   : > { %v1306_v12 = vpack.c.bf16 %v1291_v8, %v1290_v15 }
 0x353   : > { %4108 = vmatprep.mubr.bf16.mxu0 %v1306_v12 }
 0x354   : > { %4109 = vmatmul.mubr.bf16.vlgmr.msra.gmra.mrb[32].mxu0 %v1307_v34 }
 0x355   : > { %4125 = vmatpush3.bf16.xpose.msra.mxu0 %v1500_v51 }
 0x356   : > { %4349 = vmatprep.subr.msk.bf16.mxu0 %vm984_vm1, %v5165_v9  ;;  %v1512_v9 = vsel %vm984_vm1, %v1468_v57, 0 }
 0x35d   : > { %4127 = vmatpush3.bf16.xpose.msra.mxu0 %v1503_v52 }
 0x35e   : > { %4350 = vmatprep.subr.msk.bf16.mxu0 %vm984_vm1, %v1464_v6 }
 0x365   : > { %4129 = vmatpush3.bf16.xpose.msra.mxu0 %v1506_v45 }
 0x366   : > { %4351 = vmatprep.subr.msk.bf16.mxu0 %vm984_vm1, %v5195_v29 }
 0x36d   : > { %4131 = vmatpush3.bf16.xpose.msra.mxu0 %v1509_v4 }
 0x36e   : > { %4352 = vmatprep.subr.msk.bf16.mxu0 %vm984_vm1, %v1468_v57 }
 0x374   : > { %v1255_v13 = vpop.xlane.xlu0 %1254 }
 0x375   : > { %4133 = vmatpush3.bf16.xpose.msra.mxu0 %v1512_v9 }
 0x376   : > { %4353 = vmatprep.subr.msk.bf16.mxu0 %vm984_vm1, %v1470_v3 }
 0x378   : > { %v1253_v48 = vpop.xlane.xlu0 %1252  ;;  %v1251_v6 = vpop.xlane.xlu1 %1250 }
 0x379   : > { %4442 = vrcp.f32 %v1253_v48 }
 0x37a   : > { %4444 = vrcp.f32 %v1251_v6 }
 0x37b   : > { %4446 = vrcp.f32 %v1255_v13 }
 0x37c   : > { %v1271_v31 = vpop.xlane.xlu0 %1270  ;;  %v1257_v29 = vpop.xlane.xlu1 %1256 }
 0x37d   : > { %4135 = vmatpush3.bf16.xpose.msra.mxu0 %v1515_v44  ;;  %4448 = vrcp.f32 %v1257_v29 }
 0x380   : > { %v1263_v40 = vpop.xlane.xlu1 %1262  ;;  %v1267_v58 = vpop.xlane.xlu0 %1266 }
 0x383   : > { %v4443_v18 = vpop.eup %4442 }
 0x384   : > { %v4445_v41 = vpop.eup %4444  ;;  %v1259_v27 = vpop.xlane.xlu1 %1258  ;;  %v1295_v30 = vmul.f32 %v4443_v18, %v5203_v59 }
 0x385   : > { %v1294_v28 = vmul.f32 %v4445_v41, %v5201_v25  ;;  %v4447_v15 = vpop.eup %4446 }
 0x386   : > { %v1273_v8 = vpop.xlane.xlu0 %1272  ;;  %v1296_v51 = vmul.f32 %v4447_v15, %v5197_v32 }
 0x387   : > { %v1308_v35 = vpack.c.bf16 %v1295_v30, %v1294_v28  ;;  %v4449_v12 = vpop.eup %4448 }
 0x388   : > { %v1265_v34 = vpop.xlane.xlu1 %1264  ;;  %v1297_v52 = vmul.f32 %v4449_v12, %v5209_v22 }
 0x389   : > { %4112 = vmatprep.mubr.bf16.mxu0 %v1308_v35  ;;  %4450 = vrcp.f32 %v1265_v34 }
 0x38a   : > { %v1472_v45 = vpop.permute.xlu0 %1471  ;;  %4452 = vrcp.f32 %v1259_v27  ;;  %v1309_v4 = vpack.c.bf16 %v1297_v52, %v1296_v51 }
 0x38b   : > { %4354 = vmatprep.subr.msk.bf16.mxu0 %vm984_vm1, %v1472_v45  ;;  %v1518_v59 = vsel %vm984_vm1, %v1472_v45, 0  ;;  %4454 = vrcp.f32 %v1263_v40 }
 0x38c   : > { %4137 = vmatpush3.bf16.xpose.msra.mxu0 %v1518_v59  ;;  %v1261_v25 = vpop.xlane.xlu1 %1260 }
 0x38d   : > { %4113 = vmatmul.mubr.bf16.gmra.mrb[36].mxu0 %v1309_v4  ;;  %4456 = vrcp.f32 %v1261_v25 }
 0x38e   : > { %v1436_v57 = vpop.permute.xlu0 %1435  ;;  %4458 = vrcp.f32 %v1267_v58 }
 0x390   : > { %v1269_v3 = vpop.xlane.xlu1 %1268 }
 0x391   : > { %4460 = vrcp.f32 %v1269_v3 }
 0x392   : > { %4462 = vrcp.f32 %v1273_v8  ;;  %v1440_v32 = vpop.permute.xlu0 %1439 }
 0x393   : > { %v4451_v22 = vpop.eup %4450  ;;  %4464 = vrcp.f32 %v1271_v31 }
 0x394   : > { %v1474_v13 = vpop.permute.xlu1 %1473  ;;  %v4453_v9 = vpop.eup %4452  ;;  %v1301_v40 = vmul.f32 %v4451_v22, %v5228_v7 }
 0x395   : > { %4355 = vmatprep.subr.msk.bf16.mxu0 %vm984_vm1, %v1474_v13  ;;  %v1521_v48 = vsel %vm984_vm1, %v1474_v13, 0  ;;  %v4455_v6 = vpop.eup %4454  ;;  %v1298_v58 = vmul.f32 %v4453_v9, %v5222_v42 }
 0x396   : > { %v1444_v44 = vpop.permute.xlu0 %1443  ;;  %4139 = vmatpush3.bf16.xpose.msra.mxu0 %v1521_v48  ;;  %v1300_v31 = vmul.f32 %v4455_v6, %v5216_v19 }
 0x397   : > { %v4457_v29 = vpop.eup %4456 }
 0x398   : > { %v1438_v18 = vpop.permute.xlu1 %1437  ;;  %v1299_v41 = vmul.f32 %v4457_v29, %v5231_v1  ;;  %v4459_v27 = vpop.eup %4458  ;;  %v1311_v8 = vpack.c.bf16 %v1301_v40, %v1300_v31 }
 0x399   : > { %v1302_v34 = vmul.f32 %v4459_v27, %v5218_v33 }
 0x39a   : > { %v1448_v30 = vpop.permute.xlu0 %1447  ;;  %v1310_v28 = vpack.c.bf16 %v1299_v41, %v1298_v58 }
 0x39b   : > { %v4461_v15 = vpop.eup %4460 }
 0x39c   : > { %v4463_v35 = vpop.eup %4462  ;;  %4116 = vmatprep.mubr.bf16.mxu0 %v1310_v28  ;;  %v1442_v12 = vpop.permute.xlu1 %1441  ;;  %v1303_v51 = vmul.f32 %v4461_v15, %v5234_v2 }
 0x39d   : > { %4117 = vmatmul.mubr.bf16.gmra.mrb[40].mxu0 %v1311_v8  ;;  %v4465_v7 = vpop.eup %4464  ;;  %v1305_v1 = vmul.f32 %v4463_v35, %v5225_v62 }
 0x39e   : > { %v1813_v52 = vpop.permute.xlu0 %1812  ;;  %v1312_v42 = vpack.c.bf16 %v1303_v51, %v1302_v34  ;;  %v1304_v45 = vmul.f32 %v4465_v7, %v5211_v0 }
 0x39f   : > { %4156 = vmatprep.subr.bf16.mxu1 %v1813_v52 }
 0x3a0   : > { %4120 = vmatprep.mubr.bf16.mxu0 %v1312_v42  ;;  %v1446_v19 = vpop.permute.xlu1 %1445  ;;  %4157 = vmatpush3.bf16.msra.mxu1 %v1813_v52  ;;  %v1313_v4 = vpack.c.bf16 %v1305_v1, %v1304_v45 }
 0x3a2   : > { %v1817_v2 = vpop.permute.xlu0 %1816 }
 0x3a4   : > { %v1450_v59 = vpop.permute.xlu1 %1449 }
 0x3a5   : > { %4121 = vmatmul.mubr.bf16.gmra.mrb[44].mxu0 %v1313_v4 }
 0x3a6   : > { %4140 = vmatprep.mubr.msk.bf16.mxu0 %vm984_vm1, %v1436_v57  ;;  %v1821_v62 = vpop.permute.xlu0 %1820 }
 0x3a8   : > { %v1815_v33 = vpop.permute.xlu1 %1814 }
 0x3a9   : > { %4158 = vmatprep.subr.bf16.mxu1 %v1815_v33 }
 0x3aa   : > { %4159 = vmatpush3.bf16.msra.mxu1 %v1815_v33  ;;  %v1825_v57 = vpop.permute.xlu0 %1824 }
 0x3ab   : > { %4160 = vmatprep.subr.bf16.mxu1 %v1817_v2 }
 0x3ac   : > { %v1819_v25 = vpop.permute.xlu1 %1818 }
 0x3ad   : > { %4141 = vmatmul.mubr.msk.bf16.vlgmr.msra.gmra.mrb[48].mxu0 %vm984_vm1, %v1438_v18 }
 0x3ae   : > { %4144 = vmatprep.mubr.msk.bf16.mxu0 %vm984_vm1, %v1440_v32  ;;  %4161 = vmatpush3.bf16.msra.mxu1 %v1817_v2  ;;  %v5320_v32 = vpop.permute.xlu0 %2030 }
 0x3af   : > { %4162 = vmatprep.subr.bf16.mxu1 %v1819_v25 }
 0x3b0   : > { %v1823_v0 = vpop.permute.xlu1 %1822 }
 0x3b2   : > { %4163 = vmatpush3.bf16.msra.mxu1 %v1819_v25 }
 0x3b3   : > { %4164 = vmatprep.subr.bf16.mxu1 %v1821_v62 }
 0x3b4   : > { %v1827_v3 = vpop.permute.xlu1 %1826 }
 0x3b5   : > { %4145 = vmatmul.mubr.msk.bf16.gmra.mrb[52].mxu0 %vm984_vm1, %v1442_v12 }
 0x3b6   : > { %4148 = vmatprep.mubr.msk.bf16.mxu0 %vm984_vm1, %v1444_v44  ;;  %4165 = vmatpush3.bf16.msra.mxu1 %v1821_v62 }
 0x3b7   : > { %4166 = vmatprep.subr.bf16.mxu1 %v1823_v0 }
 0x3ba   : > { %4167 = vmatpush3.bf16.msra.mxu1 %v1823_v0 }
 0x3bb   : > { %4168 = vmatprep.subr.bf16.mxu1 %v1825_v57 }
 0x3bd   : > { %4149 = vmatmul.mubr.msk.bf16.gmra.mrb[56].mxu0 %vm984_vm1, %v1446_v19 }
 0x3be   : > { %4152 = vmatprep.mubr.msk.bf16.mxu0 %vm984_vm1, %v1448_v30  ;;  %4169 = vmatpush3.bf16.msra.mxu1 %v1825_v57 }
 0x3bf   : > { %4170 = vmatprep.subr.bf16.mxu1 %v1827_v3 }
 0x3c2   : > { %4171 = vmatpush3.bf16.msra.mxu1 %v1827_v3 }
 0x3c3   : > { %4356 = vmatprep.subr.msk.bf16.mxu1 %vm984_vm1, %v5320_v32 }
 0x3c5   : > { %4153 = vmatmul.mubr.msk.bf16.gmra.mrb[60].mxu0 %vm984_vm1, %v1450_v59 }
 0x427   : > { %v4110_v22 = vpop.f32.mrb[32].mxu0 }
 0x428   : > { %1413 = vst.msk [vmem:[#allocation2 + $0x10] sm:$0xff] %vm984_vm1, %v4110_v22  ;;  %v1348_v13 = vpop.f32.mrb[33].mxu0 }
 0x429   : > { %1411 = vst.msk [vmem:[#allocation2] sm:$0xff] %vm984_vm1, %v1348_v13  ;;  %v4111_v9 = vpop.f32.mrb[34].mxu0 }
 0x42a   : > { %1414 = vst.msk [vmem:[#allocation2 + $0x18] sm:$0xff] %vm984_vm1, %v4111_v9  ;;  %v1351_v48 = vpop.f32.mrb[35].mxu0 }
 0x42b   : > { %1412 = vst.msk [vmem:[#allocation2 + $0x8] sm:$0xff] %vm984_vm1, %v1351_v48 }
 0x460   : > { %v4114_v6 = vpop.f32.mrb[36].mxu0 }
 0x461   : > { %1417 = vst.msk [vmem:[#allocation2 + $0x30] sm:$0xff] %vm984_vm1, %v4114_v6  ;;  %v1364_v44 = vpop.f32.mrb[37].mxu0 }
 0x462   : > { %1415 = vst.msk [vmem:[#allocation2 + $0x20] sm:$0xff] %vm984_vm1, %v1364_v44  ;;  %v4115_v29 = vpop.f32.mrb[38].mxu0 }
 0x463   : > { %1418 = vst.msk [vmem:[#allocation2 + $0x38] sm:$0xff] %vm984_vm1, %v4115_v29  ;;  %v1367_v40 = vpop.f32.mrb[39].mxu0 }
 0x464   : > { %1416 = vst.msk [vmem:[#allocation2 + $0x28] sm:$0xff] %vm984_vm1, %v1367_v40 }
 0x470   : > { %v4118_v18 = vpop.f32.mrb[40].mxu0 }
 0x471   : > { %1421 = vst.msk [vmem:[#allocation2 + $0x50] sm:$0xff] %vm984_vm1, %v4118_v18  ;;  %v1380_v58 = vpop.f32.mrb[41].mxu0 }
 0x472   : > { %1419 = vst.msk [vmem:[#allocation2 + $0x40] sm:$0xff] %vm984_vm1, %v1380_v58  ;;  %v4119_v41 = vpop.f32.mrb[42].mxu0  ;;  %v6481_v58 = vld [vmem:[#allocation11_spill] sm:$0xff] }
 0x473   : > { %1422 = vst.msk [vmem:[#allocation2 + $0x58] sm:$0xff] %vm984_vm1, %v4119_v41  ;;  %v1383_v27 = vpop.f32.mrb[43].mxu0 }
 0x474   : > { %1420 = vst.msk [vmem:[#allocation2 + $0x48] sm:$0xff] %vm984_vm1, %v1383_v27 }
 0x478   : > { %v4122_v31 = vpop.f32.mrb[44].mxu0 }
 0x479   : > { %1425 = vst.msk [vmem:[#allocation2 + $0x70] sm:$0xff] %vm984_vm1, %v4122_v31  ;;  %v1396_v30 = vpop.f32.mrb[45].mxu0  ;;  %v6482_v31 = vld [vmem:[#allocation13_spill] sm:$0xff] }
 0x47a   : > { %1423 = vst.msk [vmem:[#allocation2 + $0x60] sm:$0xff] %vm984_vm1, %v1396_v30  ;;  %v4123_v28 = vpop.f32.mrb[46].mxu0 }
 0x47b   : > { %1426 = vst.msk [vmem:[#allocation2 + $0x78] sm:$0xff] %vm984_vm1, %v4123_v28  ;;  %v1399_v15 = vpop.f32.mrb[47].mxu0 }
 0x47c   : > { %1424 = vst.msk [vmem:[#allocation2 + $0x68] sm:$0xff] %vm984_vm1, %v1399_v15  ;;  %v6483_v15 = vld [vmem:[#allocation12_spill] sm:$0xff] }
 0x480   : > { %v4142_v8 = vpop.f32.mrb[48].mxu0 }
 0x481   : > { %v1622_v35 = vmul.f32 0.25, %v4142_v8  ;;  %v1557_v12 = vpop.f32.mrb[49].mxu0 }
 0x482   : > { %v4143_v34 = vpop.f32.mrb[50].mxu0  ;;  %v1620_v51 = vmul.f32 0.25, %v1557_v12 }
 0x483   : > { %v1560_v7 = vpop.f32.mrb[51].mxu0  ;;  %v5342_v52 = vadd.f32 %v1622_v35, %v5057_v16  ;;  %v1623_v19 = vmul.f32 0.25, %v4143_v34  ;;  %v6484_v34 = vld [vmem:[#allocation15_spill] sm:$0xff] }
 0x484   : > { %v1621_v42 = vmul.f32 0.25, %v1560_v7  ;;  %v5349_v45 = vadd.f32 %v1620_v51, %v5060_v26 }
 0x485   : > { %1656 = vmax.xlane.f32.xlu0 %v5342_v52  ;;  %v1639_v0 = vadd.f32 %v1623_v19, %v5065_v46 }
 0x486   : > { %v5346_v1 = vadd.f32 %v1621_v42, %v5070_v54 }
 0x488   : > { %1654 = vmax.xlane.f32.xlu1 %v5346_v1  ;;  %v4146_v4 = vpop.f32.mrb[52].mxu0 }
 0x489   : > { %1652 = vmax.xlane.f32.xlu0 %v5349_v45  ;;  %v1573_v59 = vpop.f32.mrb[53].mxu0  ;;  %v1626_v2 = vmul.f32 0.25, %v4146_v4  ;;  %v6485_v4 = vld [vmem:[#allocation14_spill] sm:$0xff] }
 0x48a   : > { %v4147_v33 = vpop.f32.mrb[54].mxu0  ;;  %v1624_v22 = vmul.f32 0.25, %v1573_v59 }
 0x48b   : > { %v1627_v25 = vmul.f32 0.25, %v4147_v33  ;;  %v1576_v62 = vpop.f32.mrb[55].mxu0  ;;  %v5359_v13 = vadd.f32 %v1626_v2, %v5077_v5  ;;  %v6486_v2 = vld [vmem:[#allocation16_spill] sm:$0xff] }
 0x48c   : > { %v1625_v57 = vmul.f32 0.25, %v1576_v62  ;;  %v5367_v41 = vadd.f32 %v1624_v22, %v6481_v58  ;;  %v6487_v62 = vld [vmem:[#allocation17_spill] sm:$0xff]  ;;  %v6488_v22 = vld [vmem:[#allocation3_spill] sm:$0xff] }
 0x48d   : > { %1658 = vmax.xlane.f32.xlu0 %v1639_v0  ;;  %v5355_v3 = vadd.f32 %v1627_v25, %v5086_v14 }
 0x48e   : > { %v5363_v6 = vadd.f32 %v1625_v57, %v5091_v21 }
 0x48f   : > { %1666 = vmax.xlane.f32.xlu1 %v5355_v3 }
 0x490   : > { %v4150_v9 = vpop.f32.mrb[56].mxu0 }
 0x491   : > { %1664 = vmax.xlane.f32.xlu0 %v5359_v13  ;;  %v1589_v48 = vpop.f32.mrb[57].mxu0  ;;  %v1630_v29 = vmul.f32 0.25, %v4150_v9  ;;  %v6489_v9 = vld [vmem:[#allocation4_spill] sm:$0xff] }
 0x492   : > { %v4151_v44 = vpop.f32.mrb[58].mxu0  ;;  %v1628_v28 = vmul.f32 0.25, %v1589_v48 }
 0x493   : > { %v1631_v40 = vmul.f32 0.25, %v4151_v44  ;;  %1662 = vmax.xlane.f32.xlu1 %v5363_v6  ;;  %v1592_v18 = vpop.f32.mrb[59].mxu0  ;;  %v5375_v8 = vadd.f32 %v1630_v29, %v6483_v15  ;;  %v6490_v29 = vld [vmem:[#allocation18_spill] sm:$0xff] }
 0x494   : > { %v1629_v27 = vmul.f32 0.25, %v1592_v18  ;;  %v5383_v59 = vadd.f32 %v1628_v28, %v6485_v4  ;;  %v6491_v18 = vld [vmem:[#allocation19_spill] sm:$0xff]  ;;  %v5406_v28 = vpop.permute.xlu1 %2032 }
 0x495   : > { %1660 = vmax.xlane.f32.xlu0 %v5367_v41  ;;  %v5371_v30 = vadd.f32 %v1631_v40, %v6482_v31 }
 0x496   : > { %v5379_v51 = vadd.f32 %v1629_v27, %v6484_v34 }
 0x497   : > { %1674 = vmax.xlane.f32.xlu1 %v5371_v30 }
 0x498   : > { %v4154_v35 = vpop.f32.mrb[60].mxu0 }
 0x499   : > { %1672 = vmax.xlane.f32.xlu0 %v5375_v8  ;;  %v1605_v12 = vpop.f32.mrb[61].mxu0  ;;  %v1634_v42 = vmul.f32 0.25, %v4154_v35 }
 0x49a   : > { %v4155_v7 = vpop.f32.mrb[62].mxu0  ;;  %v1632_v33 = vmul.f32 0.25, %v1605_v12 }
 0x49b   : > { %1670 = vmax.xlane.f32.xlu1 %v5379_v51  ;;  %v1608_v19 = vpop.f32.mrb[63].mxu0  ;;  %v5387_v25 = vadd.f32 %v1634_v42, %v6486_v2  ;;  %v1635_v48 = vmul.f32 0.25, %v4155_v7 }
 0x49c   : > { %v5391_v57 = vadd.f32 %v1632_v33, %v6487_v62  ;;  %v1633_v44 = vmul.f32 0.25, %v1608_v19 }
 0x49d   : > { %1668 = vmax.xlane.f32.xlu0 %v5383_v59  ;;  %v5399_v40 = vadd.f32 %v1635_v48, %v6490_v29 }
 0x49e   : > { %v5403_v27 = vadd.f32 %v1633_v44, %v6491_v18 }
 0x4a1   : > { %1680 = vmax.xlane.f32.xlu0 %v5387_v25 }
 0x4a5   : > { %1676 = vmax.xlane.f32.xlu0 %v5391_v57 }
 0x4ac   : > { %2036 = vrot.lane.b32.xlu1 %v6488_v22, %s4715_s15 }
 0x4bb   : > { %2034 = vrot.lane.b32.xlu0 %v6489_v9, %s4715_s15 }
 0x4d0   : > { %1682 = vmax.xlane.f32.xlu1 %v5399_v40 }
 0x4d4   : > { %1678 = vmax.xlane.f32.xlu1 %v5403_v27 }
 0x512   : > { %v1657_v35 = vpop.xlane.xlu0 %1656 }
 0x513   : > { %v1686_v12 = vsub.f32 %v5342_v52, %v1657_v35 }
 0x515   : > { %v1704_v42 = vmul.f32 1.442695, %v1686_v12  ;;  %v1655_v33 = vpop.xlane.xlu1 %1654 }
 0x516   : > { %v1685_v7 = vsub.f32 %v5346_v1, %v1655_v33  ;;  %v1653_v19 = vpop.xlane.xlu0 %1652 }
 0x517   : > { %4466 = vpow2.f32 %v1704_v42  ;;  %v1684_v48 = vsub.f32 %v5349_v45, %v1653_v19 }
 0x518   : > { %v1702_v29 = vmul.f32 1.442695, %v1685_v7 }
 0x519   : > { %v1700_v9 = vmul.f32 1.442695, %v1684_v48 }
 0x51a   : > { %4468 = vpow2.f32 %v1702_v29  ;;  %v1659_v44 = vpop.xlane.xlu0 %1658 }
 0x51b   : > { %4470 = vpow2.f32 %v1700_v9  ;;  %v1687_v18 = vsub.f32 %v1639_v0, %v1659_v44  ;;  %v6492_v0 = vld [vmem:[#allocation5_spill] sm:$0xff] }
 0x51c   : > { %v1667_v29 = vpop.xlane.xlu1 %1666 }
 0x51d   : > { %v1706_v22 = vmul.f32 1.442695, %v1687_v18  ;;  %v1691_v4 = vsub.f32 %v5355_v3, %v1667_v29 }
 0x51e   : > { %v1665_v45 = vpop.xlane.xlu0 %1664 }
 0x51f   : > { %4472 = vpow2.f32 %v1706_v22  ;;  %v6493_v22 = vld [vmem:[#allocation6_spill] sm:$0xff]  ;;  %v1690_v12 = vsub.f32 %v5359_v13, %v1665_v45  ;;  %v1714_v15 = vmul.f32 1.442695, %v1691_v4 }
 0x520   : > { %v1663_v42 = vpop.xlane.xlu1 %1662 }
 0x521   : > { %v5411_v62 = vpop.eup %4466  ;;  %v1712_v7 = vmul.f32 1.442695, %v1690_v12  ;;  %v1689_v48 = vsub.f32 %v5363_v6, %v1663_v42 }
 0x522   : > { %1736 = vadd.xlane.f32.xlu1 %v5411_v62  ;;  %v1661_v9 = vpop.xlane.xlu0 %1660 }
 0x523   : > { %v1688_v19 = vsub.f32 %v5367_v41, %v1661_v9  ;;  %4474 = vpow2.f32 %v1712_v7  ;;  %v1710_v34 = vmul.f32 1.442695, %v1689_v48 }
 0x524   : > { %v5414_v52 = vpop.eup %4468  ;;  %v1675_v44 = vpop.xlane.xlu1 %1674 }
 0x525   : > { %v5416_v35 = vpop.eup %4470  ;;  %1734 = vadd.xlane.f32.xlu0 %v5414_v52  ;;  %v1695_v3 = vsub.f32 %v5371_v30, %v1675_v44 }
 0x526   : > { %1732 = vadd.xlane.f32.xlu1 %v5416_v35  ;;  %v1673_v18 = vpop.xlane.xlu0 %1672 }
 0x527   : > { %v1722_v4 = vmul.f32 1.442695, %v1695_v3 }
 0x528   : > { %v1671_v31 = vpop.xlane.xlu1 %1670 }
 0x529   : > { %v5420_v1 = vpop.eup %4472 }
 0x52a   : > { %1738 = vadd.xlane.f32.xlu1 %v5420_v1  ;;  %v1669_v33 = vpop.xlane.xlu0 %1668 }
 0x52b   : > { %v1692_v41 = vsub.f32 %v5383_v59, %v1669_v33  ;;  %v1693_v59 = vsub.f32 %v5379_v51, %v1671_v31 }
 0x52d   : > { %v1716_v29 = vmul.f32 1.442695, %v1692_v41  ;;  %v5436_v42 = vpop.eup %4474 }
 0x52e   : > { %v1681_v2 = vpop.xlane.xlu0 %1680 }
 0x52f   : > { %v1698_v13 = vsub.f32 %v5387_v25, %v1681_v2 }
 0x531   : > { %v1728_v6 = vmul.f32 1.442695, %v1698_v13 }
 0x532   : > { %v1677_v9 = vpop.xlane.xlu0 %1676 }
 0x533   : > { %v1696_v12 = vsub.f32 %v5391_v57, %v1677_v9  ;;  %v1718_v57 = vmul.f32 1.442695, %v1693_v59 }
 0x53b   : > { %2040 = vrot.lane.b32.xlu1 %v6492_v0, %s4715_s15  ;;  %2038 = vrot.lane.b32.xlu0 %v6493_v22, %s4715_s15  ;;  %v1708_v0 = vmul.f32 1.442695, %v1688_v19  ;;  %v1694_v22 = vsub.f32 %v5375_v8, %v1673_v18  ;;  %v5438_v8 = vpop.permute.xlu1 %2036 }
 0x53d   : > { %4476 = vpow2.f32 %v1708_v0  ;;  %v1720_v45 = vmul.f32 1.442695, %v1694_v22 }
 0x53e   : > { %4478 = vpow2.f32 %v1710_v34  ;;  %v1724_v34 = vmul.f32 1.442695, %v1696_v12 }
 0x53f   : > { %4480 = vpow2.f32 %v1714_v15 }
 0x540   : > { %4482 = vpow2.f32 %v1720_v45  ;;  %v2035_v45 = vpop.permute.xlu0 %2034 }
 0x541   : > { %4484 = vpow2.f32 %v1728_v6 }
 0x542   : > { %4486 = vpow2.f32 %v1716_v29 }
 0x543   : > { %4488 = vpow2.f32 %v1724_v34 }
 0x544   : > { %4490 = vpow2.f32 %v1722_v4 }
 0x547   : > { %v5442_v15 = vpop.eup %4476 }
 0x548   : > { %v5444_v25 = vpop.eup %4478 }
 0x549   : > { %v5449_v22 = vpop.eup %4480 }
 0x54a   : > { %v5451_v31 = vpop.eup %4482 }
 0x54b   : > { %v5456_v33 = vpop.eup %4484 }
 0x54c   : > { %v5458_v7 = vpop.eup %4486 }
 0x54d   : > { %v5462_v19 = vpop.eup %4488 }
 0x54e   : > { %v5464_v48 = vpop.eup %4490 }
 0x55a   : > { %1744 = vadd.xlane.f32.xlu0 %v5436_v42 }
 0x55d   : > { %v1683_v2 = vpop.xlane.xlu1 %1682 }
 0x55e   : > { %v1699_v30 = vsub.f32 %v5399_v40, %v1683_v2  ;;  %1740 = vadd.xlane.f32.xlu0 %v5442_v15 }
 0x55f   : > { %1742 = vadd.xlane.f32.xlu1 %v5444_v25 }
 0x560   : > { %v1730_v0 = vmul.f32 1.442695, %v1699_v30 }
 0x561   : > { %v1679_v18 = vpop.xlane.xlu1 %1678 }
 0x562   : > { %4492 = vpow2.f32 %v1730_v0  ;;  %v1697_v51 = vsub.f32 %v5403_v27, %v1679_v18  ;;  %1746 = vadd.xlane.f32.xlu0 %v5449_v22  ;;  %v2071_v0 = vsel %vm984_vm1, %v5320_v32, 0 }
 0x563   : > { %1752 = vadd.xlane.f32.xlu1 %v5451_v31  ;;  %4494 = vpow2.f32 %v1718_v57 }
 0x564   : > { %v1726_v40 = vmul.f32 1.442695, %v1697_v51 }
 0x566   : > { %1760 = vadd.xlane.f32.xlu0 %v5456_v33  ;;  %4496 = vpow2.f32 %v1726_v40 }
 0x567   : > { %1748 = vadd.xlane.f32.xlu1 %v5458_v7 }
 0x56a   : > { %1756 = vadd.xlane.f32.xlu0 %v5462_v19 }
 0x56b   : > { %1754 = vadd.xlane.f32.xlu1 %v5464_v48 }
 0x56c   : > { %v5468_v27 = vpop.eup %4492 }
 0x56d   : > { %v5470_v44 = vpop.eup %4494 }
 0x56e   : > { %1762 = vadd.xlane.f32.xlu0 %v5468_v27 }
 0x56f   : > { %1750 = vadd.xlane.f32.xlu1 %v5470_v44 }
 0x570   : > { %v5474_v13 = vpop.eup %4496 }
 0x573   : > { %1758 = vadd.xlane.f32.xlu1 %v5474_v13 }
 0x584   : > { %2042 = vrot.lane.b32.xlu0 %v4969_v53, %s4715_s15  ;;  %2044 = vrot.lane.b32.xlu1 %v4966_v49, %s4715_s15 }
 0x588   : > { %2014 = vrot.lane.b32.xlu0 %v4920_v63, %s4715_s15  ;;  %2016 = vrot.lane.b32.xlu1 %v4915_v60, %s4715_s15 }
 0x58c   : > { %2018 = vrot.lane.b32.xlu0 %v4942_v20, %s4715_s15  ;;  %2020 = vrot.lane.b32.xlu1 %v4937_v17, %s4715_s15 }
 0x590   : > { %2022 = vrot.lane.b32.xlu0 %v4962_v43, %s4715_s15  ;;  %2024 = vrot.lane.b32.xlu1 %v4957_v39, %s4715_s15 }
 0x594   : > { %2026 = vrot.lane.b32.xlu0 %v4980_v61, %s4715_s15  ;;  %2028 = vrot.lane.b32.xlu1 %v4976_v37, %s4715_s15 }
 0x598   : > { %2375 = vrot.lane.b32.xlu0 %v4991_v11, %s4715_s15  ;;  %2377 = vrot.lane.b32.xlu1 %v4987_v10, %s4715_s15 }
 0x59c   : > { %2379 = vrot.lane.b32.xlu0 %v5003_v24, %s4715_s15  ;;  %2381 = vrot.lane.b32.xlu1 %v4998_v23, %s4715_s15 }
 0x5a0   : > { %2383 = vrot.lane.b32.xlu0 %v5015_v38, %s4715_s15  ;;  %2385 = vrot.lane.b32.xlu1 %v5010_v36, %s4715_s15 }
 0x5a4   : > { %2387 = vrot.lane.b32.xlu0 %v5025_v56, %s4715_s15  ;;  %2389 = vrot.lane.b32.xlu1 %v5022_v55, %s4715_s15 }
 0x5a8   : > { %2593 = vrot.lane.b32.xlu0 %v4901_v50, %s4716_s17  ;;  %2595 = vrot.lane.b32.xlu1 %v4898_v47, %s4716_s17 }
 0x5af   : > { %v1737_v41 = vpop.xlane.xlu1 %1736 }
 0x5b2   : > { %v1735_v9 = vpop.xlane.xlu0 %1734 }
 0x5b3   : > { %4498 = vrcp.f32 %v1735_v9  ;;  %v1733_v6 = vpop.xlane.xlu1 %1732 }
 0x5b4   : > { %4500 = vrcp.f32 %v1733_v6 }
 0x5b5   : > { %4502 = vrcp.f32 %v1737_v41 }
 0x5b6   : > { %v2039_v32 = vpop.permute.xlu0 %2038 }
 0x5b7   : > { %v1739_v12 = vpop.xlane.xlu1 %1738  ;;  %v2083_v18 = vsel %vm984_vm1, %v2039_v32, 0 }
 0x5b8   : > { %4504 = vrcp.f32 %v1739_v12 }
 0x5bd   : > { %v4499_v3 = vpop.eup %4498 }
 0x5be   : > { %v4501_v29 = vpop.eup %4500  ;;  %v1781_v34 = vmul.f32 %v4499_v3, %v5414_v52  ;;  %v2074_v52 = vsel %vm984_vm1, %v5406_v28, 0 }
 0x5bf   : > { %v1780_v4 = vmul.f32 %v4501_v29, %v5416_v35  ;;  %v4503_v59 = vpop.eup %4502  ;;  %v2080_v35 = vsel %vm984_vm1, %v5438_v8, 0 }
 0x5c0   : > { %v1782_v47 = vmul.f32 %v4503_v59, %v5411_v62  ;;  %v2077_v62 = vsel %vm984_vm1, %v2035_v45, 0 }
 0x5c1   : > { %v1796_v50 = vpack.c.bf16 %v1781_v34, %v1780_v4 }
 0x5c2   : > { %v4505_v2 = vpop.eup %4504 }
 0x5c3   : > { %v1783_v30 = vmul.f32 %v4505_v2, %v5420_v1  ;;  %4172 = vmatprep.mubr.bf16.mxu1 %v1796_v50 }
 0x5c5   : > { %v1797_v57 = vpack.c.bf16 %v1783_v30, %v1782_v47 }
 0x5c7   : > { %4173 = vmatmul.mubr.bf16.vlgmr.msra.gmra.mrb[32].mxu1 %v1797_v57 }
 0x5c8   : > { %4189 = vmatpush3.bf16.xpose.msra.mxu1 %v2071_v0 }
 0x5c9   : > { %4357 = vmatprep.subr.msk.bf16.mxu1 %vm984_vm1, %v5406_v28  ;;  %v2041_v28 = vpop.permute.xlu1 %2040 }
 0x5ca   : > { %v2086_v41 = vsel %vm984_vm1, %v2041_v28, 0 }
 0x5d0   : > { %4191 = vmatpush3.bf16.xpose.msra.mxu1 %v2074_v52 }
 0x5d1   : > { %4358 = vmatprep.subr.msk.bf16.mxu1 %vm984_vm1, %v2035_v45 }
 0x5d8   : > { %4193 = vmatpush3.bf16.xpose.msra.mxu1 %v2077_v62 }
 0x5d9   : > { %4359 = vmatprep.subr.msk.bf16.mxu1 %vm984_vm1, %v5438_v8 }
 0x5e0   : > { %4195 = vmatpush3.bf16.xpose.msra.mxu1 %v2080_v35 }
 0x5e1   : > { %4360 = vmatprep.subr.msk.bf16.mxu1 %vm984_vm1, %v2039_v32 }
 0x5e7   : > { %v1745_v1 = vpop.xlane.xlu0 %1744 }
 0x5e8   : > { %4197 = vmatpush3.bf16.xpose.msra.mxu1 %v2083_v18 }
 0x5e9   : > { %4361 = vmatprep.subr.msk.bf16.mxu1 %vm984_vm1, %v2041_v28 }
 0x5eb   : > { %v1741_v51 = vpop.xlane.xlu0 %1740 }
 0x5ec   : > { %4506 = vrcp.f32 %v1741_v51  ;;  %v1743_v40 = vpop.xlane.xlu1 %1742 }
 0x5ed   : > { %4508 = vrcp.f32 %v1743_v40 }
 0x5ee   : > { %4510 = vrcp.f32 %v1745_v1 }
 0x5ef   : > { %v1747_v45 = vpop.xlane.xlu0 %1746 }
 0x5f0   : > { %4512 = vrcp.f32 %v1747_v45  ;;  %4199 = vmatpush3.bf16.xpose.msra.mxu1 %v2086_v41  ;;  %v1753_v8 = vpop.xlane.xlu1 %1752 }
 0x5f3   : > { %v1761_v9 = vpop.xlane.xlu0 %1760 }
 0x5f4   : > { %v1749_v6 = vpop.xlane.xlu1 %1748 }
 0x5f6   : > { %v4507_v12 = vpop.eup %4506 }
 0x5f7   : > { %v4509_v3 = vpop.eup %4508  ;;  %v1757_v29 = vpop.xlane.xlu0 %1756  ;;  %v1784_v34 = vmul.f32 %v4507_v12, %v5442_v15 }
 0x5f8   : > { %v4511_v4 = vpop.eup %4510  ;;  %v1755_v59 = vpop.xlane.xlu1 %1754  ;;  %v1785_v50 = vmul.f32 %v4509_v3, %v5444_v25 }
 0x5f9   : > { %4514 = vrcp.f32 %v1755_v59  ;;  %v1786_v57 = vmul.f32 %v4511_v4, %v5436_v42 }
 0x5fa   : > { %v4513_v2 = vpop.eup %4512  ;;  %v1798_v47 = vpack.c.bf16 %v1785_v50, %v1784_v34  ;;  %4516 = vrcp.f32 %v1749_v6 }
 0x5fb   : > { %v1763_v30 = vpop.xlane.xlu0 %1762  ;;  %v1787_v0 = vmul.f32 %v4513_v2, %v5449_v22  ;;  %4518 = vrcp.f32 %v1753_v8 }
 0x5fc   : > { %4176 = vmatprep.mubr.bf16.mxu1 %v1798_v47  ;;  %v1751_v52 = vpop.xlane.xlu1 %1750 }
 0x5fd   : > { %4520 = vrcp.f32 %v1751_v52  ;;  %v1799_v62 = vpack.c.bf16 %v1787_v0, %v1786_v57 }
 0x5fe   : > { %4522 = vrcp.f32 %v1757_v29 }
 0x5ff   : > { %v2043_v15 = vpop.permute.xlu0 %2042  ;;  %4177 = vmatmul.mubr.bf16.gmra.mrb[36].mxu1 %v1799_v62 }
 0x600   : > { %4362 = vmatprep.subr.msk.bf16.mxu1 %vm984_vm1, %v2043_v15  ;;  %v1759_v25 = vpop.xlane.xlu1 %1758  ;;  %v2089_v35 = vsel %vm984_vm1, %v2043_v15, 0 }
 0x601   : > { %4524 = vrcp.f32 %v1759_v25  ;;  %4201 = vmatpush3.bf16.xpose.msra.mxu1 %v2089_v35 }
 0x602   : > { %4526 = vrcp.f32 %v1763_v30 }
 0x603   : > { %v2015_v32 = vpop.permute.xlu0 %2014  ;;  %v4515_v42 = vpop.eup %4514  ;;  %4528 = vrcp.f32 %v1761_v9 }
 0x604   : > { %v2045_v22 = vpop.permute.xlu1 %2044  ;;  %v4517_v1 = vpop.eup %4516  ;;  %v1791_v40 = vmul.f32 %v4515_v42, %v5464_v48 }
 0x605   : > { %4363 = vmatprep.subr.msk.bf16.mxu1 %vm984_vm1, %v2045_v22  ;;  %v4519_v18 = vpop.eup %4518  ;;  %v2092_v41 = vsel %vm984_vm1, %v2045_v22, 0  ;;  %v1788_v8 = vmul.f32 %v4517_v1, %v5458_v7 }
 0x606   : > { %v1790_v9 = vmul.f32 %v4519_v18, %v5451_v31 }
 0x607   : > { %v4521_v28 = vpop.eup %4520  ;;  %v2019_v51 = vpop.permute.xlu0 %2018 }
 0x608   : > { %v2017_v45 = vpop.permute.xlu1 %2016  ;;  %v1789_v6 = vmul.f32 %v4521_v28, %v5470_v44  ;;  %v4523_v12 = vpop.eup %4522  ;;  %v1801_v4 = vpack.c.bf16 %v1791_v40, %v1790_v9 }
 0x609   : > { %4203 = vmatpush3.bf16.xpose.msra.mxu1 %v2092_v41  ;;  %v1792_v48 = vmul.f32 %v4523_v12, %v5462_v19 }
 0x60a   : > { %v1800_v3 = vpack.c.bf16 %v1789_v6, %v1788_v8 }
 0x60b   : > { %v4525_v29 = vpop.eup %4524  ;;  %v2023_v34 = vpop.permute.xlu0 %2022 }
 0x60c   : > { %v4527_v59 = vpop.eup %4526  ;;  %4180 = vmatprep.mubr.bf16.mxu1 %v1800_v3  ;;  %v2021_v50 = vpop.permute.xlu1 %2020  ;;  %v1793_v2 = vmul.f32 %v4525_v29, %v5474_v13 }
 0x60d   : > { %4181 = vmatmul.mubr.bf16.gmra.mrb[40].mxu1 %v1801_v4  ;;  %v4529_v47 = vpop.eup %4528  ;;  %v1795_v44 = vmul.f32 %v4527_v59, %v5468_v27 }
 0x60e   : > { %v1802_v7 = vpack.c.bf16 %v1793_v2, %v1792_v48  ;;  %v1794_v31 = vmul.f32 %v4529_v47, %v5456_v33 }
 0x60f   : > { %v2027_v30 = vpop.permute.xlu0 %2026 }
 0x610   : > { %4184 = vmatprep.mubr.bf16.mxu1 %v1802_v7  ;;  %v2025_v57 = vpop.permute.xlu1 %2024  ;;  %v1803_v52 = vpack.c.bf16 %v1795_v44, %v1794_v31 }
 0x613   : > { %v2376_v0 = vpop.permute.xlu0 %2375 }
 0x614   : > { %4220 = vmatprep.subr.bf16.mxu0 %v2376_v0  ;;  %v2029_v62 = vpop.permute.xlu1 %2028 }
 0x615   : > { %4185 = vmatmul.mubr.bf16.gmra.mrb[44].mxu1 %v1803_v52  ;;  %4221 = vmatpush3.bf16.msra.mxu0 %v2376_v0 }
 0x616   : > { %4204 = vmatprep.mubr.msk.bf16.mxu1 %vm984_vm1, %v2015_v32 }
 0x617   : > { %v2380_v13 = vpop.permute.xlu0 %2379 }
 0x618   : > { %v2378_v19 = vpop.permute.xlu1 %2377 }
 0x619   : > { %4222 = vmatprep.subr.bf16.mxu0 %v2378_v19 }
 0x61a   : > { %4223 = vmatpush3.bf16.msra.mxu0 %v2378_v19 }
 0x61b   : > { %4224 = vmatprep.subr.bf16.mxu0 %v2380_v13  ;;  %v2384_v33 = vpop.permute.xlu0 %2383 }
 0x61c   : > { %v2382_v27 = vpop.permute.xlu1 %2381 }
 0x61d   : > { %4205 = vmatmul.mubr.msk.bf16.vlgmr.msra.gmra.mrb[48].mxu1 %vm984_vm1, %v2017_v45 }
 0x61e   : > { %4208 = vmatprep.mubr.msk.bf16.mxu1 %vm984_vm1, %v2019_v51  ;;  %4225 = vmatpush3.bf16.msra.mxu0 %v2380_v13 }
 0x61f   : > { %4226 = vmatprep.subr.bf16.mxu0 %v2382_v27  ;;  %v2388_v25 = vpop.permute.xlu0 %2387 }
 0x620   : > { %v2386_v15 = vpop.permute.xlu1 %2385 }
 0x622   : > { %4227 = vmatpush3.bf16.msra.mxu0 %v2382_v27 }
 0x623   : > { %4228 = vmatprep.subr.bf16.mxu0 %v2384_v33  ;;  %v5560_v32 = vpop.permute.xlu0 %2593 }
 0x624   : > { %v2390_v35 = vpop.permute.xlu1 %2389 }
 0x625   : > { %4209 = vmatmul.mubr.msk.bf16.gmra.mrb[52].mxu1 %vm984_vm1, %v2021_v50 }
 0x626   : > { %4212 = vmatprep.mubr.msk.bf16.mxu1 %vm984_vm1, %v2023_v34  ;;  %4229 = vmatpush3.bf16.msra.mxu0 %v2384_v33 }
 0x627   : > { %4230 = vmatprep.subr.bf16.mxu0 %v2386_v15 }
 0x62a   : > { %4231 = vmatpush3.bf16.msra.mxu0 %v2386_v15 }
 0x62b   : > { %4232 = vmatprep.subr.bf16.mxu0 %v2388_v25 }
 0x62d   : > { %4213 = vmatmul.mubr.msk.bf16.gmra.mrb[56].mxu1 %vm984_vm1, %v2025_v57 }
 0x62e   : > { %4216 = vmatprep.mubr.msk.bf16.mxu1 %vm984_vm1, %v2027_v30  ;;  %4233 = vmatpush3.bf16.msra.mxu0 %v2388_v25 }
 0x62f   : > { %4234 = vmatprep.subr.bf16.mxu0 %v2390_v35 }
 0x632   : > { %4235 = vmatpush3.bf16.msra.mxu0 %v2390_v35 }
 0x633   : > { %4364 = vmatprep.subr.msk.bf16.mxu0 %vm984_vm1, %v5560_v32 }
 0x635   : > { %4217 = vmatmul.mubr.msk.bf16.gmra.mrb[60].mxu1 %vm984_vm1, %v2029_v62 }
 0x69a   : > { %v5565_v42 = vpop.f32.mrb[32].mxu1 }
 0x69b   : > { %6494 = vst [vmem:[#allocation11_spill] sm:$0xff] %v5565_v42  ;;  %v5567_v22 = vpop.f32.mrb[33].mxu1 }
 0x69c   : > { %6495 = vst [vmem:[#allocation20_spill] sm:$0xff] %v5567_v22  ;;  %v5569_v1 = vpop.f32.mrb[34].mxu1 }
 0x69d   : > { %6496 = vst [vmem:[#allocation21_spill] sm:$0xff] %v5569_v1  ;;  %v5571_v18 = vpop.f32.mrb[35].mxu1 }
 0x69e   : > { %6497 = vst [vmem:[#allocation22_spill] sm:$0xff] %v5571_v18 }
 0x6d2   : > { %v5573_v28 = vpop.f32.mrb[36].mxu1 }
 0x6d3   : > { %6498 = vst [vmem:[#allocation23_spill] sm:$0xff] %v5573_v28  ;;  %v5575_v51 = vpop.f32.mrb[37].mxu1 }
 0x6d4   : > { %6499 = vst [vmem:[#allocation24_spill] sm:$0xff] %v5575_v51  ;;  %v5577_v40 = vpop.f32.mrb[38].mxu1 }
 0x6d5   : > { %6500 = vst [vmem:[#allocation25_spill] sm:$0xff] %v5577_v40  ;;  %v5579_v45 = vpop.f32.mrb[39].mxu1 }
 0x6d6   : > { %6501 = vst [vmem:[#allocation26_spill] sm:$0xff] %v5579_v45 }
 0x6e0   : > { %v5581_v41 = vpop.f32.mrb[40].mxu1 }
 0x6e1   : > { %6502 = vst [vmem:[#allocation27_spill] sm:$0xff] %v5581_v41  ;;  %v5583_v8 = vpop.f32.mrb[41].mxu1  ;;  %v6513_v41 = vld [vmem:[#allocation14_spill] sm:$0xff] }
 0x6e2   : > { %6503 = vst [vmem:[#allocation28_spill] sm:$0xff] %v5583_v8  ;;  %v5585_v6 = vpop.f32.mrb[42].mxu1 }
 0x6e3   : > { %6504 = vst [vmem:[#allocation29_spill] sm:$0xff] %v5585_v6  ;;  %v5587_v12 = vpop.f32.mrb[43].mxu1 }
 0x6e4   : > { %6505 = vst [vmem:[#allocation30_spill] sm:$0xff] %v5587_v12 }
 0x6e8   : > { %v5589_v9 = vpop.f32.mrb[44].mxu1 }
 0x6e9   : > { %6506 = vst [vmem:[#allocation31_spill] sm:$0xff] %v5589_v9  ;;  %v5591_v3 = vpop.f32.mrb[45].mxu1 }
 0x6ea   : > { %6507 = vst [vmem:[#allocation32_spill] sm:$0xff] %v5591_v3  ;;  %v5593_v29 = vpop.f32.mrb[46].mxu1 }
 0x6eb   : > { %6508 = vst [vmem:[#allocation33_spill] sm:$0xff] %v5593_v29  ;;  %v5595_v34 = vpop.f32.mrb[47].mxu1  ;;  %v6518_v29 = vld [vmem:[#allocation18_spill] sm:$0xff] }
 0x6ec   : > { %6509 = vst [vmem:[#allocation34_spill] sm:$0xff] %v5595_v34 }
 0x6f0   : > { %v4206_v4 = vpop.f32.mrb[48].mxu1 }
 0x6f1   : > { %v2193_v59 = vmul.f32 0.25, %v4206_v4  ;;  %v2128_v50 = vpop.f32.mrb[49].mxu1 }
 0x6f2   : > { %v4207_v48 = vpop.f32.mrb[50].mxu1  ;;  %v2191_v47 = vmul.f32 0.25, %v2128_v50 }
 0x6f3   : > { %v5598_v2 = vadd.f32 %v2193_v59, %v5057_v16  ;;  %v2131_v7 = vpop.f32.mrb[51].mxu1  ;;  %v2194_v31 = vmul.f32 0.25, %v4207_v48 }
 0x6f4   : > { %v2192_v30 = vmul.f32 0.25, %v2131_v7  ;;  %v5605_v57 = vadd.f32 %v2191_v47, %v5060_v26 }
 0x6f5   : > { %2227 = vmax.xlane.f32.xlu0 %v5598_v2  ;;  %v5610_v19 = vadd.f32 %v2194_v31, %v5065_v46 }
 0x6f6   : > { %v5602_v44 = vadd.f32 %v2192_v30, %v5070_v54 }
 0x6f8   : > { %2225 = vmax.xlane.f32.xlu1 %v5602_v44  ;;  %v4210_v0 = vpop.f32.mrb[52].mxu1 }
 0x6f9   : > { %2223 = vmax.xlane.f32.xlu0 %v5605_v57  ;;  %v2144_v52 = vpop.f32.mrb[53].mxu1  ;;  %v2197_v13 = vmul.f32 0.25, %v4210_v0 }
 0x6fa   : > { %v4211_v62 = vpop.f32.mrb[54].mxu1  ;;  %v2195_v4 = vmul.f32 0.25, %v2144_v52 }
 0x6fb   : > { %v2198_v27 = vmul.f32 0.25, %v4211_v62  ;;  %v2147_v33 = vpop.f32.mrb[55].mxu1  ;;  %v5617_v35 = vadd.f32 %v2197_v13, %v5077_v5  ;;  %v6510_v62 = vld [vmem:[#allocation13_spill] sm:$0xff] }
 0x6fc   : > { %v2196_v25 = vmul.f32 0.25, %v2147_v33  ;;  %v5625_v7 = vadd.f32 %v2195_v4, %v6481_v58  ;;  %v6512_v4 = vld [vmem:[#allocation15_spill] sm:$0xff] }
 0x6fd   : > { %v5613_v15 = vadd.f32 %v2198_v27, %v5086_v14  ;;  %2229 = vmax.xlane.f32.xlu0 %v5610_v19  ;;  %v6511_v27 = vld [vmem:[#allocation12_spill] sm:$0xff] }
 0x6fe   : > { %v5621_v50 = vadd.f32 %v2196_v25, %v5091_v21 }
 0x6ff   : > { %2237 = vmax.xlane.f32.xlu1 %v5613_v15 }
 0x700   : > { %v4214_v59 = vpop.f32.mrb[56].mxu1 }
 0x701   : > { %2235 = vmax.xlane.f32.xlu0 %v5617_v35  ;;  %v2160_v48 = vpop.f32.mrb[57].mxu1  ;;  %v2201_v30 = vmul.f32 0.25, %v4214_v59 }
 0x702   : > { %v4215_v47 = vpop.f32.mrb[58].mxu1  ;;  %v2199_v25 = vmul.f32 0.25, %v2160_v48  ;;  %v6514_v48 = vld [vmem:[#allocation16_spill] sm:$0xff] }
 0x703   : > { %v2202_v31 = vmul.f32 0.25, %v4215_v47  ;;  %2233 = vmax.xlane.f32.xlu1 %v5621_v50  ;;  %v2163_v0 = vpop.f32.mrb[59].mxu1  ;;  %v5633_v33 = vadd.f32 %v2201_v30, %v6511_v27 }
 0x704   : > { %v2200_v13 = vmul.f32 0.25, %v2163_v0 }
 0x705   : > { %v5629_v52 = vadd.f32 %v2202_v31, %v6510_v62  ;;  %2231 = vmax.xlane.f32.xlu0 %v5625_v7  ;;  %v5641_v31 = vadd.f32 %v2199_v25, %v6513_v41  ;;  %v6516_v25 = vld [vmem:[#allocation3_spill] sm:$0xff] }
 0x706   : > { %v5637_v3 = vadd.f32 %v2200_v13, %v6512_v4  ;;  %v6515_v13 = vld [vmem:[#allocation17_spill] sm:$0xff] }
 0x707   : > { %2245 = vmax.xlane.f32.xlu1 %v5629_v52 }
 0x708   : > { %v4218_v9 = vpop.f32.mrb[60].mxu1 }
 0x709   : > { %2243 = vmax.xlane.f32.xlu0 %v5633_v33  ;;  %v2176_v59 = vpop.f32.mrb[61].mxu1  ;;  %v2205_v0 = vmul.f32 0.25, %v4218_v9  ;;  %v6517_v9 = vld [vmem:[#allocation4_spill] sm:$0xff] }
 0x70a   : > { %v4219_v47 = vpop.f32.mrb[62].mxu1  ;;  %v2203_v28 = vmul.f32 0.25, %v2176_v59  ;;  %v6519_v59 = vld [vmem:[#allocation19_spill] sm:$0xff] }
 0x70b   : > { %2241 = vmax.xlane.f32.xlu1 %v5637_v3  ;;  %v2179_v8 = vpop.f32.mrb[63].mxu1  ;;  %v5646_v30 = vadd.f32 %v2205_v0, %v6514_v48  ;;  %v2206_v22 = vmul.f32 0.25, %v4219_v47 }
 0x70c   : > { %v5650_v51 = vadd.f32 %v2203_v28, %v6515_v13  ;;  %v2204_v0 = vmul.f32 0.25, %v2179_v8  ;;  %v5665_v28 = vpop.permute.xlu1 %2595 }
 0x70d   : > { %2239 = vmax.xlane.f32.xlu0 %v5641_v31  ;;  %v5658_v34 = vadd.f32 %v2206_v22, %v6518_v29 }
 0x70e   : > { %v5662_v6 = vadd.f32 %v2204_v0, %v6519_v59 }
 0x711   : > { %2251 = vmax.xlane.f32.xlu0 %v5646_v30 }
 0x715   : > { %2247 = vmax.xlane.f32.xlu0 %v5650_v51 }
 0x71c   : > { %2599 = vrot.lane.b32.xlu1 %v6516_v25, %s4716_s17 }
 0x72b   : > { %2597 = vrot.lane.b32.xlu0 %v6517_v9, %s4716_s17 }
 0x740   : > { %2253 = vmax.xlane.f32.xlu1 %v5658_v34 }
 0x744   : > { %2249 = vmax.xlane.f32.xlu1 %v5662_v6 }
 0x782   : > { %v2228_v12 = vpop.xlane.xlu0 %2227 }
 0x783   : > { %v2257_v25 = vsub.f32 %v5598_v2, %v2228_v12 }
 0x785   : > { %v2275_v40 = vmul.f32 1.442695, %v2257_v25  ;;  %v2226_v45 = vpop.xlane.xlu1 %2225 }
 0x786   : > { %v2256_v47 = vsub.f32 %v5602_v44, %v2226_v45  ;;  %v2224_v9 = vpop.xlane.xlu0 %2223 }
 0x787   : > { %4530 = vpow2.f32 %v2275_v40  ;;  %v2255_v22 = vsub.f32 %v5605_v57, %v2224_v9 }
 0x788   : > { %v2273_v8 = vmul.f32 1.442695, %v2256_v47 }
 0x789   : > { %v2271_v1 = vmul.f32 1.442695, %v2255_v22 }
 0x78a   : > { %4532 = vpow2.f32 %v2273_v8  ;;  %v2230_v0 = vpop.xlane.xlu0 %2229 }
 0x78b   : > { %4534 = vpow2.f32 %v2271_v1  ;;  %v2258_v42 = vsub.f32 %v5610_v19, %v2230_v0 }
 0x78c   : > { %v2238_v44 = vpop.xlane.xlu1 %2237 }
 0x78d   : > { %v2277_v56 = vmul.f32 1.442695, %v2258_v42  ;;  %v6520_v42 = vld [vmem:[#allocation5_spill] sm:$0xff]  ;;  %v2262_v36 = vsub.f32 %v5613_v15, %v2238_v44 }
 0x78e   : > { %v2236_v1 = vpop.xlane.xlu0 %2235 }
 0x78f   : > { %4536 = vpow2.f32 %v2277_v56  ;;  %v6521_v56 = vld [vmem:[#allocation6_spill] sm:$0xff]  ;;  %v2261_v19 = vsub.f32 %v5617_v35, %v2236_v1  ;;  %v2285_v29 = vmul.f32 1.442695, %v2262_v36 }
 0x790   : > { %v2234_v25 = vpop.xlane.xlu1 %2233 }
 0x791   : > { %v5671_v18 = vpop.eup %4530  ;;  %v2283_v9 = vmul.f32 1.442695, %v2261_v19  ;;  %v2260_v8 = vsub.f32 %v5621_v50, %v2234_v25 }
 0x792   : > { %2307 = vadd.xlane.f32.xlu1 %v5671_v18  ;;  %v2232_v2 = vpop.xlane.xlu0 %2231 }
 0x793   : > { %v2259_v22 = vsub.f32 %v5625_v7, %v2232_v2  ;;  %4538 = vpow2.f32 %v2283_v9  ;;  %v2281_v59 = vmul.f32 1.442695, %v2260_v8 }
 0x794   : > { %v5674_v12 = vpop.eup %4532  ;;  %v2246_v0 = vpop.xlane.xlu1 %2245 }
 0x795   : > { %v5676_v45 = vpop.eup %4534  ;;  %2305 = vadd.xlane.f32.xlu0 %v5674_v12  ;;  %v2266_v15 = vsub.f32 %v5629_v52, %v2246_v0 }
 0x796   : > { %2303 = vadd.xlane.f32.xlu1 %v5676_v45  ;;  %v2244_v57 = vpop.xlane.xlu0 %2243 }
 0x798   : > { %v2242_v23 = vpop.xlane.xlu1 %2241 }
 0x799   : > { %v5680_v40 = vpop.eup %4536 }
 0x79a   : > { %2309 = vadd.xlane.f32.xlu1 %v5680_v40  ;;  %v2240_v47 = vpop.xlane.xlu0 %2239 }
 0x79b   : > { %v2263_v7 = vsub.f32 %v5641_v31, %v2240_v47  ;;  %v2264_v31 = vsub.f32 %v5637_v3, %v2242_v23 }
 0x79c   : > { %v5698_v36 = vpop.permute.xlu1 %2599 }
 0x79d   : > { %v2287_v44 = vmul.f32 1.442695, %v2263_v7  ;;  %v5696_v25 = vpop.eup %4538 }
 0x79e   : > { %v2252_v55 = vpop.xlane.xlu0 %2251 }
 0x79f   : > { %v2269_v35 = vsub.f32 %v5646_v30, %v2252_v55 }
 0x7a1   : > { %v2299_v50 = vmul.f32 1.442695, %v2269_v35 }
 0x7a2   : > { %v2248_v2 = vpop.xlane.xlu0 %2247 }
 0x7a3   : > { %v2267_v19 = vsub.f32 %v5650_v51, %v2248_v2  ;;  %v2634_v2 = vsel %vm984_vm1, %v5560_v32, 0 }
 0x7a5   : > { %v2295_v55 = vmul.f32 1.442695, %v2267_v19 }
 0x7ab   : > { %2603 = vrot.lane.b32.xlu1 %v6520_v42, %s4716_s17  ;;  %2601 = vrot.lane.b32.xlu0 %v6521_v56, %s4716_s17  ;;  %v2279_v42 = vmul.f32 1.442695, %v2259_v22  ;;  %v2265_v56 = vsub.f32 %v5633_v33, %v2244_v57  ;;  %v2293_v33 = vmul.f32 1.442695, %v2266_v15 }
 0x7ad   : > { %4540 = vpow2.f32 %v2279_v42  ;;  %v2291_v1 = vmul.f32 1.442695, %v2265_v56 }
 0x7ae   : > { %4542 = vpow2.f32 %v2281_v59  ;;  %v2289_v59 = vmul.f32 1.442695, %v2264_v31 }
 0x7af   : > { %4544 = vpow2.f32 %v2285_v29 }
 0x7b0   : > { %4546 = vpow2.f32 %v2291_v1 }
 0x7b1   : > { %4548 = vpow2.f32 %v2299_v50 }
 0x7b2   : > { %4550 = vpow2.f32 %v2287_v44 }
 0x7b3   : > { %4552 = vpow2.f32 %v2295_v55 }
 0x7b4   : > { %4554 = vpow2.f32 %v2293_v33 }
 0x7b7   : > { %v5702_v29 = vpop.eup %4540 }
 0x7b8   : > { %v5704_v51 = vpop.eup %4542 }
 0x7b9   : > { %v5709_v47 = vpop.eup %4544 }
 0x7ba   : > { %v5711_v23 = vpop.eup %4546 }
 0x7bb   : > { %v5716_v22 = vpop.eup %4548 }
 0x7bc   : > { %v5718_v8 = vpop.eup %4550 }
 0x7bd   : > { %v5722_v0 = vpop.eup %4552 }
 0x7be   : > { %v5724_v42 = vpop.eup %4554 }
 0x7ca   : > { %2315 = vadd.xlane.f32.xlu0 %v5696_v25 }
 0x7cd   : > { %v2254_v30 = vpop.xlane.xlu1 %2253 }
 0x7ce   : > { %v2270_v52 = vsub.f32 %v5658_v34, %v2254_v30  ;;  %2311 = vadd.xlane.f32.xlu0 %v5702_v29 }
 0x7cf   : > { %2313 = vadd.xlane.f32.xlu1 %v5704_v51 }
 0x7d0   : > { %v2301_v57 = vmul.f32 1.442695, %v2270_v52 }
 0x7d1   : > { %v2250_v9 = vpop.xlane.xlu1 %2249 }
 0x7d2   : > { %4556 = vpow2.f32 %v2301_v57  ;;  %v2268_v3 = vsub.f32 %v5662_v6, %v2250_v9  ;;  %2317 = vadd.xlane.f32.xlu0 %v5709_v47 }
 0x7d3   : > { %2323 = vadd.xlane.f32.xlu1 %v5711_v23  ;;  %4558 = vpow2.f32 %v2289_v59 }
 0x7d4   : > { %v2297_v34 = vmul.f32 1.442695, %v2268_v3 }
 0x7d6   : > { %2331 = vadd.xlane.f32.xlu0 %v5716_v22  ;;  %4560 = vpow2.f32 %v2297_v34 }
 0x7d7   : > { %2319 = vadd.xlane.f32.xlu1 %v5718_v8 }
 0x7da   : > { %2327 = vadd.xlane.f32.xlu0 %v5722_v0 }
 0x7db   : > { %2325 = vadd.xlane.f32.xlu1 %v5724_v42 }
 0x7dc   : > { %v5728_v6 = vpop.eup %4556 }
 0x7dd   : > { %v5730_v56 = vpop.eup %4558 }
 0x7de   : > { %2333 = vadd.xlane.f32.xlu0 %v5728_v6 }
 0x7df   : > { %2321 = vadd.xlane.f32.xlu1 %v5730_v56 }
 0x7e0   : > { %v5734_v35 = vpop.eup %4560 }
 0x7e3   : > { %2329 = vadd.xlane.f32.xlu1 %v5734_v35 }
 0x7f4   : > { %2605 = vrot.lane.b32.xlu0 %v4969_v53, %s4716_s17  ;;  %2607 = vrot.lane.b32.xlu1 %v4966_v49, %s4716_s17 }
 0x7f8   : > { %2577 = vrot.lane.b32.xlu0 %v4920_v63, %s4716_s17  ;;  %2579 = vrot.lane.b32.xlu1 %v4915_v60, %s4716_s17  ;;  %v2598_v60 = vpop.permute.xlu0 %2597 }
 0x7fc   : > { %2581 = vrot.lane.b32.xlu0 %v4942_v20, %s4716_s17  ;;  %2583 = vrot.lane.b32.xlu1 %v4937_v17, %s4716_s17 }
 0x800   : > { %2585 = vrot.lane.b32.xlu0 %v4962_v43, %s4716_s17  ;;  %2587 = vrot.lane.b32.xlu1 %v4957_v39, %s4716_s17 }
 0x804   : > { %2589 = vrot.lane.b32.xlu0 %v4980_v61, %s4716_s17  ;;  %2591 = vrot.lane.b32.xlu1 %v4976_v37, %s4716_s17 }
 0x808   : > { %2938 = vrot.lane.b32.xlu0 %v4991_v11, %s4716_s17  ;;  %2940 = vrot.lane.b32.xlu1 %v4987_v10, %s4716_s17 }
 0x80c   : > { %2942 = vrot.lane.b32.xlu0 %v5003_v24, %s4716_s17 }
 0x81f   : > { %v2308_v63 = vpop.xlane.xlu1 %2307 }
 0x822   : > { %v2306_v17 = vpop.xlane.xlu0 %2305 }
 0x823   : > { %4562 = vrcp.f32 %v2306_v17  ;;  %v2304_v20 = vpop.xlane.xlu1 %2303 }
 0x824   : > { %4564 = vrcp.f32 %v2304_v20 }
 0x825   : > { %4566 = vrcp.f32 %v2308_v63 }
 0x826   : > { %v2602_v32 = vpop.permute.xlu0 %2601 }
 0x827   : > { %v2310_v39 = vpop.xlane.xlu1 %2309  ;;  %v2646_v50 = vsel %vm984_vm1, %v2602_v32, 0 }
 0x828   : > { %4568 = vrcp.f32 %v2310_v39 }
 0x82d   : > { %v4563_v43 = vpop.eup %4562 }
 0x82e   : > { %v4565_v49 = vpop.eup %4564  ;;  %v2352_v53 = vmul.f32 %v4563_v43, %v5674_v12  ;;  %v2637_v12 = vsel %vm984_vm1, %v5665_v28, 0 }
 0x82f   : > { %v2351_v37 = vmul.f32 %v4565_v49, %v5676_v45  ;;  %v4567_v61 = vpop.eup %4566  ;;  %v2643_v45 = vsel %vm984_vm1, %v5698_v36, 0 }
 0x830   : > { %v2353_v24 = vmul.f32 %v4567_v61, %v5671_v18  ;;  %v2640_v18 = vsel %vm984_vm1, %v2598_v60, 0 }
 0x831   : > { %v2367_v10 = vpack.c.bf16 %v2352_v53, %v2351_v37 }
 0x832   : > { %v4569_v11 = vpop.eup %4568 }
 0x833   : > { %v2354_v1 = vmul.f32 %v4569_v11, %v5680_v40  ;;  %4236 = vmatprep.mubr.bf16.mxu0 %v2367_v10 }
 0x835   : > { %v2368_v7 = vpack.c.bf16 %v2354_v1, %v2353_v24 }
 0x837   : > { %4237 = vmatmul.mubr.bf16.vlgmr.msra.gmra.mrb[64].mxu0 %v2368_v7 }
 0x838   : > { %4253 = vmatpush3.bf16.xpose.msra.mxu0 %v2634_v2 }
 0x839   : > { %4365 = vmatprep.subr.msk.bf16.mxu0 %vm984_vm1, %v5665_v28  ;;  %v2604_v28 = vpop.permute.xlu1 %2603 }
 0x83a   : > { %v2649_v55 = vsel %vm984_vm1, %v2604_v28, 0 }
 0x840   : > { %4255 = vmatpush3.bf16.xpose.msra.mxu0 %v2637_v12 }
 0x841   : > { %4366 = vmatprep.subr.msk.bf16.mxu0 %vm984_vm1, %v2598_v60 }
 0x848   : > { %4257 = vmatpush3.bf16.xpose.msra.mxu0 %v2640_v18 }
 0x849   : > { %4367 = vmatprep.subr.msk.bf16.mxu0 %vm984_vm1, %v5698_v36 }
 0x850   : > { %4259 = vmatpush3.bf16.xpose.msra.mxu0 %v2643_v45 }
 0x851   : > { %4368 = vmatprep.subr.msk.bf16.mxu0 %vm984_vm1, %v2602_v32 }
 0x857   : > { %v2316_v40 = vpop.xlane.xlu0 %2315 }
 0x858   : > { %4261 = vmatpush3.bf16.xpose.msra.mxu0 %v2646_v50 }
 0x859   : > { %4369 = vmatprep.subr.msk.bf16.mxu0 %vm984_vm1, %v2604_v28 }
 0x85b   : > { %v2312_v19 = vpop.xlane.xlu0 %2311 }
 0x85c   : > { %4570 = vrcp.f32 %v2312_v19  ;;  %v2314_v15 = vpop.xlane.xlu1 %2313 }
 0x85d   : > { %4572 = vrcp.f32 %v2314_v15 }
 0x85e   : > { %4574 = vrcp.f32 %v2316_v40 }
 0x85f   : > { %v2318_v44 = vpop.xlane.xlu0 %2317 }
 0x860   : > { %4576 = vrcp.f32 %v2318_v44  ;;  %4263 = vmatpush3.bf16.xpose.msra.mxu0 %v2649_v55  ;;  %v2324_v36 = vpop.xlane.xlu1 %2323 }
 0x863   : > { %v2332_v33 = vpop.xlane.xlu0 %2331 }
 0x864   : > { %v2320_v31 = vpop.xlane.xlu1 %2319 }
 0x866   : > { %v4571_v30 = vpop.eup %4570 }
 0x867   : > { %v4573_v52 = vpop.eup %4572  ;;  %v2328_v59 = vpop.xlane.xlu0 %2327  ;;  %v2355_v57 = vmul.f32 %v4571_v30, %v5702_v29 }
 0x868   : > { %v4575_v9 = vpop.eup %4574  ;;  %v2326_v3 = vpop.xlane.xlu1 %2325  ;;  %v2356_v34 = vmul.f32 %v4573_v52, %v5704_v51 }
 0x869   : > { %4578 = vrcp.f32 %v2326_v3  ;;  %v2357_v20 = vmul.f32 %v4575_v9, %v5696_v25 }
 0x86a   : > { %v4577_v60 = vpop.eup %4576  ;;  %v2369_v63 = vpack.c.bf16 %v2356_v34, %v2355_v57  ;;  %4580 = vrcp.f32 %v2320_v31 }
 0x86b   : > { %v2334_v17 = vpop.xlane.xlu0 %2333  ;;  %v2358_v39 = vmul.f32 %v4577_v60, %v5709_v47  ;;  %4582 = vrcp.f32 %v2324_v36 }
 0x86c   : > { %4240 = vmatprep.mubr.bf16.mxu0 %v2369_v63  ;;  %v2322_v43 = vpop.xlane.xlu1 %2321 }
 0x86d   : > { %4584 = vrcp.f32 %v2322_v43  ;;  %v2370_v49 = vpack.c.bf16 %v2358_v39, %v2357_v20 }
 0x86e   : > { %4586 = vrcp.f32 %v2328_v59 }
 0x86f   : > { %v2606_v29 = vpop.permute.xlu0 %2605  ;;  %4241 = vmatmul.mubr.bf16.gmra.mrb[68].mxu0 %v2370_v49 }
 0x870   : > { %4370 = vmatprep.subr.msk.bf16.mxu0 %vm984_vm1, %v2606_v29  ;;  %v2330_v51 = vpop.xlane.xlu1 %2329  ;;  %v2652_v53 = vsel %vm984_vm1, %v2606_v29, 0 }
 0x871   : > { %4588 = vrcp.f32 %v2330_v51  ;;  %4265 = vmatpush3.bf16.xpose.msra.mxu0 %v2652_v53 }
 0x872   : > { %4590 = vrcp.f32 %v2334_v17 }
 0x873   : > { %v2578_v37 = vpop.permute.xlu0 %2577  ;;  %v4579_v25 = vpop.eup %4578  ;;  %4592 = vrcp.f32 %v2332_v33 }
 0x874   : > { %v2608_v47 = vpop.permute.xlu1 %2607  ;;  %v4581_v61 = vpop.eup %4580  ;;  %v2362_v1 = vmul.f32 %v4579_v25, %v5724_v42 }
 0x875   : > { %4371 = vmatprep.subr.msk.bf16.mxu0 %vm984_vm1, %v2608_v47  ;;  %v4583_v10 = vpop.eup %4582  ;;  %v2655_v2 = vsel %vm984_vm1, %v2608_v47, 0  ;;  %v2359_v12 = vmul.f32 %v4581_v61, %v5718_v8 }
 0x876   : > { %v2361_v32 = vmul.f32 %v4583_v10, %v5711_v23 }
 0x877   : > { %v4585_v11 = vpop.eup %4584  ;;  %v2582_v24 = vpop.permute.xlu0 %2581 }
 0x878   : > { %v2580_v7 = vpop.permute.xlu1 %2579  ;;  %v2360_v18 = vmul.f32 %v4585_v11, %v5730_v56  ;;  %v4587_v45 = vpop.eup %4586  ;;  %v2372_v19 = vpack.c.bf16 %v2362_v1, %v2361_v32 }
 0x879   : > { %4267 = vmatpush3.bf16.xpose.msra.mxu0 %v2655_v2  ;;  %v2363_v42 = vmul.f32 %v4587_v45, %v5722_v0 }
 0x87a   : > { %v2371_v40 = vpack.c.bf16 %v2360_v18, %v2359_v12 }
 0x87b   : > { %v4589_v50 = vpop.eup %4588  ;;  %v2586_v28 = vpop.permute.xlu0 %2585 }
 0x87c   : > { %v4591_v15 = vpop.eup %4590  ;;  %4244 = vmatprep.mubr.bf16.mxu0 %v2371_v40  ;;  %v2584_v44 = vpop.permute.xlu1 %2583  ;;  %v2364_v55 = vmul.f32 %v4589_v50, %v5734_v35 }
 0x87d   : > { %4245 = vmatmul.mubr.bf16.gmra.mrb[72].mxu0 %v2372_v19  ;;  %v4593_v36 = vpop.eup %4592  ;;  %v2366_v56 = vmul.f32 %v4591_v15, %v5728_v6 }
 0x87e   : > { %v2373_v8 = vpack.c.bf16 %v2364_v55, %v2363_v42  ;;  %v2365_v23 = vmul.f32 %v4593_v36, %v5716_v22 }
 0x87f   : > { %v2590_v33 = vpop.permute.xlu0 %2589 }
 0x880   : > { %4248 = vmatprep.mubr.bf16.mxu0 %v2373_v8  ;;  %v2588_v31 = vpop.permute.xlu1 %2587  ;;  %v2374_v52 = vpack.c.bf16 %v2366_v56, %v2365_v23 }
 0x883   : > { %v2939_v30 = vpop.permute.xlu0 %2938 }
 0x884   : > { %4284 = vmatprep.subr.bf16.mxu1 %v2939_v30  ;;  %v2592_v59 = vpop.permute.xlu1 %2591 }
 0x885   : > { %4249 = vmatmul.mubr.bf16.gmra.mrb[76].mxu0 %v2374_v52  ;;  %4285 = vmatpush3.bf16.msra.mxu1 %v2939_v30 }
 0x886   : > { %4268 = vmatprep.mubr.msk.bf16.mxu0 %vm984_vm1, %v2578_v37 }
 0x887   : > { %v2943_v35 = vpop.permute.xlu0 %2942 }
 0x888   : > { %v2941_v0 = vpop.permute.xlu1 %2940 }
 0x889   : > { %4286 = vmatprep.subr.bf16.mxu1 %v2941_v0 }
 0x88a   : > { %4287 = vmatpush3.bf16.msra.mxu1 %v2941_v0 }
 0x88b   : > { %4288 = vmatprep.subr.bf16.mxu1 %v2943_v35 }
 0x88d   : > { %4269 = vmatmul.mubr.msk.bf16.vlgmr.msra.gmra.mrb[80].mxu0 %vm984_vm1, %v2580_v7 }
 0x88e   : > { %4272 = vmatprep.mubr.msk.bf16.mxu0 %vm984_vm1, %v2582_v24  ;;  %4289 = vmatpush3.bf16.msra.mxu1 %v2943_v35 }
 0x895   : > { %4273 = vmatmul.mubr.msk.bf16.gmra.mrb[84].mxu0 %vm984_vm1, %v2584_v44 }
 0x896   : > { %4276 = vmatprep.mubr.msk.bf16.mxu0 %vm984_vm1, %v2586_v28 }
 0x89d   : > { %4277 = vmatmul.mubr.msk.bf16.gmra.mrb[88].mxu0 %vm984_vm1, %v2588_v31 }
 0x89e   : > { %4280 = vmatprep.mubr.msk.bf16.mxu0 %vm984_vm1, %v2590_v33 }
 0x8a5   : > { %4281 = vmatmul.mubr.msk.bf16.gmra.mrb[92].mxu0 %vm984_vm1, %v2592_v59 }
 0x90a   : > { %v5807_v22 = vpop.f32.mrb[64].mxu0 }
 0x90b   : > { %v5809_v6 = vpop.f32.mrb[65].mxu0 }
 0x90c   : > { %v5811_v57 = vpop.f32.mrb[66].mxu0 }
 0x90d   : > { %v5813_v9 = vpop.f32.mrb[67].mxu0 }
 0x942   : > { %v5815_v3 = vpop.f32.mrb[68].mxu0 }
 0x943   : > { %v5817_v34 = vpop.f32.mrb[69].mxu0 }
 0x944   : > { %v5819_v60 = vpop.f32.mrb[70].mxu0 }
 0x945   : > { %v5821_v63 = vpop.f32.mrb[71].mxu0 }
 0x950   : > { %v5823_v17 = vpop.f32.mrb[72].mxu0 }
 0x951   : > { %v5825_v20 = vpop.f32.mrb[73].mxu0 }
 0x952   : > { %v5827_v39 = vpop.f32.mrb[74].mxu0 }
 0x953   : > { %v5829_v43 = vpop.f32.mrb[75].mxu0 }
 0x958   : > { %v5831_v49 = vpop.f32.mrb[76].mxu0 }
 0x959   : > { %v5833_v29 = vpop.f32.mrb[77].mxu0 }
 0x95a   : > { %v5835_v51 = vpop.f32.mrb[78].mxu0 }
 0x95b   : > { %v5837_v53 = vpop.f32.mrb[79].mxu0 }
 0x960   : > { %v4270_v37 = vpop.f32.mrb[80].mxu0 }
 0x961   : > { %v2756_v25 = vmul.f32 0.25, %v4270_v37  ;;  %v2691_v47 = vpop.f32.mrb[81].mxu0 }
 0x962   : > { %v4271_v61 = vpop.f32.mrb[82].mxu0  ;;  %v2754_v11 = vmul.f32 0.25, %v2691_v47 }
 0x963   : > { %v5840_v10 = vadd.f32 %v2756_v25, %v5057_v16  ;;  %v2694_v24 = vpop.f32.mrb[83].mxu0  ;;  %v2757_v12 = vmul.f32 0.25, %v4271_v61  ;;  %v6523_v25 = vld [vmem:[#allocation18_spill] sm:$0xff]  ;;  %v6524_v61 = vld [vmem:[#allocation19_spill] sm:$0xff] }
 0x964   : > { %v2755_v1 = vmul.f32 0.25, %v2694_v24  ;;  %v5847_v2 = vadd.f32 %v2754_v11, %v5060_v26 }
 0x965   : > { %2790 = vmax.xlane.f32.xlu0 %v5840_v10  ;;  %v5852_v32 = vadd.f32 %v2757_v12, %v5065_v46 }
 0x966   : > { %v5844_v7 = vadd.f32 %v2755_v1, %v5070_v54 }
 0x968   : > { %2788 = vmax.xlane.f32.xlu1 %v5844_v7  ;;  %v4274_v18 = vpop.f32.mrb[84].mxu0 }
 0x969   : > { %2786 = vmax.xlane.f32.xlu0 %v5847_v2  ;;  %v2707_v45 = vpop.f32.mrb[85].mxu0  ;;  %v2760_v40 = vmul.f32 0.25, %v4274_v18 }
 0x96a   : > { %v4275_v16 = vpop.f32.mrb[86].mxu0  ;;  %v2758_v15 = vmul.f32 0.25, %v2707_v45 }
 0x96b   : > { %v2761_v50 = vmul.f32 0.25, %v4275_v16  ;;  %v2710_v28 = vpop.f32.mrb[87].mxu0  ;;  %v5859_v26 = vadd.f32 %v2760_v40, %v5077_v5 }
 0x96c   : > { %v2759_v19 = vmul.f32 0.25, %v2710_v28 }
 0x96d   : > { %v5855_v54 = vadd.f32 %v2761_v50, %v5086_v14  ;;  %2792 = vmax.xlane.f32.xlu0 %v5852_v32  ;;  %v5867_v14 = vadd.f32 %v2758_v15, %v6481_v58 }
 0x96e   : > { %v5863_v42 = vadd.f32 %v2759_v19, %v5091_v21 }
 0x96f   : > { %2800 = vmax.xlane.f32.xlu1 %v5855_v54 }
 0x970   : > { %v4278_v44 = vpop.f32.mrb[88].mxu0 }
 0x971   : > { %2798 = vmax.xlane.f32.xlu0 %v5859_v26  ;;  %v2723_v46 = vpop.f32.mrb[89].mxu0  ;;  %v2764_v36 = vmul.f32 0.25, %v4278_v44 }
 0x972   : > { %v4279_v55 = vpop.f32.mrb[90].mxu0  ;;  %v2762_v31 = vmul.f32 0.25, %v2723_v46 }
 0x973   : > { %v2765_v8 = vmul.f32 0.25, %v4279_v55  ;;  %2796 = vmax.xlane.f32.xlu1 %v5863_v42  ;;  %v2726_v5 = vpop.f32.mrb[91].mxu0  ;;  %v5875_v21 = vadd.f32 %v2764_v36, %v6511_v27 }
 0x974   : > { %v2763_v56 = vmul.f32 0.25, %v2726_v5 }
 0x975   : > { %v5871_v33 = vadd.f32 %v2765_v8, %v6510_v62  ;;  %2794 = vmax.xlane.f32.xlu0 %v5867_v14  ;;  %v5883_v62 = vadd.f32 %v2762_v31, %v6513_v41  ;;  %v6522_v41 = vld [vmem:[#allocation7_spill] sm:$0xff] }
 0x976   : > { %v5879_v58 = vadd.f32 %v2763_v56, %v6512_v4 }
 0x977   : > { %2808 = vmax.xlane.f32.xlu1 %v5871_v33 }
 0x978   : > { %v4282_v23 = vpop.f32.mrb[92].mxu0 }
 0x979   : > { %2806 = vmax.xlane.f32.xlu0 %v5875_v21  ;;  %v2739_v30 = vpop.f32.mrb[93].mxu0  ;;  %v2768_v59 = vmul.f32 0.25, %v4282_v23 }
 0x97a   : > { %v4283_v52 = vpop.f32.mrb[94].mxu0  ;;  %v2766_v35 = vmul.f32 0.25, %v2739_v30 }
 0x97b   : > { %2804 = vmax.xlane.f32.xlu1 %v5879_v58  ;;  %v2742_v0 = vpop.f32.mrb[95].mxu0  ;;  %v5888_v27 = vadd.f32 %v2768_v59, %v6514_v48  ;;  %v2769_v37 = vmul.f32 0.25, %v4283_v52 }
 0x97c   : > { %v5892_v4 = vadd.f32 %v2766_v35, %v6515_v13  ;;  %v2767_v48 = vmul.f32 0.25, %v2742_v0  ;;  %v6525_v13 = vld [vmem:[#allocation8_spill] sm:$0xff] }
 0x97d   : > { %2802 = vmax.xlane.f32.xlu0 %v5883_v62  ;;  %v5900_v47 = vadd.f32 %v2769_v37, %v6523_v25 }
 0x97e   : > { %v5904_v11 = vadd.f32 %v2767_v48, %v6524_v61 }
 0x981   : > { %2814 = vmax.xlane.f32.xlu0 %v5888_v27 }
 0x985   : > { %2810 = vmax.xlane.f32.xlu0 %v5892_v4 }
 0x98c   : > { %2946 = vrot.lane.b32.xlu1 %v5015_v38, %s4716_s17 }
 0x99b   : > { %2944 = vrot.lane.b32.xlu0 %v6522_v41, %s4716_s17 }
 0x9b0   : > { %2816 = vmax.xlane.f32.xlu1 %v5900_v47 }
 0x9b4   : > { %2812 = vmax.xlane.f32.xlu1 %v5904_v11 }
 0x9c5   : > { %2948 = vrot.lane.b32.xlu1 %v6525_v13, %s4716_s17 }
 0x9f2   : > { %v2791_v24 = vpop.xlane.xlu0 %2790 }
 0x9f3   : > { %v2820_v38 = vsub.f32 %v5840_v10, %v2791_v24 }
 0x9f5   : > { %v2838_v1 = vmul.f32 1.442695, %v2820_v38  ;;  %v2789_v18 = vpop.xlane.xlu1 %2788 }
 0x9f6   : > { %v2787_v12 = vpop.xlane.xlu0 %2786  ;;  %v2819_v40 = vsub.f32 %v5844_v7, %v2789_v18 }
 0x9f7   : > { %4594 = vpow2.f32 %v2838_v1  ;;  %v2818_v45 = vsub.f32 %v5847_v2, %v2787_v12 }
 0x9f8   : > { %v2836_v44 = vmul.f32 1.442695, %v2819_v40 }
 0x9f9   : > { %v2834_v16 = vmul.f32 1.442695, %v2818_v45 }
 0x9fa   : > { %v2793_v50 = vpop.xlane.xlu0 %2792 }
 0x9fb   : > { %4596 = vpow2.f32 %v2834_v16  ;;  %v2821_v28 = vsub.f32 %v5852_v32, %v2793_v50 }
 0x9fc   : > { %v2801_v19 = vpop.xlane.xlu1 %2800 }
 0x9fd   : > { %v2840_v15 = vmul.f32 1.442695, %v2821_v28  ;;  %v2825_v7 = vsub.f32 %v5855_v54, %v2801_v19 }
 0x9fe   : > { %v2799_v46 = vpop.xlane.xlu0 %2798 }
 0x9ff   : > { %4598 = vpow2.f32 %v2840_v15  ;;  %v2824_v10 = vsub.f32 %v5859_v26, %v2799_v46  ;;  %v2848_v52 = vmul.f32 1.442695, %v2825_v7  ;;  %v6527_v46 = vld [vmem:[#allocation22_spill] sm:$0xff] }
 0xa00   : > { %v2797_v55 = vpop.xlane.xlu1 %2796  ;;  %4600 = vpow2.f32 %v2836_v44  ;;  %v6526_v44 = vld [vmem:[#allocation9_spill] sm:$0xff] }
 0xa01   : > { %v5914_v36 = vpop.eup %4594  ;;  %v2846_v8 = vmul.f32 1.442695, %v2824_v10  ;;  %v2823_v2 = vsub.f32 %v5863_v42, %v2797_v55  ;;  %v6528_v10 = vld [vmem:[#allocation10_spill] sm:$0xff]  ;;  %v6529_v55 = vld [vmem:[#allocation11_spill] sm:$0xff] }
 0xa02   : > { %v2795_v5 = vpop.xlane.xlu0 %2794  ;;  %2870 = vadd.xlane.f32.xlu1 %v5914_v36 }
 0xa03   : > { %4602 = vpow2.f32 %v2846_v8  ;;  %v2844_v32 = vmul.f32 1.442695, %v2823_v2  ;;  %v2822_v56 = vsub.f32 %v5867_v14, %v2795_v5  ;;  %v6530_v2 = vld [vmem:[#allocation21_spill] sm:$0xff] }
 0xa04   : > { %v2809_v26 = vpop.xlane.xlu1 %2808 }
 0xa05   : > { %v5920_v31 = vpop.eup %4596  ;;  %v2842_v23 = vmul.f32 1.442695, %v2822_v56  ;;  %4604 = vpow2.f32 %v2844_v32  ;;  %v2829_v54 = vsub.f32 %v5871_v33, %v2809_v26  ;;  %v6531_v26 = vld [vmem:[#allocation26_spill] sm:$0xff] }
 0xa06   : > { %v2807_v30 = vpop.xlane.xlu0 %2806  ;;  %2866 = vadd.xlane.f32.xlu1 %v5920_v31 }
 0xa07   : > { %4606 = vpow2.f32 %v2842_v23  ;;  %v2828_v42 = vsub.f32 %v5875_v21, %v2807_v30  ;;  %v2856_v61 = vmul.f32 1.442695, %v2829_v54 }
 0xa08   : > { %4608 = vpow2.f32 %v2848_v52  ;;  %v2805_v14 = vpop.xlane.xlu1 %2804  ;;  %v6532_v52 = vld [vmem:[#allocation25_spill] sm:$0xff] }
 0xa09   : > { %v5924_v59 = vpop.eup %4598  ;;  %v2854_v0 = vmul.f32 1.442695, %v2828_v42  ;;  %v2827_v21 = vsub.f32 %v5879_v58, %v2805_v14  ;;  %v6537_v42 = vld [vmem:[#allocation20_spill] sm:$0xff] }
 0xa0a   : > { %v2803_v35 = vpop.xlane.xlu0 %2802  ;;  %2872 = vadd.xlane.f32.xlu1 %v5924_v59  ;;  %v5929_v37 = vpop.eup %4600 }
 0xa0b   : > { %v2826_v41 = vsub.f32 %v5883_v62, %v2803_v35  ;;  %4610 = vpow2.f32 %v2854_v0  ;;  %v2852_v1 = vmul.f32 1.442695, %v2827_v21 }
 0xa0c   : > { %v2947_v40 = vpop.permute.xlu1 %2946 }
 0xa0d   : > { %v5931_v25 = vpop.eup %4602  ;;  %v2850_v48 = vmul.f32 1.442695, %v2826_v41  ;;  %v6543_v41 = vld [vmem:[#allocation31_spill] sm:$0xff] }
 0xa0e   : > { %v2815_v13 = vpop.xlane.xlu0 %2814  ;;  %2878 = vadd.xlane.f32.xlu0 %v5931_v25  ;;  %2868 = vadd.xlane.f32.xlu1 %v5929_v37 }
 0xa0f   : > { %4612 = vpow2.f32 %v2850_v48  ;;  %v2832_v33 = vsub.f32 %v5888_v27, %v2815_v13  ;;  %v5937_v24 = vpop.eup %4604 }
 0xa10   : > { %4614 = vpow2.f32 %v2856_v61 }
 0xa11   : > { %v5939_v62 = vpop.eup %4606  ;;  %v2862_v38 = vmul.f32 1.442695, %v2832_v33 }
 0xa12   : > { %2874 = vadd.xlane.f32.xlu0 %v5939_v62  ;;  %v2811_v12 = vpop.xlane.xlu0 %2810  ;;  %2876 = vadd.xlane.f32.xlu1 %v5937_v24  ;;  %v5944_v18 = vpop.eup %4608 }
 0xa13   : > { %4616 = vpow2.f32 %v2862_v38  ;;  %v2830_v58 = vsub.f32 %v5892_v4, %v2811_v12 }
 0xa14   : > { %4618 = vpow2.f32 %v2852_v1 }
 0xa15   : > { %v2858_v45 = vmul.f32 1.442695, %v2830_v58  ;;  %v5947_v16 = vpop.eup %4610 }
 0xa16   : > { %v2945_v27 = vpop.permute.xlu0 %2944  ;;  %2880 = vadd.xlane.f32.xlu0 %v5944_v18 }
 0xa17   : > { %4620 = vpow2.f32 %v2858_v45  ;;  %4290 = vmatprep.subr.bf16.mxu1 %v2945_v27 }
 0xa18   : > { %4291 = vmatpush3.bf16.msra.mxu1 %v2945_v27 }
 0xa19   : > { %v5949_v50 = vpop.eup %4612  ;;  %4292 = vmatprep.subr.bf16.mxu1 %v2947_v40 }
 0xa1a   : > { %2886 = vadd.xlane.f32.xlu0 %v5947_v16  ;;  %2882 = vadd.xlane.f32.xlu1 %v5949_v50  ;;  %v5953_v4 = vpop.eup %4614 }
 0xa1c   : > { %4293 = vmatpush3.bf16.msra.mxu1 %v2947_v40 }
 0xa1d   : > { %v5955_v28 = vpop.eup %4616 }
 0xa1e   : > { %2894 = vadd.xlane.f32.xlu1 %v5955_v28  ;;  %2888 = vadd.xlane.f32.xlu0 %v5953_v4  ;;  %v5959_v19 = vpop.eup %4618 }
 0xa21   : > { %v5961_v15 = vpop.eup %4620 }
 0xa22   : > { %2890 = vadd.xlane.f32.xlu1 %v5961_v15  ;;  %2884 = vadd.xlane.f32.xlu0 %v5959_v19 }
 0xa33   : > { %2952 = vrot.lane.b32.xlu1 %v6526_v44, %s4716_s17 }
 0xa37   : > { %1951 = vrot.lane.b32.xlu1 %v6527_v46, %s4717_s18 }
 0xa38   : > { %2950 = vrot.lane.b32.xlu0 %v6528_v10, %s4716_s17 }
 0xa3b   : > { %1953 = vrot.lane.b32.xlu1 %v6529_v55, %s4717_s18 }
 0xa3d   : > { %v2817_v8 = vpop.xlane.xlu1 %2816 }
 0xa3e   : > { %v2833_v56 = vsub.f32 %v5900_v47, %v2817_v8  ;;  %v6533_v47 = vld [vmem:[#allocation30_spill] sm:$0xff] }
 0xa3f   : > { %1955 = vrot.lane.b32.xlu1 %v6530_v2, %s4717_s18 }
 0xa40   : > { %v2864_v30 = vmul.f32 1.442695, %v2833_v56 }
 0xa41   : > { %v2813_v5 = vpop.xlane.xlu1 %2812 }
 0xa42   : > { %v2831_v7 = vsub.f32 %v5904_v11, %v2813_v5  ;;  %v6534_v11 = vld [vmem:[#allocation29_spill] sm:$0xff] }
 0xa43   : > { %2514 = vrot.lane.b32.xlu1 %v5813_v9, %s4718_s19 }
 0xa44   : > { %v2860_v23 = vmul.f32 1.442695, %v2831_v7 }
 0xa45   : > { %v2949_v32 = vpop.permute.xlu1 %2948 }
 0xa46   : > { %4294 = vmatprep.subr.bf16.mxu1 %v2949_v32  ;;  %4622 = vpow2.f32 %v2860_v23 }
 0xa47   : > { %2518 = vrot.lane.b32.xlu1 %v5811_v57, %s4718_s19  ;;  %4295 = vmatpush3.bf16.msra.mxu1 %v2949_v32  ;;  %4624 = vpow2.f32 %v2864_v30 }
 0xa4b   : > { %1959 = vrot.lane.b32.xlu1 %v6531_v26, %s4717_s18 }
 0xa4f   : > { %1963 = vrot.lane.b32.xlu1 %v6532_v52, %s4717_s18 }
 0xa50   : > { %v5987_v9 = vpop.eup %4622 }
 0xa51   : > { %v5992_v57 = vpop.eup %4624 }
 0xa53   : > { %2522 = vrot.lane.b32.xlu1 %v5821_v63, %s4718_s19  ;;  %v6536_v63 = vld [vmem:[#allocation33_spill] sm:$0xff] }
 0xa57   : > { %2526 = vrot.lane.b32.xlu1 %v5819_v60, %s4718_s19  ;;  %2892 = vadd.xlane.f32.xlu0 %v5987_v9  ;;  %v6535_v60 = vld [vmem:[#allocation34_spill] sm:$0xff] }
 0xa5b   : > { %1967 = vrot.lane.b32.xlu1 %v6533_v47, %s4717_s18  ;;  %2896 = vadd.xlane.f32.xlu0 %v5992_v57 }
 0xa5f   : > { %1971 = vrot.lane.b32.xlu1 %v6534_v11, %s4717_s18 }
 0xa63   : > { %2530 = vrot.lane.b32.xlu1 %v5829_v43, %s4718_s19  ;;  %v6539_v43 = vld [vmem:[#allocation23_spill] sm:$0xff] }
 0xa67   : > { %2534 = vrot.lane.b32.xlu1 %v5827_v39, %s4718_s19  ;;  %v6538_v39 = vld [vmem:[#allocation24_spill] sm:$0xff] }
 0xa6b   : > { %1975 = vrot.lane.b32.xlu1 %v6535_v60, %s4717_s18 }
 0xa6f   : > { %1979 = vrot.lane.b32.xlu1 %v6536_v63, %s4717_s18 }
 0xa71   : > { %1949 = vrot.lane.b32.xlu0 %v6537_v42, %s4717_s18 }
 0xa73   : > { %2538 = vrot.lane.b32.xlu1 %v5837_v53, %s4718_s19  ;;  %v6540_v53 = vld [vmem:[#allocation28_spill] sm:$0xff] }
 0xa75   : > { %2512 = vrot.lane.b32.xlu0 %v5809_v6, %s4718_s19  ;;  %v6541_v6 = vld [vmem:[#allocation27_spill] sm:$0xff] }
 0xa79   : > { %2516 = vrot.lane.b32.xlu0 %v5807_v22, %s4718_s19 }
 0xa7d   : > { %1957 = vrot.lane.b32.xlu0 %v6538_v39, %s4717_s18 }
 0xa81   : > { %1961 = vrot.lane.b32.xlu0 %v6539_v43, %s4717_s18 }
 0xa85   : > { %2520 = vrot.lane.b32.xlu0 %v5817_v34, %s4718_s19 }
 0xa89   : > { %2524 = vrot.lane.b32.xlu0 %v5815_v3, %s4718_s19  ;;  %v6542_v3 = vld [vmem:[#allocation32_spill] sm:$0xff] }
 0xa8d   : > { %1965 = vrot.lane.b32.xlu0 %v6540_v53, %s4717_s18 }
 0xa8f   : > { %v2871_v54 = vpop.xlane.xlu1 %2870 }
 0xa91   : > { %1969 = vrot.lane.b32.xlu0 %v6541_v6, %s4717_s18 }
 0xa93   : > { %v2867_v22 = vpop.xlane.xlu1 %2866 }
 0xa94   : > { %4626 = vrcp.f32 %v2867_v22 }
 0xa95   : > { %2528 = vrot.lane.b32.xlu0 %v5825_v20, %s4718_s19 }
 0xa97   : > { %v2873_v0 = vpop.xlane.xlu1 %2872 }
 0xa99   : > { %2532 = vrot.lane.b32.xlu0 %v5823_v17, %s4718_s19 }
 0xa9b   : > { %v2879_v34 = vpop.xlane.xlu0 %2878  ;;  %v2869_v35 = vpop.xlane.xlu1 %2868 }
 0xa9c   : > { %4628 = vrcp.f32 %v2869_v35 }
 0xa9d   : > { %1973 = vrot.lane.b32.xlu0 %v6542_v3, %s4717_s18  ;;  %4630 = vrcp.f32 %v2873_v0 }
 0xa9e   : > { %v4627_v21 = vpop.eup %4626 }
 0xa9f   : > { %v2875_v14 = vpop.xlane.xlu0 %2874  ;;  %v2877_v48 = vpop.xlane.xlu1 %2876  ;;  %v2914_v33 = vmul.f32 %v4627_v21, %v5920_v31 }
 0xaa0   : > { %4632 = vrcp.f32 %v2875_v14 }
 0xaa1   : > { %1977 = vrot.lane.b32.xlu0 %v6543_v41, %s4717_s18  ;;  %4634 = vrcp.f32 %v2877_v48 }
 0xaa2   : > { %4636 = vrcp.f32 %v2871_v54 }
 0xaa3   : > { %v2881_v61 = vpop.xlane.xlu0 %2880 }
 0xaa4   : > { %4638 = vrcp.f32 %v2881_v61 }
 0xaa5   : > { %2536 = vrot.lane.b32.xlu0 %v5833_v29, %s4718_s19 }
 0xaa6   : > { %v4629_v20 = vpop.eup %4628 }
 0xaa7   : > { %v2887_v13 = vpop.xlane.xlu0 %2886  ;;  %v2883_v17 = vpop.xlane.xlu1 %2882  ;;  %v2915_v38 = vmul.f32 %v4629_v20, %v5929_v37 }
 0xaa8   : > { %v4631_v29 = vpop.eup %4630 }
 0xaa9   : > { %v2930_v1 = vpack.c.bf16 %v2915_v38, %v2914_v33  ;;  %v2917_v10 = vmul.f32 %v4631_v29, %v5924_v59 }
 0xaaa   : > { %v4633_v40 = vpop.eup %4632 }
 0xaab   : > { %v2889_v12 = vpop.xlane.xlu0 %2888  ;;  %v6039_v58 = vpop.xlane.xlu1 %2894  ;;  %4300 = vmatprep.mubr.bf16.mxu1 %v2930_v1  ;;  %v2918_v8 = vmul.f32 %v4633_v40, %v5939_v62 }
 0xaac   : > { %v4635_v46 = vpop.eup %4634 }
 0xaad   : > { %v4637_v37 = vpop.eup %4636  ;;  %v2919_v2 = vmul.f32 %v4635_v46, %v5937_v24 }
 0xaae   : > { %v2916_v5 = vmul.f32 %v4637_v37, %v5914_v36  ;;  %v4639_v32 = vpop.eup %4638 }
 0xaaf   : > { %v2885_v45 = vpop.xlane.xlu0 %2884  ;;  %v6041_v27 = vpop.xlane.xlu1 %2890  ;;  %v2932_v23 = vpack.c.bf16 %v2919_v2, %v2918_v8  ;;  %v2921_v24 = vmul.f32 %v4639_v32, %v5944_v18  ;;  %v4399_v8 = vld [vmem:[%s6429_s8 + $0x8] sm:$0xff]   ;;  %v4400_v2 = vld [vmem:[%s6429_s8 + $0x10] sm:$0xff]  }
 0xab0   : > { %4640 = vrcp.f32 %v2885_v45  ;;  %v2931_v7 = vpack.c.bf16 %v2917_v10, %v2916_v5 }
 0xab1   : > { %4642 = vrcp.f32 %v2879_v34 }
 0xab2   : > { %4644 = vrcp.f32 %v2883_v17 }
 0xab3   : > { %v2951_v44 = vpop.permute.xlu0 %2950  ;;  %v2953_v31 = vpop.permute.xlu1 %2952  ;;  %4646 = vrcp.f32 %v2889_v12 }
 0xab4   : > { %4296 = vmatprep.subr.bf16.mxu1 %v2951_v44  ;;  %4648 = vrcp.f32 %v2887_v13 }
 0xab5   : > { %4297 = vmatpush3.bf16.msra.mxu1 %v2951_v44  ;;  %4650 = vrcp.f32 %v6041_v27 }
 0xab6   : > { %4298 = vmatprep.subr.bf16.mxu1 %v2953_v31 }
 0xab7   : > { %v1952_v55 = vpop.permute.xlu1 %1951 }
 0xab8   : > { %1999 = vst.msk [vmem:[#allocation2 + $0x8] sm:$0xff] %vm1997_vm2, %v1952_v55  ;;  %v4398_v55 = vld [vmem:[%s6429_s8] sm:$0xff]  }
 0xab9   : > { %4299 = vmatpush3.bf16.msra.mxu1 %v2953_v31 }
 0xaba   : > { %v4641_v26 = vpop.eup %4640  ;;  %4316 = vmatprep.subr.bf16.mxu1 %v4398_v55 }
 0xabb   : > { %v1954_v56 = vpop.permute.xlu1 %1953  ;;  %v4643_v59 = vpop.eup %4642  ;;  %v2923_v36 = vmul.f32 %v4641_v26, %v5959_v19 }
 0xabc   : > { %2000 = vst.msk [vmem:[#allocation2 + $0x10] sm:$0xff] %vm1997_vm2, %v1954_v56  ;;  %4301 = vmatmul.mubr.bf16.vlgmr.msra.gmra.mrb[64].mxu1 %v2931_v7  ;;  %v4645_v62 = vpop.eup %4644  ;;  %v2920_v52 = vmul.f32 %v4643_v59, %v5931_v25  ;;  %v4401_v7 = vld [vmem:[%s6429_s8 + $0x18] sm:$0xff]  }
 0xabd   : > { %4304 = vmatprep.mubr.bf16.mxu1 %v2932_v23  ;;  %v2922_v47 = vmul.f32 %v4645_v62, %v5949_v50  ;;  %v4647_v60 = vpop.eup %4646  ;;  %4317 = vmatpush3.bf16.msra.mxu1 %v4398_v55 }
 0xabe   : > { %v2933_v11 = vpack.c.bf16 %v2921_v24, %v2920_v52  ;;  %v4649_v39 = vpop.eup %4648  ;;  %v2925_v18 = vmul.f32 %v4647_v60, %v5953_v4  ;;  %4318 = vmatprep.subr.bf16.mxu1 %v4399_v8 }
 0xabf   : > { %v1956_v30 = vpop.permute.xlu1 %1955  ;;  %v2934_v42 = vpack.c.bf16 %v2923_v36, %v2922_v47  ;;  %v2924_v19 = vmul.f32 %v4649_v39, %v5947_v16  ;;  %v4651_v41 = vpop.eup %4650 }
 0xac0   : > { %2001 = vst.msk [vmem:[#allocation2 + $0x18] sm:$0xff] %vm1997_vm2, %v1956_v30  ;;  %v2926_v20 = vmul.f32 %v4651_v41, %v5961_v15 }
 0xac1   : > { %v2935_v25 = vpack.c.bf16 %v2925_v18, %v2924_v19  ;;  %4319 = vmatpush3.bf16.msra.mxu1 %v4399_v8 }
 0xac2   : > { %4320 = vmatprep.subr.bf16.mxu1 %v4400_v2 }
 0xac3   : > { %v2515_v63 = vpop.permute.xlu1 %2514 }
 0xac4   : > { %2562 = vst.msk [vmem:[#allocation2 + $0x8] sm:$0xff] %vm2560_vm3, %v2515_v63  ;;  %4305 = vmatmul.mubr.bf16.gmra.mrb[68].mxu1 %v2933_v11 }
 0xac5   : > { %4308 = vmatprep.mubr.bf16.mxu1 %v2934_v42  ;;  %4321 = vmatpush3.bf16.msra.mxu1 %v4400_v2 }
 0xac6   : > { %4322 = vmatprep.subr.bf16.mxu1 %v4401_v7 }
 0xac7   : > { %v2519_v43 = vpop.permute.xlu1 %2518 }
 0xac8   : > { %2564 = vst.msk [vmem:[#allocation2 + $0x18] sm:$0xff] %vm2560_vm3, %v2519_v43 }
 0xac9   : > { %4323 = vmatpush3.bf16.msra.mxu1 %v4401_v7  ;;  %v4690_v7 = vld [vmem:[%s4813_s16 + $0x10] sm:$0xff] }
 0xacb   : > { %v1960_v53 = vpop.permute.xlu1 %1959 }
 0xacc   : > { %2003 = vst.msk [vmem:[#allocation2 + $0x28] sm:$0xff] %vm1997_vm2, %v1960_v53  ;;  %4309 = vmatmul.mubr.bf16.gmra.mrb[72].mxu1 %v2935_v25 }
 0xacf   : > { %v1964_v50 = vpop.permute.xlu1 %1963 }
 0xad0   : > { %2005 = vst.msk [vmem:[#allocation2 + $0x38] sm:$0xff] %vm1997_vm2, %v1964_v50 }
 0xad3   : > { %v2523_v54 = vpop.permute.xlu1 %2522 }
 0xad4   : > { %2566 = vst.msk [vmem:[#allocation2 + $0x28] sm:$0xff] %vm2560_vm3, %v2523_v54 }
 0xad7   : > { %v2527_v6 = vpop.permute.xlu1 %2526 }
 0xad8   : > { %2568 = vst.msk [vmem:[#allocation2 + $0x38] sm:$0xff] %vm2560_vm3, %v2527_v6 }
 0xadb   : > { %v1968_v4 = vpop.permute.xlu1 %1967 }
 0xadc   : > { %2007 = vst.msk [vmem:[#allocation2 + $0x48] sm:$0xff] %vm1997_vm2, %v1968_v4 }
 0xadf   : > { %v1972_v22 = vpop.permute.xlu1 %1971 }
 0xae0   : > { %2009 = vst.msk [vmem:[#allocation2 + $0x58] sm:$0xff] %vm1997_vm2, %v1972_v22 }
 0xae3   : > { %v2531_v16 = vpop.permute.xlu1 %2530 }
 0xae4   : > { %2570 = vst.msk [vmem:[#allocation2 + $0x48] sm:$0xff] %vm2560_vm3, %v2531_v16  ;;  %v2893_v0 = vpop.xlane.xlu0 %2892 }
 0xae5   : > { %4652 = vrcp.f32 %v2893_v0 }
 0xae6   : > { %4654 = vrcp.f32 %v6039_v58 }
 0xae7   : > { %v2535_v34 = vpop.permute.xlu1 %2534 }
 0xae8   : > { %2572 = vst.msk [vmem:[#allocation2 + $0x58] sm:$0xff] %vm2560_vm3, %v2535_v34  ;;  %v2897_v35 = vpop.xlane.xlu0 %2896 }
 0xae9   : > { %4656 = vrcp.f32 %v2897_v35 }
 0xaeb   : > { %v1976_v3 = vpop.permute.xlu1 %1975 }
 0xaec   : > { %2011 = vst.msk [vmem:[#allocation2 + $0x68] sm:$0xff] %vm1997_vm2, %v1976_v3  ;;  %v1950_v14 = vpop.permute.xlu0 %1949 }
 0xaed   : > { %1998 = vst.msk [vmem:[#allocation2] sm:$0xff] %vm1997_vm2, %v1950_v14 }
 0xaef   : > { %v4653_v48 = vpop.eup %4652  ;;  %v1980_v61 = vpop.permute.xlu1 %1979 }
 0xaf0   : > { %2013 = vst.msk [vmem:[#allocation2 + $0x78] sm:$0xff] %vm1997_vm2, %v1980_v61  ;;  %v2513_v21 = vpop.permute.xlu0 %2512  ;;  %v2927_v13 = vmul.f32 %v4653_v48, %v5987_v9  ;;  %v4655_v17 = vpop.eup %4654 }
 0xaf1   : > { %2561 = vst.msk [vmem:[#allocation2] sm:$0xff] %vm2560_vm3, %v2513_v21  ;;  %v2928_v58 = vmul.f32 %v4655_v17, %v5955_v28 }
 0xaf2   : > { %v2936_v33 = vpack.c.bf16 %v2927_v13, %v2926_v20 }
 0xaf3   : > { %v4657_v38 = vpop.eup %4656  ;;  %v2539_v1 = vpop.permute.xlu1 %2538 }
 0xaf4   : > { %2574 = vst.msk [vmem:[#allocation2 + $0x68] sm:$0xff] %vm2560_vm3, %v2539_v1  ;;  %v2517_v12 = vpop.permute.xlu0 %2516  ;;  %4312 = vmatprep.mubr.bf16.mxu1 %v2936_v33  ;;  %v2929_v45 = vmul.f32 %v4657_v38, %v5992_v57 }
 0xaf5   : > { %2563 = vst.msk [vmem:[#allocation2 + $0x10] sm:$0xff] %vm2560_vm3, %v2517_v12 }
 0xaf6   : > { %v2937_v27 = vpack.c.bf16 %v2929_v45, %v2928_v58 }
 0xaf8   : > { %v1958_v15 = vpop.permute.xlu0 %1957  ;;  %4313 = vmatmul.mubr.bf16.gmra.mrb[76].mxu1 %v2937_v27 }
 0xaf9   : > { %2002 = vst.msk [vmem:[#allocation2 + $0x20] sm:$0xff] %vm1997_vm2, %v1958_v15 }
 0xafc   : > { %v1962_v9 = vpop.permute.xlu0 %1961 }
 0xafd   : > { %2004 = vst.msk [vmem:[#allocation2 + $0x30] sm:$0xff] %vm1997_vm2, %v1962_v9 }
 0xb00   : > { %v2521_v29 = vpop.permute.xlu0 %2520 }
 0xb01   : > { %2565 = vst.msk [vmem:[#allocation2 + $0x20] sm:$0xff] %vm2560_vm3, %v2521_v29 }
 0xb04   : > { %v2525_v40 = vpop.permute.xlu0 %2524 }
 0xb05   : > { %2567 = vst.msk [vmem:[#allocation2 + $0x30] sm:$0xff] %vm2560_vm3, %v2525_v40 }
 0xb08   : > { %v1966_v44 = vpop.permute.xlu0 %1965 }
 0xb09   : > { %2006 = vst.msk [vmem:[#allocation2 + $0x40] sm:$0xff] %vm1997_vm2, %v1966_v44 }
 0xb0c   : > { %v1970_v28 = vpop.permute.xlu0 %1969 }
 0xb0d   : > { %2008 = vst.msk [vmem:[#allocation2 + $0x50] sm:$0xff] %vm1997_vm2, %v1970_v28 }
 0xb10   : > { %v2529_v57 = vpop.permute.xlu0 %2528 }
 0xb11   : > { %2569 = vst.msk [vmem:[#allocation2 + $0x40] sm:$0xff] %vm2560_vm3, %v2529_v57 }
 0xb14   : > { %v2533_v31 = vpop.permute.xlu0 %2532 }
 0xb15   : > { %2571 = vst.msk [vmem:[#allocation2 + $0x50] sm:$0xff] %vm2560_vm3, %v2533_v31 }
 0xb18   : > { %v1974_v46 = vpop.permute.xlu0 %1973 }
 0xb19   : > { %2010 = vst.msk [vmem:[#allocation2 + $0x60] sm:$0xff] %vm1997_vm2, %v1974_v46 }
 0xb1c   : > { %v1978_v37 = vpop.permute.xlu0 %1977 }
 0xb1d   : > { %2012 = vst.msk [vmem:[#allocation2 + $0x70] sm:$0xff] %vm1997_vm2, %v1978_v37  ;;  %v6150_v37 = vld [vmem:[%s6430_s9] ss:$0 sm:$0xff] }
 0xb20   : > { %v2537_v10 = vpop.permute.xlu0 %2536 }
 0xb21   : > { %2573 = vst.msk [vmem:[#allocation2 + $0x60] sm:$0xff] %vm2560_vm3, %v2537_v10 }
 0xb8f   : > { %v4302_v5 = vpop.f32.mrb[64].mxu1 }
 0xb90   : > { %3079 = vrot.lane.b32.xlu0 %v4302_v5, %s4719_s13  ;;  %v2996_v32 = vpop.f32.mrb[65].mxu1 }
 0xb91   : > { %v4303_v56 = vpop.f32.mrb[66].mxu1 }
 0xb92   : > { %3081 = vrot.lane.b32.xlu1 %v4303_v56, %s4719_s13  ;;  %v2999_v23 = vpop.f32.mrb[67].mxu1 }
 0xb94   : > { %3075 = vrot.lane.b32.xlu0 %v2996_v32, %s4719_s13 }
 0xb96   : > { %3077 = vrot.lane.b32.xlu1 %v2999_v23, %s4719_s13 }
 0xb97   : > { %v4306_v26 = vpop.f32.mrb[68].mxu1 }
 0xb98   : > { %3087 = vrot.lane.b32.xlu0 %v4306_v26, %s4719_s13  ;;  %v3012_v59 = vpop.f32.mrb[69].mxu1 }
 0xb99   : > { %v4307_v62 = vpop.f32.mrb[70].mxu1 }
 0xb9a   : > { %3089 = vrot.lane.b32.xlu1 %v4307_v62, %s4719_s13  ;;  %v3015_v24 = vpop.f32.mrb[71].mxu1 }
 0xb9c   : > { %3083 = vrot.lane.b32.xlu0 %v3012_v59, %s4719_s13  ;;  %v4691_v59 = vld [vmem:[%s4813_s16] sm:$0xff] }
 0xb9e   : > { %3085 = vrot.lane.b32.xlu1 %v3015_v24, %s4719_s13  ;;  %v4692_v24 = vld [vmem:[%s4813_s16 + $0x18] sm:$0xff] }
 0xb9f   : > { %v4310_v30 = vpop.f32.mrb[72].mxu1 }
 0xba0   : > { %3095 = vrot.lane.b32.xlu0 %v4310_v30, %s4719_s13  ;;  %v3028_v36 = vpop.f32.mrb[73].mxu1 }
 0xba1   : > { %v4311_v52 = vpop.f32.mrb[74].mxu1 }
 0xba2   : > { %3097 = vrot.lane.b32.xlu1 %v4311_v52, %s4719_s13  ;;  %v3031_v47 = vpop.f32.mrb[75].mxu1  ;;  %v4693_v52 = vld [vmem:[%s4813_s16 + $0x8] sm:$0xff] }
 0xba4   : > { %3091 = vrot.lane.b32.xlu0 %v3028_v36, %s4719_s13 }
 0xba6   : > { %3093 = vrot.lane.b32.xlu1 %v3031_v47, %s4719_s13 }
 0xba8   : > { %2540 = vrot.lane.b32.xlu0 %v5831_v49, %s4718_s19 }
 0xbaa   : > { %2542 = vrot.lane.b32.xlu1 %v5835_v51, %s4718_s19 }
 0xbcb   : > { %v4314_v11 = vpop.f32.mrb[76].mxu1 }
 0xbcc   : > { %v3044_v60 = vpop.f32.mrb[77].mxu1 }
 0xbcd   : > { %3099 = vrot.lane.b32.xlu0 %v3044_v60, %s4719_s13  ;;  %v4315_v63 = vpop.f32.mrb[78].mxu1 }
 0xbce   : > { %v3047_v42 = vpop.f32.mrb[79].mxu1 }
 0xbcf   : > { %3101 = vrot.lane.b32.xlu1 %v3047_v42, %s4719_s13 }
 0xbd1   : > { %3103 = vrot.lane.b32.xlu0 %v4314_v11, %s4719_s13 }
 0xbd3   : > { %3105 = vrot.lane.b32.xlu1 %v4315_v63, %s4719_s13 }
 0xc02   : > { %v3080_v39 = vpop.permute.xlu0 %3079 }
 0xc03   : > { %3126 = vst.msk [vmem:[#allocation2 + $0x10] sm:$0xff] %vm3123_vm4, %v3080_v39 }
 0xc04   : > { %v3082_v49 = vpop.permute.xlu1 %3081 }
 0xc05   : > { %3127 = vst.msk [vmem:[#allocation2 + $0x18] sm:$0xff] %vm3123_vm4, %v3082_v49 }
 0xc06   : > { %v3076_v51 = vpop.permute.xlu0 %3075 }
 0xc07   : > { %3124 = vst.msk [vmem:[#allocation2] sm:$0xff] %vm3123_vm4, %v3076_v51 }
 0xc08   : > { %v3078_v18 = vpop.permute.xlu1 %3077 }
 0xc09   : > { %3125 = vst.msk [vmem:[#allocation2 + $0x8] sm:$0xff] %vm3123_vm4, %v3078_v18 }
 0xc0a   : > { %v3088_v43 = vpop.permute.xlu0 %3087  ;;  %v3142_v22 = vld [vmem:[#allocation2 + $0x10] sm:$0xff] }
 0xc0b   : > { %3130 = vst.msk [vmem:[#allocation2 + $0x30] sm:$0xff] %vm3123_vm4, %v3088_v43 }
 0xc0c   : > { %v3090_v19 = vpop.permute.xlu1 %3089  ;;  %v3143_v53 = vld [vmem:[#allocation2 + $0x18] sm:$0xff] }
 0xc0d   : > { %3131 = vst.msk [vmem:[#allocation2 + $0x38] sm:$0xff] %vm3123_vm4, %v3090_v19  ;;  %v3157_v0 = vpack.c.bf16 %v3143_v53, %v3142_v22 }
 0xc0e   : > { %v3084_v25 = vpop.permute.xlu0 %3083  ;;  %v3140_v54 = vld [vmem:[#allocation2] sm:$0xff] }
 0xc0f   : > { %3128 = vst.msk [vmem:[#allocation2 + $0x20] sm:$0xff] %vm3123_vm4, %v3084_v25 }
 0xc10   : > { %v3086_v50 = vpop.permute.xlu1 %3085  ;;  %v3141_v6 = vld [vmem:[#allocation2 + $0x8] sm:$0xff] }
 0xc11   : > { %3129 = vst.msk [vmem:[#allocation2 + $0x28] sm:$0xff] %vm3123_vm4, %v3086_v50  ;;  %v3156_v4 = vpack.c.bf16 %v3141_v6, %v3140_v54  ;;  %v4694_v50 = vld [vmem:[%s4813_s16 + $0x38] sm:$0xff] }
 0xc12   : > { %v3096_v16 = vpop.permute.xlu0 %3095  ;;  %v3146_v21 = vld [vmem:[#allocation2 + $0x30] sm:$0xff] }
 0xc13   : > { %3134 = vst.msk [vmem:[#allocation2 + $0x50] sm:$0xff] %vm3123_vm4, %v3096_v16  ;;  %4324 = vmatprep.mubr.msk.bf16.mxu1 %vm498_vm0, %v3156_v4 }
 0xc14   : > { %4325 = vmatmul.mubr.msk.bf16.vlgmr.msra.gmra.mrb[80].mxu1 %vm498_vm0, %v3157_v0  ;;  %v3098_v34 = vpop.permute.xlu1 %3097  ;;  %v3147_v3 = vld [vmem:[#allocation2 + $0x38] sm:$0xff] }
 0xc15   : > { %3135 = vst.msk [vmem:[#allocation2 + $0x58] sm:$0xff] %vm3123_vm4, %v3098_v34  ;;  %v3159_v13 = vpack.c.bf16 %v3147_v3, %v3146_v21  ;;  %v4696_v21 = vld [vmem:[%s4813_s16 + $0x30] sm:$0xff] }
 0xc16   : > { %v3092_v35 = vpop.permute.xlu0 %3091  ;;  %v3144_v41 = vld [vmem:[#allocation2 + $0x20] sm:$0xff] }
 0xc17   : > { %3132 = vst.msk [vmem:[#allocation2 + $0x40] sm:$0xff] %vm3123_vm4, %v3092_v35 }
 0xc18   : > { %v3094_v14 = vpop.permute.xlu1 %3093  ;;  %v3145_v48 = vld [vmem:[#allocation2 + $0x28] sm:$0xff] }
 0xc19   : > { %3133 = vst.msk [vmem:[#allocation2 + $0x48] sm:$0xff] %vm3123_vm4, %v3094_v14  ;;  %v3158_v61 = vpack.c.bf16 %v3145_v48, %v3144_v41  ;;  %v4695_v41 = vld [vmem:[%s4813_s16 + $0x28] sm:$0xff] }
 0xc1a   : > { %v2541_v20 = vpop.permute.xlu0 %2540  ;;  %v3150_v58 = vld [vmem:[#allocation2 + $0x50] sm:$0xff] }
 0xc1b   : > { %2575 = vst.msk [vmem:[#allocation2 + $0x70] sm:$0xff] %vm2560_vm3, %v2541_v20  ;;  %4328 = vmatprep.mubr.msk.bf16.mxu1 %vm498_vm0, %v3158_v61 }
 0xc1c   : > { %4329 = vmatmul.mubr.msk.bf16.gmra.mrb[84].mxu1 %vm498_vm0, %v3159_v13  ;;  %v2543_v17 = vpop.permute.xlu1 %2542  ;;  %v3151_v33 = vld [vmem:[#allocation2 + $0x58] sm:$0xff] }
 0xc1d   : > { %2576 = vst.msk [vmem:[#allocation2 + $0x78] sm:$0xff] %vm2560_vm3, %v2543_v17  ;;  %v3161_v45 = vpack.c.bf16 %v3151_v33, %v3150_v58 }
 0xc1e   : > { %v3148_v38 = vld [vmem:[#allocation2 + $0x40] sm:$0xff] }
 0xc20   : > { %v3149_v1 = vld [vmem:[#allocation2 + $0x48] sm:$0xff] }
 0xc21   : > { %v3160_v12 = vpack.c.bf16 %v3149_v1, %v3148_v38  ;;  %v4697_v1 = vld [vmem:[%s4813_s16 + $0x20] sm:$0xff] }
 0xc23   : > { %4332 = vmatprep.mubr.msk.bf16.mxu1 %vm498_vm0, %v3160_v12 }
 0xc24   : > { %4333 = vmatmul.mubr.msk.bf16.gmra.mrb[88].mxu1 %vm498_vm0, %v3161_v45 }
 0xc3f   : > { %v3100_v27 = vpop.permute.xlu0 %3099 }
 0xc40   : > { %3136 = vst.msk [vmem:[#allocation2 + $0x60] sm:$0xff] %vm3123_vm4, %v3100_v27 }
 0xc41   : > { %v3102_v15 = vpop.permute.xlu1 %3101 }
 0xc42   : > { %3137 = vst.msk [vmem:[#allocation2 + $0x68] sm:$0xff] %vm3123_vm4, %v3102_v15 }
 0xc43   : > { %v3104_v9 = vpop.permute.xlu0 %3103 }
 0xc44   : > { %3138 = vst.msk [vmem:[#allocation2 + $0x70] sm:$0xff] %vm3123_vm4, %v3104_v9 }
 0xc45   : > { %v3106_v29 = vpop.permute.xlu1 %3105 }
 0xc46   : > { %3139 = vst.msk [vmem:[#allocation2 + $0x78] sm:$0xff] %vm3123_vm4, %v3106_v29 }
 0xc47   : > { %v3152_v40 = vld [vmem:[#allocation2 + $0x60] sm:$0xff] }
 0xc49   : > { %v3153_v44 = vld [vmem:[#allocation2 + $0x68] sm:$0xff] }
 0xc4a   : > { %v3162_v28 = vpack.c.bf16 %v3153_v44, %v3152_v40  ;;  %v4698_v40 = vld [vmem:[%s4813_s16 + $0x58] sm:$0xff] }
 0xc4b   : > { %v3154_v57 = vld [vmem:[#allocation2 + $0x70] sm:$0xff] }
 0xc4c   : > { %4336 = vmatprep.mubr.msk.bf16.mxu1 %vm498_vm0, %v3162_v28 }
 0xc4d   : > { %v3155_v31 = vld [vmem:[#allocation2 + $0x78] sm:$0xff] }
 0xc4e   : > { %v3163_v46 = vpack.c.bf16 %v3155_v31, %v3154_v57 }
 0xc50   : > { %4337 = vmatmul.mubr.msk.bf16.gmra.mrb[92].mxu1 %vm498_vm0, %v3163_v46 }
 0xce7   : > { %v4326_v10 = vpop.f32.mrb[80].mxu1 }
 0xce8   : > { %v3270_v55 = vadd.f32 %v4326_v10, %v6150_v37  ;;  %v3261_v8 = vpop.f32.mrb[81].mxu1 }
 0xce9   : > { %v3262_v2 = vadd.f32 %v6150_v37, %v3261_v8  ;;  %v4327_v5 = vpop.f32.mrb[82].mxu1 }
 0xcea   : > { %v6155_v32 = vadd.f32 %v4690_v7, %v3270_v55  ;;  %v3273_v56 = vadd.f32 %v4327_v5, %v6150_v37  ;;  %v3264_v23 = vpop.f32.mrb[83].mxu1  ;;  %v4699_v55 = vld [vmem:[%s4813_s16 + $0x48] sm:$0xff]  ;;  %v4700_v5 = vld [vmem:[%s4813_s16 + $0x50] sm:$0xff] }
 0xceb   : > { %v3265_v26 = vadd.f32 %v6150_v37, %v3264_v23  ;;  %v6160_v62 = vadd.f32 %v4691_v59, %v3262_v2 }
 0xcec   : > { %v6163_v30 = vadd.f32 %v4692_v24, %v3273_v56  ;;  %v3346_v36 = vsel %vm498_vm0, %v6155_v32, 0.0  ;;  %v3407_v53 = vmul.f32 %v6155_v32, %v6155_v32  ;;  %v4701_v24 = vld [vmem:[%s4813_s16 + $0x40] sm:$0xff] }
 0xced   : > { %v6168_v47 = vadd.f32 %v4693_v52, %v3265_v26  ;;  %3347 = vadd.xlane.f32.xlu0 %v3346_v36  ;;  %v3340_v39 = vsel %vm498_vm0, %v6160_v62, 0.0  ;;  %v3405_v35 = vmul.f32 %v6160_v62, %v6160_v62 }
 0xcee   : > { %v3408_v63 = vmul.f32 %v6163_v30, %v6163_v30  ;;  %v3349_v25 = vsel %vm498_vm0, %v6163_v30, 0.0  ;;  %v3427_v34 = vsel %vm498_vm0, %v3407_v53, 0.0 }
 0xcef   : > { %v4330_v11 = vpop.f32.mrb[84].mxu1  ;;  %v3343_v60 = vsel %vm498_vm0, %v6168_v47, 0.0  ;;  %v3406_v19 = vmul.f32 %v6168_v47, %v6168_v47  ;;  %v3421_v17 = vsel %vm498_vm0, %v3405_v35, 0.0 }
 0xcf0   : > { %3344 = vadd.xlane.f32.xlu1 %v3343_v60  ;;  %v3277_v42 = vpop.f32.mrb[85].mxu1  ;;  %v3430_v43 = vsel %vm498_vm0, %v3408_v63, 0.0  ;;  %v3286_v16 = vadd.f32 %v4330_v11, %v6150_v37 }
 0xcf1   : > { %3341 = vadd.xlane.f32.xlu0 %v3340_v39  ;;  %v4331_v49 = vpop.f32.mrb[86].mxu1  ;;  %v3424_v22 = vsel %vm498_vm0, %v3406_v19, 0.0  ;;  %v3278_v13 = vadd.f32 %v6150_v37, %v3277_v42 }
 0xcf2   : > { %v3280_v51 = vpop.f32.mrb[87].mxu1  ;;  %v3289_v18 = vadd.f32 %v4331_v49, %v6150_v37  ;;  %v6199_v20 = vadd.f32 %v4696_v21, %v3286_v16 }
 0xcf3   : > { %v3281_v6 = vadd.f32 %v6150_v37, %v3280_v51  ;;  %v6208_v12 = vadd.f32 %v4697_v1, %v3278_v13 }
 0xcf4   : > { %3431 = vadd.xlane.f32.xlu1 %v3430_v43  ;;  %v6185_v54 = vadd.f32 %v4694_v50, %v3289_v18  ;;  %v3358_v58 = vsel %vm498_vm0, %v6199_v20, 0.0  ;;  %v3411_v29 = vmul.f32 %v6199_v20, %v6199_v20 }
 0xcf5   : > { %3350 = vadd.xlane.f32.xlu0 %v3349_v25  ;;  %v6194_v48 = vadd.f32 %v4695_v41, %v3281_v6  ;;  %v3352_v9 = vsel %vm498_vm0, %v6208_v12, 0.0  ;;  %v3409_v10 = vmul.f32 %v6208_v12, %v6208_v12  ;;  %v4702_v6 = vld [vmem:[%s4813_s16 + $0x70] sm:$0xff] }
 0xcf6   : > { %v3361_v61 = vsel %vm498_vm0, %v6185_v54, 0.0  ;;  %v3412_v38 = vmul.f32 %v6185_v54, %v6185_v54  ;;  %v3439_v46 = vsel %vm498_vm0, %v3411_v29, 0.0 }
 0xcf7   : > { %v4334_v4 = vpop.f32.mrb[88].mxu1  ;;  %v3355_v33 = vsel %vm498_vm0, %v6194_v48, 0.0  ;;  %v3410_v15 = vmul.f32 %v6194_v48, %v6194_v48  ;;  %v3433_v23 = vsel %vm498_vm0, %v3409_v10, 0.0 }
 0xcf8   : > { %3425 = vadd.xlane.f32.xlu1 %v3424_v22  ;;  %v3293_v0 = vpop.f32.mrb[89].mxu1  ;;  %v3442_v27 = vsel %vm498_vm0, %v3412_v38, 0.0  ;;  %v3302_v31 = vadd.f32 %v4334_v4, %v6150_v37 }
 0xcf9   : > { %3428 = vadd.xlane.f32.xlu0 %v3427_v34  ;;  %v4335_v3 = vpop.f32.mrb[90].mxu1  ;;  %v3436_v57 = vsel %vm498_vm0, %v3410_v15, 0.0  ;;  %v3294_v56 = vadd.f32 %v6150_v37, %v3293_v0  ;;  %v4703_v34 = vld [vmem:[%s4813_s16 + $0x60] sm:$0xff] }
 0xcfa   : > { %v3296_v14 = vpop.f32.mrb[91].mxu1  ;;  %v3305_v45 = vadd.f32 %v4335_v3, %v6150_v37  ;;  %v6235_v7 = vadd.f32 %v4700_v5, %v3302_v31  ;;  %v4704_v3 = vld [vmem:[%s4813_s16 + $0x78] sm:$0xff] }
 0xcfb   : > { %v3297_v28 = vadd.f32 %v6150_v37, %v3296_v14  ;;  %v6244_v36 = vadd.f32 %v4701_v24, %v3294_v56 }
 0xcfc   : > { %3362 = vadd.xlane.f32.xlu1 %v3361_v61  ;;  %v6221_v44 = vadd.f32 %v4698_v40, %v3305_v45  ;;  %v3370_v52 = vsel %vm498_vm0, %v6235_v7, 0.0  ;;  %v3415_v42 = vmul.f32 %v6235_v7, %v6235_v7  ;;  %v4705_v61 = vld [vmem:[%s4813_s16 + $0x68] sm:$0xff] }
 0xcfd   : > { %3422 = vadd.xlane.f32.xlu0 %v3421_v17  ;;  %v6230_v8 = vadd.f32 %v4699_v55, %v3297_v28  ;;  %v3364_v63 = vsel %vm498_vm0, %v6244_v36, 0.0  ;;  %v3413_v51 = vmul.f32 %v6244_v36, %v6244_v36 }
 0xcfe   : > { %v3373_v2 = vsel %vm498_vm0, %v6221_v44, 0.0  ;;  %v3416_v59 = vmul.f32 %v6221_v44, %v6221_v44  ;;  %v3451_v49 = vsel %vm498_vm0, %v3415_v42, 0.0 }
 0xcff   : > { %v3367_v26 = vsel %vm498_vm0, %v6230_v8, 0.0  ;;  %v3414_v60 = vmul.f32 %v6230_v8, %v6230_v8  ;;  %v3445_v18 = vsel %vm498_vm0, %v3413_v51, 0.0 }
 0xd00   : > { %3356 = vadd.xlane.f32.xlu1 %v3355_v33  ;;  %v3454_v11 = vsel %vm498_vm0, %v3416_v59, 0.0 }
 0xd01   : > { %3359 = vadd.xlane.f32.xlu0 %v3358_v58  ;;  %v3448_v39 = vsel %vm498_vm0, %v3414_v60, 0.0 }
 0xd04   : > { %3443 = vadd.xlane.f32.xlu1 %v3442_v27 }
 0xd05   : > { %3353 = vadd.xlane.f32.xlu0 %v3352_v9 }
 0xd08   : > { %3437 = vadd.xlane.f32.xlu1 %v3436_v57 }
 0xd09   : > { %3440 = vadd.xlane.f32.xlu0 %v3439_v46 }
 0xd0c   : > { %3374 = vadd.xlane.f32.xlu1 %v3373_v2 }
 0xd0d   : > { %3434 = vadd.xlane.f32.xlu0 %v3433_v23 }
 0xd10   : > { %3368 = vadd.xlane.f32.xlu1 %v3367_v26 }
 0xd11   : > { %3371 = vadd.xlane.f32.xlu0 %v3370_v52 }
 0xd14   : > { %3455 = vadd.xlane.f32.xlu1 %v3454_v11 }
 0xd15   : > { %3365 = vadd.xlane.f32.xlu0 %v3364_v63 }
 0xd18   : > { %3449 = vadd.xlane.f32.xlu1 %v3448_v39 }
 0xd19   : > { %3452 = vadd.xlane.f32.xlu0 %v3451_v49 }
 0xd1d   : > { %3446 = vadd.xlane.f32.xlu0 %v3445_v18 }
 0xd23   : > { %v4338_v43 = vpop.f32.mrb[92].mxu1 }
 0xd24   : > { %v3318_v19 = vadd.f32 %v4338_v43, %v6150_v37  ;;  %v3309_v25 = vpop.f32.mrb[93].mxu1 }
 0xd25   : > { %v3310_v53 = vadd.f32 %v6150_v37, %v3309_v25  ;;  %v4339_v50 = vpop.f32.mrb[94].mxu1 }
 0xd26   : > { %v6263_v4 = vadd.f32 %v4702_v6, %v3318_v19  ;;  %v3321_v22 = vadd.f32 %v4339_v50, %v6150_v37  ;;  %v3312_v16 = vpop.f32.mrb[95].mxu1 }
 0xd27   : > { %v3313_v0 = vadd.f32 %v6150_v37, %v3312_v16  ;;  %v6268_v35 = vadd.f32 %v4703_v34, %v3310_v53 }
 0xd28   : > { %v6271_v14 = vadd.f32 %v4704_v3, %v3321_v22  ;;  %v3382_v41 = vsel %vm498_vm0, %v6263_v4, 0.0  ;;  %v3419_v58 = vmul.f32 %v6263_v4, %v6263_v4 }
 0xd29   : > { %3383 = vadd.xlane.f32.xlu0 %v3382_v41  ;;  %v6276_v21 = vadd.f32 %v4705_v61, %v3313_v0  ;;  %v3376_v37 = vsel %vm498_vm0, %v6268_v35, 0.0  ;;  %v3417_v17 = vmul.f32 %v6268_v35, %v6268_v35 }
 0xd2a   : > { %v3385_v13 = vsel %vm498_vm0, %v6271_v14, 0.0  ;;  %v3420_v27 = vmul.f32 %v6271_v14, %v6271_v14  ;;  %v3463_v15 = vsel %vm498_vm0, %v3419_v58, 0.0  ;;  %v6314_v58 = vld [vmem:[%s6431_s10] ss:$0 sm:$0xff] }
 0xd2b   : > { %3386 = vadd.xlane.f32.xlu1 %v3385_v13  ;;  %v3379_v33 = vsel %vm498_vm0, %v6276_v21, 0.0  ;;  %v3418_v38 = vmul.f32 %v6276_v21, %v6276_v21  ;;  %v3457_v1 = vsel %vm498_vm0, %v3417_v17, 0.0 }
 0xd2c   : > { %v3466_v9 = vsel %vm498_vm0, %v3420_v27, 0.0 }
 0xd2d   : > { %3377 = vadd.xlane.f32.xlu0 %v3376_v37  ;;  %v3460_v45 = vsel %vm498_vm0, %v3418_v38, 0.0 }
 0xd2f   : > { %3380 = vadd.xlane.f32.xlu1 %v3379_v33 }
 0xd31   : > { %3458 = vadd.xlane.f32.xlu0 %v3457_v1 }
 0xd33   : > { %3461 = vadd.xlane.f32.xlu1 %v3460_v45 }
 0xd35   : > { %3464 = vadd.xlane.f32.xlu0 %v3463_v15 }
 0xd37   : > { %3467 = vadd.xlane.f32.xlu1 %v3466_v9 }
 0xd7a   : > { %v3348_v29 = vpop.xlane.xlu0 %3347 }
 0xd7b   : > { %v3391_v10 = vmul.f32 0.015625, %v3348_v29 }
 0xd7d   : > { %v3345_v40 = vpop.xlane.xlu1 %3344  ;;  %v3487_v24 = vmul.f32 %v3391_v10, %v3391_v10  ;;  %v3519_v38 = vsub.f32 %v6155_v32, %v3391_v10  ;;  %v6321_v32 = vld [vmem:[%s6432_s11] ss:$0 sm:$0xff] }
 0xd7e   : > { %v3342_v28 = vpop.xlane.xlu0 %3341  ;;  %v3390_v31 = vmul.f32 0.015625, %v3345_v40 }
 0xd7f   : > { %v6296_v52 = vmul.f32 0.015625, %v3342_v28 }
 0xd80   : > { %v3486_v23 = vmul.f32 %v3390_v31, %v3390_v31  ;;  %v3518_v1 = vsub.f32 %v6168_v47, %v3390_v31 }
 0xd81   : > { %v3432_v57 = vpop.xlane.xlu1 %3431  ;;  %v3485_v43 = vmul.f32 %v6296_v52, %v6296_v52 }
 0xd82   : > { %v3351_v46 = vpop.xlane.xlu0 %3350  ;;  %v3472_v2 = vmul.f32 0.015625, %v3432_v57 }
 0xd83   : > { %v3392_v55 = vmul.f32 0.015625, %v3351_v46 }
 0xd85   : > { %v3488_v5 = vmul.f32 %v3392_v55, %v3392_v55  ;;  %v3426_v56 = vpop.xlane.xlu1 %3425  ;;  %v3520_v37 = vsub.f32 %v6163_v30, %v3392_v55 }
 0xd86   : > { %v3470_v26 = vmul.f32 0.015625, %v3426_v56  ;;  %v3429_v59 = vpop.xlane.xlu0 %3428 }
 0xd87   : > { %v3504_v11 = vsub.f32 %v3472_v2, %v3488_v5  ;;  %v3471_v60 = vmul.f32 0.015625, %v3429_v59 }
 0xd88   : > { %v3502_v63 = vsub.f32 %v3470_v26, %v3486_v23  ;;  %v3517_v26 = vsub.f32 %v6160_v62, %v6296_v52 }
 0xd89   : > { %v3536_v42 = vadd.f32 1e-05, %v3504_v11  ;;  %v3503_v39 = vsub.f32 %v3471_v60, %v3487_v24  ;;  %v3363_v49 = vpop.xlane.xlu1 %3362 }
 0xd8a   : > { %v3534_v51 = vadd.f32 1e-05, %v3502_v63  ;;  %v3423_v18 = vpop.xlane.xlu0 %3422  ;;  %v6300_v6 = vmul.f32 0.015625, %v3363_v49 }
 0xd8b   : > { %4658 = vrsqrt.f32 %v3536_v42  ;;  %v3535_v19 = vadd.f32 1e-05, %v3503_v39  ;;  %v3469_v25 = vmul.f32 0.015625, %v3423_v18 }
 0xd8c   : > { %4660 = vrsqrt.f32 %v3534_v51  ;;  %v3492_v34 = vmul.f32 %v6300_v6, %v6300_v6 }
 0xd8d   : > { %4662 = vrsqrt.f32 %v3535_v19  ;;  %v3501_v53 = vsub.f32 %v3469_v25, %v3485_v43  ;;  %v3357_v50 = vpop.xlane.xlu1 %3356 }
 0xd8e   : > { %v3360_v22 = vpop.xlane.xlu0 %3359  ;;  %v6304_v3 = vmul.f32 0.015625, %v3357_v50 }
 0xd8f   : > { %v3533_v16 = vadd.f32 1e-05, %v3501_v53  ;;  %v6306_v13 = vmul.f32 0.015625, %v3360_v22 }
 0xd90   : > { %v3490_v9 = vmul.f32 %v6304_v3, %v6304_v3 }
 0xd91   : > { %4664 = vrsqrt.f32 %v3533_v16  ;;  %v3444_v0 = vpop.xlane.xlu1 %3443  ;;  %v3491_v57 = vmul.f32 %v6306_v13, %v6306_v13  ;;  %v3524_v16 = vsub.f32 %v6185_v54, %v6300_v6 }
 0xd92   : > { %v3476_v41 = vmul.f32 0.015625, %v3444_v0  ;;  %v3354_v61 = vpop.xlane.xlu0 %3353 }
 0xd93   : > { %v6325_v31 = vmul.f32 0.015625, %v3354_v61 }
 0xd94   : > { %v3508_v17 = vsub.f32 %v3476_v41, %v3492_v34 }
 0xd95   : > { %v4659_v33 = vpop.eup %4658  ;;  %v3438_v45 = vpop.xlane.xlu1 %3437  ;;  %v3489_v39 = vmul.f32 %v6325_v31, %v6325_v31 }
 0xd96   : > { %v4661_v27 = vpop.eup %4660  ;;  %v3568_v15 = vmul.f32 %v4659_v33, %v3520_v37  ;;  %v3540_v29 = vadd.f32 1e-05, %v3508_v17  ;;  %v3474_v30 = vmul.f32 0.015625, %v3438_v45  ;;  %v3441_v40 = vpop.xlane.xlu0 %3440  ;;  %v3522_v45 = vsub.f32 %v6194_v48, %v6304_v3 }
 0xd97   : > { %v4663_v28 = vpop.eup %4662  ;;  %v3566_v47 = vmul.f32 %v4661_v27, %v3518_v1  ;;  %v3475_v46 = vmul.f32 0.015625, %v3441_v40  ;;  %v3523_v27 = vsub.f32 %v6199_v20, %v6306_v13 }
 0xd98   : > { %v3591_v10 = vmul.f32 %v6314_v58, %v3568_v15  ;;  %v3567_v55 = vmul.f32 %v4663_v28, %v3519_v38  ;;  %4666 = vrsqrt.f32 %v3540_v29  ;;  %v3506_v2 = vsub.f32 %v3474_v30, %v3490_v9 }
 0xd99   : > { %v3589_v5 = vmul.f32 %v6314_v58, %v3566_v47  ;;  %v3507_v56 = vsub.f32 %v3475_v46, %v3491_v57  ;;  %v3375_v23 = vpop.xlane.xlu1 %3374 }
 0xd9a   : > { %v3614_v59 = vadd.f32 %v6321_v32, %v3591_v10  ;;  %v3590_v24 = vmul.f32 %v6314_v58, %v3567_v55  ;;  %v3538_v11 = vadd.f32 1e-05, %v3506_v2  ;;  %v3435_v60 = vpop.xlane.xlu0 %3434  ;;  %v3400_v25 = vmul.f32 0.015625, %v3375_v23 }
 0xd9b   : > { %v4665_v63 = vpop.eup %4664  ;;  %v3612_v42 = vadd.f32 %v6321_v32, %v3589_v5  ;;  %v3539_v49 = vadd.f32 1e-05, %v3507_v56  ;;  %v3473_v51 = vmul.f32 0.015625, %v3435_v60  ;;  %v3521_v2 = vsub.f32 %v6208_v12, %v6325_v31 }
 0xd9c   : > { %3630 = vst.msk [vmem:[%s6333_s24 + $0x18] sm:$0xff] %vm498_vm0, %v3614_v59  ;;  %v3613_v18 = vadd.f32 %v6321_v32, %v3590_v24  ;;  %v3565_v62 = vmul.f32 %v4665_v63, %v3517_v26  ;;  %4668 = vrsqrt.f32 %v3538_v11  ;;  %v3496_v41 = vmul.f32 %v3400_v25, %v3400_v25 }
 0xd9d   : > { %3628 = vst.msk [vmem:[%s6333_s24 + $0x8] sm:$0xff] %vm498_vm0, %v3612_v42  ;;  %4670 = vrsqrt.f32 %v3539_v49  ;;  %v3505_v52 = vsub.f32 %v3473_v51, %v3489_v39  ;;  %v3369_v43 = vpop.xlane.xlu1 %3368  ;;  %v3528_v51 = vsub.f32 %v6221_v44, %v3400_v25 }
 0xd9e   : > { %3629 = vst.msk [vmem:[%s6333_s24 + $0x10] sm:$0xff] %vm498_vm0, %v3613_v18  ;;  %v3588_v19 = vmul.f32 %v6314_v58, %v3565_v62  ;;  %v3372_v53 = vpop.xlane.xlu0 %3371  ;;  %v3398_v61 = vmul.f32 0.015625, %v3369_v43 }
 0xd9f   : > { %v3537_v50 = vadd.f32 1e-05, %v3505_v52  ;;  %v3399_v37 = vmul.f32 0.015625, %v3372_v53 }
 0xda0   : > { %v3611_v22 = vadd.f32 %v6321_v32, %v3588_v19  ;;  %v3494_v9 = vmul.f32 %v3398_v61, %v3398_v61  ;;  %v3526_v52 = vsub.f32 %v6230_v8, %v3398_v61 }
 0xda1   : > { %4672 = vrsqrt.f32 %v3537_v50  ;;  %v3456_v0 = vpop.xlane.xlu1 %3455  ;;  %v3495_v29 = vmul.f32 %v3399_v37, %v3399_v37  ;;  %v3527_v53 = vsub.f32 %v6235_v7, %v3399_v37 }
 0xda2   : > { %v4667_v34 = vpop.eup %4666  ;;  %3627 = vst.msk [vmem:[%s6333_s24] sm:$0xff] %vm498_vm0, %v3611_v22  ;;  %v3480_v17 = vmul.f32 0.015625, %v3456_v0  ;;  %v3366_v33 = vpop.xlane.xlu0 %3365 }
 0xda3   : > { %v3572_v38 = vmul.f32 %v4667_v34, %v3524_v16  ;;  %v3397_v10 = vmul.f32 0.015625, %v3366_v33 }
 0xda4   : > { %v3512_v1 = vsub.f32 %v3480_v17, %v3496_v41 }
 0xda5   : > { %v3595_v54 = vmul.f32 %v6314_v58, %v3572_v38  ;;  %v3450_v6 = vpop.xlane.xlu1 %3449  ;;  %v3493_v24 = vmul.f32 %v3397_v10, %v3397_v10  ;;  %v3525_v8 = vsub.f32 %v6244_v36, %v3397_v10 }
 0xda6   : > { %v4669_v15 = vpop.eup %4668  ;;  %v3544_v30 = vadd.f32 1e-05, %v3512_v1  ;;  %v3478_v40 = vmul.f32 0.015625, %v3450_v6  ;;  %v3453_v28 = vpop.xlane.xlu0 %3452 }
 0xda7   : > { %v4671_v47 = vpop.eup %4670  ;;  %v3618_v57 = vadd.f32 %v6321_v32, %v3595_v54  ;;  %v3570_v46 = vmul.f32 %v4669_v15, %v3522_v45  ;;  %v3479_v55 = vmul.f32 0.015625, %v3453_v28 }
 0xda8   : > { %v3571_v48 = vmul.f32 %v4671_v47, %v3523_v27  ;;  %4674 = vrsqrt.f32 %v3544_v30  ;;  %v3510_v3 = vsub.f32 %v3478_v40, %v3494_v9 }
 0xda9   : > { %3634 = vst.msk [vmem:[%s6333_s24 + $0x38] sm:$0xff] %vm498_vm0, %v3618_v57  ;;  %v3593_v20 = vmul.f32 %v6314_v58, %v3570_v46  ;;  %v3511_v13 = vsub.f32 %v3479_v55, %v3495_v29 }
 0xdaa   : > { %v3594_v5 = vmul.f32 %v6314_v58, %v3571_v48  ;;  %v3542_v56 = vadd.f32 1e-05, %v3510_v3  ;;  %v3447_v23 = vpop.xlane.xlu0 %3446 }
 0xdab   : > { %v4673_v26 = vpop.eup %4672  ;;  %v3616_v59 = vadd.f32 %v6321_v32, %v3593_v20  ;;  %v3543_v11 = vadd.f32 1e-05, %v3511_v13  ;;  %v3477_v60 = vmul.f32 0.015625, %v3447_v23 }
 0xdac   : > { %v3617_v63 = vadd.f32 %v6321_v32, %v3594_v5  ;;  %v3569_v42 = vmul.f32 %v4673_v26, %v3521_v2  ;;  %4676 = vrsqrt.f32 %v3542_v56 }
 0xdad   : > { %3632 = vst.msk [vmem:[%s6333_s24 + $0x28] sm:$0xff] %vm498_vm0, %v3616_v59  ;;  %4678 = vrsqrt.f32 %v3543_v11  ;;  %v3509_v39 = vsub.f32 %v3477_v60, %v3493_v24 }
 0xdae   : > { %3633 = vst.msk [vmem:[%s6333_s24 + $0x30] sm:$0xff] %vm498_vm0, %v3617_v63  ;;  %v3592_v12 = vmul.f32 %v6314_v58, %v3569_v42 }
 0xdaf   : > { %v3541_v31 = vadd.f32 1e-05, %v3509_v39 }
 0xdb0   : > { %v3615_v49 = vadd.f32 %v6321_v32, %v3592_v12 }
 0xdb1   : > { %4680 = vrsqrt.f32 %v3541_v31 }
 0xdb2   : > { %v4675_v18 = vpop.eup %4674  ;;  %3631 = vst.msk [vmem:[%s6333_s24 + $0x20] sm:$0xff] %vm498_vm0, %v3615_v49 }
 0xdb3   : > { %v3576_v62 = vmul.f32 %v4675_v18, %v3528_v51 }
 0xdb5   : > { %v3599_v43 = vmul.f32 %v6314_v58, %v3576_v62 }
 0xdb6   : > { %v4677_v19 = vpop.eup %4676  ;;  %v3384_v50 = vpop.xlane.xlu0 %3383 }
 0xdb7   : > { %v4679_v22 = vpop.eup %4678  ;;  %v3622_v16 = vadd.f32 %v6321_v32, %v3599_v43  ;;  %v3574_v0 = vmul.f32 %v4677_v19, %v3526_v52  ;;  %v3403_v54 = vmul.f32 0.015625, %v3384_v50 }
 0xdb8   : > { %v3575_v44 = vmul.f32 %v4679_v22, %v3527_v53  ;;  %v3387_v25 = vpop.xlane.xlu1 %3386 }
 0xdb9   : > { %3638 = vst.msk [vmem:[%s6333_s24 + $0x58] sm:$0xff] %vm498_vm0, %v3622_v16  ;;  %v3597_v34 = vmul.f32 %v6314_v58, %v3574_v0  ;;  %v3404_v29 = vmul.f32 0.015625, %v3387_v25  ;;  %v3499_v46 = vmul.f32 %v3403_v54, %v3403_v54  ;;  %v3531_v42 = vsub.f32 %v6263_v4, %v3403_v54 }
 0xdba   : > { %v3598_v41 = vmul.f32 %v6314_v58, %v3575_v44  ;;  %v3378_v61 = vpop.xlane.xlu0 %3377 }
 0xdbb   : > { %v4681_v17 = vpop.eup %4680  ;;  %v3620_v7 = vadd.f32 %v6321_v32, %v3597_v34  ;;  %v3401_v37 = vmul.f32 0.015625, %v3378_v61  ;;  %v3500_v3 = vmul.f32 %v3404_v29, %v3404_v29  ;;  %v3532_v49 = vsub.f32 %v6271_v14, %v3404_v29 }
 0xdbc   : > { %v3621_v33 = vadd.f32 %v6321_v32, %v3598_v41  ;;  %v3573_v38 = vmul.f32 %v4681_v17, %v3525_v8  ;;  %v3381_v1 = vpop.xlane.xlu1 %3380 }
 0xdbd   : > { %3636 = vst.msk [vmem:[%s6333_s24 + $0x48] sm:$0xff] %vm498_vm0, %v3620_v7  ;;  %v3402_v45 = vmul.f32 0.015625, %v3381_v1  ;;  %v3497_v6 = vmul.f32 %v3401_v37, %v3401_v37  ;;  %v3529_v59 = vsub.f32 %v6268_v35, %v3401_v37 }
 0xdbe   : > { %3637 = vst.msk [vmem:[%s6333_s24 + $0x50] sm:$0xff] %vm498_vm0, %v3621_v33  ;;  %v3596_v27 = vmul.f32 %v6314_v58, %v3573_v38  ;;  %v3459_v36 = vpop.xlane.xlu0 %3458 }
 0xdbf   : > { %v3481_v15 = vmul.f32 0.015625, %v3459_v36  ;;  %v3498_v40 = vmul.f32 %v3402_v45, %v3402_v45  ;;  %v3530_v11 = vsub.f32 %v6276_v21, %v3402_v45 }
 0xdc0   : > { %v3619_v9 = vadd.f32 %v6321_v32, %v3596_v27  ;;  %v3462_v30 = vpop.xlane.xlu1 %3461 }
 0xdc1   : > { %v3513_v28 = vsub.f32 %v3481_v15, %v3497_v6  ;;  %v3482_v47 = vmul.f32 0.015625, %v3462_v30 }
 0xdc2   : > { %3635 = vst.msk [vmem:[%s6333_s24 + $0x40] sm:$0xff] %vm498_vm0, %v3619_v9  ;;  %v3465_v57 = vpop.xlane.xlu0 %3464 }
 0xdc3   : > { %v3545_v10 = vadd.f32 1e-05, %v3513_v28  ;;  %v3514_v55 = vsub.f32 %v3482_v47, %v3498_v40  ;;  %v3483_v48 = vmul.f32 0.015625, %v3465_v57 }
 0xdc4   : > { %v3468_v20 = vpop.xlane.xlu1 %3467 }
 0xdc5   : > { %4682 = vrsqrt.f32 %v3545_v10  ;;  %v3546_v13 = vadd.f32 1e-05, %v3514_v55  ;;  %v3515_v2 = vsub.f32 %v3483_v48, %v3499_v46  ;;  %v3484_v5 = vmul.f32 0.015625, %v3468_v20 }
 0xdc7   : > { %4684 = vrsqrt.f32 %v3546_v13  ;;  %v3547_v56 = vadd.f32 1e-05, %v3515_v2  ;;  %v3516_v23 = vsub.f32 %v3484_v5, %v3500_v3 }
 0xdc9   : > { %4686 = vrsqrt.f32 %v3547_v56  ;;  %v3548_v26 = vadd.f32 1e-05, %v3516_v23 }
 0xdcb   : > { %4688 = vrsqrt.f32 %v3548_v26 }
 0xdcf   : > { %v4683_v24 = vpop.eup %4682 }
 0xdd0   : > { %v3577_v60 = vmul.f32 %v4683_v24, %v3529_v59 }
 0xdd1   : > { %v4685_v63 = vpop.eup %4684 }
 0xdd2   : > { %v3600_v39 = vmul.f32 %v6314_v58, %v3577_v60  ;;  %v3578_v12 = vmul.f32 %v4685_v63, %v3530_v11 }
 0xdd3   : > { %v4687_v31 = vpop.eup %4686 }
 0xdd4   : > { %v3623_v51 = vadd.f32 %v6321_v32, %v3600_v39  ;;  %v3601_v35 = vmul.f32 %v6314_v58, %v3578_v12  ;;  %v3579_v18 = vmul.f32 %v4687_v31, %v3531_v42 }
 0xdd5   : > { %v4689_v62 = vpop.eup %4688 }
 0xdd6   : > { %3639 = vst.msk [vmem:[%s6333_s24 + $0x60] sm:$0xff] %vm498_vm0, %v3623_v51  ;;  %v3624_v21 = vadd.f32 %v6321_v32, %v3601_v35  ;;  %v3602_v4 = vmul.f32 %v6314_v58, %v3579_v18  ;;  %v3580_v52 = vmul.f32 %v4689_v62, %v3532_v49 }
 0xdd8   : > { %3640 = vst.msk [vmem:[%s6333_s24 + $0x68] sm:$0xff] %vm498_vm0, %v3624_v21  ;;  %v3625_v43 = vadd.f32 %v6321_v32, %v3602_v4  ;;  %v3603_v19 = vmul.f32 %v6314_v58, %v3580_v52 }
 0xdda   : > { %3641 = vst.msk [vmem:[%s6333_s24 + $0x70] sm:$0xff] %vm498_vm0, %v3625_v43  ;;  %v3626_v14 = vadd.f32 %v6321_v32, %v3603_v19 }
 0xddc   : > { %3642 = vst.msk [vmem:[%s6333_s24 + $0x78] sm:$0xff] %vm498_vm0, %v3626_v14 }
 0xddd PF: > { %s22_s21 = sadd.s32 1, %s4712_s21  }
 0xdde   : > { %p19_p4 = scmp.ge.s32.totalorder %s22_s21, 6  }
 0xde0   :  { %21 = sbr.rel (!%p19_p4) target bundleno = 1 (0x1), region = 101 }

</bundles_post_ra>
